<compile_context>
chip_gen: v7x
topology: tpu7x:2x2x1
jax: 0.10.0
libtpu: 0.0.40
codegen_flags: <defaults>
</compile_context>

<pallas_src>
import functools
import numpy as np

import jax
import jax.numpy as jnp
from jax.experimental import pallas as pl
from jax.experimental.pallas import tpu as pltpu


S2_SIZES = (1, 2, 3, 4)          # pyramid pooling output sizes
S2P = 32                         # 1+4+9+16 = 30 pooled positions, padded to 32


def _round_up(v, m):
    return ((v + m - 1) // m) * m


def padded_width(w):
    # left pad = 1 zero column for the 3x3 conv; pad right so the padded width is
    # a multiple of 16 (bf16 sublane tile) -> aligned per-dy slab sub-slices.
    return _round_up(w + 2, 16)


# ----------------------------------------------------------------------------
# glue: linear operators for adaptive avg-pool / align_corners bilinear upsample
# ----------------------------------------------------------------------------
def _adaptive_pool_matrix_1d(in_size, out_size):
    m = np.zeros((out_size, in_size), np.float32)
    for i in range(out_size):
        start = (i * in_size) // out_size
        end = -((-(i + 1) * in_size) // out_size)
        m[i, start:end] = 1.0 / float(end - start)
    return m


def _bilinear_upsample_matrix_1d(in_size, out_size):
    m = np.zeros((out_size, in_size), np.float32)
    if in_size == 1:
        m[:, 0] = 1.0
        return m
    for o in range(out_size):
        src = o * (in_size - 1) / (out_size - 1) if out_size > 1 else 0.0
        lo = int(np.floor(src))
        hi = min(lo + 1, in_size - 1)
        frac = src - lo
        m[o, lo] += 1.0 - frac
        m[o, hi] += frac
    return m


def build_consts(h, w, cb, p):
    """Pooling matrix over the PADDED flat image, padded-width shifted-upsample
    matrix, and branch mask (all tiny)."""
    hw = h * w
    lp = (h + 2) * p
    pool_hw = np.zeros((S2P, hw), np.float32)
    u_all = np.zeros((hw, S2P), np.float32)
    mask = np.zeros((S2P, 4 * cb), np.float32)
    r0 = 0
    for s, size in enumerate(S2_SIZES):
        s2 = size * size
        pool_hw[r0:r0 + s2] = np.kron(_adaptive_pool_matrix_1d(h, size),
                                      _adaptive_pool_matrix_1d(w, size))
        u_all[:, r0:r0 + s2] = np.kron(_bilinear_upsample_matrix_1d(size, h),
                                       _bilinear_upsample_matrix_1d(size, w))
        mask[r0:r0 + s2, s * cb:(s + 1) * cb] = 1.0
        r0 += s2
    # embed pooling weights at padded NHWC-flat positions (zero over the pad ring)
    p_img = np.zeros((S2P, h + 2, p), np.float32)
    p_img[:, 1:h + 1, 1:w + 1] = pool_hw.reshape(S2P, h, w)
    p_pad = p_img.reshape(S2P, lp)
    # 9 spatially shifted (zero-padded) copies of the upsample operator (tap-major)
    # -> folds upsample + the 3x3 conv taps over the branch features into one
    # matmul inside the head kernel.  Extended to the padded-width row layout.
    u_img = u_all.reshape(h, w, S2P)
    u_zp = np.pad(u_img, ((1, 1), (1, 1), (0, 0)))
    ush = np.concatenate(
        [u_zp[dy:dy + h, dx:dx + w, :].reshape(hw, S2P)
         for dy in range(3) for dx in range(3)], axis=1)          # (HW, 9*S2P)
    ush_pad = np.pad(ush.reshape(h, w, 9 * S2P),
                     ((0, 0), (0, p - w), (0, 0))).reshape(h * p, 9 * S2P)
    return {"pool": jnp.asarray(p_pad, jnp.bfloat16),
            "ushift": jnp.asarray(ush_pad, jnp.bfloat16),
            "mask": jnp.asarray(mask)}


# ----------------------------------------------------------------------------
# Kernel A: pyramid pooling + branch 1x1 conv / BN / ReLU.
# Reads the SAME padded flat x tensor as Kernel B (pool weights are zero on the
# pad ring).  One full-image block per batch element; everything else is tiny.
# The fold into head-conv coefficients is done in XLA (keeps VMEM small, v7x ok).
# ----------------------------------------------------------------------------
def _pool_branch_kernel(x_ref, p_ref, wcat_ref, acat_ref, bcat_ref, mask_ref,
                        y_ref):
    pooled = jnp.dot(p_ref[...], x_ref[0],
                     preferred_element_type=jnp.float32)          # (S2P, Cin)
    z = jnp.dot(pooled.astype(jnp.bfloat16), wcat_ref[...],
                preferred_element_type=jnp.float32)               # (S2P, 4*Cb)
    y = jnp.maximum(z * acat_ref[...] + bcat_ref[...], 0.0) * mask_ref[...]
    y_ref[0] = y.astype(y_ref.dtype)


def pyramid_pool_branches(xflat, p_pad, wcat, acat, bcat, mask):
    n, lp, c = xflat.shape
    s2p = p_pad.shape[0]
    c4 = wcat.shape[1]
    return pl.pallas_call(
        _pool_branch_kernel,
        out_shape=jax.ShapeDtypeStruct((n, s2p, c4), jnp.bfloat16),
        grid_spec=pltpu.PrefetchScalarGridSpec(
            num_scalar_prefetch=0,
            grid=(n,),
            in_specs=[
                pl.BlockSpec((1, lp, c), lambda b: (b, 0, 0)),    # padded flat x
                pl.BlockSpec((s2p, lp), lambda b: (0, 0)),        # pool matrix
                pl.BlockSpec((c, c4), lambda b: (0, 0)),          # branch 1x1 w
                pl.BlockSpec((1, c4), lambda b: (0, 0)),          # BN scale
                pl.BlockSpec((1, c4), lambda b: (0, 0)),          # BN shift
                pl.BlockSpec((s2p, c4), lambda b: (0, 0)),        # branch mask
            ],
            out_specs=pl.BlockSpec((1, s2p, c4), lambda b: (b, 0, 0)),
        ),
        compiler_params=pltpu.CompilerParams(
            dimension_semantics=("parallel",),
            vmem_limit_bytes=32 * 1024 * 1024),
    )(xflat, p_pad, wcat, acat, bcat, mask)


# ----------------------------------------------------------------------------
# Kernel B: head 3x3 conv + BN + ReLU + 1x1 conv (+bias), computed at "padded
# width" resolution P (garbage columns j>=W are discarded outside).
#   - grid (N, row-tiles, Cin-chunks); fp32 accumulator over the channel chunks
#   - halo'd flat x slab fetched per (row-tile, chunk) with double-buffered DMA
#   - 3x3 conv = 9 per-tap accumulating dots; tap (dy,dx) is the constant row
#     offset dy*P+dx into the flat slab (dy sub-slices are vreg-row aligned)
#   - pyramid-branch contribution seeds the accumulator at k==0 (hides the
#     otherwise-exposed first slab DMA behind a real matmul)
# ----------------------------------------------------------------------------
def _head_kernel(xflat_hbm, ush_ref, m_ref, w3_ref, a_ref, b_ref, w1_ref,
                 bias_ref, o_ref, xbuf, sem, acc_ref, *, th, p, tk, tail):
    b = pl.program_id(0)
    r = pl.program_id(1)
    k = pl.program_id(2)
    nk = pl.num_programs(2)
    slab = (th + 2) * p                    # rows of the halo'd, flattened slab

    def issue(chunk, slot):
        pltpu.make_async_copy(
            xflat_hbm.at[b, pl.ds(r * (th * p), slab), pl.ds(chunk * tk, tk)],
            xbuf.at[slot, pl.ds(0, slab), :],
            sem.at[slot]).start()

    @pl.when(k == 0)
    def _():
        # the dx=1,2 taps of the (discarded) rightmost output columns peek <=2
        # rows past the slab: keep that tail deterministic zeros.
        xbuf[0, pl.ds(slab, tail), :] = jnp.zeros((tail, tk), xbuf.dtype)
        xbuf[1, pl.ds(slab, tail), :] = jnp.zeros((tail, tk), xbuf.dtype)
        issue(0, 0)
        # seed the accumulator with the pyramid-branch contribution; this matmul
        # overlaps the first slab DMA of the row tile.
        acc_ref[...] = jnp.dot(ush_ref[...], m_ref[0],
                               preferred_element_type=jnp.float32)

    @pl.when(k + 1 < nk)
    def _():
        issue(k + 1, (k + 1) % 2)          # double-buffered prefetch of next chunk

    slot = k % 2
    pltpu.make_async_copy(
        xflat_hbm.at[b, pl.ds(r * (th * p), slab), pl.ds(k * tk, tk)],
        xbuf.at[slot, pl.ds(0, slab), :],
        sem.at[slot]).wait()

    # 3x3 conv as 9 per-tap dots on the flat slab.  dx picks one shifted view of
    # the slab (misaligned only for dx=1,2); dy sub-slices it at aligned offsets.
    for dx in range(3):
        sl = xbuf[slot, pl.ds(dx, slab), :]                       # (slab, tk)
        for dy in range(3):
            tap = sl[dy * p:dy * p + th * p, :]                   # (th*P, tk)
            acc_ref[...] += jnp.dot(tap, w3_ref[0, 3 * dy + dx],
                                    preferred_element_type=jnp.float32)

    @pl.when(k == nk - 1)
    def _():
        y = jnp.maximum(acc_ref[...] * a_ref[...] + b_ref[...], 0.0)
        # TODO(synk): Dropout(0.1) is modeled in eval mode (identity).
        out = jnp.dot(y.astype(jnp.bfloat16), w1_ref[...],
                      preferred_element_type=jnp.float32) + bias_ref[...]
        o_ref[0] = out.astype(o_ref.dtype)                        # bf16, lane-dense


def head_conv(xflat, ush_pad, mstack, w3x_kt, a3, b3, w1p, biasp,
              *, h, w, p, th, tk):
    n, lp, c = xflat.shape
    assert lp == (h + 2) * p
    assert h % th == 0 and c % tk == 0 and p % 16 == 0 and p >= w + 2
    cmid = w3x_kt.shape[-1]
    npad = w1p.shape[-1]
    s2p9 = ush_pad.shape[-1]
    nr, nk = h // th, c // tk
    slab = (th + 2) * p
    tail = 16
    kernel = functools.partial(_head_kernel, th=th, p=p, tk=tk, tail=tail)
    return pl.pallas_call(
        kernel,
        out_shape=jax.ShapeDtypeStruct((n, h * p, npad), jnp.bfloat16),
        grid_spec=pltpu.PrefetchScalarGridSpec(
            num_scalar_prefetch=0,
            grid=(n, nr, nk),
            in_specs=[
                pl.BlockSpec(memory_space=pl.ANY),                        # x (HBM)
                pl.BlockSpec((th * p, s2p9), lambda b, r, k: (r, 0)),     # U_shift
                pl.BlockSpec((1, s2p9, cmid), lambda b, r, k: (b, 0, 0)),  # Mstack
                pl.BlockSpec((1, 9, tk, cmid), lambda b, r, k: (k, 0, 0, 0)),
                pl.BlockSpec((1, cmid), lambda b, r, k: (0, 0)),          # BN a
                pl.BlockSpec((1, cmid), lambda b, r, k: (0, 0)),          # BN b
                pl.BlockSpec((cmid, npad), lambda b, r, k: (0, 0)),       # 1x1 w
                pl.BlockSpec((1, npad), lambda b, r, k: (0, 0)),          # bias
            ],
            out_specs=pl.BlockSpec((1, th * p, npad), lambda b, r, k: (b, r, 0)),
            scratch_shapes=[
                pltpu.VMEM((2, slab + tail, tk), jnp.bfloat16),
                pltpu.SemaphoreType.DMA((2,)),
                pltpu.VMEM((th * p, cmid), jnp.float32),
            ],
        ),
        compiler_params=pltpu.CompilerParams(
            dimension_semantics=("parallel", "parallel", "arbitrary"),
            # conservative budget so the same code fits v7x's smaller VMEM
            vmem_limit_bytes=32 * 1024 * 1024),
    )(xflat, ush_pad, mstack, w3x_kt, a3, b3, w1p, biasp)


# ----------------------------------------------------------------------------
# parameter setup (deterministic synthetic weights; PyTorch layouts transposed)
# ----------------------------------------------------------------------------
def init_params(key, in_channels, mid_channels, nclass, eps=1e-5):
    cb = in_channels // 4
    cin2 = 2 * in_channels
    keys = iter(jax.random.split(key, 64))

    def bn_fold(cout):
        gamma = 1.0 + 0.1 * jax.random.normal(next(keys), (cout,), jnp.float32)
        beta = 0.1 * jax.random.normal(next(keys), (cout,), jnp.float32)
        mean = 0.1 * jax.random.normal(next(keys), (cout,), jnp.float32)
        var = jnp.abs(1.0 + 0.1 * jax.random.normal(next(keys), (cout,), jnp.float32))
        a = gamma / jnp.sqrt(var + eps)
        b = beta - mean * a
        return a, b

    ws, aas, bbs = [], [], []
    for _ in range(4):
        w_pt = 0.05 * jax.random.normal(next(keys), (cb, in_channels, 1, 1), jnp.float32)
        a, b = bn_fold(cb)
        ws.append(jnp.transpose(w_pt[:, :, 0, 0], (1, 0)))     # (Cin, Cb)
        aas.append(a)
        bbs.append(b)
    psp = {"w": jnp.stack(ws), "a": jnp.stack(aas), "b": jnp.stack(bbs)}

    w3_pt = 0.05 * jax.random.normal(next(keys), (mid_channels, cin2, 3, 3), jnp.float32)
    a3, b3 = bn_fold(mid_channels)
    w1_pt = 0.05 * jax.random.normal(next(keys), (nclass, mid_channels, 1, 1), jnp.float32)
    bias = 0.05 * jax.random.normal(next(keys), (nclass,), jnp.float32)
    head = {"w3": jnp.transpose(w3_pt, (2, 3, 1, 0)),          # (3,3,2Cin,Cmid)
            "a": a3.reshape(1, mid_channels), "b": b3.reshape(1, mid_channels),
            "w1": jnp.transpose(w1_pt[:, :, 0, 0], (1, 0)),     # (Cmid, nclass)
            "bias": bias}
    return {"psp": psp, "head": head}


# ----------------------------------------------------------------------------
# full forward (NCHW in -> NCHW out); parameters packed for the kernels (glue)
# ----------------------------------------------------------------------------
def psp_head_forward(x_nchw, params, consts, *, th=16, tk=128):
    n, c, h, w = x_nchw.shape
    cb = c // 4
    pp, hd = params["psp"], params["head"]
    cmid = hd["a"].shape[-1]
    nclass = hd["bias"].shape[-1]
    npad = _round_up(nclass, 128)
    p = padded_width(w)
    nk = c // tk

    # the single HBM copy of x read by BOTH kernels: zero-padded channels-last
    x_nhwc = jnp.transpose(x_nchw, (0, 2, 3, 1))
    xpad = jnp.pad(x_nhwc, ((0, 0), (1, 1), (1, p - 1 - w), (0, 0))).astype(jnp.bfloat16)
    xflat = xpad.reshape(n, (h + 2) * p, c)            # layout-preserving reshape

    # branch conv weights packed side by side (column block s == branch s)
    wcat = jnp.transpose(pp["w"], (1, 0, 2)).reshape(c, 4 * cb).astype(jnp.bfloat16)
    acat = pp["a"].reshape(1, 4 * cb)
    bcat = pp["b"].reshape(1, 4 * cb)

    # split 3x3 conv weight into the x part and the pyramid-features part
    w3 = hd["w3"]                                               # (3,3,2C,Cmid)
    w3x = w3[:, :, :c, :].reshape(9, c, cmid)
    w3x_kt = (w3x.reshape(9, nk, tk, cmid)
              .transpose(1, 0, 2, 3)).astype(jnp.bfloat16)       # (nk,9,tk,Cmid)
    w3f = w3[:, :, c:, :].reshape(9, 4 * cb, cmid).astype(jnp.bfloat16)

    w1p = jnp.pad(hd["w1"], ((0, 0), (0, npad - nclass))).astype(jnp.bfloat16)
    biasp = jnp.pad(hd["bias"], (0, npad - nclass)).reshape(1, npad)

    # Kernel A: pooled + branch-conv features (tiny, per image)
    ybr = pyramid_pool_branches(xflat, consts["pool"], wcat, acat, bcat,
                                consts["mask"])                  # (n, S2P, 4Cb)
    # tiny per-image fold into head-conv coefficients (XLA; keeps Kernel A small)
    mstack = jnp.einsum("bsc,tcm->btsm", ybr, w3f,
                        preferred_element_type=jnp.float32)
    mstack = mstack.reshape(n, 9 * S2P, cmid).astype(jnp.bfloat16)

    # Kernel B: head conv at padded-width resolution
    out = head_conv(xflat, consts["ushift"], mstack, w3x_kt,
                    hd["a"], hd["b"], w1p, biasp, h=h, w=w, p=p, th=th, tk=tk)
    out = out.reshape(n, h, p, npad)[:, :, :w, :nclass].astype(jnp.float32)
    return jnp.transpose(out, (0, 3, 1, 2))


# pure-JAX fp32 reference with PyTorch semantics (for the numeric check)
def reference_forward(x_nchw, params):
    n, c, h, w = x_nchw.shape
    pp, hd = params["psp"], params["head"]
    x_flat = jnp.transpose(x_nchw, (0, 2, 3, 1)).reshape(n, h * w, c)
    feats = [x_flat]
    for s, size in enumerate(S2_SIZES):
        pm = jnp.asarray(np.kron(_adaptive_pool_matrix_1d(h, size),
                                 _adaptive_pool_matrix_1d(w, size)))
        um = jnp.asarray(np.kron(_bilinear_upsample_matrix_1d(size, h),
                                 _bilinear_upsample_matrix_1d(size, w)))
        pooled = jnp.einsum("sp,npc->nsc", pm, x_flat)
        y = jnp.maximum(pooled @ pp["w"][s] * pp["a"][s] + pp["b"][s], 0.0)
        feats.append(jnp.einsum("ps,nsc->npc", um, y))
    xcat = jnp.concatenate(feats, -1).reshape(n, h, w, 2 * c)
    xpad = jnp.pad(xcat, ((0, 0), (1, 1), (1, 1), (0, 0)))
    cmid = hd["a"].shape[-1]
    acc = jnp.zeros((n, h * w, cmid), jnp.float32)
    for dy in range(3):
        for dx in range(3):
            patch = xpad[:, dy:dy + h, dx:dx + w, :].reshape(n, h * w, 2 * c)
            acc = acc + patch @ hd["w3"][dy, dx]
    y = jnp.maximum(acc * hd["a"] + hd["b"], 0.0)
    out = y @ hd["w1"] + hd["bias"]
    return jnp.transpose(out.reshape(n, h, w, -1), (0, 3, 1, 2))


if __name__ == "__main__":
    # Real _PSPHead is in=2048 (concat 4096), mid=512, H=W~60; scaled-down demo
    # with the same structure.  W chosen so the padded width (W+2 -> 32) is a
    # multiple of the bf16 sublane tile.
    N, C, H, W = 2, 128, 32, 30
    MID, NCLASS = 128, 6

    key = jax.random.PRNGKey(0)
    kx, kp = jax.random.split(key)
    x = jax.random.normal(kx, (N, C, H, W), jnp.float32)
    params = init_params(kp, C, MID, NCLASS)
    consts = build_consts(H, W, C // 4, padded_width(W))

    fwd = jax.jit(functools.partial(psp_head_forward, th=16, tk=128))
    out = jax.block_until_ready(fwd(x, params, consts))

    assert out.shape == (N, NCLASS, H, W), out.shape
    ref = reference_forward(x, params)
    np.testing.assert_allclose(np.asarray(out), np.asarray(ref),
                               rtol=5e-2, atol=5e-2)
    print("KERNEL_OK")
</pallas_src>

<mosaic_0001>
module attributes {stable_mosaic.version = 11 : i64} {
  func.func @_pool_branch_kernel(%arg0: i32, %arg1: memref<1x1088x128xbf16, #tpu.memory_space<vmem>>, %arg2: memref<32x1088xbf16, #tpu.memory_space<vmem>>, %arg3: memref<128x128xbf16, #tpu.memory_space<vmem>>, %arg4: memref<1x128xf32, #tpu.memory_space<vmem>>, %arg5: memref<1x128xf32, #tpu.memory_space<vmem>>, %arg6: memref<32x128xf32, #tpu.memory_space<vmem>>, %arg7: memref<1x32x128xbf16, #tpu.memory_space<vmem>>) attributes {dimension_semantics = [#tpu.dimension_semantics<parallel>], iteration_bounds = array<i64: 2>, scalar_prefetch = 0 : i64, scratch_operands = 0 : i64, tpu.core_type = #tpu.core_type<tc>, window_params = [{transform_indices = @transform_0, window_bounds = array<i64: 1, 1088, 128>}, {pipeline_mode = #tpu.pipeline_mode<synchronous>, transform_indices = @transform_1, window_bounds = array<i64: 32, 1088>}, {pipeline_mode = #tpu.pipeline_mode<synchronous>, transform_indices = @transform_2, window_bounds = array<i64: 128, 128>}, {pipeline_mode = #tpu.pipeline_mode<synchronous>, transform_indices = @transform_3, window_bounds = array<i64: 1, 128>}, {pipeline_mode = #tpu.pipeline_mode<synchronous>, transform_indices = @transform_4, window_bounds = array<i64: 1, 128>}, {pipeline_mode = #tpu.pipeline_mode<synchronous>, transform_indices = @transform_5, window_bounds = array<i64: 32, 128>}, {transform_indices = @transform_6, window_bounds = array<i64: 1, 32, 128>}]} {
    %c0 = arith.constant 0 : index
    %c0_0 = arith.constant 0 : index
    %0 = vector.load %arg2[%c0, %c0_0] : memref<32x1088xbf16, #tpu.memory_space<vmem>>, vector<32x1088xbf16>
    %c0_1 = arith.constant 0 : index
    %c0_2 = arith.constant 0 : index
    %c0_3 = arith.constant 0 : index
    %1 = vector.load %arg1[%c0_1, %c0_2, %c0_3] : memref<1x1088x128xbf16, #tpu.memory_space<vmem>>, vector<1x1088x128xbf16>
    %2 = vector.shape_cast %1 : vector<1x1088x128xbf16> to vector<1088x128xbf16>
    %cst = arith.constant dense<0.000000e+00> : vector<32x128xf32>
    %3 = tpu.matmul %0, %2, %cst {dimension_numbers = #tpu.dot_dimension_numbers<[1], [0], [0], [1], [0, 0, 1, 1], [], []>} : vector<32x1088xbf16>, vector<1088x128xbf16>, vector<32x128xf32> -> vector<32x128xf32>
    %4 = arith.truncf %3 : vector<32x128xf32> to vector<32x128xbf16>
    %c0_4 = arith.constant 0 : index
    %c0_5 = arith.constant 0 : index
    %5 = vector.load %arg3[%c0_4, %c0_5] : memref<128x128xbf16, #tpu.memory_space<vmem>>, vector<128x128xbf16>
    %cst_6 = arith.constant dense<0.000000e+00> : vector<32x128xf32>
    %6 = tpu.matmul %4, %5, %cst_6 {dimension_numbers = #tpu.dot_dimension_numbers<[1], [0], [0], [1], [0, 0, 1, 1], [], []>} : vector<32x128xbf16>, vector<128x128xbf16>, vector<32x128xf32> -> vector<32x128xf32>
    %c0_7 = arith.constant 0 : index
    %c0_8 = arith.constant 0 : index
    %7 = vector.load %arg4[%c0_7, %c0_8] : memref<1x128xf32, #tpu.memory_space<vmem>>, vector<1x128xf32>
    %8 = vector.broadcast %7 : vector<1x128xf32> to vector<32x128xf32>
    %9 = arith.mulf %6, %8 : vector<32x128xf32>
    %c0_9 = arith.constant 0 : index
    %c0_10 = arith.constant 0 : index
    %10 = vector.load %arg5[%c0_9, %c0_10] : memref<1x128xf32, #tpu.memory_space<vmem>>, vector<1x128xf32>
    %11 = vector.broadcast %10 : vector<1x128xf32> to vector<32x128xf32>
    %12 = arith.addf %9, %11 : vector<32x128xf32>
    %cst_11 = arith.constant 0.000000e+00 : f32
    %13 = vector.broadcast %cst_11 : f32 to vector<32x128xf32>
    %14 = arith.maximumf %12, %13 : vector<32x128xf32>
    %c0_12 = arith.constant 0 : index
    %c0_13 = arith.constant 0 : index
    %15 = vector.load %arg6[%c0_12, %c0_13] : memref<32x128xf32, #tpu.memory_space<vmem>>, vector<32x128xf32>
    %16 = arith.mulf %14, %15 : vector<32x128xf32>
    %17 = arith.truncf %16 : vector<32x128xf32> to vector<32x128xbf16>
    %c0_14 = arith.constant 0 : index
    %c0_15 = arith.constant 0 : index
    %c0_16 = arith.constant 0 : index
    %18 = vector.load %arg7[%c0_14, %c0_15, %c0_16] : memref<1x32x128xbf16, #tpu.memory_space<vmem>>, vector<1x32x128xbf16>
    %19 = vector.shape_cast %18 : vector<1x32x128xbf16> to vector<32x128xbf16>
    %20 = vector.shape_cast %17 : vector<32x128xbf16> to vector<1x32x128xbf16>
    tpu.vector_store %arg7[%c0_14, %c0_15, %c0_16], %20 {strides = array<i32>} : memref<1x32x128xbf16, #tpu.memory_space<vmem>>, vector<1x32x128xbf16>,
    return
  }
  func.func @transform_0(%arg0: i32) -> (i32, i32, i32) {
    %c0_i32 = arith.constant 0 : i32
    %c0_i32_0 = arith.constant 0 : i32
    %c0_i32_1 = arith.constant 0 : i32
    return %arg0, %c0_i32, %c0_i32_0 : i32, i32, i32
  }
  func.func @transform_1(%arg0: i32) -> (i32, i32) {
    %c0_i32 = arith.constant 0 : i32
    %c0_i32_0 = arith.constant 0 : i32
    %c0_i32_1 = arith.constant 0 : i32
    return %c0_i32, %c0_i32_0 : i32, i32
  }
  func.func @transform_2(%arg0: i32) -> (i32, i32) {
    %c0_i32 = arith.constant 0 : i32
    %c0_i32_0 = arith.constant 0 : i32
    %c0_i32_1 = arith.constant 0 : i32
    return %c0_i32, %c0_i32_0 : i32, i32
  }
  func.func @transform_3(%arg0: i32) -> (i32, i32) {
    %c0_i32 = arith.constant 0 : i32
    %c0_i32_0 = arith.constant 0 : i32
    %c0_i32_1 = arith.constant 0 : i32
    return %c0_i32, %c0_i32_0 : i32, i32
  }
  func.func @transform_4(%arg0: i32) -> (i32, i32) {
    %c0_i32 = arith.constant 0 : i32
    %c0_i32_0 = arith.constant 0 : i32
    %c0_i32_1 = arith.constant 0 : i32
    return %c0_i32, %c0_i32_0 : i32, i32
  }
  func.func @transform_5(%arg0: i32) -> (i32, i32) {
    %c0_i32 = arith.constant 0 : i32
    %c0_i32_0 = arith.constant 0 : i32
    %c0_i32_1 = arith.constant 0 : i32
    return %c0_i32, %c0_i32_0 : i32, i32
  }
  func.func @transform_6(%arg0: i32) -> (i32, i32, i32) {
    %c0_i32 = arith.constant 0 : i32
    %c0_i32_0 = arith.constant 0 : i32
    %c0_i32_1 = arith.constant 0 : i32
    return %arg0, %c0_i32, %c0_i32_0 : i32, i32, i32
  }
}

module attributes {stable_mosaic.version = 11 : i64} {
  func.func @_head_kernel(%arg0: i32, %arg1: i32, %arg2: i32, %arg3: memref<2x1088x128xbf16, #tpu.memory_space<any>>, %arg4: memref<512x288xbf16, #tpu.memory_space<vmem>>, %arg5: memref<1x288x128xbf16, #tpu.memory_space<vmem>>, %arg6: memref<1x9x128x128xbf16, #tpu.memory_space<vmem>>, %arg7: memref<1x128xf32, #tpu.memory_space<vmem>>, %arg8: memref<1x128xf32, #tpu.memory_space<vmem>>, %arg9: memref<128x128xbf16, #tpu.memory_space<vmem>>, %arg10: memref<1x128xf32, #tpu.memory_space<vmem>>, %arg11: memref<1x512x128xbf16, #tpu.memory_space<vmem>>, %arg12: memref<2x592x128xbf16, #tpu.memory_space<vmem>>, %arg13: memref<2x!tpu.dma_semaphore, #tpu.memory_space<semaphore_mem>>, %arg14: memref<512x128xf32, #tpu.memory_space<vmem>>) attributes {dimension_semantics = [#tpu.dimension_semantics<parallel>, #tpu.dimension_semantics<parallel>, #tpu.dimension_semantics<arbitrary>], iteration_bounds = array<i64: 2, 2, 1>, scalar_prefetch = 0 : i64, scratch_operands = 3 : i64, tpu.core_type = #tpu.core_type<tc>, window_params = [{}, {transform_indices = @transform_1, window_bounds = array<i64: 512, 288>}, {transform_indices = @transform_2, window_bounds = array<i64: 1, 288, 128>}, {transform_indices = @transform_3, window_bounds = array<i64: 1, 9, 128, 128>}, {pipeline_mode = #tpu.pipeline_mode<synchronous>, transform_indices = @transform_4, window_bounds = array<i64: 1, 128>}, {pipeline_mode = #tpu.pipeline_mode<synchronous>, transform_indices = @transform_5, window_bounds = array<i64: 1, 128>}, {pipeline_mode = #tpu.pipeline_mode<synchronous>, transform_indices = @transform_6, window_bounds = array<i64: 128, 128>}, {pipeline_mode = #tpu.pipeline_mode<synchronous>, transform_indices = @transform_7, window_bounds = array<i64: 1, 128>}, {transform_indices = @transform_8, window_bounds = array<i64: 1, 512, 128>}]} {
    %c0_i32 = arith.constant 0 : i32
    %0 = arith.cmpi eq, %arg2, %c0_i32 : i32
    %1 = arith.extui %0 : i1 to i32
    %c0_i32_0 = arith.constant 0 : i32
    %2 = arith.cmpi ne, %1, %c0_i32_0 : i32
    scf.if %2 {
      %cst_89 = arith.constant 0.000000e+00 : bf16
      %100 = vector.broadcast %cst_89 : bf16 to vector<16x128xbf16>
      %c0_90 = arith.constant 0 : index
      %c576 = arith.constant 576 : index
      %c0_91 = arith.constant 0 : index
      %101 = vector.load %arg12[%c0_90, %c576, %c0_91] : memref<2x592x128xbf16, #tpu.memory_space<vmem>>, vector<1x16x128xbf16>
      %102 = vector.shape_cast %101 : vector<1x16x128xbf16> to vector<16x128xbf16>
      %103 = vector.shape_cast %100 : vector<16x128xbf16> to vector<1x16x128xbf16>
      tpu.vector_store %arg12[%c0_90, %c576, %c0_91], %103 {strides = array<i32>} : memref<2x592x128xbf16, #tpu.memory_space<vmem>>, vector<1x16x128xbf16>,
      %cst_92 = arith.constant 0.000000e+00 : bf16
      %104 = vector.broadcast %cst_92 : bf16 to vector<16x128xbf16>
      %c1_93 = arith.constant 1 : index
      %c576_94 = arith.constant 576 : index
      %c0_95 = arith.constant 0 : index
      %105 = vector.load %arg12[%c1_93, %c576_94, %c0_95] : memref<2x592x128xbf16, #tpu.memory_space<vmem>>, vector<1x16x128xbf16>
      %106 = vector.shape_cast %105 : vector<1x16x128xbf16> to vector<16x128xbf16>
      %107 = vector.shape_cast %104 : vector<16x128xbf16> to vector<1x16x128xbf16>
      tpu.vector_store %arg12[%c1_93, %c576_94, %c0_95], %107 {strides = array<i32>} : memref<2x592x128xbf16, #tpu.memory_space<vmem>>, vector<1x16x128xbf16>,
      %c512_i32_96 = arith.constant 512 : i32
      %108 = arith.muli %arg1, %c512_i32_96 : i32
      %c0_i32_97 = arith.constant 0 : i32
      %c0_i32_98 = arith.constant 0 : i32
      %c0_i32_99 = arith.constant 0 : i32
      %109 = tpu.memref_slice %arg3[%arg0, %108, %c0_i32_99] : memref<2x1088x128xbf16, #tpu.memory_space<any>> -> memref<1x576x128xbf16, #tpu.memory_space<any>>
      %110 = tpu.memref_squeeze %109 : memref<1x576x128xbf16, #tpu.memory_space<any>> -> memref<576x128xbf16, #tpu.memory_space<any>>
      %c0_i32_100 = arith.constant 0 : i32
      %c0_i32_101 = arith.constant 0 : i32
      %111 = tpu.memref_slice %arg12[%c0_i32_97, %c0_i32_100, %c0_i32_101] : memref<2x592x128xbf16, #tpu.memory_space<vmem>> -> memref<1x576x128xbf16, #tpu.memory_space<vmem>>
      %112 = tpu.memref_squeeze %111 : memref<1x576x128xbf16, #tpu.memory_space<vmem>> -> memref<576x128xbf16, #tpu.memory_space<vmem>>
      %113 = tpu.memref_slice %arg13[%c0_i32_98] : memref<2x!tpu.dma_semaphore, #tpu.memory_space<semaphore_mem>> -> memref<1x!tpu.dma_semaphore, #tpu.memory_space<semaphore_mem>>
      %114 = tpu.memref_squeeze %113 : memref<1x!tpu.dma_semaphore, #tpu.memory_space<semaphore_mem>> -> memref<!tpu.dma_semaphore, #tpu.memory_space<semaphore_mem>>
      tpu.enqueue_dma source(%110 : memref<576x128xbf16, #tpu.memory_space<any>>) target(%112 : memref<576x128xbf16, #tpu.memory_space<vmem>>) target_semaphore(%114 : memref<!tpu.dma_semaphore, #tpu.memory_space<semaphore_mem>>)
      %c0_102 = arith.constant 0 : index
      %c0_103 = arith.constant 0 : index
      %115 = vector.load %arg4[%c0_102, %c0_103] : memref<512x288xbf16, #tpu.memory_space<vmem>>, vector<512x288xbf16>
      %c0_104 = arith.constant 0 : index
      %c0_105 = arith.constant 0 : index
      %c0_106 = arith.constant 0 : index
      %116 = vector.load %arg5[%c0_104, %c0_105, %c0_106] : memref<1x288x128xbf16, #tpu.memory_space<vmem>>, vector<1x288x128xbf16>
      %117 = vector.shape_cast %116 : vector<1x288x128xbf16> to vector<288x128xbf16>
      %cst_107 = arith.constant dense<0.000000e+00> : vector<512x128xf32>
      %118 = tpu.matmul %115, %117, %cst_107 {dimension_numbers = #tpu.dot_dimension_numbers<[1], [0], [0], [1], [0, 0, 1, 1], [], []>} : vector<512x288xbf16>, vector<288x128xbf16>, vector<512x128xf32> -> vector<512x128xf32>
      %c0_108 = arith.constant 0 : index
      %c0_109 = arith.constant 0 : index
      %119 = vector.load %arg14[%c0_108, %c0_109] : memref<512x128xf32, #tpu.memory_space<vmem>>, vector<512x128xf32>
      tpu.vector_store %arg14[%c0_108, %c0_109], %118 {strides = array<i32>} : memref<512x128xf32, #tpu.memory_space<vmem>>, vector<512x128xf32>,
    } else {
    }
    %c1_i32 = arith.constant 1 : i32
    %3 = arith.addi %arg2, %c1_i32 : i32
    %c1_i32_1 = arith.constant 1 : i32
    %4 = arith.cmpi slt, %3, %c1_i32_1 : i32
    %5 = arith.extui %4 : i1 to i32
    %c0_i32_2 = arith.constant 0 : i32
    %6 = arith.cmpi ne, %5, %c0_i32_2 : i32
    scf.if %6 {
      %c1_i32_89 = arith.constant 1 : i32
      %100 = arith.addi %arg2, %c1_i32_89 : i32
      %c1_i32_90 = arith.constant 1 : i32
      %101 = arith.addi %arg2, %c1_i32_90 : i32
      %c2_i32_91 = arith.constant 2 : i32
      %c0_i32_92 = arith.constant 0 : i32
      %102 = arith.cmpi eq, %c2_i32_91, %c0_i32_92 : i32
      %c1_i32_93 = arith.constant 1 : i32
      %103 = arith.select %102, %c1_i32_93, %c2_i32_91 : i32
      %104 = arith.remsi %101, %103 : i32
      %c0_i32_94 = arith.constant 0 : i32
      %105 = arith.cmpi ne, %104, %c0_i32_94 : i32
      %c0_i32_95 = arith.constant 0 : i32
      %106 = arith.cmpi slt, %104, %c0_i32_95 : i32
      %c0_i32_96 = arith.constant 0 : i32
      %107 = arith.cmpi slt, %103, %c0_i32_96 : i32
      %108 = arith.xori %106, %107 : i1
      %109 = arith.andi %108, %105 : i1
      %110 = arith.addi %104, %103 : i32
      %111 = arith.select %109, %110, %104 : i32
      %c512_i32_97 = arith.constant 512 : i32
      %112 = arith.muli %arg1, %c512_i32_97 : i32
      %c128_i32_98 = arith.constant 128 : i32
      %113 = arith.muli %100, %c128_i32_98 : i32
      %114 = tpu.memref_slice %arg3[%arg0, %112, %113] : memref<2x1088x128xbf16, #tpu.memory_space<any>> -> memref<1x576x128xbf16, #tpu.memory_space<any>>
      %115 = tpu.memref_squeeze %114 : memref<1x576x128xbf16, #tpu.memory_space<any>> -> memref<576x128xbf16, #tpu.memory_space<any>>
      %c0_i32_99 = arith.constant 0 : i32
      %c0_i32_100 = arith.constant 0 : i32
      %116 = tpu.memref_slice %arg12[%111, %c0_i32_99, %c0_i32_100] : memref<2x592x128xbf16, #tpu.memory_space<vmem>> -> memref<1x576x128xbf16, #tpu.memory_space<vmem>>
      %117 = tpu.memref_squeeze %116 : memref<1x576x128xbf16, #tpu.memory_space<vmem>> -> memref<576x128xbf16, #tpu.memory_space<vmem>>
      %118 = tpu.memref_slice %arg13[%111] : memref<2x!tpu.dma_semaphore, #tpu.memory_space<semaphore_mem>> -> memref<1x!tpu.dma_semaphore, #tpu.memory_space<semaphore_mem>>
      %119 = tpu.memref_squeeze %118 : memref<1x!tpu.dma_semaphore, #tpu.memory_space<semaphore_mem>> -> memref<!tpu.dma_semaphore, #tpu.memory_space<semaphore_mem>>
      tpu.enqueue_dma source(%115 : memref<576x128xbf16, #tpu.memory_space<any>>) target(%117 : memref<576x128xbf16, #tpu.memory_space<vmem>>) target_semaphore(%119 : memref<!tpu.dma_semaphore, #tpu.memory_space<semaphore_mem>>)
    } else {
    }
    %c2_i32 = arith.constant 2 : i32
    %c0_i32_3 = arith.constant 0 : i32
    %7 = arith.cmpi eq, %c2_i32, %c0_i32_3 : i32
    %c1_i32_4 = arith.constant 1 : i32
    %8 = arith.select %7, %c1_i32_4, %c2_i32 : i32
    %9 = arith.remsi %arg2, %8 : i32
    %c0_i32_5 = arith.constant 0 : i32
    %10 = arith.cmpi ne, %9, %c0_i32_5 : i32
    %c0_i32_6 = arith.constant 0 : i32
    %11 = arith.cmpi slt, %9, %c0_i32_6 : i32
    %c0_i32_7 = arith.constant 0 : i32
    %12 = arith.cmpi slt, %8, %c0_i32_7 : i32
    %13 = arith.xori %11, %12 : i1
    %14 = arith.andi %13, %10 : i1
    %15 = arith.addi %9, %8 : i32
    %16 = arith.select %14, %15, %9 : i32
    %c512_i32 = arith.constant 512 : i32
    %17 = arith.muli %arg1, %c512_i32 : i32
    %c128_i32 = arith.constant 128 : i32
    %18 = arith.muli %arg2, %c128_i32 : i32
    %19 = tpu.memref_slice %arg3[%arg0, %17, %18] : memref<2x1088x128xbf16, #tpu.memory_space<any>> -> memref<1x576x128xbf16, #tpu.memory_space<any>>
    %20 = tpu.memref_squeeze %19 : memref<1x576x128xbf16, #tpu.memory_space<any>> -> memref<576x128xbf16, #tpu.memory_space<any>>
    %c0_i32_8 = arith.constant 0 : i32
    %c0_i32_9 = arith.constant 0 : i32
    %21 = tpu.memref_slice %arg12[%16, %c0_i32_8, %c0_i32_9] : memref<2x592x128xbf16, #tpu.memory_space<vmem>> -> memref<1x576x128xbf16, #tpu.memory_space<vmem>>
    %22 = tpu.memref_squeeze %21 : memref<1x576x128xbf16, #tpu.memory_space<vmem>> -> memref<576x128xbf16, #tpu.memory_space<vmem>>
    %23 = tpu.memref_slice %arg13[%16] : memref<2x!tpu.dma_semaphore, #tpu.memory_space<semaphore_mem>> -> memref<1x!tpu.dma_semaphore, #tpu.memory_space<semaphore_mem>>
    %24 = tpu.memref_squeeze %23 : memref<1x!tpu.dma_semaphore, #tpu.memory_space<semaphore_mem>> -> memref<!tpu.dma_semaphore, #tpu.memory_space<semaphore_mem>>
    tpu.wait_dma2 semaphore(%24 : memref<!tpu.dma_semaphore, #tpu.memory_space<semaphore_mem>>) src(%20 : memref<576x128xbf16, #tpu.memory_space<any>>) dst(%22 : memref<576x128xbf16, #tpu.memory_space<vmem>>)
    %25 = arith.index_cast %16 : i32 to index
    %c0 = arith.constant 0 : index
    %c0_10 = arith.constant 0 : index
    %26 = vector.load %arg12[%25, %c0, %c0_10] : memref<2x592x128xbf16, #tpu.memory_space<vmem>>, vector<1x576x128xbf16>
    %27 = vector.shape_cast %26 : vector<1x576x128xbf16> to vector<576x128xbf16>
    %28 = vector.extract_strided_slice %27 {offsets = [0, 0], sizes = [512, 128], strides = [1, 1]} : vector<576x128xbf16> to vector<512x128xbf16>
    %c0_11 = arith.constant 0 : index
    %c0_12 = arith.constant 0 : index
    %29 = vector.load %arg14[%c0_11, %c0_12] : memref<512x128xf32, #tpu.memory_space<vmem>>, vector<512x128xf32>
    %c0_13 = arith.constant 0 : index
    %c0_14 = arith.constant 0 : index
    %c0_15 = arith.constant 0 : index
    %c0_16 = arith.constant 0 : index
    %30 = vector.load %arg6[%c0_13, %c0_14, %c0_15, %c0_16] : memref<1x9x128x128xbf16, #tpu.memory_space<vmem>>, vector<1x1x128x128xbf16>
    %31 = vector.shape_cast %30 : vector<1x1x128x128xbf16> to vector<128x128xbf16>
    %cst = arith.constant dense<0.000000e+00> : vector<512x128xf32>
    %32 = tpu.matmul %28, %31, %cst {dimension_numbers = #tpu.dot_dimension_numbers<[1], [0], [0], [1], [0, 0, 1, 1], [], []>} : vector<512x128xbf16>, vector<128x128xbf16>, vector<512x128xf32> -> vector<512x128xf32>
    %33 = arith.addf %29, %32 : vector<512x128xf32>
    %c0_17 = arith.constant 0 : index
    %c0_18 = arith.constant 0 : index
    %34 = vector.load %arg14[%c0_17, %c0_18] : memref<512x128xf32, #tpu.memory_space<vmem>>, vector<512x128xf32>
    tpu.vector_store %arg14[%c0_17, %c0_18], %33 {strides = array<i32>} : memref<512x128xf32, #tpu.memory_space<vmem>>, vector<512x128xf32>,
    %35 = vector.extract_strided_slice %27 {offsets = [32, 0], sizes = [512, 128], strides = [1, 1]} : vector<576x128xbf16> to vector<512x128xbf16>
    %c0_19 = arith.constant 0 : index
    %c0_20 = arith.constant 0 : index
    %36 = vector.load %arg14[%c0_19, %c0_20] : memref<512x128xf32, #tpu.memory_space<vmem>>, vector<512x128xf32>
    %c0_21 = arith.constant 0 : index
    %c3 = arith.constant 3 : index
    %c0_22 = arith.constant 0 : index
    %c0_23 = arith.constant 0 : index
    %37 = vector.load %arg6[%c0_21, %c3, %c0_22, %c0_23] : memref<1x9x128x128xbf16, #tpu.memory_space<vmem>>, vector<1x1x128x128xbf16>
    %38 = vector.shape_cast %37 : vector<1x1x128x128xbf16> to vector<128x128xbf16>
    %cst_24 = arith.constant dense<0.000000e+00> : vector<512x128xf32>
    %39 = tpu.matmul %35, %38, %cst_24 {dimension_numbers = #tpu.dot_dimension_numbers<[1], [0], [0], [1], [0, 0, 1, 1], [], []>} : vector<512x128xbf16>, vector<128x128xbf16>, vector<512x128xf32> -> vector<512x128xf32>
    %40 = arith.addf %36, %39 : vector<512x128xf32>
    %c0_25 = arith.constant 0 : index
    %c0_26 = arith.constant 0 : index
    %41 = vector.load %arg14[%c0_25, %c0_26] : memref<512x128xf32, #tpu.memory_space<vmem>>, vector<512x128xf32>
    tpu.vector_store %arg14[%c0_25, %c0_26], %40 {strides = array<i32>} : memref<512x128xf32, #tpu.memory_space<vmem>>, vector<512x128xf32>,
    %42 = vector.extract_strided_slice %27 {offsets = [64, 0], sizes = [512, 128], strides = [1, 1]} : vector<576x128xbf16> to vector<512x128xbf16>
    %c0_27 = arith.constant 0 : index
    %c0_28 = arith.constant 0 : index
    %43 = vector.load %arg14[%c0_27, %c0_28] : memref<512x128xf32, #tpu.memory_space<vmem>>, vector<512x128xf32>
    %c0_29 = arith.constant 0 : index
    %c6 = arith.constant 6 : index
    %c0_30 = arith.constant 0 : index
    %c0_31 = arith.constant 0 : index
    %44 = vector.load %arg6[%c0_29, %c6, %c0_30, %c0_31] : memref<1x9x128x128xbf16, #tpu.memory_space<vmem>>, vector<1x1x128x128xbf16>
    %45 = vector.shape_cast %44 : vector<1x1x128x128xbf16> to vector<128x128xbf16>
    %cst_32 = arith.constant dense<0.000000e+00> : vector<512x128xf32>
    %46 = tpu.matmul %42, %45, %cst_32 {dimension_numbers = #tpu.dot_dimension_numbers<[1], [0], [0], [1], [0, 0, 1, 1], [], []>} : vector<512x128xbf16>, vector<128x128xbf16>, vector<512x128xf32> -> vector<512x128xf32>
    %47 = arith.addf %43, %46 : vector<512x128xf32>
    %c0_33 = arith.constant 0 : index
    %c0_34 = arith.constant 0 : index
    %48 = vector.load %arg14[%c0_33, %c0_34] : memref<512x128xf32, #tpu.memory_space<vmem>>, vector<512x128xf32>
    tpu.vector_store %arg14[%c0_33, %c0_34], %47 {strides = array<i32>} : memref<512x128xf32, #tpu.memory_space<vmem>>, vector<512x128xf32>,
    %49 = arith.index_cast %16 : i32 to index
    %c1 = arith.constant 1 : index
    %c0_35 = arith.constant 0 : index
    %50 = vector.load %arg12[%49, %c1, %c0_35] : memref<2x592x128xbf16, #tpu.memory_space<vmem>>, vector<1x576x128xbf16>
    %51 = vector.shape_cast %50 : vector<1x576x128xbf16> to vector<576x128xbf16>
    %52 = vector.extract_strided_slice %51 {offsets = [0, 0], sizes = [512, 128], strides = [1, 1]} : vector<576x128xbf16> to vector<512x128xbf16>
    %c0_36 = arith.constant 0 : index
    %c0_37 = arith.constant 0 : index
    %53 = vector.load %arg14[%c0_36, %c0_37] : memref<512x128xf32, #tpu.memory_space<vmem>>, vector<512x128xf32>
    %c0_38 = arith.constant 0 : index
    %c1_39 = arith.constant 1 : index
    %c0_40 = arith.constant 0 : index
    %c0_41 = arith.constant 0 : index
    %54 = vector.load %arg6[%c0_38, %c1_39, %c0_40, %c0_41] : memref<1x9x128x128xbf16, #tpu.memory_space<vmem>>, vector<1x1x128x128xbf16>
    %55 = vector.shape_cast %54 : vector<1x1x128x128xbf16> to vector<128x128xbf16>
    %cst_42 = arith.constant dense<0.000000e+00> : vector<512x128xf32>
    %56 = tpu.matmul %52, %55, %cst_42 {dimension_numbers = #tpu.dot_dimension_numbers<[1], [0], [0], [1], [0, 0, 1, 1], [], []>} : vector<512x128xbf16>, vector<128x128xbf16>, vector<512x128xf32> -> vector<512x128xf32>
    %57 = arith.addf %53, %56 : vector<512x128xf32>
    %c0_43 = arith.constant 0 : index
    %c0_44 = arith.constant 0 : index
    %58 = vector.load %arg14[%c0_43, %c0_44] : memref<512x128xf32, #tpu.memory_space<vmem>>, vector<512x128xf32>
    tpu.vector_store %arg14[%c0_43, %c0_44], %57 {strides = array<i32>} : memref<512x128xf32, #tpu.memory_space<vmem>>, vector<512x128xf32>,
    %59 = vector.extract_strided_slice %51 {offsets = [32, 0], sizes = [512, 128], strides = [1, 1]} : vector<576x128xbf16> to vector<512x128xbf16>
    %c0_45 = arith.constant 0 : index
    %c0_46 = arith.constant 0 : index
    %60 = vector.load %arg14[%c0_45, %c0_46] : memref<512x128xf32, #tpu.memory_space<vmem>>, vector<512x128xf32>
    %c0_47 = arith.constant 0 : index
    %c4 = arith.constant 4 : index
    %c0_48 = arith.constant 0 : index
    %c0_49 = arith.constant 0 : index
    %61 = vector.load %arg6[%c0_47, %c4, %c0_48, %c0_49] : memref<1x9x128x128xbf16, #tpu.memory_space<vmem>>, vector<1x1x128x128xbf16>
    %62 = vector.shape_cast %61 : vector<1x1x128x128xbf16> to vector<128x128xbf16>
    %cst_50 = arith.constant dense<0.000000e+00> : vector<512x128xf32>
    %63 = tpu.matmul %59, %62, %cst_50 {dimension_numbers = #tpu.dot_dimension_numbers<[1], [0], [0], [1], [0, 0, 1, 1], [], []>} : vector<512x128xbf16>, vector<128x128xbf16>, vector<512x128xf32> -> vector<512x128xf32>
    %64 = arith.addf %60, %63 : vector<512x128xf32>
    %c0_51 = arith.constant 0 : index
    %c0_52 = arith.constant 0 : index
    %65 = vector.load %arg14[%c0_51, %c0_52] : memref<512x128xf32, #tpu.memory_space<vmem>>, vector<512x128xf32>
    tpu.vector_store %arg14[%c0_51, %c0_52], %64 {strides = array<i32>} : memref<512x128xf32, #tpu.memory_space<vmem>>, vector<512x128xf32>,
    %66 = vector.extract_strided_slice %51 {offsets = [64, 0], sizes = [512, 128], strides = [1, 1]} : vector<576x128xbf16> to vector<512x128xbf16>
    %c0_53 = arith.constant 0 : index
    %c0_54 = arith.constant 0 : index
    %67 = vector.load %arg14[%c0_53, %c0_54] : memref<512x128xf32, #tpu.memory_space<vmem>>, vector<512x128xf32>
    %c0_55 = arith.constant 0 : index
    %c7 = arith.constant 7 : index
    %c0_56 = arith.constant 0 : index
    %c0_57 = arith.constant 0 : index
    %68 = vector.load %arg6[%c0_55, %c7, %c0_56, %c0_57] : memref<1x9x128x128xbf16, #tpu.memory_space<vmem>>, vector<1x1x128x128xbf16>
    %69 = vector.shape_cast %68 : vector<1x1x128x128xbf16> to vector<128x128xbf16>
    %cst_58 = arith.constant dense<0.000000e+00> : vector<512x128xf32>
    %70 = tpu.matmul %66, %69, %cst_58 {dimension_numbers = #tpu.dot_dimension_numbers<[1], [0], [0], [1], [0, 0, 1, 1], [], []>} : vector<512x128xbf16>, vector<128x128xbf16>, vector<512x128xf32> -> vector<512x128xf32>
    %71 = arith.addf %67, %70 : vector<512x128xf32>
    %c0_59 = arith.constant 0 : index
    %c0_60 = arith.constant 0 : index
    %72 = vector.load %arg14[%c0_59, %c0_60] : memref<512x128xf32, #tpu.memory_space<vmem>>, vector<512x128xf32>
    tpu.vector_store %arg14[%c0_59, %c0_60], %71 {strides = array<i32>} : memref<512x128xf32, #tpu.memory_space<vmem>>, vector<512x128xf32>,
    %73 = arith.index_cast %16 : i32 to index
    %c2 = arith.constant 2 : index
    %c0_61 = arith.constant 0 : index
    %74 = vector.load %arg12[%73, %c2, %c0_61] : memref<2x592x128xbf16, #tpu.memory_space<vmem>>, vector<1x576x128xbf16>
    %75 = vector.shape_cast %74 : vector<1x576x128xbf16> to vector<576x128xbf16>
    %76 = vector.extract_strided_slice %75 {offsets = [0, 0], sizes = [512, 128], strides = [1, 1]} : vector<576x128xbf16> to vector<512x128xbf16>
    %c0_62 = arith.constant 0 : index
    %c0_63 = arith.constant 0 : index
    %77 = vector.load %arg14[%c0_62, %c0_63] : memref<512x128xf32, #tpu.memory_space<vmem>>, vector<512x128xf32>
    %c0_64 = arith.constant 0 : index
    %c2_65 = arith.constant 2 : index
    %c0_66 = arith.constant 0 : index
    %c0_67 = arith.constant 0 : index
    %78 = vector.load %arg6[%c0_64, %c2_65, %c0_66, %c0_67] : memref<1x9x128x128xbf16, #tpu.memory_space<vmem>>, vector<1x1x128x128xbf16>
    %79 = vector.shape_cast %78 : vector<1x1x128x128xbf16> to vector<128x128xbf16>
    %cst_68 = arith.constant dense<0.000000e+00> : vector<512x128xf32>
    %80 = tpu.matmul %76, %79, %cst_68 {dimension_numbers = #tpu.dot_dimension_numbers<[1], [0], [0], [1], [0, 0, 1, 1], [], []>} : vector<512x128xbf16>, vector<128x128xbf16>, vector<512x128xf32> -> vector<512x128xf32>
    %81 = arith.addf %77, %80 : vector<512x128xf32>
    %c0_69 = arith.constant 0 : index
    %c0_70 = arith.constant 0 : index
    %82 = vector.load %arg14[%c0_69, %c0_70] : memref<512x128xf32, #tpu.memory_space<vmem>>, vector<512x128xf32>
    tpu.vector_store %arg14[%c0_69, %c0_70], %81 {strides = array<i32>} : memref<512x128xf32, #tpu.memory_space<vmem>>, vector<512x128xf32>,
    %83 = vector.extract_strided_slice %75 {offsets = [32, 0], sizes = [512, 128], strides = [1, 1]} : vector<576x128xbf16> to vector<512x128xbf16>
    %c0_71 = arith.constant 0 : index
    %c0_72 = arith.constant 0 : index
    %84 = vector.load %arg14[%c0_71, %c0_72] : memref<512x128xf32, #tpu.memory_space<vmem>>, vector<512x128xf32>
    %c0_73 = arith.constant 0 : index
    %c5 = arith.constant 5 : index
    %c0_74 = arith.constant 0 : index
    %c0_75 = arith.constant 0 : index
    %85 = vector.load %arg6[%c0_73, %c5, %c0_74, %c0_75] : memref<1x9x128x128xbf16, #tpu.memory_space<vmem>>, vector<1x1x128x128xbf16>
    %86 = vector.shape_cast %85 : vector<1x1x128x128xbf16> to vector<128x128xbf16>
    %cst_76 = arith.constant dense<0.000000e+00> : vector<512x128xf32>
    %87 = tpu.matmul %83, %86, %cst_76 {dimension_numbers = #tpu.dot_dimension_numbers<[1], [0], [0], [1], [0, 0, 1, 1], [], []>} : vector<512x128xbf16>, vector<128x128xbf16>, vector<512x128xf32> -> vector<512x128xf32>
    %88 = arith.addf %84, %87 : vector<512x128xf32>
    %c0_77 = arith.constant 0 : index
    %c0_78 = arith.constant 0 : index
    %89 = vector.load %arg14[%c0_77, %c0_78] : memref<512x128xf32, #tpu.memory_space<vmem>>, vector<512x128xf32>
    tpu.vector_store %arg14[%c0_77, %c0_78], %88 {strides = array<i32>} : memref<512x128xf32, #tpu.memory_space<vmem>>, vector<512x128xf32>,
    %90 = vector.extract_strided_slice %75 {offsets = [64, 0], sizes = [512, 128], strides = [1, 1]} : vector<576x128xbf16> to vector<512x128xbf16>
    %c0_79 = arith.constant 0 : index
    %c0_80 = arith.constant 0 : index
    %91 = vector.load %arg14[%c0_79, %c0_80] : memref<512x128xf32, #tpu.memory_space<vmem>>, vector<512x128xf32>
    %c0_81 = arith.constant 0 : index
    %c8 = arith.constant 8 : index
    %c0_82 = arith.constant 0 : index
    %c0_83 = arith.constant 0 : index
    %92 = vector.load %arg6[%c0_81, %c8, %c0_82, %c0_83] : memref<1x9x128x128xbf16, #tpu.memory_space<vmem>>, vector<1x1x128x128xbf16>
    %93 = vector.shape_cast %92 : vector<1x1x128x128xbf16> to vector<128x128xbf16>
    %cst_84 = arith.constant dense<0.000000e+00> : vector<512x128xf32>
    %94 = tpu.matmul %90, %93, %cst_84 {dimension_numbers = #tpu.dot_dimension_numbers<[1], [0], [0], [1], [0, 0, 1, 1], [], []>} : vector<512x128xbf16>, vector<128x128xbf16>, vector<512x128xf32> -> vector<512x128xf32>
    %95 = arith.addf %91, %94 : vector<512x128xf32>
    %c0_85 = arith.constant 0 : index
    %c0_86 = arith.constant 0 : index
    %96 = vector.load %arg14[%c0_85, %c0_86] : memref<512x128xf32, #tpu.memory_space<vmem>>, vector<512x128xf32>
    tpu.vector_store %arg14[%c0_85, %c0_86], %95 {strides = array<i32>} : memref<512x128xf32, #tpu.memory_space<vmem>>, vector<512x128xf32>,
    %c0_i32_87 = arith.constant 0 : i32
    %97 = arith.cmpi eq, %arg2, %c0_i32_87 : i32
    %98 = arith.extui %97 : i1 to i32
    %c0_i32_88 = arith.constant 0 : i32
    %99 = arith.cmpi ne, %98, %c0_i32_88 : i32
    scf.if %99 {
      %c0_89 = arith.constant 0 : index
      %c0_90 = arith.constant 0 : index
      %100 = vector.load %arg14[%c0_89, %c0_90] : memref<512x128xf32, #tpu.memory_space<vmem>>, vector<512x128xf32>
      %c0_91 = arith.constant 0 : index
      %c0_92 = arith.constant 0 : index
      %101 = vector.load %arg7[%c0_91, %c0_92] : memref<1x128xf32, #tpu.memory_space<vmem>>, vector<1x128xf32>
      %102 = vector.broadcast %101 : vector<1x128xf32> to vector<512x128xf32>
      %103 = arith.mulf %100, %102 : vector<512x128xf32>
      %c0_93 = arith.constant 0 : index
      %c0_94 = arith.constant 0 : index
      %104 = vector.load %arg8[%c0_93, %c0_94] : memref<1x128xf32, #tpu.memory_space<vmem>>, vector<1x128xf32>
      %105 = vector.broadcast %104 : vector<1x128xf32> to vector<512x128xf32>
      %106 = arith.addf %103, %105 : vector<512x128xf32>
      %cst_95 = arith.constant 0.000000e+00 : f32
      %107 = vector.broadcast %cst_95 : f32 to vector<512x128xf32>
      %108 = arith.maximumf %106, %107 : vector<512x128xf32>
      %109 = arith.truncf %108 : vector<512x128xf32> to vector<512x128xbf16>
      %c0_96 = arith.constant 0 : index
      %c0_97 = arith.constant 0 : index
      %110 = vector.load %arg9[%c0_96, %c0_97] : memref<128x128xbf16, #tpu.memory_space<vmem>>, vector<128x128xbf16>
      %cst_98 = arith.constant dense<0.000000e+00> : vector<512x128xf32>
      %111 = tpu.matmul %109, %110, %cst_98 {dimension_numbers = #tpu.dot_dimension_numbers<[1], [0], [0], [1], [0, 0, 1, 1], [], []>} : vector<512x128xbf16>, vector<128x128xbf16>, vector<512x128xf32> -> vector<512x128xf32>
      %c0_99 = arith.constant 0 : index
      %c0_100 = arith.constant 0 : index
      %112 = vector.load %arg10[%c0_99, %c0_100] : memref<1x128xf32, #tpu.memory_space<vmem>>, vector<1x128xf32>
      %113 = vector.broadcast %112 : vector<1x128xf32> to vector<512x128xf32>
      %114 = arith.addf %111, %113 : vector<512x128xf32>
      %115 = arith.truncf %114 : vector<512x128xf32> to vector<512x128xbf16>
      %c0_101 = arith.constant 0 : index
      %c0_102 = arith.constant 0 : index
      %c0_103 = arith.constant 0 : index
      %116 = vector.load %arg11[%c0_101, %c0_102, %c0_103] : memref<1x512x128xbf16, #tpu.memory_space<vmem>>, vector<1x512x128xbf16>
      %117 = vector.shape_cast %116 : vector<1x512x128xbf16> to vector<512x128xbf16>
      %118 = vector.shape_cast %115 : vector<512x128xbf16> to vector<1x512x128xbf16>
      tpu.vector_store %arg11[%c0_101, %c0_102, %c0_103], %118 {strides = array<i32>} : memref<1x512x128xbf16, #tpu.memory_space<vmem>>, vector<1x512x128xbf16>,
    } else {
    }
    return
  }
  func.func @transform_1(%arg0: i32, %arg1: i32, %arg2: i32) -> (i32, i32) {
    %c0_i32 = arith.constant 0 : i32
    %c0_i32_0 = arith.constant 0 : i32
    return %arg1, %c0_i32 : i32, i32
  }
  func.func @transform_2(%arg0: i32, %arg1: i32, %arg2: i32) -> (i32, i32, i32) {
    %c0_i32 = arith.constant 0 : i32
    %c0_i32_0 = arith.constant 0 : i32
    %c0_i32_1 = arith.constant 0 : i32
    return %arg0, %c0_i32, %c0_i32_0 : i32, i32, i32
  }
  func.func @transform_3(%arg0: i32, %arg1: i32, %arg2: i32) -> (i32, i32, i32, i32) {
    %c0_i32 = arith.constant 0 : i32
    %c0_i32_0 = arith.constant 0 : i32
    %c0_i32_1 = arith.constant 0 : i32
    %c0_i32_2 = arith.constant 0 : i32
    return %arg2, %c0_i32, %c0_i32_0, %c0_i32_1 : i32, i32, i32, i32
  }
  func.func @transform_4(%arg0: i32, %arg1: i32, %arg2: i32) -> (i32, i32) {
    %c0_i32 = arith.constant 0 : i32
    %c0_i32_0 = arith.constant 0 : i32
    %c0_i32_1 = arith.constant 0 : i32
    return %c0_i32, %c0_i32_0 : i32, i32
  }
  func.func @transform_5(%arg0: i32, %arg1: i32, %arg2: i32) -> (i32, i32) {
    %c0_i32 = arith.constant 0 : i32
    %c0_i32_0 = arith.constant 0 : i32
    %c0_i32_1 = arith.constant 0 : i32
    return %c0_i32, %c0_i32_0 : i32, i32
  }
  func.func @transform_6(%arg0: i32, %arg1: i32, %arg2: i32) -> (i32, i32) {
    %c0_i32 = arith.constant 0 : i32
    %c0_i32_0 = arith.constant 0 : i32
    %c0_i32_1 = arith.constant 0 : i32
    return %c0_i32, %c0_i32_0 : i32, i32
  }
  func.func @transform_7(%arg0: i32, %arg1: i32, %arg2: i32) -> (i32, i32) {
    %c0_i32 = arith.constant 0 : i32
    %c0_i32_0 = arith.constant 0 : i32
    %c0_i32_1 = arith.constant 0 : i32
    return %c0_i32, %c0_i32_0 : i32, i32
  }
  func.func @transform_8(%arg0: i32, %arg1: i32, %arg2: i32) -> (i32, i32, i32) {
    %c0_i32 = arith.constant 0 : i32
    %c0_i32_0 = arith.constant 0 : i32
    return %arg0, %arg1, %c0_i32 : i32, i32, i32
  }
}

</mosaic_0001>

<bundles_post_ra>
// kernel: psp_head_forward.2
= control target key start
LH: loop header
LB: loop body
LE: loop exit
PB: predicated region body
PF: predicated region fallthrough
CT: control target
= control target key end

     0   :  { %s1790_s21 = smov 0   ;;  %s1977_s0 = inlined_call_operand.vmem [shape: bf16[2,1088,128], index: 0, kind: input, shape index: {}]   ;;  %s1978_s1 = inlined_call_operand.vmem [shape: bf16[32,1088], index: 1, kind: input, shape index: {}]   ;;  %s1979_s2 = inlined_call_operand.vmem [shape: bf16[128,128], index: 2, kind: input, shape index: {}]   ;;  %s1980_s3 = inlined_call_operand.vmem [shape: f32[1,128], index: 3, kind: input, shape index: {}]   ;;  %s1981_s4 = inlined_call_operand.vmem [shape: f32[1,128], index: 4, kind: input, shape index: {}]   ;;  %s1982_s5 = inlined_call_operand.vmem [shape: f32[32,128], index: 5, kind: input, shape index: {}]   ;;  %s1983_s6 = inlined_call_operand.vmem [shape: bf16[2,32,128], index: 6, kind: output, shape index: {}]  }
   0x1 LB: > { %s1367_s22 = sadd.s32 4294967295, %s1753_s21   ;;  %p1371_p0 = scmp.ge.s32.totalorder %s1753_s21, 1  ;;  %s1753_s21 = sphi %s1790_s21, %s16_s21  }
   0x2   : > { %p212_p1 = scmp.lt.s32.totalorder %s1753_s21, 3 }
   0x4   : > { %p213_p2 = pnand %p1371_p0, %p212_p1 }
   0x5   : > { %p242_p3 = scmp.lt.s32.totalorder (!%p213_p2), %s1367_s22, 1  ;;  %v1679_v0 = vld [vmem:[%s1978_s1 + $0x4] ss:$36 sps:$4 sm:$0xff] (!%p213_p2)   ;;  %v1682_v1 = vld [vmem:[%s1978_s1 + $0xc] ss:$36 sps:$4 sm:$0xff] (!%p213_p2)   ;;  %vm907_vm0 = vcmask (!%p213_p2), 523264  }
   0x6   : > { %216 = sbr.rel (%p213_p2) target bundleno = 545 (0x221), region = 44  ;;  %946 = vmatprep.mubr.bf16.mxu0 (!%p213_p2), %v1679_v0  ;;  %995 = vmatprep.mubr.bf16.mxu1 (!%p213_p2), %v1682_v1  ;;  %v1677_v32 = vld [vmem:[%s1978_s1] ss:$36 sps:$4 sm:$0xff] (!%p213_p2)   ;;  %v1680_v34 = vld [vmem:[%s1978_s1 + $0x8] ss:$36 sps:$4 sm:$0xff] (!%p213_p2)  }
   0x7   : > { %v1704_v36 = vld [vmem:[%s1978_s1 + $0x4c] ss:$36 sps:$4 sm:$0xff] (!%p213_p2)   ;;  %v1706_v39 = vld [vmem:[%s1978_s1 + $0x54] ss:$36 sps:$4 sm:$0xff] (!%p213_p2)  }
   0x8   : > { %v1709_v44 = vld [vmem:[%s1978_s1 + $0x48] ss:$36 sps:$4 sm:$0xff] (!%p213_p2)   ;;  %v1710_v47 = vld [vmem:[%s1978_s1 + $0x50] ss:$36 sps:$4 sm:$0xff] (!%p213_p2)  }
   0x9   : > { %v1722_v48 = vld [vmem:[%s1978_s1 + $0x14] ss:$36 sps:$4 sm:$0xff] (!%p213_p2)  }
   0xd   : > { %s1985_s22 = smov (!%p242_p3, %s1367_s22), 1 }
   0xe   : > { %s1636_s27 = smul.u32 544, %s1985_s22 }
  0x10   : > { %s1810_s30 = scalar_lea.vmem %s1977_s0, %s1636_s27 }
  0x11   : > { %v1645_v2 = vld [vmem:[%s1810_s30 + $0x40] sm:$0xff]   ;;  %v1649_v6 = vld [vmem:[%s1810_s30 + $0x48] sm:$0xff]   ;;  %v1653_v10 = vld [vmem:[%s1810_s30 + $0x50] sm:$0xff]  }
  0x12   : > { %v1646_v3 = vld [vmem:[%s1810_s30 + $0xc0] sm:$0xff]   ;;  %1476 = vmatprep.subr.bf16.mxu0 %v1645_v2  ;;  %v1650_v7 = vld [vmem:[%s1810_s30 + $0xc8] sm:$0xff]   ;;  %v1654_v11 = vld [vmem:[%s1810_s30 + $0xd0] sm:$0xff]  }
  0x13   : > { %v1647_v4 = vld [vmem:[%s1810_s30] sm:$0xff]   ;;  %1504 = vmatprep.subr.bf16.mxu1 %v1646_v3  ;;  %v1651_v8 = vld [vmem:[%s1810_s30 + $0x8] sm:$0xff]   ;;  %v1655_v12 = vld [vmem:[%s1810_s30 + $0x10] sm:$0xff]  }
  0x14   : > { %v1648_v5 = vld [vmem:[%s1810_s30 + $0x80] sm:$0xff]   ;;  %1477 = vmatpush3.bf16.msra.mxu0 %v1647_v4  ;;  %v1652_v9 = vld [vmem:[%s1810_s30 + $0x88] sm:$0xff]   ;;  %v1656_v13 = vld [vmem:[%s1810_s30 + $0x90] sm:$0xff]  }
  0x15   : > { %1505 = vmatpush3.bf16.msra.mxu1 %v1648_v5  ;;  %1478 = vmatprep.subr.bf16.mxu0 %v1649_v6  ;;  %v1657_v14 = vld [vmem:[%s1810_s30 + $0x58] sm:$0xff]   ;;  %v1661_v18 = vld [vmem:[%s1810_s30 + $0x60] sm:$0xff]   ;;  %v1665_v22 = vld [vmem:[%s1810_s30 + $0x68] sm:$0xff]  }
  0x16   : > { %1506 = vmatprep.subr.bf16.mxu1 %v1650_v7  ;;  %v1658_v15 = vld [vmem:[%s1810_s30 + $0xd8] sm:$0xff]   ;;  %v1662_v19 = vld [vmem:[%s1810_s30 + $0xe0] sm:$0xff]   ;;  %v1666_v23 = vld [vmem:[%s1810_s30 + $0xe8] sm:$0xff]  }
  0x17   : > { %v1659_v16 = vld [vmem:[%s1810_s30 + $0x18] sm:$0xff]   ;;  %v1663_v20 = vld [vmem:[%s1810_s30 + $0x20] sm:$0xff]   ;;  %v1667_v24 = vld [vmem:[%s1810_s30 + $0x28] sm:$0xff]  }
  0x18   : > { %1479 = vmatpush3.bf16.msra.mxu0 %v1651_v8  ;;  %v1660_v17 = vld [vmem:[%s1810_s30 + $0x98] sm:$0xff]   ;;  %v1664_v21 = vld [vmem:[%s1810_s30 + $0xa0] sm:$0xff]   ;;  %v1668_v25 = vld [vmem:[%s1810_s30 + $0xa8] sm:$0xff]  }
  0x19   : > { %1507 = vmatpush3.bf16.msra.mxu1 %v1652_v9  ;;  %1480 = vmatprep.subr.bf16.mxu0 %v1653_v10  ;;  %v1669_v26 = vld [vmem:[%s1810_s30 + $0x70] sm:$0xff]   ;;  %v1673_v30 = vld [vmem:[%s1810_s30 + $0x78] sm:$0xff]   ;;  %v1683_v37 = vld [vmem:[%s1810_s30 + $0x140] sm:$0xff]  }
  0x1a   : > { %1508 = vmatprep.subr.bf16.mxu1 %v1654_v11  ;;  %v1670_v27 = vld [vmem:[%s1810_s30 + $0xf0] sm:$0xff]   ;;  %v1674_v31 = vld [vmem:[%s1810_s30 + $0xf8] sm:$0xff]   ;;  %v1684_v38 = vld [vmem:[%s1810_s30 + $0x100] sm:$0xff]  }
  0x1b   : > { %v1671_v28 = vld [vmem:[%s1810_s30 + $0x30] sm:$0xff]   ;;  %v1675_v33 = vld [vmem:[%s1810_s30 + $0x38] sm:$0xff]   ;;  %v1685_v40 = vld [vmem:[%s1810_s30 + $0x1c0] sm:$0xff]  }
  0x1c   : > { %1481 = vmatpush3.bf16.msra.mxu0 %v1655_v12  ;;  %v1672_v29 = vld [vmem:[%s1810_s30 + $0xb0] sm:$0xff]   ;;  %v1676_v35 = vld [vmem:[%s1810_s30 + $0xb8] sm:$0xff]   ;;  %v1686_v41 = vld [vmem:[%s1810_s30 + $0x180] sm:$0xff]  }
  0x1d   : > { %1509 = vmatpush3.bf16.msra.mxu1 %v1656_v13  ;;  %1482 = vmatprep.subr.bf16.mxu0 %v1657_v14  ;;  %v1687_v42 = vld [vmem:[%s1810_s30 + $0x148] sm:$0xff]   ;;  %v1691_v49 = vld [vmem:[%s1810_s30 + $0x150] sm:$0xff]   ;;  %v1695_v53 = vld [vmem:[%s1810_s30 + $0x158] sm:$0xff]  }
  0x1e   : > { %1510 = vmatprep.subr.bf16.mxu1 %v1658_v15  ;;  %v1688_v43 = vld [vmem:[%s1810_s30 + $0x108] sm:$0xff]   ;;  %v1692_v50 = vld [vmem:[%s1810_s30 + $0x110] sm:$0xff]   ;;  %v1696_v54 = vld [vmem:[%s1810_s30 + $0x118] sm:$0xff]  }
  0x1f   : > { %v1689_v45 = vld [vmem:[%s1810_s30 + $0x1c8] sm:$0xff]   ;;  %v1693_v51 = vld [vmem:[%s1810_s30 + $0x1d0] sm:$0xff]   ;;  %v1697_v55 = vld [vmem:[%s1810_s30 + $0x1d8] sm:$0xff]  }
  0x20   : > { %1483 = vmatpush3.bf16.msra.mxu0 %v1659_v16  ;;  %v1690_v46 = vld [vmem:[%s1810_s30 + $0x188] sm:$0xff]   ;;  %v1694_v52 = vld [vmem:[%s1810_s30 + $0x190] sm:$0xff]   ;;  %v1698_v56 = vld [vmem:[%s1810_s30 + $0x198] sm:$0xff]  }
  0x21   : > { %1511 = vmatpush3.bf16.msra.mxu1 %v1660_v17  ;;  %1484 = vmatprep.subr.bf16.mxu0 %v1661_v18  ;;  %v1699_v57 = vld [vmem:[%s1810_s30 + $0x160] sm:$0xff]   ;;  %v1703_v61 = vld [vmem:[%s1810_s30 + $0x168] sm:$0xff]   ;;  %v1713_v1 = vld [vmem:[%s1810_s30 + $0x170] sm:$0xff]  }
  0x22   : > { %1512 = vmatprep.subr.bf16.mxu1 %v1662_v19  ;;  %v1700_v58 = vld [vmem:[%s1810_s30 + $0x120] sm:$0xff]   ;;  %v1708_v62 = vld [vmem:[%s1810_s30 + $0x128] sm:$0xff]   ;;  %v1714_v2 = vld [vmem:[%s1810_s30 + $0x130] sm:$0xff]  }
  0x23   : > { %v1701_v59 = vld [vmem:[%s1810_s30 + $0x1e0] sm:$0xff]   ;;  %v1711_v63 = vld [vmem:[%s1810_s30 + $0x1e8] sm:$0xff]   ;;  %v1715_v3 = vld [vmem:[%s1810_s30 + $0x1f0] sm:$0xff]  }
  0x24   : > { %1485 = vmatpush3.bf16.msra.mxu0 %v1663_v20  ;;  %v1702_v60 = vld [vmem:[%s1810_s30 + $0x1a0] sm:$0xff]   ;;  %v1712_v0 = vld [vmem:[%s1810_s30 + $0x1a8] sm:$0xff]   ;;  %v1716_v4 = vld [vmem:[%s1810_s30 + $0x1b0] sm:$0xff]  }
  0x25   : > { %1513 = vmatpush3.bf16.msra.mxu1 %v1664_v21  ;;  %1486 = vmatprep.subr.bf16.mxu0 %v1665_v22  ;;  %v1717_v5 = vld [vmem:[%s1810_s30 + $0x178] sm:$0xff]   ;;  %v1720_v7 = vld [vmem:[%s1978_s1 + $0x10] ss:$36 sps:$4 sm:$0xff]   ;;  %v1724_v10 = vld [vmem:[%s1810_s30 + $0x200] sm:$0xff]  }
  0x26   : > { %1514 = vmatprep.subr.bf16.mxu1 %v1666_v23  ;;  %v1718_v6 = vld [vmem:[%s1810_s30 + $0x138] sm:$0xff]   ;;  %v1728_v13 = vld [vmem:[%s1810_s30 + $0x208] sm:$0xff]   ;;  %v1732_v15 = vld [vmem:[%s1810_s30 + $0x210] sm:$0xff]  }
  0x27   : > { %v1719_v8 = vld [vmem:[%s1810_s30 + $0x1f8] sm:$0xff]   ;;  %v1733_v17 = vld [vmem:[%s1978_s1 + $0x64] ss:$36 sps:$4 sm:$0xff]  }
  0x28   : > { %1487 = vmatpush3.bf16.msra.mxu0 %v1667_v24  ;;  %v1723_v9 = vld [vmem:[%s1810_s30 + $0x1b8] sm:$0xff]   ;;  %v1735_v18 = vld [vmem:[%s1978_s1 + $0x60] ss:$36 sps:$4 sm:$0xff]   ;;  %v1738_v21 = vld [vmem:[%s1978_s1 + $0x68] ss:$36 sps:$4 sm:$0xff]  }
  0x29   : > { %1515 = vmatpush3.bf16.msra.mxu1 %v1668_v25  ;;  %1488 = vmatprep.subr.bf16.mxu0 %v1669_v26  ;;  %v1725_v11 = vld [vmem:[%s1978_s1 + $0x18] ss:$36 sps:$4 sm:$0xff]   ;;  %v1737_v19 = vld [vmem:[%s1978_s1 + $0x20] ss:$36 sps:$4 sm:$0xff]   ;;  %v1740_v23 = vld [vmem:[%s1979_s2 + $0x8] sm:$0xff]  }
  0x2a   : > { %1516 = vmatprep.subr.bf16.mxu1 %v1670_v27  ;;  %v1727_v12 = vld [vmem:[%s1978_s1 + $0x1c] ss:$36 sps:$4 sm:$0xff]   ;;  %v1741_v24 = vld [vmem:[%s1979_s2 + $0x10] sm:$0xff]   ;;  %v1744_v27 = vld [vmem:[%s1979_s2 + $0x28] sm:$0xff]  }
  0x2b   : > { %v1729_v14 = vld [vmem:[%s1978_s1 + $0x5c] ss:$36 sps:$4 sm:$0xff]  }
  0x2c   : > { %1489 = vmatpush3.bf16.msra.mxu0 %v1671_v28  ;;  %v1731_v16 = vld [vmem:[%s1978_s1 + $0x58] ss:$36 sps:$4 sm:$0xff]   ;;  %v1739_v22 = vld [vmem:[%s1979_s2] sm:$0xff]   ;;  %v1745_v28 = vld [vmem:[%s1979_s2 + $0x30] sm:$0xff]  }
  0x2d   : > { %1517 = vmatpush3.bf16.msra.mxu1 %v1672_v29  ;;  %1490 = vmatprep.subr.bf16.mxu0 %v1673_v30  ;;  %v1736_v20 = vld [vmem:[%s1810_s30 + $0x218] sm:$0xff]   ;;  %v1743_v26 = vld [vmem:[%s1979_s2 + $0x20] sm:$0xff]   ;;  %s1475_s30 = sshll.u32 %s1985_s22, 4 }
  0x2e   : > { %1518 = vmatprep.subr.bf16.mxu1 %v1674_v31  ;;  %v1742_v25 = vld [vmem:[%s1979_s2 + $0x18] sm:$0xff]   ;;  %s251_s28 = scalar_lea.vmem %s1983_s6, %s1475_s30 }
  0x2f   : > { %v1746_v29 = vld [vmem:[%s1979_s2 + $0x38] sm:$0xff]  }
  0x30   : > { %1491 = vmatpush3.bf16.msra.mxu0 %v1675_v33 }
  0x31   : > { %1519 = vmatpush3.bf16.msra.mxu1 %v1676_v35  ;;  %1532 = vmatprep.subr.bf16.mxu0 %v1683_v37 }
  0x32   : > { %1560 = vmatprep.subr.bf16.mxu1 %v1685_v40 }
  0x33   : > { %947 = vmatmul.mubr.bf16.vlgmr.msra.gmra.mrb[0].mxu0 %v1677_v32 }
  0x34   : > { %996 = vmatmul.mubr.bf16.vlgmr.msra.gmra.mrb[0].mxu1 %v1680_v34  ;;  %1533 = vmatpush3.bf16.msra.mxu0 %v1684_v38 }
  0x35   : > { %954 = vmatprep.mubr.bf16.mxu0 %v1704_v36  ;;  %1561 = vmatpush3.bf16.msra.mxu1 %v1686_v41 }
  0x36   : > { %1534 = vmatprep.subr.bf16.mxu0 %v1687_v42  ;;  %1003 = vmatprep.mubr.bf16.mxu1 %v1706_v39 }
  0x37   : > { %1562 = vmatprep.subr.bf16.mxu1 %v1689_v45 }
  0x38   : > { %1535 = vmatpush3.bf16.msra.mxu0 %v1688_v43 }
  0x39   : > { %1563 = vmatpush3.bf16.msra.mxu1 %v1690_v46  ;;  %1536 = vmatprep.subr.bf16.mxu0 %v1691_v49 }
  0x3a   : > { %1564 = vmatprep.subr.bf16.mxu1 %v1693_v51 }
  0x3b   : > { %955 = vmatmul.mubr.bf16.gmra.mrb[4].mxu0 %v1709_v44 }
  0x3c   : > { %1537 = vmatpush3.bf16.msra.mxu0 %v1692_v50  ;;  %1004 = vmatmul.mubr.bf16.gmra.mrb[4].mxu1 %v1710_v47 }
  0x3d   : > { %1044 = vmatprep.mubr.bf16.mxu0 %v1722_v48  ;;  %1565 = vmatpush3.bf16.msra.mxu1 %v1694_v52 }
  0x3e   : > { %1538 = vmatprep.subr.bf16.mxu0 %v1695_v53  ;;  %1566 = vmatprep.subr.bf16.mxu1 %v1697_v55 }
  0x3f   : > { %1093 = vmatprep.mubr.bf16.mxu1 %v1727_v12 }
  0x40   : > { %1539 = vmatpush3.bf16.msra.mxu0 %v1696_v54 }
  0x41   : > { %1567 = vmatpush3.bf16.msra.mxu1 %v1698_v56  ;;  %1540 = vmatprep.subr.bf16.mxu0 %v1699_v57 }
  0x42   : > { %1568 = vmatprep.subr.bf16.mxu1 %v1701_v59 }
  0x44   : > { %1541 = vmatpush3.bf16.msra.mxu0 %v1700_v58 }
  0x45   : > { %1569 = vmatpush3.bf16.msra.mxu1 %v1702_v60  ;;  %1542 = vmatprep.subr.bf16.mxu0 %v1703_v61 }
  0x46   : > { %1570 = vmatprep.subr.bf16.mxu1 %v1711_v63 }
  0x48   : > { %1543 = vmatpush3.bf16.msra.mxu0 %v1708_v62 }
  0x49   : > { %1571 = vmatpush3.bf16.msra.mxu1 %v1712_v0  ;;  %1544 = vmatprep.subr.bf16.mxu0 %v1713_v1 }
  0x4a   : > { %1572 = vmatprep.subr.bf16.mxu1 %v1715_v3 }
  0x4c   : > { %1545 = vmatpush3.bf16.msra.mxu0 %v1714_v2 }
  0x4d   : > { %1573 = vmatpush3.bf16.msra.mxu1 %v1716_v4  ;;  %1546 = vmatprep.subr.bf16.mxu0 %v1717_v5 }
  0x4e   : > { %1574 = vmatprep.subr.bf16.mxu1 %v1719_v8 }
  0x50   : > { %1547 = vmatpush3.bf16.msra.mxu0 %v1718_v6 }
  0x51   : > { %1575 = vmatpush3.bf16.msra.mxu1 %v1723_v9  ;;  %1604 = vmatprep.subr.bf16.mxu0 %v1724_v10 }
  0x52   : > { %1616 = vmatprep.subr.bf16.mxu1 %v1739_v22 }
  0x53   : > { %1045 = vmatmul.mubr.bf16.vlgmr.msra.gmra.mrb[8].mxu0 %v1720_v7 }
  0x54   : > { %1605 = vmatpush3.bf16.msra.mxu0 %v1724_v10  ;;  %1094 = vmatmul.mubr.bf16.vlgmr.msra.gmra.mrb[8].mxu1 %v1725_v11 }
  0x55   : > { %1606 = vmatprep.subr.bf16.mxu0 %v1728_v13  ;;  %1052 = vmatprep.mubr.bf16.mxu0 %v1729_v14 }
  0x56   : > { %1101 = vmatprep.mubr.bf16.mxu1 %v1733_v17  ;;  %1617 = vmatpush3.bf16.msra.mxu1 %v1739_v22 }
  0x57   : > { %1618 = vmatprep.subr.bf16.mxu1 %v1740_v23 }
  0x58   : > { %1607 = vmatpush3.bf16.msra.mxu0 %v1728_v13 }
  0x59   : > { %1608 = vmatprep.subr.bf16.mxu0 %v1732_v15 }
  0x5a   : > { %1619 = vmatpush3.bf16.msra.mxu1 %v1740_v23 }
  0x5b   : > { %1053 = vmatmul.mubr.bf16.gmra.mrb[12].mxu0 %v1731_v16  ;;  %1620 = vmatprep.subr.bf16.mxu1 %v1741_v24 }
  0x5c   : > { %1609 = vmatpush3.bf16.msra.mxu0 %v1732_v15  ;;  %1612 = vmatprep.mubr.msk.bf16.mxu0 %vm907_vm0, %v1737_v19 }
  0x5d   : > { %1102 = vmatmul.mubr.bf16.gmra.mrb[12].mxu1 %v1735_v18  ;;  %1610 = vmatprep.subr.bf16.mxu0 %v1736_v20 }
  0x5e   : > { %1621 = vmatpush3.bf16.msra.mxu1 %v1741_v24 }
  0x5f   : > { %1622 = vmatprep.subr.bf16.mxu1 %v1742_v25 }
  0x60   : > { %1611 = vmatpush3.bf16.msra.mxu0 %v1736_v20 }
  0x62   : > { %1623 = vmatpush3.bf16.msra.mxu1 %v1742_v25 }
  0x63   : > { %1613 = vmatmul.mubr.msk.bf16.vlgmr.msra.gmra.mrb[16].mxu0 %vm907_vm0, %v1738_v21  ;;  %1624 = vmatprep.subr.bf16.mxu1 %v1743_v26 }
  0x66   : > { %1625 = vmatpush3.bf16.msra.mxu1 %v1743_v26 }
  0x67   : > { %1626 = vmatprep.subr.bf16.mxu1 %v1744_v27 }
  0x6a   : > { %1627 = vmatpush3.bf16.msra.mxu1 %v1744_v27 }
  0x6b   : > { %1628 = vmatprep.subr.bf16.mxu1 %v1745_v28 }
  0x6e   : > { %1629 = vmatpush3.bf16.msra.mxu1 %v1745_v28 }
  0x6f   : > { %1630 = vmatprep.subr.bf16.mxu1 %v1746_v29 }
  0x72   : > { %1631 = vmatpush3.bf16.msra.mxu1 %v1746_v29 }
 0x106   : > { %v1492_v30 = vpop.f32.mrb[0].mxu0 }
 0x107   : > { %v1520_v31 = vpop.f32.mrb[0].mxu1  ;;  %v1493_v32 = vpop.f32.mrb[1].mxu0 }
 0x108   : > { %v1494_v33 = vadd.f32 %v1493_v32, %v1492_v30  ;;  %v1521_v34 = vpop.f32.mrb[1].mxu1  ;;  %v1495_v35 = vpop.f32.mrb[2].mxu0 }
 0x109   : > { %v1522_v36 = vadd.f32 %v1521_v34, %v1520_v31  ;;  %v1523_v37 = vpop.f32.mrb[2].mxu1  ;;  %v1496_v38 = vpop.f32.mrb[3].mxu0 }
 0x10a   : > { %v1497_v39 = vadd.f32 %v1496_v38, %v1495_v35  ;;  %v1524_v40 = vpop.f32.mrb[3].mxu1  ;;  %v1472_v38 = vld [vmem:[%s1981_s4] ss:$0 sm:$0xff] }
 0x10b   : > { %v998_v41 = vadd.f32 %v1522_v36, %v1494_v33  ;;  %v1525_v42 = vadd.f32 %v1524_v40, %v1523_v37  ;;  %v1471_v36 = vld [vmem:[%s1980_s3] ss:$0 sm:$0xff] }
 0x10d   : > { %v1001_v43 = vadd.f32 %v1525_v42, %v1497_v39 }
 0x10e   : > { %v1498_v44 = vpop.f32.mrb[4].mxu0 }
 0x10f   : > { %v1499_v45 = vpop.f32.mrb[5].mxu0  ;;  %v1526_v46 = vpop.f32.mrb[4].mxu1 }
 0x110   : > { %v1500_v47 = vadd.f32 %v1499_v45, %v1498_v44  ;;  %v1501_v48 = vpop.f32.mrb[6].mxu0  ;;  %v1527_v49 = vpop.f32.mrb[5].mxu1 }
 0x111   : > { %v1502_v50 = vpop.f32.mrb[7].mxu0  ;;  %v1528_v51 = vadd.f32 %v1527_v49, %v1526_v46  ;;  %v1529_v52 = vpop.f32.mrb[6].mxu1 }
 0x112   : > { %v1503_v53 = vadd.f32 %v1502_v50, %v1501_v48  ;;  %v1530_v54 = vpop.f32.mrb[7].mxu1  ;;  %v1302_v50 = vld [vmem:[%s1982_s5 + $0x10] sm:$0xff] }
 0x113   : > { %v1006_v55 = vadd.f32 %v1528_v51, %v1500_v47  ;;  %v1531_v56 = vadd.f32 %v1530_v54, %v1529_v52  ;;  %v1303_v52 = vld [vmem:[%s1982_s5 + $0x18] sm:$0xff]  ;;  %v1300_v54 = vld [vmem:[%s1982_s5] sm:$0xff] }
 0x115   : > { %v1009_v57 = vadd.f32 %v1531_v56, %v1503_v53  ;;  %v1301_v56 = vld [vmem:[%s1982_s5 + $0x8] sm:$0xff] }
 0x126   : > { %v1548_v58 = vpop.f32.mrb[8].mxu0 }
 0x127   : > { %v1549_v59 = vpop.f32.mrb[9].mxu0  ;;  %v1576_v62 = vpop.f32.mrb[8].mxu1 }
 0x128   : > { %v1550_v60 = vadd.f32 %v1549_v59, %v1548_v58  ;;  %v1551_v61 = vpop.f32.mrb[10].mxu0  ;;  %v1577_v0 = vpop.f32.mrb[9].mxu1 }
 0x129   : > { %v1552_v63 = vpop.f32.mrb[11].mxu0  ;;  %v1578_v3 = vadd.f32 %v1577_v0, %v1576_v62  ;;  %v1579_v4 = vpop.f32.mrb[10].mxu1 }
 0x12a   : > { %v1047_v1 = vadd.f32 %v1550_v60, %v998_v41  ;;  %v1553_v2 = vadd.f32 %v1552_v63, %v1551_v61  ;;  %v1580_v5 = vpop.f32.mrb[11].mxu1 }
 0x12b   : > { %v1581_v7 = vadd.f32 %v1580_v5, %v1579_v4 }
 0x12c   : > { %v1050_v6 = vadd.f32 %v1553_v2, %v1001_v43  ;;  %v1096_v8 = vadd.f32 %v1578_v3, %v1047_v1 }
 0x12e   : > { %v1554_v9 = vpop.f32.mrb[12].mxu0  ;;  %v1099_v10 = vadd.f32 %v1581_v7, %v1050_v6 }
 0x12f   : > { %v1555_v11 = vpop.f32.mrb[13].mxu0 }
 0x130   : > { %v1556_v12 = vadd.f32 %v1555_v11, %v1554_v9  ;;  %v1557_v13 = vpop.f32.mrb[14].mxu0  ;;  %v1582_v14 = vpop.f32.mrb[12].mxu1 }
 0x131   : > { %v1558_v15 = vpop.f32.mrb[15].mxu0  ;;  %v1583_v16 = vpop.f32.mrb[13].mxu1 }
 0x132   : > { %v1055_v17 = vadd.f32 %v1556_v12, %v1006_v55  ;;  %v1559_v18 = vadd.f32 %v1558_v15, %v1557_v13  ;;  %v1584_v19 = vadd.f32 %v1583_v16, %v1582_v14  ;;  %v1585_v20 = vpop.f32.mrb[14].mxu1 }
 0x133   : > { %v1586_v21 = vpop.f32.mrb[15].mxu1 }
 0x134   : > { %v1058_v22 = vadd.f32 %v1559_v18, %v1009_v57  ;;  %v1587_v23 = vadd.f32 %v1586_v21, %v1585_v20  ;;  %v1104_v24 = vadd.f32 %v1584_v19, %v1055_v17 }
 0x136   : > { %v1614_v25 = vpop.f32.mrb[16].mxu0  ;;  %v1107_v26 = vadd.f32 %v1587_v23, %v1058_v22 }
 0x137   : > { %v1153_v27 = vadd.f32 %v1614_v25, %v1104_v24  ;;  %v1144_v28 = vpop.f32.mrb[17].mxu0 }
 0x138   : > { %v1145_v29 = vadd.f32 %v1144_v28, %v1096_v8  ;;  %v1615_v30 = vpop.f32.mrb[18].mxu0 }
 0x139   : > { %v1156_v31 = vadd.f32 %v1615_v30, %v1107_v26  ;;  %v1147_v32 = vpop.f32.mrb[19].mxu0 }
 0x13a   : > { %v1148_v33 = vadd.f32 %v1147_v32, %v1099_v10 }
 0x13b   : > { %v1160_v34 = vpack.c.bf16 %v1156_v31, %v1153_v27 }
 0x13c   : > { %v1159_v35 = vpack.c.bf16 %v1148_v33, %v1145_v29 }
 0x13e   : > { %1632 = vmatprep.mubr.bf16.mxu1 %v1159_v35 }
 0x13f   : > { %1633 = vmatmul.mubr.bf16.vlgmr.msra.gmra.mrb[16].mxu1 %v1160_v34 }
 0x212   : > { %v1634_v37 = vpop.f32.mrb[16].mxu1 }
 0x213   : > { %v1283_v39 = vmul.f32 %v1634_v37, %v1471_v36  ;;  %v1259_v40 = vpop.f32.mrb[17].mxu1 }
 0x214   : > { %v1281_v41 = vmul.f32 %v1471_v36, %v1259_v40  ;;  %v1635_v42 = vpop.f32.mrb[18].mxu1 }
 0x215   : > { %v1294_v43 = vadd.f32 %v1472_v38, %v1283_v39  ;;  %v1284_v44 = vmul.f32 %v1635_v42, %v1471_v36  ;;  %v1262_v45 = vpop.f32.mrb[19].mxu1 }
 0x216   : > { %v1292_v46 = vadd.f32 %v1472_v38, %v1281_v41  ;;  %v1282_v47 = vmul.f32 %v1471_v36, %v1262_v45 }
 0x217   : > { %v1298_v48 = vmax.f32 %v1294_v43, 0.0  ;;  %v1295_v49 = vadd.f32 %v1472_v38, %v1284_v44 }
 0x218   : > { %v1296_v51 = vmax.f32 %v1292_v46, 0.0  ;;  %v1293_v53 = vadd.f32 %v1472_v38, %v1282_v47 }
 0x219   : > { %v1299_v55 = vmax.f32 %v1295_v49, 0.0  ;;  %v1306_v58 = vmul.f32 %v1302_v50, %v1298_v48 }
 0x21a   : > { %v1297_v57 = vmax.f32 %v1293_v53, 0.0  ;;  %v1304_v60 = vmul.f32 %v1300_v54, %v1296_v51 }
 0x21b   : > { %v1307_v59 = vmul.f32 %v1303_v52, %v1299_v55 }
 0x21c   : > { %v1305_v61 = vmul.f32 %v1301_v56, %v1297_v57 }
 0x21d   : > { %v1309_v62 = vpack.c.bf16 %v1307_v59, %v1306_v58 }
 0x21e   : > { %v1308_v63 = vpack.c.bf16 %v1305_v61, %v1304_v60 }
 0x21f   : > { %1311 = vst [vmem:[%s251_s28 + $0x8] sm:$0xff] %v1309_v62 }
 0x220   : > { %1310 = vst [vmem:[%s251_s28] sm:$0xff] %v1308_v63 }
 0x221 PF: > { %s16_s21 = sadd.s32 1, %s1753_s21  }
 0x222   : > { %p13_p4 = scmp.ge.s32.totalorder %s16_s21, 4  }
 0x224   :  { %15 = sbr.rel (!%p13_p4) target bundleno = 1 (0x1), region = 74 }

// kernel: psp_head_forward.3
= control target key start
LH: loop header
LB: loop body
LE: loop exit
PB: predicated region body
PF: predicated region fallthrough
CT: control target
= control target key end

     0   :  { %s11178_s27 = smov 0   ;;  %s11180_s28 = smov 0   ;;  %s14475_s0 = inlined_call_operand.vmem [shape: bf16[2,1088,128], index: 0, kind: input, shape index: {}]   ;;  %s14476_s1 = inlined_call_operand.vmem [shape: bf16[1024,288], index: 1, kind: input, shape index: {}]   ;;  %s14477_s2 = inlined_call_operand.vmem [shape: bf16[2,288,128], index: 2, kind: input, shape index: {}]   ;;  %s14478_s3 = inlined_call_operand.vmem [shape: bf16[1,9,128,128], index: 3, kind: input, shape index: {}]   ;;  %s14479_s4 = inlined_call_operand.vmem [shape: f32[1,128], index: 4, kind: input, shape index: {}]   ;;  %s14480_s5 = inlined_call_operand.vmem [shape: f32[1,128], index: 5, kind: input, shape index: {}]   ;;  %s14481_s6 = inlined_call_operand.vmem [shape: bf16[128,128], index: 6, kind: input, shape index: {}]   ;;  %s14482_s7 = inlined_call_operand.vmem [shape: f32[1,128], index: 7, kind: input, shape index: {}]   ;;  %s14483_s8 = inlined_call_operand.vmem [shape: bf16[2,1024,128], index: 8, kind: output, shape index: {}]  }
   0x1   :  { %s11182_s29 = smov 0   ;;  %s11184_s30 = smov 0  }
   0x2   :  { %s11186_s9 = smov 0  }
   0x3 LB: > { %14578 = sst [smem:[#allocation8_spill]] %s11122_s29  ;;  %s33_s10 = sadd.s32 1, %s11122_s29  ;;  %s11130_s9 = sphi %s11186_s9, %s18_s9   ;;  %s11126_s30 = sphi %s11184_s30, %s15475_s30   ;;  %s11122_s29 = sphi %s11182_s29, %s15474_s29   ;;  %s11118_s28 = sphi %s11180_s28, %s15473_s28   ;;  %s11114_s27 = sphi %s11178_s27, %s15472_s27  }
   0x4   : > { %14579 = sst [smem:[#allocation9_spill]] %s11126_s30  ;;  %s37_s11 = sadd.s32 1, %s11126_s30 }
   0x5   : > { %p35_p0 = scmp.ge.s32.totalorder %s33_s10, 2  ;;  %p8784_p1 = scmp.ge.s32.totalorder %s11130_s9, 1 }
   0x6   : > { %p281_p2 = scmp.lt.s32.totalorder %s11130_s9, 5 }
   0x7   : > { %s15477_s10 = smov (%p35_p0, %s33_s10), 0  ;;  %s15479_s11 = smov (!%p35_p0, %s37_s11), %s11126_s30 }
   0x8   : > { %14580 = sst [smem:[#allocation10_spill]] %s15477_s10  ;;  %p282_p3 = pnand %p8784_p1, %p281_p2 }
   0x9   : > { %p39_p4 = scmp.ge.s32.totalorder %s15479_s11, 2 }
   0xa   : > { %285 = sbr.rel (%p282_p3) target bundleno = 1725 (0x6bd), region = 48 }
   0xb   : > { %s15481_s11 = smov (%p39_p4, %s15479_s11), 0 }
   0xc   : > { %14581 = sst [smem:[#allocation11_spill]] %s15481_s11 }
  0x11   : > { %s8785_s12 = sshll.u32 %s11114_s27, 6  ;;  %p335_p5 = scmp.lt.s32.totalorder %s11118_s28, 1  ;;  %v11132_v0 = vmov 0  }
  0x12   : > { %p329_p6 = scmp.lt.s32.totalorder %s8785_s12, 127  ;;  %360 = vst [vmem:[#allocation2 + $0x120] sm:$0xff] %v11132_v0  ;;  %s8791_s13 = sshll.u32 %s11114_s27, 9 }
  0x13   : > { %s336_s14 = scalar_select %p335_p5, %s11118_s28, 1 }
  0x14   : > { %s15483_s12 = smov (!%p329_p6, %s8785_s12), 127  ;;  %s364_s10 = sshra.s32 %s8791_s13, 3 }
  0x15   : > { %s10819_s15 = smul.u32 144, %s336_s14  ;;  %s8789_s16 = sshll.u32 %s336_s14, 7 }
  0x16   : > { %s10818_s17 = smul.u32 12, %s15483_s12  ;;  %s351_s18 = sadd.s32 %s8789_s16, %s15483_s12 }
  0x17   : > { %s11220_s21 = scalar_lea.vmem %s14477_s2, %s10819_s15  ;;  %s8790_s22 = sshll.u32 %s351_s18, 2 }
  0x18   : > { %s11225_s25 = scalar_lea.vmem %s14476_s1, %s10818_s17  ;;  %s11230_s27 = scalar_lea.vmem %s14483_s8, %s8790_s22 }
  0x19   : > { %s366_s14 = smul.u32 136, %s11118_s28 }
  0x1b   : > { %s367_s30 = sadd.s32 %s366_s14, %s364_s10 }
  0x1c   : > { %s8792_s12 = sshll.u32 %s367_s30, 2 }
  0x1d   : > { %s11236_s15 = scalar_lea.vmem %s14475_s0, %s8792_s12 }
  0x1e   : > { %v402_v1 = vld [vmem:[%s11236_s15] sm:$0xff]  ;;  %v404_v2 = vld [vmem:[%s11236_s15 + $0x8] sm:$0xff]  ;;  %v406_v3 = vld [vmem:[%s11236_s15 + $0x10] sm:$0xff] }
  0x1f   : > { %403 = vst [vmem:[#allocation2] sm:$0xff] %v402_v1  ;;  %405 = vst [vmem:[#allocation2 + $0x8] sm:$0xff] %v404_v2  ;;  %v408_v4 = vld [vmem:[%s11236_s15 + $0x18] sm:$0xff]  ;;  %v410_v5 = vld [vmem:[%s11236_s15 + $0x20] sm:$0xff] }
  0x20   : > { %407 = vst [vmem:[#allocation2 + $0x10] sm:$0xff] %v406_v3  ;;  %v412_v6 = vld [vmem:[%s11236_s15 + $0x28] sm:$0xff]  ;;  %409 = vst [vmem:[#allocation2 + $0x18] sm:$0xff] %v408_v4  ;;  %v414_v7 = vld [vmem:[%s11236_s15 + $0x30] sm:$0xff] }
  0x21   : > { %411 = vst [vmem:[#allocation2 + $0x20] sm:$0xff] %v410_v5  ;;  %413 = vst [vmem:[#allocation2 + $0x28] sm:$0xff] %v412_v6  ;;  %v416_v8 = vld [vmem:[%s11236_s15 + $0x38] sm:$0xff]  ;;  %v418_v9 = vld [vmem:[%s11236_s15 + $0x40] sm:$0xff] }
  0x22   : > { %415 = vst [vmem:[#allocation2 + $0x30] sm:$0xff] %v414_v7  ;;  %417 = vst [vmem:[#allocation2 + $0x38] sm:$0xff] %v416_v8  ;;  %v420_v10 = vld [vmem:[%s11236_s15 + $0x48] sm:$0xff]  ;;  %v422_v11 = vld [vmem:[%s11236_s15 + $0x50] sm:$0xff] }
  0x23   : > { %419 = vst [vmem:[#allocation2 + $0x40] sm:$0xff] %v418_v9  ;;  %v424_v12 = vld [vmem:[%s11236_s15 + $0x58] sm:$0xff]  ;;  %421 = vst [vmem:[#allocation2 + $0x48] sm:$0xff] %v420_v10  ;;  %v426_v13 = vld [vmem:[%s11236_s15 + $0x60] sm:$0xff] }
  0x24   : > { %423 = vst [vmem:[#allocation2 + $0x50] sm:$0xff] %v422_v11  ;;  %425 = vst [vmem:[#allocation2 + $0x58] sm:$0xff] %v424_v12  ;;  %v428_v14 = vld [vmem:[%s11236_s15 + $0x68] sm:$0xff]  ;;  %v430_v15 = vld [vmem:[%s11236_s15 + $0x70] sm:$0xff] }
  0x25   : > { %427 = vst [vmem:[#allocation2 + $0x60] sm:$0xff] %v426_v13  ;;  %429 = vst [vmem:[#allocation2 + $0x68] sm:$0xff] %v428_v14  ;;  %v432_v16 = vld [vmem:[%s11236_s15 + $0x78] sm:$0xff]  ;;  %v434_v17 = vld [vmem:[%s11236_s15 + $0x80] sm:$0xff] }
  0x26   : > { %431 = vst [vmem:[#allocation2 + $0x70] sm:$0xff] %v430_v15  ;;  %v436_v18 = vld [vmem:[%s11236_s15 + $0x88] sm:$0xff]  ;;  %433 = vst [vmem:[#allocation2 + $0x78] sm:$0xff] %v432_v16  ;;  %v438_v19 = vld [vmem:[%s11236_s15 + $0x90] sm:$0xff] }
  0x27   : > { %435 = vst [vmem:[#allocation2 + $0x80] sm:$0xff] %v434_v17  ;;  %437 = vst [vmem:[#allocation2 + $0x88] sm:$0xff] %v436_v18  ;;  %v440_v20 = vld [vmem:[%s11236_s15 + $0x98] sm:$0xff]  ;;  %v442_v21 = vld [vmem:[%s11236_s15 + $0xa0] sm:$0xff] }
  0x28   : > { %439 = vst [vmem:[#allocation2 + $0x90] sm:$0xff] %v438_v19  ;;  %441 = vst [vmem:[#allocation2 + $0x98] sm:$0xff] %v440_v20  ;;  %v444_v22 = vld [vmem:[%s11236_s15 + $0xa8] sm:$0xff]  ;;  %v446_v23 = vld [vmem:[%s11236_s15 + $0xb0] sm:$0xff] }
  0x29   : > { %443 = vst [vmem:[#allocation2 + $0xa0] sm:$0xff] %v442_v21  ;;  %v448_v24 = vld [vmem:[%s11236_s15 + $0xb8] sm:$0xff]  ;;  %445 = vst [vmem:[#allocation2 + $0xa8] sm:$0xff] %v444_v22  ;;  %v450_v25 = vld [vmem:[%s11236_s15 + $0xc0] sm:$0xff] }
  0x2a   : > { %447 = vst [vmem:[#allocation2 + $0xb0] sm:$0xff] %v446_v23  ;;  %449 = vst [vmem:[#allocation2 + $0xb8] sm:$0xff] %v448_v24  ;;  %v452_v26 = vld [vmem:[%s11236_s15 + $0xc8] sm:$0xff]  ;;  %v454_v27 = vld [vmem:[%s11236_s15 + $0xd0] sm:$0xff] }
  0x2b   : > { %451 = vst [vmem:[#allocation2 + $0xc0] sm:$0xff] %v450_v25  ;;  %453 = vst [vmem:[#allocation2 + $0xc8] sm:$0xff] %v452_v26  ;;  %v456_v28 = vld [vmem:[%s11236_s15 + $0xd8] sm:$0xff]  ;;  %v458_v29 = vld [vmem:[%s11236_s15 + $0xe0] sm:$0xff] }
  0x2c   : > { %455 = vst [vmem:[#allocation2 + $0xd0] sm:$0xff] %v454_v27  ;;  %v460_v30 = vld [vmem:[%s11236_s15 + $0xe8] sm:$0xff]  ;;  %457 = vst [vmem:[#allocation2 + $0xd8] sm:$0xff] %v456_v28  ;;  %v462_v31 = vld [vmem:[%s11236_s15 + $0xf0] sm:$0xff] }
  0x2d   : > { %459 = vst [vmem:[#allocation2 + $0xe0] sm:$0xff] %v458_v29  ;;  %461 = vst [vmem:[#allocation2 + $0xe8] sm:$0xff] %v460_v30  ;;  %v464_v32 = vld [vmem:[%s11236_s15 + $0xf8] sm:$0xff]  ;;  %v466_v33 = vld [vmem:[%s11236_s15 + $0x100] sm:$0xff] }
  0x2e   : > { %463 = vst [vmem:[#allocation2 + $0xf0] sm:$0xff] %v462_v31  ;;  %465 = vst [vmem:[#allocation2 + $0xf8] sm:$0xff] %v464_v32  ;;  %v468_v34 = vld [vmem:[%s11236_s15 + $0x108] sm:$0xff]  ;;  %v470_v35 = vld [vmem:[%s11236_s15 + $0x110] sm:$0xff] }
  0x2f   : > { %467 = vst [vmem:[#allocation2 + $0x100] sm:$0xff] %v466_v33  ;;  %v472_v36 = vld [vmem:[%s11236_s15 + $0x118] sm:$0xff]  ;;  %469 = vst [vmem:[#allocation2 + $0x108] sm:$0xff] %v468_v34 }
  0x30   : > { %471 = vst [vmem:[#allocation2 + $0x110] sm:$0xff] %v470_v35  ;;  %473 = vst [vmem:[#allocation2 + $0x118] sm:$0xff] %v472_v36 }
  0x31   : > { %481 = vsyncadd [#allocation3], 4608  ;;  %1331 = vmatprep.subr.bf16.mxu0 %v11132_v0  ;;  %v10861_v37 = vld [vmem:[%s11220_s21] sm:$0xff]   ;;  %v10862_v38 = vld [vmem:[%s11220_s21 + $0x8] sm:$0xff]   ;;  %vm1234_vm0 = vcmask 261120  }
  0x32   : > { %1332 = vmatpush1.bf16.msra.mxu0 %v10861_v37  ;;  %v10863_v39 = vld [vmem:[%s11220_s21 + $0x10] sm:$0xff]   ;;  %v10864_v40 = vld [vmem:[%s11220_s21 + $0x18] sm:$0xff]   ;;  %v10865_v41 = vld [vmem:[%s11220_s21 + $0x20] sm:$0xff]  }
  0x33   : > { %1333 = vmatprep.subr.bf16.mxu0 %v11132_v0  ;;  %v10879_v42 = vld [vmem:[%s11225_s25 + $0x4] ss:$12 sps:$4 sm:$0xff]   ;;  %v10866_v44 = vld [vmem:[%s11220_s21 + $0x28] sm:$0xff]   ;;  %v10868_v46 = vld [vmem:[%s11220_s21 + $0x38] sm:$0xff]  }
  0x34   : > { %v11286_v43 = vld [vmem:[%s11220_s21 + $0x80] sm:$0xff]   ;;  %1363 = vmatprep.mubr.bf16.mxu0 %v10879_v42  ;;  %v10867_v45 = vld [vmem:[%s11220_s21 + $0x30] sm:$0xff]   ;;  %v10902_v47 = vld [vmem:[%s11220_s21 + $0x88] sm:$0xff]  }
  0x35   : > { %10814 = vmatprep.subr.bf16.mxu1 %v11286_v43  ;;  %v10903_v48 = vld [vmem:[%s11225_s25 + $0xc8] ss:$12 sps:$4 sm:$0xff]   ;;  %v10869_v49 = vld [vmem:[%s11220_s21 + $0x40] sm:$0xff]   ;;  %v10914_v54 = vld [vmem:[%s11225_s25 + $0x110] ss:$12 sps:$4 sm:$0xff]  }
  0x36   : > { %1334 = vmatpush1.bf16.msra.mxu0 %v10862_v38  ;;  %10816 = vmatpush3.bf16.msra.mxu1 %v11286_v43  ;;  %v10906_v50 = vld [vmem:[%s11225_s25 + $0xe0] ss:$12 sps:$4 sm:$0xff]   ;;  %v10911_v51 = vld [vmem:[%s11225_s25 + $0xf8] ss:$12 sps:$4 sm:$0xff]   ;;  %v10871_v53 = vld [vmem:[%s11220_s21 + $0x50] sm:$0xff]  }
  0x37   : > { %1335 = vmatprep.subr.bf16.mxu0 %v11132_v0  ;;  %10815 = vmatprep.subr.bf16.mxu1 %v10902_v47  ;;  %v10870_v52 = vld [vmem:[%s11220_s21 + $0x48] sm:$0xff]   ;;  %v10872_v56 = vld [vmem:[%s11220_s21 + $0x58] sm:$0xff]   ;;  %v10873_v57 = vld [vmem:[%s11220_s21 + $0x60] sm:$0xff]  }
  0x38   : > { %9966 = vmatprep.mubr.msk.bf16.mxu1 %vm1234_vm0, %v10903_v48  ;;  %v10919_v55 = vld [vmem:[%s11225_s25 + $0x128] ss:$12 sps:$4 sm:$0xff]   ;;  %v10922_v58 = vld [vmem:[%s11225_s25 + $0x140] ss:$12 sps:$4 sm:$0xff]   ;;  %v10927_v59 = vld [vmem:[%s11225_s25 + $0x158] ss:$12 sps:$4 sm:$0xff]  }
  0x39   : > { %v10874_v60 = vld [vmem:[%s11220_s21 + $0x68] sm:$0xff]   ;;  %v10930_v61 = vld [vmem:[%s11225_s25 + $0x170] ss:$12 sps:$4 sm:$0xff]   ;;  %v10884_v5 = vld [vmem:[%s11225_s25 + $0x34] ss:$12 sps:$4 sm:$0xff]  }
  0x3a   : > { %1336 = vmatpush1.bf16.msra.mxu0 %v10863_v39  ;;  %10817 = vmatpush3.bf16.msra.mxu1 %v10902_v47  ;;  %v10875_v62 = vld [vmem:[%s11220_s21 + $0x70] sm:$0xff]   ;;  %v10876_v1 = vld [vmem:[%s11220_s21 + $0x78] sm:$0xff]   ;;  %v10877_v2 = vld [vmem:[%s11225_s25] ss:$12 sps:$4 sm:$0xff]  }
  0x3b   : > { %1337 = vmatprep.subr.bf16.mxu0 %v11132_v0  ;;  %v10935_v63 = vld [vmem:[%s11225_s25 + $0x188] ss:$12 sps:$4 sm:$0xff]   ;;  %v10938_v3 = vld [vmem:[%s11225_s25 + $0x1a0] ss:$12 sps:$4 sm:$0xff]   ;;  %v10943_v6 = vld [vmem:[%s11225_s25 + $0x1b8] ss:$12 sps:$4 sm:$0xff]  }
  0x3c   : > { %v10881_v4 = vld [vmem:[%s11225_s25 + $0x1c] ss:$12 sps:$4 sm:$0xff]   ;;  %v10887_v9 = vld [vmem:[%s11225_s25 + $0x4c] ss:$12 sps:$4 sm:$0xff]   ;;  %v10890_v11 = vld [vmem:[%s11225_s25 + $0x64] ss:$12 sps:$4 sm:$0xff]  }
  0x3d   : > { %9967 = vmatmul.mubr.msk.bf16.vlgmr.msra.gmra.mrb[0].mxu1 %vm1234_vm0, %v10906_v50  ;;  %v10946_v7 = vld [vmem:[%s11225_s25 + $0x1d0] ss:$12 sps:$4 sm:$0xff]   ;;  %v10889_v10 = vld [vmem:[%s11225_s25 + $0x48] ss:$12 sps:$4 sm:$0xff]   ;;  %v10954_v13 = vld [vmem:[%s11225_s25 + $0x200] ss:$12 sps:$4 sm:$0xff]  }
  0x3e   : > { %1338 = vmatpush1.bf16.msra.mxu0 %v10864_v40  ;;  %9970 = vmatprep.mubr.msk.bf16.mxu1 %vm1234_vm0, %v10911_v51  ;;  %v10886_v8 = vld [vmem:[%s11225_s25 + $0x30] ss:$12 sps:$4 sm:$0xff]   ;;  %v10951_v12 = vld [vmem:[%s11225_s25 + $0x1e8] ss:$12 sps:$4 sm:$0xff]   ;;  %v10892_v14 = vld [vmem:[%s11225_s25 + $0x60] ss:$12 sps:$4 sm:$0xff]  }
  0x3f   : > { %1339 = vmatprep.subr.bf16.mxu0 %v11132_v0  ;;  %v10893_v15 = vld [vmem:[%s11225_s25 + $0x7c] ss:$12 sps:$4 sm:$0xff]   ;;  %v10895_v16 = vld [vmem:[%s11225_s25 + $0x78] ss:$12 sps:$4 sm:$0xff]   ;;  %v10896_v17 = vld [vmem:[%s11225_s25 + $0x94] ss:$12 sps:$4 sm:$0xff]  }
  0x40   : > { %v10959_v18 = vld [vmem:[%s11225_s25 + $0x218] ss:$12 sps:$4 sm:$0xff]   ;;  %v10962_v19 = vld [vmem:[%s11225_s25 + $0x230] ss:$12 sps:$4 sm:$0xff]   ;;  %v10901_v22 = vld [vmem:[%s11225_s25 + $0xa8] ss:$12 sps:$4 sm:$0xff]  }
  0x41   : > { %v10898_v20 = vld [vmem:[%s11225_s25 + $0x90] ss:$12 sps:$4 sm:$0xff]   ;;  %v10899_v21 = vld [vmem:[%s11225_s25 + $0xac] ss:$12 sps:$4 sm:$0xff]   ;;  %v10967_v24 = vld [vmem:[%s11225_s25 + $0x248] ss:$12 sps:$4 sm:$0xff]  }
  0x42   : > { %1340 = vmatpush1.bf16.msra.mxu0 %v10865_v41  ;;  %v10904_v23 = vld [vmem:[%s11225_s25 + $0xc4] ss:$12 sps:$4 sm:$0xff]   ;;  %v10970_v25 = vld [vmem:[%s11225_s25 + $0x260] ss:$12 sps:$4 sm:$0xff]   ;;  %v10908_v27 = vld [vmem:[%s11225_s25 + $0xdc] ss:$12 sps:$4 sm:$0xff]  }
  0x43   : > { %1341 = vmatprep.subr.bf16.mxu0 %v11132_v0  ;;  %v10907_v26 = vld [vmem:[%s11225_s25 + $0xc0] ss:$12 sps:$4 sm:$0xff]   ;;  %v10910_v28 = vld [vmem:[%s11225_s25 + $0xd8] ss:$12 sps:$4 sm:$0xff]   ;;  %v10978_v31 = vld [vmem:[%s11225_s25 + $0x290] ss:$12 sps:$4 sm:$0xff]  }
  0x44   : > { %v10912_v29 = vld [vmem:[%s11225_s25 + $0xf4] ss:$12 sps:$4 sm:$0xff]   ;;  %v10975_v30 = vld [vmem:[%s11225_s25 + $0x278] ss:$12 sps:$4 sm:$0xff]   ;;  %v10915_v32 = vld [vmem:[%s11225_s25 + $0xf0] ss:$12 sps:$4 sm:$0xff]  }
  0x45   : > { %9971 = vmatmul.mubr.msk.bf16.gmra.mrb[4].mxu1 %vm1234_vm0, %v10914_v54  ;;  %v10916_v33 = vld [vmem:[%s11225_s25 + $0x10c] ss:$12 sps:$4 sm:$0xff]   ;;  %v10918_v34 = vld [vmem:[%s11225_s25 + $0x108] ss:$12 sps:$4 sm:$0xff]   ;;  %v10920_v35 = vld [vmem:[%s11225_s25 + $0x124] ss:$12 sps:$4 sm:$0xff]  }
  0x46   : > { %1342 = vmatpush1.bf16.msra.mxu0 %v10866_v44  ;;  %9974 = vmatprep.mubr.msk.bf16.mxu1 %vm1234_vm0, %v10919_v55  ;;  %v10923_v36 = vld [vmem:[%s11225_s25 + $0x120] ss:$12 sps:$4 sm:$0xff]   ;;  %v10983_v37 = vld [vmem:[%s11225_s25 + $0x2a8] ss:$12 sps:$4 sm:$0xff]   ;;  %v10926_v40 = vld [vmem:[%s11225_s25 + $0x138] ss:$12 sps:$4 sm:$0xff]  }
  0x47   : > { %1343 = vmatprep.subr.bf16.mxu0 %v11132_v0  ;;  %v10924_v38 = vld [vmem:[%s11225_s25 + $0x13c] ss:$12 sps:$4 sm:$0xff]   ;;  %v10986_v39 = vld [vmem:[%s11225_s25 + $0x2c0] ss:$12 sps:$4 sm:$0xff]   ;;  %v10942_v50 = vld [vmem:[%s11225_s25 + $0x198] ss:$12 sps:$4 sm:$0xff]  }
  0x48   : > { %v10928_v41 = vld [vmem:[%s11225_s25 + $0x154] ss:$12 sps:$4 sm:$0xff]   ;;  %v10931_v42 = vld [vmem:[%s11225_s25 + $0x150] ss:$12 sps:$4 sm:$0xff]   ;;  %v10932_v44 = vld [vmem:[%s11225_s25 + $0x16c] ss:$12 sps:$4 sm:$0xff]  }
  0x49   : > { %v10939_v48 = vld [vmem:[%s11225_s25 + $0x180] ss:$12 sps:$4 sm:$0xff]   ;;  %v10950_v54 = vld [vmem:[%s11225_s25 + $0x1c8] ss:$12 sps:$4 sm:$0xff]   ;;  %v10952_v55 = vld [vmem:[%s11225_s25 + $0x1e4] ss:$12 sps:$4 sm:$0xff]  }
  0x4a   : > { %1344 = vmatpush1.bf16.msra.mxu0 %v10867_v45  ;;  %v10994_v45 = vld [vmem:[%s11225_s25 + $0x2f0] ss:$12 sps:$4 sm:$0xff]   ;;  %v10944_v51 = vld [vmem:[%s11225_s25 + $0x1b4] ss:$12 sps:$4 sm:$0xff]  }
  0x4b   : > { %1345 = vmatprep.subr.bf16.mxu0 %v11132_v0 }
  0x4d   : > { %9975 = vmatmul.mubr.msk.bf16.gmra.mrb[8].mxu1 %vm1234_vm0, %v10922_v58  ;;  %v10958_v58 = vld [vmem:[%s11225_s25 + $0x1f8] ss:$12 sps:$4 sm:$0xff]  }
  0x4e   : > { %1346 = vmatpush1.bf16.msra.mxu0 %v10868_v46  ;;  %9978 = vmatprep.mubr.msk.bf16.mxu1 %vm1234_vm0, %v10927_v59  ;;  %v10934_v46 = vld [vmem:[%s11225_s25 + $0x168] ss:$12 sps:$4 sm:$0xff]  }
  0x4f   : > { %1347 = vmatprep.subr.bf16.mxu0 %v11132_v0  ;;  %v10960_v59 = vld [vmem:[%s11225_s25 + $0x214] ss:$12 sps:$4 sm:$0xff]  }
  0x52   : > { %1348 = vmatpush1.bf16.msra.mxu0 %v10869_v49  ;;  %v10940_v49 = vld [vmem:[%s11225_s25 + $0x19c] ss:$12 sps:$4 sm:$0xff]  }
  0x53   : > { %1349 = vmatprep.subr.bf16.mxu0 %v11132_v0 }
  0x55   : > { %9979 = vmatmul.mubr.msk.bf16.gmra.mrb[12].mxu1 %vm1234_vm0, %v10930_v61  ;;  %v10964_v61 = vld [vmem:[%s11225_s25 + $0x22c] ss:$12 sps:$4 sm:$0xff]  }
  0x56   : > { %1350 = vmatpush1.bf16.msra.mxu0 %v10870_v52  ;;  %9982 = vmatprep.mubr.msk.bf16.mxu1 %vm1234_vm0, %v10935_v63  ;;  %v10947_v52 = vld [vmem:[%s11225_s25 + $0x1b0] ss:$12 sps:$4 sm:$0xff]   ;;  %v10966_v63 = vld [vmem:[%s11225_s25 + $0x228] ss:$12 sps:$4 sm:$0xff]  }
  0x57   : > { %1351 = vmatprep.subr.bf16.mxu0 %v11132_v0 }
  0x5a   : > { %1352 = vmatpush1.bf16.msra.mxu0 %v10871_v53  ;;  %v10948_v53 = vld [vmem:[%s11225_s25 + $0x1cc] ss:$12 sps:$4 sm:$0xff]  }
  0x5b   : > { %1353 = vmatprep.subr.bf16.mxu0 %v11132_v0 }
  0x5d   : > { %9983 = vmatmul.mubr.msk.bf16.gmra.mrb[16].mxu1 %vm1234_vm0, %v10938_v3 }
  0x5e   : > { %1354 = vmatpush1.bf16.msra.mxu0 %v10872_v56  ;;  %9986 = vmatprep.mubr.msk.bf16.mxu1 %vm1234_vm0, %v10943_v6  ;;  %v10955_v56 = vld [vmem:[%s11225_s25 + $0x1e0] ss:$12 sps:$4 sm:$0xff]  }
  0x5f   : > { %1355 = vmatprep.subr.bf16.mxu0 %v11132_v0 }
  0x62   : > { %1356 = vmatpush1.bf16.msra.mxu0 %v10873_v57  ;;  %v10956_v57 = vld [vmem:[%s11225_s25 + $0x1fc] ss:$12 sps:$4 sm:$0xff]  }
  0x63   : > { %1357 = vmatprep.subr.bf16.mxu0 %v11132_v0 }
  0x65   : > { %9987 = vmatmul.mubr.msk.bf16.gmra.mrb[20].mxu1 %vm1234_vm0, %v10946_v7  ;;  %v10972_v7 = vld [vmem:[%s11225_s25 + $0x25c] ss:$12 sps:$4 sm:$0xff]  }
  0x66   : > { %1358 = vmatpush1.bf16.msra.mxu0 %v10874_v60  ;;  %9990 = vmatprep.mubr.msk.bf16.mxu1 %vm1234_vm0, %v10951_v12  ;;  %v10963_v60 = vld [vmem:[%s11225_s25 + $0x210] ss:$12 sps:$4 sm:$0xff]  }
  0x67   : > { %1359 = vmatprep.subr.bf16.mxu0 %v11132_v0 }
  0x6a   : > { %1360 = vmatpush1.bf16.msra.mxu0 %v10875_v62 }
  0x6b   : > { %1361 = vmatprep.subr.bf16.mxu0 %v11132_v0  ;;  %v10883_v0 = vld [vmem:[%s11225_s25 + $0x18] ss:$12 sps:$4 sm:$0xff]  }
  0x6d   : > { %9991 = vmatmul.mubr.msk.bf16.gmra.mrb[24].mxu1 %vm1234_vm0, %v10954_v13  ;;  %v10976_v13 = vld [vmem:[%s11225_s25 + $0x274] ss:$12 sps:$4 sm:$0xff]  }
  0x6e   : > { %1362 = vmatpush1.bf16.msra.mxu0 %v10876_v1  ;;  %9994 = vmatprep.mubr.msk.bf16.mxu1 %vm1234_vm0, %v10959_v18 }
  0x6f   : > { %9946 = vmatprep.subr.bf16.mxu0 %v11286_v43 }
  0x71   : > { %1364 = vmatmul.mubr.bf16.vlgmr.msra.gmra.mrb[0].mxu0 %v10877_v2  ;;  %v10968_v2 = vld [vmem:[%s11225_s25 + $0x244] ss:$12 sps:$4 sm:$0xff]  }
  0x72   : > { %9947 = vmatpush3.bf16.msra.mxu0 %v11286_v43  ;;  %1371 = vmatprep.mubr.bf16.mxu0 %v10881_v4  ;;  %v10991_v43 = vld [vmem:[%s11225_s25 + $0x2d8] ss:$12 sps:$4 sm:$0xff]  }
  0x73   : > { %9948 = vmatprep.subr.bf16.mxu0 %v10902_v47 }
  0x75   : > { %9995 = vmatmul.mubr.msk.bf16.gmra.mrb[28].mxu1 %vm1234_vm0, %v10962_v19  ;;  %v10980_v19 = vld [vmem:[%s11225_s25 + $0x28c] ss:$12 sps:$4 sm:$0xff]  }
  0x76   : > { %9949 = vmatpush3.bf16.msra.mxu0 %v10902_v47  ;;  %9998 = vmatprep.mubr.msk.bf16.mxu1 %vm1234_vm0, %v10967_v24  ;;  %v10936_v47 = vld [vmem:[%s11225_s25 + $0x184] ss:$12 sps:$4 sm:$0xff]  }
  0x79   : > { %1372 = vmatmul.mubr.bf16.gmra.mrb[4].mxu0 %v10883_v0 }
  0x7a   : > { %1379 = vmatprep.mubr.bf16.mxu0 %v10884_v5  ;;  %v10971_v5 = vld [vmem:[%s11225_s25 + $0x240] ss:$12 sps:$4 sm:$0xff]  }
  0x7d   : > { %9999 = vmatmul.mubr.msk.bf16.gmra.mrb[32].mxu1 %vm1234_vm0, %v10970_v25  ;;  %v10982_v25 = vld [vmem:[%s11225_s25 + $0x288] ss:$12 sps:$4 sm:$0xff]  }
  0x7e   : > { %10002 = vmatprep.mubr.msk.bf16.mxu1 %vm1234_vm0, %v10975_v30 }
  0x81   : > { %1380 = vmatmul.mubr.bf16.gmra.mrb[8].mxu0 %v10886_v8 }
  0x82   : > { %1387 = vmatprep.mubr.bf16.mxu0 %v10887_v9 }
  0x85   : > { %10003 = vmatmul.mubr.msk.bf16.gmra.mrb[36].mxu1 %vm1234_vm0, %v10978_v31 }
  0x86   : > { %10006 = vmatprep.mubr.msk.bf16.mxu1 %vm1234_vm0, %v10983_v37 }
  0x89   : > { %1388 = vmatmul.mubr.bf16.gmra.mrb[12].mxu0 %v10889_v10 }
  0x8a   : > { %1395 = vmatprep.mubr.bf16.mxu0 %v10890_v11  ;;  %v10974_v11 = vld [vmem:[%s11225_s25 + $0x258] ss:$12 sps:$4 sm:$0xff]  }
  0x8d   : > { %10007 = vmatmul.mubr.msk.bf16.gmra.mrb[40].mxu1 %vm1234_vm0, %v10986_v39 }
  0x8e   : > { %10010 = vmatprep.mubr.msk.bf16.mxu1 %vm1234_vm0, %v10991_v43 }
  0x91   : > { %1396 = vmatmul.mubr.bf16.gmra.mrb[16].mxu0 %v10892_v14 }
  0x92   : > { %1403 = vmatprep.mubr.bf16.mxu0 %v10893_v15 }
  0x95   : > { %10011 = vmatmul.mubr.msk.bf16.gmra.mrb[44].mxu1 %vm1234_vm0, %v10994_v45  ;;  %v10992_v45 = vld [vmem:[%s11225_s25 + $0x2d4] ss:$12 sps:$4 sm:$0xff]  }
  0x99   : > { %1404 = vmatmul.mubr.bf16.gmra.mrb[20].mxu0 %v10895_v16 }
  0x9a   : > { %1411 = vmatprep.mubr.bf16.mxu0 %v10896_v17  ;;  %v10979_v17 = vld [vmem:[%s11225_s25 + $0x270] ss:$12 sps:$4 sm:$0xff]  }
  0xa1   : > { %1412 = vmatmul.mubr.bf16.gmra.mrb[24].mxu0 %v10898_v20 }
  0xa2   : > { %1419 = vmatprep.mubr.bf16.mxu0 %v10899_v21 }
  0xa9   : > { %1420 = vmatmul.mubr.bf16.gmra.mrb[28].mxu0 %v10901_v22 }
  0xaa   : > { %1427 = vmatprep.mubr.bf16.mxu0 %v10904_v23 }
  0xb1   : > { %1428 = vmatmul.mubr.bf16.gmra.mrb[32].mxu0 %v10907_v26 }
  0xb2   : > { %1435 = vmatprep.mubr.bf16.mxu0 %v10908_v27 }
  0xb9   : > { %1436 = vmatmul.mubr.bf16.gmra.mrb[36].mxu0 %v10910_v28  ;;  %v10984_v28 = vld [vmem:[%s11225_s25 + $0x2a4] ss:$12 sps:$4 sm:$0xff]  }
  0xba   : > { %1443 = vmatprep.mubr.bf16.mxu0 %v10912_v29 }
  0xc1   : > { %1444 = vmatmul.mubr.bf16.gmra.mrb[40].mxu0 %v10915_v32 }
  0xc2   : > { %1451 = vmatprep.mubr.bf16.mxu0 %v10916_v33 }
  0xc9   : > { %1452 = vmatmul.mubr.bf16.gmra.mrb[44].mxu0 %v10918_v34  ;;  %v10987_v34 = vld [vmem:[%s11225_s25 + $0x2a0] ss:$12 sps:$4 sm:$0xff]  }
  0xca   : > { %1459 = vmatprep.mubr.bf16.mxu0 %v10920_v35 }
  0xd1   : > { %1460 = vmatmul.mubr.bf16.gmra.mrb[48].mxu0 %v10923_v36  ;;  %v10988_v36 = vld [vmem:[%s11225_s25 + $0x2bc] ss:$12 sps:$4 sm:$0xff]  }
  0xd2   : > { %1467 = vmatprep.mubr.bf16.mxu0 %v10924_v38 }
  0xd9   : > { %1468 = vmatmul.mubr.bf16.gmra.mrb[52].mxu0 %v10926_v40 }
  0xda   : > { %1475 = vmatprep.mubr.bf16.mxu0 %v10928_v41 }
  0xe1   : > { %1476 = vmatmul.mubr.bf16.gmra.mrb[56].mxu0 %v10931_v42  ;;  %v10990_v42 = vld [vmem:[%s11225_s25 + $0x2b8] ss:$12 sps:$4 sm:$0xff]  }
  0xe2   : > { %1483 = vmatprep.mubr.bf16.mxu0 %v10932_v44 }
  0xe9   : > { %1484 = vmatmul.mubr.bf16.gmra.mrb[60].mxu0 %v10934_v46 }
  0xea   : > { %1491 = vmatprep.mubr.bf16.mxu0 %v10936_v47 }
  0xf1   : > { %1492 = vmatmul.mubr.bf16.gmra.mrb[64].mxu0 %v10939_v48 }
  0xf2   : > { %1499 = vmatprep.mubr.bf16.mxu0 %v10940_v49 }
  0xf9   : > { %1500 = vmatmul.mubr.bf16.gmra.mrb[68].mxu0 %v10942_v50  ;;  %v10995_v50 = vld [vmem:[%s11225_s25 + $0x2d0] ss:$12 sps:$4 sm:$0xff]  }
  0xfa   : > { %1507 = vmatprep.mubr.bf16.mxu0 %v10944_v51 }
 0x101   : > { %1508 = vmatmul.mubr.bf16.gmra.mrb[72].mxu0 %v10947_v52  ;;  %v10996_v52 = vld [vmem:[%s11225_s25 + $0x2ec] ss:$12 sps:$4 sm:$0xff]  }
 0x102   : > { %1515 = vmatprep.mubr.bf16.mxu0 %v10948_v53 }
 0x109   : > { %1516 = vmatmul.mubr.bf16.gmra.mrb[76].mxu0 %v10950_v54 }
 0x10a   : > { %1523 = vmatprep.mubr.bf16.mxu0 %v10952_v55 }
 0x110   : > { %v11409_v62 = vpop.f32.mrb[0].mxu1 }
 0x111   : > { %1524 = vmatmul.mubr.bf16.gmra.mrb[80].mxu0 %v10955_v56  ;;  %v11412_v1 = vpop.f32.mrb[1].mxu1 }
 0x112   : > { %1531 = vmatprep.mubr.bf16.mxu0 %v10956_v57  ;;  %v11415_v3 = vpop.f32.mrb[2].mxu1 }
 0x113   : > { %v11417_v4 = vpop.f32.mrb[3].mxu1 }
 0x118   : > { %v11419_v0 = vpop.f32.mrb[4].mxu1 }
 0x119   : > { %1532 = vmatmul.mubr.bf16.gmra.mrb[84].mxu0 %v10958_v58  ;;  %v11422_v6 = vpop.f32.mrb[5].mxu1  ;;  %v10998_v58 = vld [vmem:[%s11225_s25 + $0x2e8] ss:$12 sps:$4 sm:$0xff]  }
 0x11a   : > { %1539 = vmatprep.mubr.bf16.mxu0 %v10960_v59  ;;  %v11425_v8 = vpop.f32.mrb[6].mxu1 }
 0x11b   : > { %v11427_v9 = vpop.f32.mrb[7].mxu1 }
 0x120   : > { %v11429_v10 = vpop.f32.mrb[8].mxu1 }
 0x121   : > { %1540 = vmatmul.mubr.bf16.gmra.mrb[88].mxu0 %v10963_v60  ;;  %v11432_v12 = vpop.f32.mrb[9].mxu1 }
 0x122   : > { %1547 = vmatprep.mubr.bf16.mxu0 %v10964_v61  ;;  %v11435_v14 = vpop.f32.mrb[10].mxu1  ;;  %v10999_v61 = vld [vmem:[%s11225_s25 + $0x8] ss:$12 sps:$4 sm:$0xff]  }
 0x123   : > { %v11437_v15 = vpop.f32.mrb[11].mxu1 }
 0x128   : > { %v11439_v16 = vpop.f32.mrb[12].mxu1 }
 0x129   : > { %1548 = vmatmul.mubr.bf16.gmra.mrb[92].mxu0 %v10966_v63  ;;  %v11442_v18 = vpop.f32.mrb[13].mxu1 }
 0x12a   : > { %1555 = vmatprep.mubr.bf16.mxu0 %v10968_v2  ;;  %v11445_v20 = vpop.f32.mrb[14].mxu1 }
 0x12b   : > { %v11447_v21 = vpop.f32.mrb[15].mxu1 }
 0x130   : > { %v11451_v23 = vpop.f32.mrb[16].mxu1 }
 0x131   : > { %1556 = vmatmul.mubr.bf16.gmra.mrb[96].mxu0 %v10971_v5  ;;  %v11454_v26 = vpop.f32.mrb[17].mxu1 }
 0x132   : > { %1563 = vmatprep.mubr.bf16.mxu0 %v10972_v7  ;;  %v11459_v29 = vpop.f32.mrb[18].mxu1 }
 0x133   : > { %v11461_v31 = vpop.f32.mrb[19].mxu1 }
 0x138   : > { %v11469_v38 = vpop.f32.mrb[20].mxu1 }
 0x139   : > { %1564 = vmatmul.mubr.bf16.gmra.mrb[100].mxu0 %v10974_v11  ;;  %v11473_v40 = vpop.f32.mrb[21].mxu1  ;;  %v11000_v11 = vld [vmem:[%s11225_s25 + $0x20] ss:$12 sps:$4 sm:$0xff]  }
 0x13a   : > { %1571 = vmatprep.mubr.bf16.mxu0 %v10976_v13  ;;  %v11476_v43 = vpop.f32.mrb[22].mxu1 }
 0x13b   : > { %v11481_v46 = vpop.f32.mrb[23].mxu1 }
 0x140   : > { %v11489_v54 = vpop.f32.mrb[24].mxu1 }
 0x141   : > { %1572 = vmatmul.mubr.bf16.gmra.mrb[104].mxu0 %v10979_v17  ;;  %v11493_v56 = vpop.f32.mrb[25].mxu1  ;;  %v11001_v17 = vld [vmem:[%s11225_s25 + $0x38] ss:$12 sps:$4 sm:$0xff]  }
 0x142   : > { %1579 = vmatprep.mubr.bf16.mxu0 %v10980_v19  ;;  %v11496_v59 = vpop.f32.mrb[26].mxu1 }
 0x143   : > { %v11501_v63 = vpop.f32.mrb[27].mxu1 }
 0x144   : > { %v11449_v22 = vpop.f32.mrb[0].mxu0 }
 0x145   : > { %v1367_v24 = vpop.f32.mrb[1].mxu0 }
 0x146   : > { %v11456_v27 = vpop.f32.mrb[2].mxu0 }
 0x147   : > { %v1370_v30 = vpop.f32.mrb[3].mxu0 }
 0x148   : > { %v11510_v24 = vpop.f32.mrb[28].mxu1 }
 0x149   : > { %1580 = vmatmul.mubr.bf16.gmra.mrb[108].mxu0 %v10982_v25 }
 0x14a   : > { %1587 = vmatprep.mubr.bf16.mxu0 %v10984_v28  ;;  %v11516_v28 = vpop.f32.mrb[29].mxu1 }
 0x14c   : > { %v11463_v32 = vpop.f32.mrb[4].mxu0 }
 0x14d   : > { %v1375_v33 = vpop.f32.mrb[5].mxu0 }
 0x14e   : > { %v11466_v35 = vpop.f32.mrb[6].mxu0  ;;  %v11002_v33 = vld [vmem:[%s11225_s25 + $0x50] ss:$12 sps:$4 sm:$0xff]  }
 0x14f   : > { %v1378_v37 = vpop.f32.mrb[7].mxu0 }
 0x150   : > { %v11003_v37 = vld [vmem:[%s11225_s25 + $0x68] ss:$12 sps:$4 sm:$0xff]  }
 0x151   : > { %1588 = vmatmul.mubr.bf16.gmra.mrb[112].mxu0 %v10987_v34  ;;  %v11519_v34 = vpop.f32.mrb[30].mxu1 }
 0x152   : > { %1595 = vmatprep.mubr.bf16.mxu0 %v10988_v36 }
 0x154   : > { %v11471_v39 = vpop.f32.mrb[8].mxu0 }
 0x155   : > { %v1383_v41 = vpop.f32.mrb[9].mxu0 }
 0x156   : > { %v11478_v44 = vpop.f32.mrb[10].mxu0  ;;  %v11524_v41 = vpop.f32.mrb[31].mxu1 }
 0x157   : > { %v1386_v47 = vpop.f32.mrb[11].mxu0 }
 0x159   : > { %1596 = vmatmul.mubr.bf16.gmra.mrb[116].mxu0 %v10990_v42 }
 0x15a   : > { %1603 = vmatprep.mubr.bf16.mxu0 %v10992_v45 }
 0x15c   : > { %v11483_v48 = vpop.f32.mrb[12].mxu0 }
 0x15d   : > { %v1391_v49 = vpop.f32.mrb[13].mxu0 }
 0x15e   : > { %v11486_v51 = vpop.f32.mrb[14].mxu0  ;;  %v11004_v49 = vld [vmem:[%s11225_s25 + $0x80] ss:$12 sps:$4 sm:$0xff]  }
 0x15f   : > { %v1394_v53 = vpop.f32.mrb[15].mxu0 }
 0x161   : > { %1604 = vmatmul.mubr.bf16.gmra.mrb[120].mxu0 %v10995_v50 }
 0x162   : > { %1611 = vmatprep.mubr.bf16.mxu0 %v10996_v52  ;;  %v11005_v52 = vld [vmem:[%s11225_s25 + $0x98] ss:$12 sps:$4 sm:$0xff]  }
 0x164   : > { %v11491_v55 = vpop.f32.mrb[16].mxu0 }
 0x165   : > { %v1399_v57 = vpop.f32.mrb[17].mxu0 }
 0x166   : > { %v11498_v60 = vpop.f32.mrb[18].mxu0  ;;  %v11534_v57 = vpop.f32.mrb[32].mxu1 }
 0x167   : > { %v1402_v2 = vpop.f32.mrb[19].mxu0 }
 0x169   : > { %1612 = vmatmul.mubr.bf16.gmra.mrb[124].mxu0 %v10998_v58 }
 0x16a   : > { %9950 = vmatprep.mubr.msk.bf16.mxu0 %vm1234_vm0, %v10999_v61  ;;  %v11538_v61 = vpop.f32.mrb[33].mxu1 }
 0x16c   : > { %v11504_v5 = vpop.f32.mrb[20].mxu0 }
 0x16d   : > { %v1407_v7 = vpop.f32.mrb[21].mxu0 }
 0x16e   : > { %v11507_v13 = vpop.f32.mrb[22].mxu0 }
 0x16f   : > { %v1410_v19 = vpop.f32.mrb[23].mxu0 }
 0x171   : > { %9951 = vmatmul.mubr.msk.bf16.vlgmr.msra.gmra.mrb[128].mxu0 %vm1234_vm0, %v11000_v11  ;;  %v11006_v11 = vld [vmem:[%s11225_s25 + $0xb0] ss:$12 sps:$4 sm:$0xff]  }
 0x172   : > { %9954 = vmatprep.mubr.msk.bf16.mxu0 %vm1234_vm0, %v11001_v17  ;;  %v11544_v17 = vpop.f32.mrb[34].mxu1 }
 0x174   : > { %v11514_v25 = vpop.f32.mrb[24].mxu0 }
 0x175   : > { %v1415_v30 = vpop.f32.mrb[25].mxu0 }
 0x176   : > { %v11521_v36 = vpop.f32.mrb[26].mxu0  ;;  %v11546_v30 = vpop.f32.mrb[35].mxu1 }
 0x177   : > { %v1418_v42 = vpop.f32.mrb[27].mxu0 }
 0x179   : > { %9955 = vmatmul.mubr.msk.bf16.gmra.mrb[132].mxu0 %vm1234_vm0, %v11002_v33 }
 0x17a   : > { %9958 = vmatprep.mubr.msk.bf16.mxu0 %vm1234_vm0, %v11003_v37 }
 0x17c   : > { %v11528_v45 = vpop.f32.mrb[28].mxu0 }
 0x17d   : > { %v1423_v47 = vpop.f32.mrb[29].mxu0 }
 0x17e   : > { %v11531_v50 = vpop.f32.mrb[30].mxu0 }
 0x17f   : > { %v1426_v53 = vpop.f32.mrb[31].mxu0 }
 0x181   : > { %9959 = vmatmul.mubr.msk.bf16.gmra.mrb[136].mxu0 %vm1234_vm0, %v11004_v49 }
 0x182   : > { %9962 = vmatprep.mubr.msk.bf16.mxu0 %vm1234_vm0, %v11005_v52 }
 0x184   : > { %v1429_v58 = vpop.f32.mrb[32].mxu0 }
 0x185   : > { %v11541_v2 = vadd.f32 %v11412_v1, %v1429_v58  ;;  %v1431_v7 = vpop.f32.mrb[33].mxu0  ;;  %v11558_v58 = vpop.f32.mrb[36].mxu1 }
 0x186   : > { %v1432_v19 = vpop.f32.mrb[34].mxu0 }
 0x187   : > { %14582 = vst [vmem:[#allocation12_spill] sm:$0xff] %v11541_v2  ;;  %v11549_v33 = vadd.f32 %v11417_v4, %v1432_v19  ;;  %v1434_v37 = vpop.f32.mrb[35].mxu0  ;;  %v11560_v2 = vpop.f32.mrb[37].mxu1 }
 0x189   : > { %14583 = vst [vmem:[#allocation13_spill] sm:$0xff] %v11549_v33  ;;  %9963 = vmatmul.mubr.msk.bf16.gmra.mrb[140].mxu0 %vm1234_vm0, %v11006_v11  ;;  %v11565_v11 = vpop.f32.mrb[38].mxu1 }
 0x18c   : > { %v1437_v42 = vpop.f32.mrb[36].mxu0 }
 0x18d   : > { %v11553_v47 = vadd.f32 %v11409_v62, %v1437_v42  ;;  %v1439_v49 = vpop.f32.mrb[37].mxu0  ;;  %v11567_v62 = vpop.f32.mrb[39].mxu1 }
 0x18e   : > { %v1440_v1 = vpop.f32.mrb[38].mxu0 }
 0x18f   : > { %14584 = vst [vmem:[#allocation14_spill] sm:$0xff] %v11553_v47  ;;  %v11556_v52 = vadd.f32 %v11415_v3, %v1440_v1  ;;  %v1442_v53 = vpop.f32.mrb[39].mxu0 }
 0x191   : > { %14585 = vst [vmem:[#allocation15_spill] sm:$0xff] %v11556_v52 }
 0x194   : > { %v1445_v7 = vpop.f32.mrb[40].mxu0 }
 0x195   : > { %v11563_v4 = vadd.f32 %v11422_v6, %v1445_v7  ;;  %v1447_v19 = vpop.f32.mrb[41].mxu0  ;;  %v11578_v7 = vpop.f32.mrb[40].mxu1 }
 0x196   : > { %v1448_v37 = vpop.f32.mrb[42].mxu0 }
 0x197   : > { %14586 = vst [vmem:[#allocation16_spill] sm:$0xff] %v11563_v4  ;;  %v11570_v42 = vadd.f32 %v11427_v9, %v1448_v37  ;;  %v1450_v3 = vpop.f32.mrb[43].mxu0  ;;  %v11580_v4 = vpop.f32.mrb[41].mxu1 }
 0x198   : > { %v11585_v37 = vpop.f32.mrb[42].mxu1 }
 0x199   : > { %14587 = vst [vmem:[#allocation17_spill] sm:$0xff] %v11570_v42 }
 0x19c   : > { %v1453_v49 = vpop.f32.mrb[44].mxu0 }
 0x19d   : > { %v11573_v1 = vadd.f32 %v11419_v0, %v1453_v49  ;;  %v1455_v53 = vpop.f32.mrb[45].mxu0  ;;  %v11587_v0 = vpop.f32.mrb[43].mxu1 }
 0x19e   : > { %v1456_v33 = vpop.f32.mrb[46].mxu0 }
 0x19f   : > { %14588 = vst [vmem:[#allocation18_spill] sm:$0xff] %v11573_v1  ;;  %v11576_v52 = vadd.f32 %v11425_v8, %v1456_v33  ;;  %v1458_v6 = vpop.f32.mrb[47].mxu0 }
 0x1a1   : > { %14589 = vst [vmem:[#allocation19_spill] sm:$0xff] %v11576_v52 }
 0x1a4   : > { %v1461_v19 = vpop.f32.mrb[48].mxu0 }
 0x1a5   : > { %v11583_v47 = vadd.f32 %v11432_v12, %v1461_v19  ;;  %v1463_v9 = vpop.f32.mrb[49].mxu0  ;;  %v11598_v19 = vpop.f32.mrb[44].mxu1 }
 0x1a6   : > { %v1464_v3 = vpop.f32.mrb[50].mxu0 }
 0x1a7   : > { %14590 = vst [vmem:[#allocation20_spill] sm:$0xff] %v11583_v47  ;;  %v11590_v49 = vadd.f32 %v11437_v15, %v1464_v3  ;;  %v1466_v8 = vpop.f32.mrb[51].mxu0  ;;  %v11600_v47 = vpop.f32.mrb[45].mxu1 }
 0x1a8   : > { %v11605_v3 = vpop.f32.mrb[46].mxu1 }
 0x1a9   : > { %14591 = vst [vmem:[#allocation21_spill] sm:$0xff] %v11590_v49 }
 0x1ac   : > { %v1469_v33 = vpop.f32.mrb[52].mxu0 }
 0x1ad   : > { %v11593_v53 = vadd.f32 %v11429_v10, %v1469_v33  ;;  %v1471_v6 = vpop.f32.mrb[53].mxu0  ;;  %v11607_v10 = vpop.f32.mrb[47].mxu1 }
 0x1ae   : > { %v1472_v42 = vpop.f32.mrb[54].mxu0 }
 0x1af   : > { %14592 = vst [vmem:[#allocation22_spill] sm:$0xff] %v11593_v53  ;;  %v11596_v52 = vadd.f32 %v11435_v14, %v1472_v42  ;;  %v1474_v12 = vpop.f32.mrb[55].mxu0 }
 0x1b1   : > { %14593 = vst [vmem:[#allocation23_spill] sm:$0xff] %v11596_v52 }
 0x1b4   : > { %v1477_v9 = vpop.f32.mrb[56].mxu0 }
 0x1b5   : > { %v11603_v1 = vadd.f32 %v11442_v18, %v1477_v9  ;;  %v1479_v15 = vpop.f32.mrb[57].mxu0 }
 0x1b6   : > { %v1480_v8 = vpop.f32.mrb[58].mxu0 }
 0x1b7   : > { %14594 = vst [vmem:[#allocation24_spill] sm:$0xff] %v11603_v1  ;;  %v11610_v33 = vadd.f32 %v11447_v21, %v1480_v8  ;;  %v1482_v14 = vpop.f32.mrb[59].mxu0 }
 0x1b9   : > { %14595 = vst [vmem:[#allocation25_spill] sm:$0xff] %v11610_v33 }
 0x1bc   : > { %v1485_v42 = vpop.f32.mrb[60].mxu0 }
 0x1bd   : > { %v11613_v6 = vadd.f32 %v11439_v16, %v1485_v42  ;;  %v1487_v12 = vpop.f32.mrb[61].mxu0 }
 0x1be   : > { %v1488_v49 = vpop.f32.mrb[62].mxu0 }
 0x1bf   : > { %14596 = vst [vmem:[#allocation26_spill] sm:$0xff] %v11613_v6  ;;  %v11616_v52 = vadd.f32 %v11445_v20, %v1488_v49  ;;  %v1490_v18 = vpop.f32.mrb[63].mxu0 }
 0x1c1   : > { %14597 = vst [vmem:[#allocation27_spill] sm:$0xff] %v11616_v52 }
 0x1c4   : > { %v1493_v9 = vpop.f32.mrb[64].mxu0 }
 0x1c5   : > { %v11619_v15 = vadd.f32 %v11454_v26, %v1493_v9  ;;  %v1495_v1 = vpop.f32.mrb[65].mxu0 }
 0x1c6   : > { %v1496_v53 = vpop.f32.mrb[66].mxu0 }
 0x1c7   : > { %14598 = vst [vmem:[#allocation28_spill] sm:$0xff] %v11619_v15  ;;  %v11622_v21 = vadd.f32 %v11461_v31, %v1496_v53  ;;  %v1498_v8 = vpop.f32.mrb[67].mxu0 }
 0x1c9   : > { %14599 = vst [vmem:[#allocation29_spill] sm:$0xff] %v11622_v21 }
 0x1cc   : > { %v1501_v14 = vpop.f32.mrb[68].mxu0 }
 0x1cd   : > { %v11625_v16 = vadd.f32 %v11451_v23, %v1501_v14  ;;  %v1503_v42 = vpop.f32.mrb[69].mxu0 }
 0x1ce   : > { %v1504_v12 = vpop.f32.mrb[70].mxu0 }
 0x1cf   : > { %14600 = vst [vmem:[#allocation30_spill] sm:$0xff] %v11625_v16  ;;  %v11628_v20 = vadd.f32 %v11459_v29, %v1504_v12  ;;  %v1506_v49 = vpop.f32.mrb[71].mxu0 }
 0x1d1   : > { %14601 = vst [vmem:[#allocation31_spill] sm:$0xff] %v11628_v20 }
 0x1d4   : > { %v1509_v18 = vpop.f32.mrb[72].mxu0 }
 0x1d5   : > { %v11631_v26 = vadd.f32 %v11473_v40, %v1509_v18  ;;  %v1511_v1 = vpop.f32.mrb[73].mxu0 }
 0x1d6   : > { %v1512_v9 = vpop.f32.mrb[74].mxu0 }
 0x1d7   : > { %14602 = vst [vmem:[#allocation32_spill] sm:$0xff] %v11631_v26  ;;  %v11634_v31 = vadd.f32 %v11481_v46, %v1512_v9  ;;  %v1514_v53 = vpop.f32.mrb[75].mxu0 }
 0x1d9   : > { %14603 = vst [vmem:[#allocation33_spill] sm:$0xff] %v11634_v31 }
 0x1dc   : > { %v1517_v8 = vpop.f32.mrb[76].mxu0 }
 0x1dd   : > { %v11637_v23 = vadd.f32 %v11469_v38, %v1517_v8  ;;  %v1519_v14 = vpop.f32.mrb[77].mxu0 }
 0x1de   : > { %v1520_v42 = vpop.f32.mrb[78].mxu0 }
 0x1df   : > { %14604 = vst [vmem:[#allocation34_spill] sm:$0xff] %v11637_v23  ;;  %v11640_v29 = vadd.f32 %v11476_v43, %v1520_v42  ;;  %v1522_v12 = vpop.f32.mrb[79].mxu0 }
 0x1e1   : > { %14605 = vst [vmem:[#allocation35_spill] sm:$0xff] %v11640_v29 }
 0x1e4   : > { %v1525_v49 = vpop.f32.mrb[80].mxu0 }
 0x1e5   : > { %v11643_v40 = vadd.f32 %v11493_v56, %v1525_v49  ;;  %v1527_v18 = vpop.f32.mrb[81].mxu0 }
 0x1e6   : > { %v1528_v1 = vpop.f32.mrb[82].mxu0 }
 0x1e7   : > { %14606 = vst [vmem:[#allocation36_spill] sm:$0xff] %v11643_v40  ;;  %v11646_v46 = vadd.f32 %v11501_v63, %v1528_v1  ;;  %v1530_v9 = vpop.f32.mrb[83].mxu0 }
 0x1e9   : > { %14607 = vst [vmem:[#allocation37_spill] sm:$0xff] %v11646_v46 }
 0x1ec   : > { %v1533_v53 = vpop.f32.mrb[84].mxu0 }
 0x1ed   : > { %v11649_v38 = vadd.f32 %v11489_v54, %v1533_v53  ;;  %v1535_v8 = vpop.f32.mrb[85].mxu0 }
 0x1ee   : > { %v1536_v14 = vpop.f32.mrb[86].mxu0 }
 0x1ef   : > { %14608 = vst [vmem:[#allocation38_spill] sm:$0xff] %v11649_v38  ;;  %v11652_v43 = vadd.f32 %v11496_v59, %v1536_v14  ;;  %v1538_v42 = vpop.f32.mrb[87].mxu0 }
 0x1f1   : > { %14609 = vst [vmem:[#allocation39_spill] sm:$0xff] %v11652_v43 }
 0x1f4   : > { %v1541_v12 = vpop.f32.mrb[88].mxu0 }
 0x1f5   : > { %v11655_v56 = vadd.f32 %v11516_v28, %v1541_v12  ;;  %v1543_v49 = vpop.f32.mrb[89].mxu0 }
 0x1f6   : > { %v1544_v18 = vpop.f32.mrb[90].mxu0 }
 0x1f7   : > { %14610 = vst [vmem:[#allocation40_spill] sm:$0xff] %v11655_v56  ;;  %v11658_v63 = vadd.f32 %v11524_v41, %v1544_v18  ;;  %v1546_v1 = vpop.f32.mrb[91].mxu0 }
 0x1f9   : > { %14611 = vst [vmem:[#allocation41_spill] sm:$0xff] %v11658_v63 }
 0x1fc   : > { %v1549_v9 = vpop.f32.mrb[92].mxu0 }
 0x1fd   : > { %v11661_v54 = vadd.f32 %v11510_v24, %v1549_v9  ;;  %v1551_v53 = vpop.f32.mrb[93].mxu0 }
 0x1fe   : > { %v1552_v8 = vpop.f32.mrb[94].mxu0 }
 0x1ff   : > { %14612 = vst [vmem:[#allocation42_spill] sm:$0xff] %v11661_v54  ;;  %v11664_v59 = vadd.f32 %v11519_v34, %v1552_v8  ;;  %v1554_v14 = vpop.f32.mrb[95].mxu0 }
 0x201   : > { %14613 = vst [vmem:[#allocation43_spill] sm:$0xff] %v11664_v59 }
 0x204   : > { %v1557_v42 = vpop.f32.mrb[96].mxu0 }
 0x205   : > { %v11667_v28 = vadd.f32 %v11538_v61, %v1557_v42  ;;  %v1559_v12 = vpop.f32.mrb[97].mxu0 }
 0x206   : > { %v1560_v49 = vpop.f32.mrb[98].mxu0 }
 0x207   : > { %14614 = vst [vmem:[#allocation44_spill] sm:$0xff] %v11667_v28  ;;  %v11670_v41 = vadd.f32 %v11546_v30, %v1560_v49  ;;  %v1562_v18 = vpop.f32.mrb[99].mxu0 }
 0x209   : > { %14615 = vst [vmem:[#allocation45_spill] sm:$0xff] %v11670_v41 }
 0x20c   : > { %v1565_v1 = vpop.f32.mrb[100].mxu0 }
 0x20d   : > { %v11673_v24 = vadd.f32 %v11534_v57, %v1565_v1  ;;  %v1567_v9 = vpop.f32.mrb[101].mxu0 }
 0x20e   : > { %v1568_v53 = vpop.f32.mrb[102].mxu0 }
 0x20f   : > { %14616 = vst [vmem:[#allocation46_spill] sm:$0xff] %v11673_v24  ;;  %v11676_v34 = vadd.f32 %v11544_v17, %v1568_v53  ;;  %v1570_v8 = vpop.f32.mrb[103].mxu0 }
 0x211   : > { %14617 = vst [vmem:[#allocation47_spill] sm:$0xff] %v11676_v34 }
 0x214   : > { %v1573_v14 = vpop.f32.mrb[104].mxu0 }
 0x215   : > { %v11679_v61 = vadd.f32 %v11560_v2, %v1573_v14  ;;  %v1575_v42 = vpop.f32.mrb[105].mxu0 }
 0x216   : > { %v1576_v12 = vpop.f32.mrb[106].mxu0 }
 0x217   : > { %14618 = vst [vmem:[#allocation48_spill] sm:$0xff] %v11679_v61  ;;  %v11682_v30 = vadd.f32 %v11567_v62, %v1576_v12  ;;  %v1578_v49 = vpop.f32.mrb[107].mxu0 }
 0x219   : > { %14619 = vst [vmem:[#allocation49_spill] sm:$0xff] %v11682_v30 }
 0x21c   : > { %v1581_v18 = vpop.f32.mrb[108].mxu0 }
 0x21d   : > { %v11685_v57 = vadd.f32 %v11558_v58, %v1581_v18  ;;  %v1583_v1 = vpop.f32.mrb[109].mxu0 }
 0x21e   : > { %v1584_v9 = vpop.f32.mrb[110].mxu0 }
 0x21f   : > { %14620 = vst [vmem:[#allocation50_spill] sm:$0xff] %v11685_v57  ;;  %v11688_v17 = vadd.f32 %v11565_v11, %v1584_v9  ;;  %v1586_v53 = vpop.f32.mrb[111].mxu0 }
 0x221   : > { %14621 = vst [vmem:[#allocation51_spill] sm:$0xff] %v11688_v17 }
 0x224   : > { %v1589_v8 = vpop.f32.mrb[112].mxu0 }
 0x225   : > { %v11691_v2 = vadd.f32 %v11580_v4, %v1589_v8  ;;  %v1591_v14 = vpop.f32.mrb[113].mxu0 }
 0x226   : > { %v1592_v42 = vpop.f32.mrb[114].mxu0 }
 0x227   : > { %14622 = vst [vmem:[#allocation52_spill] sm:$0xff] %v11691_v2  ;;  %v11694_v62 = vadd.f32 %v11587_v0, %v1592_v42  ;;  %v1594_v12 = vpop.f32.mrb[115].mxu0 }
 0x229   : > { %14623 = vst [vmem:[#allocation53_spill] sm:$0xff] %v11694_v62 }
 0x22c   : > { %v1597_v49 = vpop.f32.mrb[116].mxu0 }
 0x22d   : > { %v11697_v58 = vadd.f32 %v11578_v7, %v1597_v49  ;;  %v1599_v18 = vpop.f32.mrb[117].mxu0 }
 0x22e   : > { %v1600_v1 = vpop.f32.mrb[118].mxu0 }
 0x22f   : > { %14624 = vst [vmem:[#allocation54_spill] sm:$0xff] %v11697_v58  ;;  %v11700_v11 = vadd.f32 %v11585_v37, %v1600_v1  ;;  %v1602_v9 = vpop.f32.mrb[119].mxu0 }
 0x231   : > { %14625 = vst [vmem:[#allocation55_spill] sm:$0xff] %v11700_v11 }
 0x234   : > { %v1605_v53 = vpop.f32.mrb[120].mxu0 }
 0x235   : > { %v11703_v4 = vadd.f32 %v11600_v47, %v1605_v53  ;;  %v1607_v8 = vpop.f32.mrb[121].mxu0 }
 0x236   : > { %v1608_v14 = vpop.f32.mrb[122].mxu0 }
 0x237   : > { %14626 = vst [vmem:[#allocation56_spill] sm:$0xff] %v11703_v4  ;;  %v11706_v0 = vadd.f32 %v11607_v10, %v1608_v14  ;;  %v1610_v42 = vpop.f32.mrb[123].mxu0 }
 0x239   : > { %14627 = vst [vmem:[#allocation57_spill] sm:$0xff] %v11706_v0 }
 0x23c   : > { %v1613_v12 = vpop.f32.mrb[124].mxu0 }
 0x23d   : > { %v11709_v7 = vadd.f32 %v11598_v19, %v1613_v12  ;;  %v1615_v49 = vpop.f32.mrb[125].mxu0 }
 0x23e   : > { %v1616_v18 = vpop.f32.mrb[126].mxu0 }
 0x23f   : > { %14628 = vst [vmem:[#allocation58_spill] sm:$0xff] %v11709_v7  ;;  %v11712_v37 = vadd.f32 %v11605_v3, %v1616_v18  ;;  %v1618_v1 = vpop.f32.mrb[127].mxu0 }
 0x241   : > { %14629 = vst [vmem:[#allocation59_spill] sm:$0xff] %v11712_v37 }
 0x244   : > { %v9952_v9 = vpop.f32.mrb[128].mxu0 }
 0x245   : > { %v11715_v47 = vadd.f32 %v9952_v9, %v11463_v32  ;;  %v1654_v53 = vpop.f32.mrb[129].mxu0 }
 0x246   : > { %v11718_v8 = vadd.f32 %v1654_v53, %v11449_v22  ;;  %v9953_v10 = vpop.f32.mrb[130].mxu0 }
 0x247   : > { %v11721_v14 = vadd.f32 %v9953_v10, %v11466_v35  ;;  %v1657_v19 = vpop.f32.mrb[131].mxu0 }
 0x248   : > { %v11724_v42 = vadd.f32 %v1657_v19, %v11456_v27 }
 0x24c   : > { %v9956_v12 = vpop.f32.mrb[132].mxu0 }
 0x24d   : > { %v11727_v3 = vadd.f32 %v9956_v12, %v11483_v48  ;;  %v1670_v49 = vpop.f32.mrb[133].mxu0 }
 0x24e   : > { %v11730_v32 = vadd.f32 %v1670_v49, %v11471_v39  ;;  %v9957_v18 = vpop.f32.mrb[134].mxu0 }
 0x24f   : > { %v11733_v22 = vadd.f32 %v9957_v18, %v11486_v51  ;;  %v1673_v1 = vpop.f32.mrb[135].mxu0 }
 0x250   : > { %14630 = vst [vmem:[#allocation60_spill] sm:$0xff] %v11730_v32  ;;  %v11736_v35 = vadd.f32 %v1673_v1, %v11478_v44 }
 0x251   : > { %14631 = vst [vmem:[#allocation61_spill] sm:$0xff] %v11733_v22 }
 0x252   : > { %14632 = vst [vmem:[#allocation62_spill] sm:$0xff] %v11736_v35 }
 0x254   : > { %v9960_v9 = vpop.f32.mrb[136].mxu0 }
 0x255   : > { %v11739_v27 = vadd.f32 %v9960_v9, %v11504_v5  ;;  %v1686_v53 = vpop.f32.mrb[137].mxu0 }
 0x256   : > { %v11742_v48 = vadd.f32 %v1686_v53, %v11491_v55  ;;  %v9961_v10 = vpop.f32.mrb[138].mxu0 }
 0x257   : > { %14633 = vst [vmem:[#allocation63_spill] sm:$0xff] %v11739_v27  ;;  %v11745_v39 = vadd.f32 %v9961_v10, %v11507_v13  ;;  %v1689_v19 = vpop.f32.mrb[139].mxu0 }
 0x258   : > { %14634 = vst [vmem:[#allocation64_spill] sm:$0xff] %v11742_v48  ;;  %v11748_v51 = vadd.f32 %v1689_v19, %v11498_v60 }
 0x259   : > { %14635 = vst [vmem:[#allocation65_spill] sm:$0xff] %v11745_v39 }
 0x25a   : > { %14636 = vst [vmem:[#allocation66_spill] sm:$0xff] %v11748_v51 }
 0x25c   : > { %v9964_v12 = vpop.f32.mrb[140].mxu0 }
 0x25d   : > { %v11751_v44 = vadd.f32 %v9964_v12, %v11528_v45  ;;  %v1702_v49 = vpop.f32.mrb[141].mxu0 }
 0x25e   : > { %v11754_v5 = vadd.f32 %v1702_v49, %v11514_v25  ;;  %v9965_v18 = vpop.f32.mrb[142].mxu0 }
 0x25f   : > { %14637 = vst [vmem:[#allocation67_spill] sm:$0xff] %v11751_v44  ;;  %v11757_v55 = vadd.f32 %v9965_v18, %v11531_v50  ;;  %v1705_v1 = vpop.f32.mrb[143].mxu0 }
 0x260   : > { %14638 = vst [vmem:[#allocation68_spill] sm:$0xff] %v11754_v5  ;;  %v11760_v13 = vadd.f32 %v1705_v1, %v11521_v36 }
 0x261   : > { %14639 = vst [vmem:[#allocation69_spill] sm:$0xff] %v11757_v55 }
 0x262   : > { %14640 = vst [vmem:[#allocation70_spill] sm:$0xff] %v11760_v13 }
 0x263   : > { %11110 = dma.done.wait [#allocation3], 4608 }
 0x264   : > { %11111 = vsyncadd [#allocation3], 4294962688  ;;  %v11007_v60 = vld [vmem:[%s14478_s3] sm:$0xff]   ;;  %v11008_v45 = vld [vmem:[%s14478_s3 + $0x8] sm:$0xff]   ;;  %vm3928_vm1 = vsmask.f32 7424 }
 0x265   : > { %10014 = vmatprep.subr.bf16.mxu1 %v11007_v60  ;;  %v11009_v25 = vld [vmem:[%s14478_s3 + $0x10] sm:$0xff]   ;;  %v11010_v36 = vld [vmem:[%s14478_s3 + $0x18] sm:$0xff]   ;;  %v2137_v50 = vld [vmem:[#allocation2] sm:$0xff]  ;;  %vm5965_vm2 = vcmask 1046528  }
 0x266   : > { %10015 = vmatpush3.bf16.msra.mxu1 %v11007_v60  ;;  %10030 = vmatprep.mubr.bf16.mxu1 %v2137_v50  ;;  %v11774_v9 = vld [vmem:[#allocation2 + $0x20] sm:$0xff]  ;;  %v11012_v10 = vld [vmem:[%s14478_s3 + $0x28] sm:$0xff]   ;;  %v11013_v19 = vld [vmem:[%s14478_s3 + $0x30] sm:$0xff]  }
 0x267   : > { %10016 = vmatprep.subr.bf16.mxu1 %v11008_v45  ;;  %10190 = vmatprep.mubr.bf16.mxu0 %v11774_v9  ;;  %v11011_v53 = vld [vmem:[%s14478_s3 + $0x20] sm:$0xff]   ;;  %v11014_v12 = vld [vmem:[%s14478_s3 + $0x38] sm:$0xff]   ;;  %v11023_v18 = vld [vmem:[%s14478_s3 + $0x188] sm:$0xff]  }
 0x268   : > { %v11022_v49 = vld [vmem:[%s14478_s3 + $0x180] sm:$0xff]   ;;  %v11024_v60 = vld [vmem:[%s14478_s3 + $0x190] sm:$0xff]   ;;  %v11025_v50 = vld [vmem:[%s14478_s3 + $0x198] sm:$0xff]  }
 0x269   : > { %10174 = vmatprep.subr.bf16.mxu0 %v11022_v49  ;;  %v11015_v1 = vld [vmem:[%s14478_s3 + $0xc0] sm:$0xff]   ;;  %v11026_v0 = vld [vmem:[%s14478_s3 + $0xf8] sm:$0xff]   ;;  %v11891_v37 = vld [vmem:[#allocation2 + $0x70] sm:$0xff] }
 0x26a   : > { %10017 = vmatpush3.bf16.msra.mxu1 %v11008_v45  ;;  %10175 = vmatpush3.bf16.msra.mxu0 %v11022_v49  ;;  %v2138_v45 = vld [vmem:[#allocation2 + $0x8] sm:$0xff]  ;;  %v11900_v4 = vld [vmem:[#allocation2 + $0x78] sm:$0xff]  ;;  %v11902_v7 = vld [vmem:[#allocation2 + $0x80] sm:$0xff] }
 0x26b   : > { %10018 = vmatprep.subr.bf16.mxu1 %v11009_v25  ;;  %10176 = vmatprep.subr.bf16.mxu0 %v11023_v18  ;;  %v11028_v49 = vld [vmem:[%s14478_s3 + $0x1a8] sm:$0xff]   ;;  %v11910_v11 = vld [vmem:[#allocation2 + $0x90] sm:$0xff]  ;;  %v11919_v2 = vld [vmem:[#allocation2 + $0x98] sm:$0xff] }
 0x26c   : > { %v11908_v62 = vld [vmem:[#allocation2 + $0x88] sm:$0xff]  ;;  %v11921_v58 = vld [vmem:[#allocation2 + $0xa0] sm:$0xff]  ;;  %v11929_v17 = vld [vmem:[#allocation2 + $0xb0] sm:$0xff] }
 0x26d   : > { %v11927_v30 = vld [vmem:[#allocation2 + $0xa8] sm:$0xff]  ;;  %v11938_v61 = vld [vmem:[#allocation2 + $0xb8] sm:$0xff]  ;;  %v11940_v57 = vld [vmem:[#allocation2 + $0xc0] sm:$0xff] }
 0x26e   : > { %10019 = vmatpush3.bf16.msra.mxu1 %v11009_v25  ;;  %10177 = vmatpush3.bf16.msra.mxu0 %v11023_v18  ;;  %v11801_v25 = vld [vmem:[#allocation2 + $0x10] sm:$0xff]  ;;  %v11019_v18 = vld [vmem:[%s14478_s3 + $0xe0] sm:$0xff]   ;;  %v11946_v41 = vld [vmem:[#allocation2 + $0xc8] sm:$0xff] }
 0x26f   : > { %10020 = vmatprep.subr.bf16.mxu1 %v11010_v36  ;;  %10178 = vmatprep.subr.bf16.mxu0 %v11024_v60  ;;  %v11948_v34 = vld [vmem:[#allocation2 + $0xd0] sm:$0xff]  ;;  %v11957_v28 = vld [vmem:[#allocation2 + $0xd8] sm:$0xff]  ;;  %v11959_v24 = vld [vmem:[#allocation2 + $0xe0] sm:$0xff]  ;;  %v3945_v40 = vshll.u32 %v11801_v25, 16  ;;  %v3949_v26 = vshrl.u32 %v11801_v25, 16 }
 0x270   : > { %v11965_v63 = vld [vmem:[#allocation2 + $0xe8] sm:$0xff]  ;;  %v11967_v59 = vld [vmem:[#allocation2 + $0xf0] sm:$0xff]  ;;  %v11976_v56 = vld [vmem:[#allocation2 + $0xf8] sm:$0xff] }
 0x271   : > { %v11033_v54 = vld [vmem:[%s14478_s3 + $0x48] sm:$0xff]   ;;  %v11986_v46 = vld [vmem:[#allocation2 + $0x100] sm:$0xff]  ;;  %v11035_v43 = vld [vmem:[%s14478_s3 + $0x50] sm:$0xff]   ;;  %v12005_v29 = vrot.slane %v3945_v40, 1 }
 0x272   : > { %10021 = vmatpush3.bf16.msra.mxu1 %v11010_v36  ;;  %v11016_v36 = vld [vmem:[%s14478_s3 + $0xc8] sm:$0xff]   ;;  %10179 = vmatpush3.bf16.msra.mxu0 %v11024_v60  ;;  %v2171_v31 = vld [vmem:[#allocation2 + $0x110] sm:$0xff] }
 0x273   : > { %10022 = vmatprep.subr.bf16.mxu1 %v11011_v53  ;;  %10180 = vmatprep.subr.bf16.mxu0 %v11025_v50  ;;  %v11832_v60 = vld [vmem:[#allocation2 + $0x28] sm:$0xff]  ;;  %v3951_v21 = vor.u32 %v3949_v26, %v12005_v29  ;;  %v3965_v26 = vshrl.u32 %v11774_v9, 16 }
 0x274   : > { %v12002_v38 = vld [vmem:[#allocation2 + $0x108] sm:$0xff]  ;;  %v3973_v6 = vshrl.u32 %v11832_v60, 16 }
 0x275   : > { %v11041_v40 = vld [vmem:[%s14478_s3 + $0x68] sm:$0xff]  }
 0x276   : > { %10023 = vmatpush3.bf16.msra.mxu1 %v11011_v53  ;;  %v11017_v53 = vld [vmem:[%s14478_s3 + $0xd0] sm:$0xff]   ;;  %10181 = vmatpush3.bf16.msra.mxu0 %v11025_v50  ;;  %v11030_v50 = vld [vmem:[%s14478_s3 + $0x1b8] sm:$0xff]  }
 0x277   : > { %10024 = vmatprep.subr.bf16.mxu1 %v11012_v10 }
 0x27a   : > { %10025 = vmatpush3.bf16.msra.mxu1 %v11012_v10  ;;  %v11027_v10 = vld [vmem:[%s14478_s3 + $0x1a0] sm:$0xff]  }
 0x27b   : > { %10026 = vmatprep.subr.bf16.mxu1 %v11013_v19  ;;  %10182 = vmatprep.subr.bf16.mxu0 %v11027_v10 }
 0x27c   : > { %10183 = vmatpush3.bf16.msra.mxu0 %v11027_v10  ;;  %v11032_v10 = vld [vmem:[%s14478_s3 + $0x100] sm:$0xff]  }
 0x27d   : > { %10184 = vmatprep.subr.bf16.mxu0 %v11028_v49 }
 0x27e   : > { %10027 = vmatpush3.bf16.msra.mxu1 %v11013_v19  ;;  %v11816_v19 = vld [vmem:[#allocation2 + $0x18] sm:$0xff] }
 0x27f   : > { %10028 = vmatprep.subr.bf16.mxu1 %v11014_v12  ;;  %v3953_v23 = vshll.u32 %v11816_v19, 16  ;;  %v3957_v15 = vshrl.u32 %v11816_v19, 16 }
 0x280   : > { %10185 = vmatpush3.bf16.msra.mxu0 %v11028_v49  ;;  %v11852_v49 = vld [vmem:[#allocation2 + $0x40] sm:$0xff] }
 0x281   : > { %v3955_v20 = vrot.slane %v3953_v23, 1  ;;  %v11043_v23 = vld [vmem:[%s14478_s3 + $0x70] sm:$0xff]  }
 0x282   : > { %10029 = vmatpush3.bf16.msra.mxu1 %v11014_v12  ;;  %v11018_v12 = vld [vmem:[%s14478_s3 + $0xd8] sm:$0xff]  }
 0x283   : > { %10094 = vmatprep.subr.bf16.mxu1 %v11015_v1  ;;  %v12022_v16 = vsel %vm3928_vm1, %v3951_v21, %v3955_v20 }
 0x285   : > { %10031 = vmatmul.mubr.bf16.vlgmr.msra.gmra.mrb[48].mxu1 %v2138_v45  ;;  %v11834_v45 = vld [vmem:[#allocation2 + $0x30] sm:$0xff] }
 0x286   : > { %10095 = vmatpush3.bf16.msra.mxu1 %v11015_v1  ;;  %10034 = vmatprep.mubr.bf16.mxu1 %v11801_v25  ;;  %v11029_v1 = vld [vmem:[%s14478_s3 + $0x1b0] sm:$0xff]  }
 0x287   : > { %10096 = vmatprep.subr.bf16.mxu1 %v11016_v36  ;;  %10186 = vmatprep.subr.bf16.mxu0 %v11029_v1 }
 0x288   : > { %10187 = vmatpush3.bf16.msra.mxu0 %v11029_v1  ;;  %v11864_v1 = vld [vmem:[%s14478_s3 + $0x40] sm:$0xff]  }
 0x289   : > { %10188 = vmatprep.subr.bf16.mxu0 %v11030_v50 }
 0x28a   : > { %10097 = vmatpush3.bf16.msra.mxu1 %v11016_v36  ;;  %v11020_v36 = vld [vmem:[%s14478_s3 + $0xe8] sm:$0xff]  }
 0x28b   : > { %10098 = vmatprep.subr.bf16.mxu1 %v11017_v53 }
 0x28c   : > { %10189 = vmatpush3.bf16.msra.mxu0 %v11030_v50  ;;  %v11871_v50 = vld [vmem:[#allocation2 + $0x50] sm:$0xff] }
 0x28d   : > { %10035 = vmatmul.mubr.bf16.gmra.mrb[52].mxu1 %v11816_v19  ;;  %10334 = vmatprep.subr.bf16.mxu0 %v11032_v10 }
 0x28e   : > { %10038 = vmatprep.mubr.bf16.mxu1 %v11774_v9  ;;  %10099 = vmatpush3.bf16.msra.mxu1 %v11017_v53  ;;  %v11021_v53 = vld [vmem:[%s14478_s3 + $0xf0] sm:$0xff]  }
 0x28f   : > { %10100 = vmatprep.subr.bf16.mxu1 %v11018_v12  ;;  %10191 = vmatmul.mubr.bf16.vlgmr.msra.gmra.mrb[144].mxu0 %v11832_v60 }
 0x290   : > { %10335 = vmatpush3.bf16.msra.mxu0 %v11032_v10  ;;  %10194 = vmatprep.mubr.bf16.mxu0 %v11834_v45  ;;  %v11880_v10 = vld [vmem:[#allocation2 + $0x58] sm:$0xff] }
 0x292   : > { %10101 = vmatpush3.bf16.msra.mxu1 %v11018_v12  ;;  %v11850_v12 = vld [vmem:[#allocation2 + $0x38] sm:$0xff] }
 0x293   : > { %10102 = vmatprep.subr.bf16.mxu1 %v11019_v18 }
 0x295   : > { %10039 = vmatmul.mubr.bf16.gmra.mrb[56].mxu1 %v11832_v60 }
 0x296   : > { %10042 = vmatprep.mubr.bf16.mxu1 %v11834_v45  ;;  %10103 = vmatpush3.bf16.msra.mxu1 %v11019_v18  ;;  %v11034_v18 = vld [vmem:[%s14478_s3 + $0x108] sm:$0xff]  }
 0x297   : > { %10104 = vmatprep.subr.bf16.mxu1 %v11020_v36  ;;  %10336 = vmatprep.subr.bf16.mxu0 %v11034_v18 }
 0x298   : > { %10337 = vmatpush3.bf16.msra.mxu0 %v11034_v18  ;;  %v11889_v18 = vld [vmem:[#allocation2 + $0x68] sm:$0xff] }
 0x299   : > { %10195 = vmatmul.mubr.bf16.gmra.mrb[148].mxu0 %v11850_v12 }
 0x29a   : > { %10105 = vmatpush3.bf16.msra.mxu1 %v11020_v36  ;;  %v11868_v36 = vld [vmem:[#allocation2 + $0x48] sm:$0xff]  ;;  %10198 = vmatprep.mubr.bf16.mxu0 %v11852_v49 }
 0x29b   : > { %10106 = vmatprep.subr.bf16.mxu1 %v11021_v53 }
 0x29d   : > { %10043 = vmatmul.mubr.bf16.gmra.mrb[60].mxu1 %v11850_v12 }
 0x29e   : > { %10046 = vmatprep.mubr.bf16.mxu1 %v11852_v49  ;;  %10107 = vmatpush3.bf16.msra.mxu1 %v11021_v53  ;;  %v11036_v53 = vld [vmem:[%s14478_s3 + $0x110] sm:$0xff]  }
 0x29f   : > { %10108 = vmatprep.subr.bf16.mxu1 %v11026_v0  ;;  %10338 = vmatprep.subr.bf16.mxu0 %v11036_v53 }
 0x2a0   : > { %10339 = vmatpush3.bf16.msra.mxu0 %v11036_v53  ;;  %v11038_v53 = vld [vmem:[%s14478_s3 + $0x118] sm:$0xff]  }
 0x2a1   : > { %10199 = vmatmul.mubr.bf16.gmra.mrb[152].mxu0 %v11868_v36  ;;  %10340 = vmatprep.subr.bf16.mxu0 %v11038_v53 }
 0x2a2   : > { %10109 = vmatpush3.bf16.msra.mxu1 %v11026_v0  ;;  %v11883_v0 = vld [vmem:[#allocation2 + $0x60] sm:$0xff]  ;;  %10202 = vmatprep.mubr.bf16.mxu0 %v11871_v50 }
 0x2a3   : > { %10254 = vmatprep.subr.bf16.mxu1 %v11864_v1 }
 0x2a4   : > { %10341 = vmatpush3.bf16.msra.mxu0 %v11038_v53  ;;  %v11040_v53 = vld [vmem:[%s14478_s3 + $0x120] sm:$0xff]  }
 0x2a5   : > { %10047 = vmatmul.mubr.bf16.gmra.mrb[64].mxu1 %v11868_v36  ;;  %10342 = vmatprep.subr.bf16.mxu0 %v11040_v53 }
 0x2a6   : > { %10050 = vmatprep.mubr.bf16.mxu1 %v11871_v50 }
 0x2a8   : > { %10343 = vmatpush3.bf16.msra.mxu0 %v11040_v53  ;;  %v11042_v53 = vld [vmem:[%s14478_s3 + $0x128] sm:$0xff]  }
 0x2a9   : > { %10203 = vmatmul.mubr.bf16.gmra.mrb[156].mxu0 %v11880_v10  ;;  %10344 = vmatprep.subr.bf16.mxu0 %v11042_v53 }
 0x2aa   : > { %10206 = vmatprep.mubr.bf16.mxu0 %v11883_v0 }
 0x2ac   : > { %10345 = vmatpush3.bf16.msra.mxu0 %v11042_v53  ;;  %v11044_v53 = vld [vmem:[%s14478_s3 + $0x130] sm:$0xff]  }
 0x2ad   : > { %10051 = vmatmul.mubr.bf16.gmra.mrb[68].mxu1 %v11880_v10  ;;  %10346 = vmatprep.subr.bf16.mxu0 %v11044_v53 }
 0x2ae   : > { %10054 = vmatprep.mubr.bf16.mxu1 %v11883_v0 }
 0x2b0   : > { %10347 = vmatpush3.bf16.msra.mxu0 %v11044_v53  ;;  %v11046_v53 = vld [vmem:[%s14478_s3 + $0x138] sm:$0xff]  }
 0x2b1   : > { %10207 = vmatmul.mubr.bf16.gmra.mrb[160].mxu0 %v11889_v18  ;;  %10348 = vmatprep.subr.bf16.mxu0 %v11046_v53 }
 0x2b2   : > { %10210 = vmatprep.mubr.bf16.mxu0 %v11891_v37 }
 0x2b4   : > { %10349 = vmatpush3.bf16.msra.mxu0 %v11046_v53  ;;  %v11048_v53 = vld [vmem:[%s14478_s3 + $0x80] sm:$0xff]  }
 0x2b5   : > { %10055 = vmatmul.mubr.bf16.gmra.mrb[72].mxu1 %v11889_v18  ;;  %10494 = vmatprep.subr.bf16.mxu0 %v11048_v53 }
 0x2b6   : > { %10058 = vmatprep.mubr.bf16.mxu1 %v11891_v37 }
 0x2b9   : > { %10211 = vmatmul.mubr.bf16.gmra.mrb[164].mxu0 %v11900_v4 }
 0x2ba   : > { %10214 = vmatprep.mubr.bf16.mxu0 %v11902_v7 }
 0x2bd   : > { %10059 = vmatmul.mubr.bf16.gmra.mrb[76].mxu1 %v11900_v4 }
 0x2be   : > { %10062 = vmatprep.mubr.bf16.mxu1 %v11902_v7 }
 0x2c1   : > { %10215 = vmatmul.mubr.bf16.gmra.mrb[168].mxu0 %v11908_v62 }
 0x2c2   : > { %10218 = vmatprep.mubr.bf16.mxu0 %v11910_v11 }
 0x2c5   : > { %10063 = vmatmul.mubr.bf16.gmra.mrb[80].mxu1 %v11908_v62 }
 0x2c6   : > { %10066 = vmatprep.mubr.bf16.mxu1 %v11910_v11 }
 0x2c9   : > { %10219 = vmatmul.mubr.bf16.gmra.mrb[172].mxu0 %v11919_v2 }
 0x2ca   : > { %10222 = vmatprep.mubr.bf16.mxu0 %v11921_v58 }
 0x2cd   : > { %10067 = vmatmul.mubr.bf16.gmra.mrb[84].mxu1 %v11919_v2 }
 0x2ce   : > { %10070 = vmatprep.mubr.bf16.mxu1 %v11921_v58 }
 0x2d1   : > { %10223 = vmatmul.mubr.bf16.gmra.mrb[176].mxu0 %v11927_v30 }
 0x2d2   : > { %10226 = vmatprep.mubr.bf16.mxu0 %v11929_v17 }
 0x2d5   : > { %10071 = vmatmul.mubr.bf16.gmra.mrb[88].mxu1 %v11927_v30 }
 0x2d6   : > { %10074 = vmatprep.mubr.bf16.mxu1 %v11929_v17 }
 0x2d9   : > { %10227 = vmatmul.mubr.bf16.gmra.mrb[180].mxu0 %v11938_v61 }
 0x2da   : > { %10230 = vmatprep.mubr.bf16.mxu0 %v11940_v57 }
 0x2dd   : > { %10075 = vmatmul.mubr.bf16.gmra.mrb[92].mxu1 %v11938_v61 }
 0x2de   : > { %10078 = vmatprep.mubr.bf16.mxu1 %v11940_v57 }
 0x2e1   : > { %10231 = vmatmul.mubr.bf16.gmra.mrb[184].mxu0 %v11946_v41 }
 0x2e2   : > { %10234 = vmatprep.mubr.bf16.mxu0 %v11948_v34 }
 0x2e5   : > { %10079 = vmatmul.mubr.bf16.gmra.mrb[96].mxu1 %v11946_v41 }
 0x2e6   : > { %10082 = vmatprep.mubr.bf16.mxu1 %v11948_v34 }
 0x2e9   : > { %10235 = vmatmul.mubr.bf16.gmra.mrb[188].mxu0 %v11957_v28 }
 0x2ea   : > { %10238 = vmatprep.mubr.bf16.mxu0 %v11959_v24 }
 0x2ed   : > { %10083 = vmatmul.mubr.bf16.gmra.mrb[100].mxu1 %v11957_v28 }
 0x2ee   : > { %10086 = vmatprep.mubr.bf16.mxu1 %v11959_v24 }
 0x2f1   : > { %10239 = vmatmul.mubr.bf16.gmra.mrb[192].mxu0 %v11965_v63 }
 0x2f2   : > { %10242 = vmatprep.mubr.bf16.mxu0 %v11967_v59 }
 0x2f5   : > { %10087 = vmatmul.mubr.bf16.gmra.mrb[104].mxu1 %v11965_v63 }
 0x2f6   : > { %10090 = vmatprep.mubr.bf16.mxu1 %v11967_v59 }
 0x2f9   : > { %10243 = vmatmul.mubr.bf16.gmra.mrb[196].mxu0 %v11976_v56 }
 0x2fa   : > { %10246 = vmatprep.mubr.bf16.mxu0 %v11986_v46 }
 0x2fd   : > { %10091 = vmatmul.mubr.bf16.gmra.mrb[108].mxu1 %v11976_v56 }
 0x2fe   : > { %10110 = vmatprep.mubr.bf16.mxu1 %v11801_v25  ;;  %v2172_v25 = vld [vmem:[#allocation2 + $0x118] sm:$0xff] }
 0x301   : > { %10247 = vmatmul.mubr.bf16.gmra.mrb[200].mxu0 %v12002_v38 }
 0x302   : > { %10250 = vmatprep.mubr.bf16.mxu0 %v2171_v31  ;;  %v3969_v31 = vshll.u32 %v11832_v60, 16 }
 0x304   : > { %v3971_v21 = vrot.slane %v3969_v31, 1  ;;  %v3993_v31 = vshll.u32 %v11852_v49, 16 }
 0x305   : > { %10111 = vmatmul.mubr.bf16.vlgmr.msra.gmra.mrb[112].mxu1 %v11816_v19  ;;  %v3959_v19 = vor.u32 %v3957_v15, %v3955_v20  ;;  %v3981_v20 = vshrl.u32 %v11834_v45, 16 }
 0x306   : > { %10255 = vmatpush3.bf16.msra.mxu1 %v11864_v1  ;;  %10114 = vmatprep.mubr.bf16.mxu1 %v11774_v9  ;;  %v11037_v1 = vld [vmem:[%s14478_s3 + $0x58] sm:$0xff]  }
 0x307   : > { %10256 = vmatprep.subr.bf16.mxu1 %v11033_v54 }
 0x309   : > { %10251 = vmatmul.mubr.bf16.gmra.mrb[204].mxu0 %v2172_v25 }
 0x30a   : > { %10257 = vmatpush3.bf16.msra.mxu1 %v11033_v54  ;;  %v11039_v54 = vld [vmem:[%s14478_s3 + $0x60] sm:$0xff]   ;;  %10350 = vmatprep.mubr.bf16.mxu0 %v12022_v16 }
 0x30b   : > { %10258 = vmatprep.subr.bf16.mxu1 %v11035_v43 }
 0x30d   : > { %10115 = vmatmul.mubr.bf16.gmra.mrb[116].mxu1 %v11832_v60  ;;  %v12053_v60 = vld [vmem:[%s14478_s3 + $0x1c0] sm:$0xff]  }
 0x30e   : > { %10118 = vmatprep.mubr.bf16.mxu1 %v11834_v45  ;;  %10259 = vmatpush3.bf16.msra.mxu1 %v11035_v43  ;;  %v3961_v43 = vshll.u32 %v11774_v9, 16  ;;  %v11045_v9 = vld [vmem:[%s14478_s3 + $0x78] sm:$0xff]  }
 0x30f   : > { %10260 = vmatprep.subr.bf16.mxu1 %v11037_v1 }
 0x312   : > { %10261 = vmatpush3.bf16.msra.mxu1 %v11037_v1  ;;  %v3963_v1 = vrot.slane %v3961_v43, 1  ;;  %v11050_v43 = vld [vmem:[%s14478_s3 + $0x88] sm:$0xff]  }
 0x313   : > { %10262 = vmatprep.subr.bf16.mxu1 %v11039_v54 }
 0x314   : > { %v3967_v33 = vor.u32 %v3965_v26, %v3963_v1  ;;  %v12036_v52 = vsel %vm3928_vm1, %v3959_v19, %v3963_v1  ;;  %v3989_v1 = vshrl.u32 %v11850_v12, 16  ;;  %v4001_v19 = vshll.u32 %v11868_v36, 16 }
 0x315   : > { %10119 = vmatmul.mubr.bf16.gmra.mrb[120].mxu1 %v11850_v12  ;;  %10351 = vmatmul.mubr.bf16.vlgmr.msra.gmra.mrb[208].mxu0 %v12036_v52 }
 0x316   : > { %10122 = vmatprep.mubr.bf16.mxu1 %v11852_v49  ;;  %10263 = vmatpush3.bf16.msra.mxu1 %v11039_v54  ;;  %v3977_v54 = vshll.u32 %v11834_v45, 16  ;;  %v12041_v15 = vsel %vm3928_vm1, %v3967_v33, %v3971_v21  ;;  %v3975_v45 = vor.u32 %v3973_v6, %v3971_v21  ;;  %v3997_v6 = vshrl.u32 %v11852_v49, 16  ;;  %v11052_v21 = vld [vmem:[%s14478_s3 + $0x90] sm:$0xff]  }
 0x317   : > { %10264 = vmatprep.subr.bf16.mxu1 %v11041_v40  ;;  %14641 = vst [vmem:[#allocation71_spill] sm:$0xff] %v12041_v15  ;;  %10495 = vmatpush3.bf16.msra.mxu0 %v11048_v53  ;;  %v4009_v49 = vshll.u32 %v11871_v50, 16 }
 0x318   : > { %v3979_v33 = vrot.slane %v3977_v54, 1  ;;  %10354 = vmatprep.mubr.bf16.mxu0 %v12041_v15  ;;  %10496 = vmatprep.subr.bf16.mxu0 %v11050_v43 }
 0x31a   : > { %10265 = vmatpush3.bf16.msra.mxu1 %v11041_v40  ;;  %v3985_v40 = vshll.u32 %v11850_v12, 16  ;;  %v3983_v25 = vor.u32 %v3981_v20, %v3979_v33  ;;  %v4003_v20 = vrot.slane %v4001_v19, 1 }
 0x31b   : > { %10266 = vmatprep.subr.bf16.mxu1 %v11043_v23  ;;  %10497 = vmatpush3.bf16.msra.mxu0 %v11050_v43  ;;  %v4005_v43 = vshrl.u32 %v11868_v36, 16 }
 0x31c   : > { %v3987_v26 = vrot.slane %v3985_v40, 1  ;;  %10498 = vmatprep.subr.bf16.mxu0 %v11052_v21 }
 0x31d   : > { %10123 = vmatmul.mubr.bf16.gmra.mrb[124].mxu1 %v11868_v36  ;;  %v4025_v36 = vshll.u32 %v11883_v0, 16 }
 0x31e   : > { %10126 = vmatprep.mubr.bf16.mxu1 %v11871_v50  ;;  %10267 = vmatpush3.bf16.msra.mxu1 %v11043_v23  ;;  %v12059_v23 = vsel %vm3928_vm1, %v3975_v45, %v3979_v33  ;;  %v12064_v53 = vsel %vm3928_vm1, %v3983_v25, %v3987_v26  ;;  %v3991_v12 = vor.u32 %v3989_v1, %v3987_v26  ;;  %v4013_v45 = vshrl.u32 %v11871_v50, 16 }
 0x31f   : > { %10268 = vmatprep.subr.bf16.mxu1 %v11045_v9  ;;  %14642 = vst [vmem:[#allocation72_spill] sm:$0xff] %v12059_v23  ;;  %14643 = vst [vmem:[#allocation73_spill] sm:$0xff] %v12064_v53  ;;  %10355 = vmatmul.mubr.bf16.gmra.mrb[212].mxu0 %v12059_v23  ;;  %v4017_v25 = vshll.u32 %v11880_v10, 16  ;;  %v4011_v26 = vrot.slane %v4009_v49, 1 }
 0x320   : > { %10358 = vmatprep.mubr.bf16.mxu0 %v12064_v53  ;;  %10499 = vmatpush3.bf16.msra.mxu0 %v11052_v21  ;;  %v4021_v21 = vshrl.u32 %v11880_v10, 16 }
 0x321   : > { %v4015_v1 = vor.u32 %v4013_v45, %v4011_v26 }
 0x322   : > { %10269 = vmatpush3.bf16.msra.mxu1 %v11045_v9  ;;  %v3995_v9 = vrot.slane %v3993_v31, 1  ;;  %v4007_v31 = vor.u32 %v4005_v43, %v4003_v20 }
 0x323   : > { %10414 = vmatprep.subr.bf16.mxu1 %v12053_v60 }
 0x324   : > { %v3999_v54 = vor.u32 %v3997_v6, %v3995_v9  ;;  %v12076_v40 = vsel %vm3928_vm1, %v3991_v12, %v3995_v9  ;;  %v4019_v6 = vrot.slane %v4017_v25, 1  ;;  %v12090_v19 = vsel %vm3928_vm1, %v4007_v31, %v4011_v26 }
 0x325   : > { %10127 = vmatmul.mubr.bf16.gmra.mrb[128].mxu1 %v11880_v10  ;;  %14644 = vst [vmem:[#allocation74_spill] sm:$0xff] %v12076_v40  ;;  %14646 = vst [vmem:[#allocation76_spill] sm:$0xff] %v12090_v19  ;;  %v4029_v9 = vshrl.u32 %v11883_v0, 16  ;;  %v4033_v12 = vshll.u32 %v11889_v18, 16  ;;  %v4037_v25 = vshrl.u32 %v11889_v18, 16  ;;  %v4045_v31 = vshrl.u32 %v11891_v37, 16 }
 0x326   : > { %10130 = vmatprep.mubr.bf16.mxu1 %v11883_v0  ;;  %v12081_v33 = vsel %vm3928_vm1, %v3999_v54, %v4003_v20  ;;  %v12095_v50 = vsel %vm3928_vm1, %v4015_v1, %v4019_v6  ;;  %v11054_v54 = vld [vmem:[%s14478_s3 + $0x98] sm:$0xff]   ;;  %v4027_v20 = vrot.slane %v4025_v36, 1  ;;  %v4023_v10 = vor.u32 %v4021_v21, %v4019_v6 }
 0x327   : > { %14645 = vst [vmem:[#allocation75_spill] sm:$0xff] %v12081_v33  ;;  %10359 = vmatmul.mubr.bf16.gmra.mrb[216].mxu0 %v12076_v40  ;;  %14647 = vst [vmem:[#allocation77_spill] sm:$0xff] %v12095_v50  ;;  %10500 = vmatprep.subr.bf16.mxu0 %v11054_v54  ;;  %v4035_v43 = vrot.slane %v4033_v12, 1  ;;  %v4041_v0 = vshll.u32 %v11891_v37, 16  ;;  %v4049_v1 = vshll.u32 %v11900_v4, 16 }
 0x328   : > { %10362 = vmatprep.mubr.bf16.mxu0 %v12081_v33  ;;  %10501 = vmatpush3.bf16.msra.mxu0 %v11054_v54  ;;  %v4031_v49 = vor.u32 %v4029_v9, %v4027_v20  ;;  %v12107_v45 = vsel %vm3928_vm1, %v4023_v10, %v4027_v20  ;;  %v4053_v54 = vshrl.u32 %v11900_v4, 16  ;;  %v4061_v20 = vshrl.u32 %v11902_v7, 16 }
 0x329   : > { %14648 = vst [vmem:[#allocation78_spill] sm:$0xff] %v12107_v45  ;;  %v4043_v6 = vrot.slane %v4041_v0, 1  ;;  %v4039_v36 = vor.u32 %v4037_v25, %v4035_v43  ;;  %v4051_v9 = vrot.slane %v4049_v1, 1  ;;  %v4065_v10 = vshll.u32 %v11908_v62, 16  ;;  %v3829_v25 = vld [vmem:[#allocation2 + $0x98] sm:$0xff] }
 0x32a   : > { %v12112_v26 = vsel %vm3928_vm1, %v4031_v49, %v4035_v43  ;;  %v11056_v49 = vld [vmem:[%s14478_s3 + $0xa0] sm:$0xff]   ;;  %v4069_v1 = vshrl.u32 %v11908_v62, 16 }
 0x32b   : > { %14649 = vst [vmem:[#allocation79_spill] sm:$0xff] %v12112_v26  ;;  %v4047_v21 = vor.u32 %v4045_v31, %v4043_v6  ;;  %v12121_v12 = vsel %vm3928_vm1, %v4039_v36, %v4043_v6  ;;  %10502 = vmatprep.subr.bf16.mxu0 %v11056_v49  ;;  %v4067_v0 = vrot.slane %v4065_v10, 1  ;;  %v4077_v6 = vshrl.u32 %v11910_v11, 16 }
 0x32c   : > { %14650 = vst [vmem:[#allocation80_spill] sm:$0xff] %v12121_v12  ;;  %10503 = vmatpush3.bf16.msra.mxu0 %v11056_v49  ;;  %v4081_v36 = vshll.u32 %v3829_v25, 16  ;;  %v4085_v49 = vshrl.u32 %v3829_v25, 16  ;;  %v3832_v25 = vld [vmem:[#allocation2 + $0xb0] sm:$0xff] }
 0x32d   : > { %10131 = vmatmul.mubr.bf16.gmra.mrb[132].mxu1 %v11889_v18  ;;  %v4057_v18 = vshll.u32 %v11902_v7, 16 }
 0x32e   : > { %10134 = vmatprep.mubr.bf16.mxu1 %v11891_v37  ;;  %v12126_v37 = vsel %vm3928_vm1, %v4047_v21, %v4051_v9 }
 0x32f   : > { %10363 = vmatmul.mubr.bf16.gmra.mrb[220].mxu0 %v12090_v19  ;;  %14651 = vst [vmem:[#allocation81_spill] sm:$0xff] %v12126_v37  ;;  %v4059_v43 = vrot.slane %v4057_v18, 1  ;;  %v3830_v18 = vld [vmem:[#allocation2 + $0xa0] sm:$0xff] }
 0x330   : > { %10366 = vmatprep.mubr.bf16.mxu0 %v12095_v50  ;;  %v4089_v10 = vshll.u32 %v3830_v18, 16 }
 0x335   : > { %10135 = vmatmul.mubr.bf16.gmra.mrb[136].mxu1 %v11900_v4  ;;  %v4063_v4 = vor.u32 %v4061_v20, %v4059_v43  ;;  %v4083_v20 = vrot.slane %v4081_v36, 1 }
 0x336   : > { %10138 = vmatprep.mubr.bf16.mxu1 %v11902_v7  ;;  %v4073_v7 = vshll.u32 %v11910_v11, 16 }
 0x337   : > { %10367 = vmatmul.mubr.bf16.gmra.mrb[224].mxu0 %v12107_v45 }
 0x338   : > { %10370 = vmatprep.mubr.bf16.mxu0 %v12112_v26  ;;  %v4075_v21 = vrot.slane %v4073_v7, 1 }
 0x33d   : > { %10139 = vmatmul.mubr.bf16.gmra.mrb[140].mxu1 %v11908_v62  ;;  %v3831_v62 = vld [vmem:[#allocation2 + $0xa8] sm:$0xff] }
 0x33e   : > { %10142 = vmatprep.mubr.bf16.mxu1 %v11910_v11 }
 0x33f   : > { %10371 = vmatmul.mubr.bf16.gmra.mrb[228].mxu0 %v12121_v12 }
 0x340   : > { %10374 = vmatprep.mubr.bf16.mxu0 %v12126_v37 }
 0x345   : > { %10143 = vmatmul.mubr.bf16.gmra.mrb[144].mxu1 %v11919_v2  ;;  %v4055_v2 = vor.u32 %v4053_v54, %v4051_v9  ;;  %v4071_v9 = vor.u32 %v4069_v1, %v4067_v0  ;;  %v4079_v54 = vor.u32 %v4077_v6, %v4075_v21 }
 0x346   : > { %10146 = vmatprep.mubr.bf16.mxu1 %v11921_v58  ;;  %v12143_v58 = vsel %vm3928_vm1, %v4063_v4, %v4067_v0  ;;  %v4091_v4 = vrot.slane %v4089_v10, 1  ;;  %v4109_v10 = vshrl.u32 %v3832_v25, 16 }
 0x347   : > { %v12138_v31 = vsel %vm3928_vm1, %v4055_v2, %v4059_v43  ;;  %14653 = vst [vmem:[#allocation83_spill] sm:$0xff] %v12143_v58  ;;  %v12154_v11 = vsel %vm3928_vm1, %v4079_v54, %v4083_v20  ;;  %v4097_v43 = vshll.u32 %v3831_v62, 16  ;;  %v11058_v2 = vld [vmem:[%s14478_s3 + $0xa8] sm:$0xff]   ;;  %v4101_v54 = vshrl.u32 %v3831_v62, 16 }
 0x348   : > { %14652 = vst [vmem:[#allocation82_spill] sm:$0xff] %v12138_v31  ;;  %10375 = vmatmul.mubr.bf16.gmra.mrb[232].mxu0 %v12138_v31  ;;  %14655 = vst [vmem:[#allocation85_spill] sm:$0xff] %v12154_v11  ;;  %10504 = vmatprep.subr.bf16.mxu0 %v11058_v2 }
 0x349   : > { %10378 = vmatprep.mubr.bf16.mxu0 %v12143_v58  ;;  %10505 = vmatpush3.bf16.msra.mxu0 %v11058_v2  ;;  %v4099_v6 = vrot.slane %v4097_v43, 1 }
 0x34b   : > { %v4103_v2 = vor.u32 %v4101_v54, %v4099_v6 }
 0x34d   : > { %10147 = vmatmul.mubr.bf16.gmra.mrb[148].mxu1 %v11927_v30  ;;  %v12150_v30 = vsel %vm3928_vm1, %v4071_v9, %v4075_v21  ;;  %v3833_v21 = vld [vmem:[#allocation2 + $0xb8] sm:$0xff] }
 0x34e   : > { %10150 = vmatprep.mubr.bf16.mxu1 %v11929_v17  ;;  %14654 = vst [vmem:[#allocation84_spill] sm:$0xff] %v12150_v30  ;;  %v4093_v17 = vshrl.u32 %v3830_v18, 16 }
 0x350   : > { %10379 = vmatmul.mubr.bf16.gmra.mrb[236].mxu0 %v12150_v30  ;;  %v4095_v1 = vor.u32 %v4093_v17, %v4091_v4 }
 0x351   : > { %10382 = vmatprep.mubr.bf16.mxu0 %v12154_v11 }
 0x355   : > { %10151 = vmatmul.mubr.bf16.gmra.mrb[152].mxu1 %v11938_v61  ;;  %v4087_v61 = vor.u32 %v4085_v49, %v4083_v20  ;;  %v12175_v20 = vsel %vm3928_vm1, %v4095_v1, %v4099_v6  ;;  %v4113_v49 = vshll.u32 %v3833_v21, 16  ;;  %v3835_v1 = vld [vmem:[#allocation2 + $0xc8] sm:$0xff] }
 0x356   : > { %10154 = vmatprep.mubr.bf16.mxu1 %v11940_v57  ;;  %v4105_v57 = vshll.u32 %v3832_v25, 16  ;;  %14657 = vst [vmem:[#allocation87_spill] sm:$0xff] %v12175_v20  ;;  %v4129_v54 = vshll.u32 %v3835_v1, 16  ;;  %v4133_v48 = vshrl.u32 %v3835_v1, 16  ;;  %v3838_v1 = vld [vmem:[#allocation2 + $0xe0] sm:$0xff] }
 0x357   : > { %v12171_v18 = vsel %vm3928_vm1, %v4087_v61, %v4091_v4  ;;  %v3834_v4 = vld [vmem:[#allocation2 + $0xc0] sm:$0xff] }
 0x358   : > { %v12161_v0 = vpop.f32.mrb[48].mxu1  ;;  %14656 = vst [vmem:[#allocation86_spill] sm:$0xff] %v12171_v18  ;;  %10383 = vmatmul.mubr.bf16.gmra.mrb[240].mxu0 %v12171_v18  ;;  %v4107_v17 = vrot.slane %v4105_v57, 1  ;;  %v4121_v55 = vshll.u32 %v3834_v4, 16  ;;  %v4117_v57 = vshrl.u32 %v3833_v21, 16  ;;  %v4125_v6 = vshrl.u32 %v3834_v4, 16 }
 0x359   : > { %v12164_v7 = vpop.f32.mrb[49].mxu1  ;;  %10386 = vmatprep.mubr.bf16.mxu0 %v12175_v20  ;;  %v4131_v4 = vrot.slane %v4129_v54, 1 }
 0x35a   : > { %v12166_v36 = vpop.f32.mrb[50].mxu1  ;;  %v4111_v62 = vor.u32 %v4109_v10, %v4107_v17  ;;  %v11060_v10 = vld [vmem:[%s14478_s3 + $0xb0] sm:$0xff]  }
 0x35b   : > { %v12168_v9 = vpop.f32.mrb[51].mxu1  ;;  %10506 = vmatprep.subr.bf16.mxu0 %v11060_v10 }
 0x35c   : > { %10507 = vmatpush3.bf16.msra.mxu0 %v11060_v10 }
 0x35d   : > { %10155 = vmatmul.mubr.bf16.gmra.mrb[156].mxu1 %v11946_v41  ;;  %v4115_v41 = vrot.slane %v4113_v49, 1  ;;  %v4123_v49 = vrot.slane %v4121_v55, 1 }
 0x35e   : > { %10158 = vmatprep.mubr.bf16.mxu1 %v11948_v34  ;;  %v12189_v34 = vsel %vm3928_vm1, %v4103_v2, %v4107_v17 }
 0x35f   : > { %14662 = vst [vmem:[#allocation92_spill] sm:$0xff] %v12189_v34  ;;  %v12193_v5 = vsel %vm3928_vm1, %v4111_v62, %v4115_v41  ;;  %v4119_v21 = vor.u32 %v4117_v57, %v4115_v41  ;;  %v4127_v2 = vor.u32 %v4125_v6, %v4123_v49  ;;  %v3837_v62 = vld [vmem:[#allocation2 + $0xd8] sm:$0xff]  ;;  %v11087_v6 = vld [vmem:[#allocation2] sm:$0xff] }
 0x360   : > { %v12179_v43 = vpop.f32.mrb[52].mxu1  ;;  %14663 = vst [vmem:[#allocation93_spill] sm:$0xff] %v12193_v5  ;;  %10387 = vmatmul.mubr.bf16.gmra.mrb[244].mxu0 %v12189_v34  ;;  %v3932_v54 = vshll.u32 %v11087_v6, 16  ;;  %v3930_v27 = vshrl.u32 %v11087_v6, 16  ;;  %v4157_v6 = vshrl.u32 %v3838_v1, 16 }
 0x361   : > { %14658 = vst [vmem:[#allocation88_spill] sm:$0xff] %v12179_v43  ;;  %v12182_v61 = vpop.f32.mrb[53].mxu1  ;;  %10390 = vmatprep.mubr.bf16.mxu0 %v12193_v5  ;;  %v12210_v55 = vsel %vm3928_vm1, %v4119_v21, %v4123_v49  ;;  %v12214_v41 = vsel %vm3928_vm1, %v4127_v2, %v4131_v4  ;;  %v4135_v49 = vor.u32 %v4133_v48, %v4131_v4 }
 0x362   : > { %14659 = vst [vmem:[#allocation89_spill] sm:$0xff] %v12182_v61  ;;  %v12184_v13 = vpop.f32.mrb[54].mxu1 }
 0x363   : > { %14660 = vst [vmem:[#allocation90_spill] sm:$0xff] %v12184_v13  ;;  %v12186_v25 = vpop.f32.mrb[55].mxu1  ;;  %v4153_v13 = vshll.u32 %v3838_v1, 16 }
 0x364   : > { %14661 = vst [vmem:[#allocation91_spill] sm:$0xff] %v12186_v25  ;;  %v3934_v25 = vrot.slane %v3932_v54, 1 }
 0x365   : > { %10159 = vmatmul.mubr.bf16.gmra.mrb[160].mxu1 %v11957_v28  ;;  %v3836_v28 = vld [vmem:[#allocation2 + $0xd0] sm:$0xff] }
 0x366   : > { %10162 = vmatprep.mubr.bf16.mxu1 %v11959_v24  ;;  %v4137_v39 = vshll.u32 %v3836_v28, 16  ;;  %v4141_v57 = vshrl.u32 %v3836_v28, 16  ;;  %v12225_v28 = vpop.f32.mrb[144].mxu0 }
 0x368   : > { %v12200_v44 = vpop.f32.mrb[56].mxu1  ;;  %10391 = vmatmul.mubr.bf16.gmra.mrb[248].mxu0 %v12210_v55  ;;  %v4139_v10 = vrot.slane %v4137_v39, 1  ;;  %v11088_v39 = vld [vmem:[#allocation2 + $0x8] sm:$0xff] }
 0x369   : > { %14664 = vst [vmem:[#allocation94_spill] sm:$0xff] %v12200_v44  ;;  %v12203_v17 = vpop.f32.mrb[57].mxu1  ;;  %10394 = vmatprep.mubr.bf16.mxu0 %v12214_v41  ;;  %v3937_v35 = vshll.u32 %v11088_v39, 16  ;;  %v3941_v43 = vshrl.u32 %v11088_v39, 16 }
 0x36a   : > { %14665 = vst [vmem:[#allocation95_spill] sm:$0xff] %v12203_v17  ;;  %v12205_v24 = vpop.f32.mrb[58].mxu1  ;;  %v4145_v17 = vshll.u32 %v3837_v62, 16  ;;  %v12234_v4 = vsel %vm3928_vm1, %v4135_v49, %v4139_v10  ;;  %v3840_v49 = vld [vmem:[#allocation2 + $0xf0] sm:$0xff] }
 0x36b   : > { %14666 = vst [vmem:[#allocation96_spill] sm:$0xff] %v12205_v24  ;;  %v12207_v51 = vpop.f32.mrb[59].mxu1  ;;  %14672 = vst [vmem:[#allocation102_spill] sm:$0xff] %v12234_v4  ;;  %v3939_v22 = vrot.slane %v3937_v35, 1  ;;  %v3841_v35 = vld [vmem:[#allocation2 + $0xf8] sm:$0xff] }
 0x36c   : > { %14667 = vst [vmem:[#allocation97_spill] sm:$0xff] %v12207_v51  ;;  %v4147_v2 = vrot.slane %v4145_v17, 1  ;;  %v4149_v17 = vshrl.u32 %v3837_v62, 16  ;;  %v4155_v62 = vrot.slane %v4153_v13, 1 }
 0x36d   : > { %10163 = vmatmul.mubr.bf16.gmra.mrb[164].mxu1 %v11965_v63  ;;  %v4143_v63 = vor.u32 %v4141_v57, %v4139_v10 }
 0x36e   : > { %10166 = vmatprep.mubr.bf16.mxu1 %v11967_v59  ;;  %v3839_v59 = vld [vmem:[#allocation2 + $0xe8] sm:$0xff] }
 0x36f   : > { %v4161_v54 = vshll.u32 %v3839_v59, 16 }
 0x370   : > { %v12218_v51 = vpop.f32.mrb[60].mxu1  ;;  %10395 = vmatmul.mubr.bf16.gmra.mrb[252].mxu0 %v12234_v4 }
 0x371   : > { %14668 = vst [vmem:[#allocation98_spill] sm:$0xff] %v12218_v51  ;;  %v12221_v21 = vpop.f32.mrb[61].mxu1  ;;  %v12229_v51 = vpop.f32.mrb[145].mxu0  ;;  %v4163_v61 = vrot.slane %v4161_v54, 1  ;;  %v4173_v54 = vshrl.u32 %v3840_v49, 16 }
 0x372   : > { %14669 = vst [vmem:[#allocation99_spill] sm:$0xff] %v12221_v21  ;;  %v12223_v24 = vpop.f32.mrb[62].mxu1  ;;  %v12231_v48 = vpop.f32.mrb[146].mxu0  ;;  %v3935_v21 = vor.u32 %v3934_v25, %v3930_v27 }
 0x373   : > { %14670 = vst [vmem:[#allocation100_spill] sm:$0xff] %v12223_v24  ;;  %v12227_v44 = vpop.f32.mrb[63].mxu1  ;;  %v12237_v57 = vpop.f32.mrb[147].mxu0  ;;  %v12240_v24 = vsel %vm3928_vm1, %v4143_v63, %v4147_v2  ;;  %v4159_v63 = vor.u32 %v4157_v6, %v4155_v62  ;;  %v4165_v6 = vshrl.u32 %v3839_v59, 16 }
 0x374   : > { %14671 = vst [vmem:[#allocation101_spill] sm:$0xff] %v12227_v44  ;;  %14673 = vst [vmem:[#allocation103_spill] sm:$0xff] %v12240_v24  ;;  %v11062_v44 = vld [vmem:[%s14478_s3 + $0xb8] sm:$0xff]   ;;  %10398 = vmatprep.mubr.bf16.mxu0 %v12240_v24  ;;  %v12254_v27 = vpop.f32.mrb[148].mxu0  ;;  %v3940_v13 = vsel %vm3928_vm1, %v3935_v21, %v3939_v22 }
 0x375   : > { %10167 = vmatmul.mubr.bf16.gmra.mrb[168].mxu1 %v11976_v56  ;;  %v4151_v56 = vor.u32 %v4149_v17, %v4147_v2  ;;  %10508 = vmatprep.subr.bf16.mxu0 %v11062_v44  ;;  %v4169_v2 = vshll.u32 %v3840_v49, 16  ;;  %v12270_v39 = vsel %vm3928_vm1, %v4159_v63, %v4163_v61 }
 0x376   : > { %10170 = vmatprep.mubr.bf16.mxu1 %v11986_v46  ;;  %10509 = vmatpush3.bf16.msra.mxu0 %v11062_v44  ;;  %14680 = vst [vmem:[#allocation110_spill] sm:$0xff] %v12270_v39 }
 0x377   : > { %v4171_v21 = vrot.slane %v4169_v2, 1 }
 0x378   : > { %v12247_v10 = vpop.f32.mrb[64].mxu1 }
 0x379   : > { %14674 = vst [vmem:[#allocation104_spill] sm:$0xff] %v12247_v10  ;;  %v12250_v1 = vpop.f32.mrb[65].mxu1  ;;  %v12259_v10 = vpop.f32.mrb[149].mxu0 }
 0x37a   : > { %14675 = vst [vmem:[#allocation105_spill] sm:$0xff] %v12250_v1  ;;  %v12252_v32 = vpop.f32.mrb[66].mxu1  ;;  %v12261_v17 = vpop.f32.mrb[150].mxu0  ;;  %v12264_v1 = vsel %vm3928_vm1, %v4151_v56, %v4155_v62  ;;  %v4167_v62 = vor.u32 %v4165_v6, %v4163_v61  ;;  %v4185_v61 = vshll.u32 %v11986_v46, 16 }
 0x37b   : > { %14676 = vst [vmem:[#allocation106_spill] sm:$0xff] %v12252_v32  ;;  %v12256_v25 = vpop.f32.mrb[67].mxu1  ;;  %14678 = vst [vmem:[#allocation108_spill] sm:$0xff] %v12264_v1  ;;  %v12267_v44 = vpop.f32.mrb[151].mxu0  ;;  %v3943_v32 = vor.u32 %v3941_v43, %v3939_v22  ;;  %10399 = vmatmul.mubr.bf16.gmra.mrb[0].mxu0 %v12264_v1  ;;  %v3843_v22 = vld [vmem:[#allocation2 + $0x108] sm:$0xff] }
 0x37c   : > { %14677 = vst [vmem:[#allocation107_spill] sm:$0xff] %v12256_v25  ;;  %14679 = vst [vmem:[#allocation109_spill] sm:$0xff] %v12267_v44  ;;  %v4177_v25 = vshll.u32 %v3841_v35, 16  ;;  %10402 = vmatprep.mubr.bf16.mxu0 %v12270_v39  ;;  %v12282_v63 = vpop.f32.mrb[152].mxu0 }
 0x37d   : > { %10171 = vmatmul.mubr.bf16.gmra.mrb[172].mxu1 %v12002_v38  ;;  %v4175_v38 = vor.u32 %v4173_v54, %v4171_v21  ;;  %v3948_v49 = vsel %vm3928_vm1, %v3943_v32, %v12005_v29  ;;  %v12289_v2 = vpop.f32.mrb[153].mxu0  ;;  %v4181_v54 = vshrl.u32 %v3841_v35, 16  ;;  %v11051_v35 = vld [vmem:[%s14478_s3 + $0x1d0] sm:$0xff]  }
 0x37e   : > { %10270 = vmatprep.mubr.bf16.mxu1 %v3940_v13  ;;  %v4179_v56 = vrot.slane %v4177_v25, 1  ;;  %v11049_v13 = vld [vmem:[%s14478_s3 + $0x1c8] sm:$0xff]   ;;  %v12292_v6 = vpop.f32.mrb[154].mxu0  ;;  %v12295_v25 = vsel %vm3928_vm1, %v4167_v62, %v4171_v21  ;;  %v4187_v21 = vrot.slane %v4185_v61, 1  ;;  %v11053_v61 = vld [vmem:[%s14478_s3 + $0x1d8] sm:$0xff]  }
 0x37f   : > { %14685 = vst [vmem:[#allocation115_spill] sm:$0xff] %v12295_v25  ;;  %v12297_v29 = vpop.f32.mrb[155].mxu0 }
 0x380   : > { %v12273_v24 = vpop.f32.mrb[68].mxu1  ;;  %14686 = vst [vmem:[#allocation116_spill] sm:$0xff] %v12297_v29  ;;  %v12300_v32 = vsel %vm3928_vm1, %v4175_v38, %v4179_v56  ;;  %v12322_v39 = vpop.f32.mrb[156].mxu0 }
 0x381   : > { %14681 = vst [vmem:[#allocation111_spill] sm:$0xff] %v12273_v24  ;;  %v12276_v59 = vpop.f32.mrb[69].mxu1  ;;  %14687 = vst [vmem:[#allocation117_spill] sm:$0xff] %v12300_v32 }
 0x382   : > { %14682 = vst [vmem:[#allocation112_spill] sm:$0xff] %v12276_v59  ;;  %v12278_v44 = vpop.f32.mrb[70].mxu1  ;;  %v12308_v59 = vld [vmem:[%s14478_s3 + $0x200] sm:$0xff]  }
 0x383   : > { %14683 = vst [vmem:[#allocation113_spill] sm:$0xff] %v12278_v44  ;;  %v12284_v43 = vpop.f32.mrb[71].mxu1  ;;  %v4771_v44 = vshll.u32 %v3843_v22, 16  ;;  %10403 = vmatmul.mubr.bf16.gmra.mrb[4].mxu0 %v12295_v25  ;;  %10654 = vmatprep.subr.bf16.mxu0 %v12308_v59 }
 0x384   : > { %14684 = vst [vmem:[#allocation114_spill] sm:$0xff] %v12284_v43  ;;  %v4767_v43 = vshrl.u32 %v11986_v46, 16  ;;  %10406 = vmatprep.mubr.bf16.mxu0 %v12300_v32  ;;  %v4183_v46 = vor.u32 %v4181_v54, %v4179_v56  ;;  %v12329_v56 = vpop.f32.mrb[157].mxu0 }
 0x385   : > { %10271 = vmatmul.mubr.bf16.vlgmr.msra.gmra.mrb[176].mxu1 %v3948_v49  ;;  %v4773_v38 = vrot.slane %v4771_v44, 1  ;;  %v3844_v49 = vld [vmem:[#allocation2 + $0x110] sm:$0xff]  ;;  %v12331_v54 = vpop.f32.mrb[158].mxu0  ;;  %v4775_v44 = vshrl.u32 %v3843_v22, 16 }
 0x386   : > { %10415 = vmatpush3.bf16.msra.mxu1 %v12053_v60  ;;  %10274 = vmatprep.mubr.bf16.mxu1 %v12022_v16  ;;  %v4769_v60 = vor.u32 %v4767_v43, %v4187_v21  ;;  %v12334_v43 = vsel %vm3928_vm1, %v4183_v46, %v4187_v21  ;;  %v11055_v21 = vld [vmem:[%s14478_s3 + $0x1e0] sm:$0xff]  }
 0x387   : > { %10416 = vmatprep.subr.bf16.mxu1 %v11049_v13  ;;  %14692 = vst [vmem:[#allocation122_spill] sm:$0xff] %v12334_v43 }
 0x388   : > { %v12314_v62 = vpop.f32.mrb[72].mxu1 }
 0x389   : > { %14688 = vst [vmem:[#allocation118_spill] sm:$0xff] %v12314_v62  ;;  %v12318_v16 = vpop.f32.mrb[73].mxu1  ;;  %v5815_v62 = vld [vmem:[#allocation2 + $0x8] sm:$0xff] }
 0x38a   : > { %14689 = vst [vmem:[#allocation119_spill] sm:$0xff] %v12318_v16  ;;  %v12320_v24 = vpop.f32.mrb[74].mxu1  ;;  %10417 = vmatpush3.bf16.msra.mxu1 %v11049_v13  ;;  %v4779_v16 = vshll.u32 %v3844_v49, 16  ;;  %v12337_v13 = vpop.f32.mrb[159].mxu0 }
 0x38b   : > { %14690 = vst [vmem:[#allocation120_spill] sm:$0xff] %v12320_v24  ;;  %v12324_v29 = vpop.f32.mrb[75].mxu1  ;;  %10418 = vmatprep.subr.bf16.mxu1 %v11051_v35  ;;  %14693 = vst [vmem:[#allocation123_spill] sm:$0xff] %v12337_v13  ;;  %v5814_v24 = vld [vmem:[#allocation2] sm:$0xfe]  ;;  %10407 = vmatmul.mubr.bf16.gmra.mrb[8].mxu0 %v12334_v43  ;;  %v12356_v32 = vpop.f32.mrb[160].mxu0 }
 0x38c   : > { %14691 = vst [vmem:[#allocation121_spill] sm:$0xff] %v12324_v29  ;;  %v12340_v29 = vsel %vm3928_vm1, %v4769_v60, %v4773_v38  ;;  %v12350_v46 = vrot.slane %v4779_v16, 1  ;;  %v5966_v49 = vrot.slane %v5814_v24, 1 }
 0x38d   : > { %10275 = vmatmul.mubr.bf16.gmra.mrb[180].mxu1 %v12036_v52  ;;  %14694 = vst [vmem:[#allocation124_spill] sm:$0xff] %v12340_v29  ;;  %10410 = vmatprep.mubr.bf16.mxu0 %v12340_v29  ;;  %v4777_v52 = vor.u32 %v4775_v44, %v4773_v38  ;;  %v11057_v29 = vld [vmem:[%s14478_s3 + $0x1e8] sm:$0xff]   ;;  %v12363_v38 = vpop.f32.mrb[161].mxu0  ;;  %v5816_v44 = vld [vmem:[#allocation2 + $0x10] sm:$0xff] }
 0x38e   : > { %10278 = vmatprep.mubr.bf16.mxu1 %v12041_v15  ;;  %10419 = vmatpush3.bf16.msra.mxu1 %v11051_v35  ;;  %14696 = vst [vmem:[#allocation126_spill] sm:$0xff] %v12350_v46  ;;  %v5967_v35 = vrot.slane %v5815_v62, 1  ;;  %v12365_v16 = vpop.f32.mrb[162].mxu0 }
 0x38f   : > { %10420 = vmatprep.subr.bf16.mxu1 %v11053_v61  ;;  %v12369_v24 = vsel %vm3928_vm1, %v4777_v52, %v12350_v46  ;;  %v12372_v62 = vpop.f32.mrb[163].mxu0  ;;  %v5969_v46 = vrot.slane %v5816_v44, 1  ;;  %v5818_v44 = vld [vmem:[#allocation2 + $0x20] sm:$0xff] }
 0x390   : > { %v12347_v22 = vpop.f32.mrb[76].mxu1  ;;  %14700 = vst [vmem:[#allocation130_spill] sm:$0xff] %v12369_v24 }
 0x391   : > { %14695 = vst [vmem:[#allocation125_spill] sm:$0xff] %v12347_v22  ;;  %v12352_v60 = vpop.f32.mrb[77].mxu1 }
 0x392   : > { %14697 = vst [vmem:[#allocation127_spill] sm:$0xff] %v12352_v60  ;;  %v12354_v15 = vpop.f32.mrb[78].mxu1  ;;  %10421 = vmatpush3.bf16.msra.mxu1 %v11053_v61  ;;  %v5968_v61 = vsel %vm5965_vm2, %v5966_v49, %v5967_v35 }
 0x393   : > { %14698 = vst [vmem:[#allocation128_spill] sm:$0xff] %v12354_v15  ;;  %v12358_v13 = vpop.f32.mrb[79].mxu1  ;;  %10422 = vmatprep.subr.bf16.mxu1 %v11055_v21  ;;  %v11059_v15 = vld [vmem:[%s14478_s3 + $0x1f0] sm:$0xff]   ;;  %10411 = vmatmul.mubr.bf16.gmra.mrb[12].mxu0 %v12369_v24 }
 0x394   : > { %14699 = vst [vmem:[#allocation129_spill] sm:$0xff] %v12358_v13  ;;  %v5817_v13 = vld [vmem:[#allocation2 + $0x18] sm:$0xff]  ;;  %10510 = vmatprep.mubr.bf16.mxu0 %v5968_v61  ;;  %v5970_v61 = vsel %vm5965_vm2, %v5967_v35, %v5969_v46  ;;  %v12411_v35 = vld [vmem:[%s14478_s3 + $0x140] sm:$0xff]  }
 0x395   : > { %10279 = vmatmul.mubr.bf16.gmra.mrb[184].mxu1 %v12059_v23  ;;  %v5971_v22 = vrot.slane %v5817_v13, 1  ;;  %v11061_v23 = vld [vmem:[%s14478_s3 + $0x1f8] sm:$0xff]  }
 0x396   : > { %10282 = vmatprep.mubr.bf16.mxu1 %v12064_v53  ;;  %10423 = vmatpush3.bf16.msra.mxu1 %v11055_v21  ;;  %v12386_v53 = vpop.f32.mrb[164].mxu0 }
 0x397   : > { %10424 = vmatprep.subr.bf16.mxu1 %v11057_v29  ;;  %v12393_v24 = vpop.f32.mrb[165].mxu0 }
 0x398   : > { %v12380_v52 = vpop.f32.mrb[80].mxu1 }
 0x399   : > { %14701 = vst [vmem:[#allocation131_spill] sm:$0xff] %v12380_v52  ;;  %v12382_v60 = vpop.f32.mrb[81].mxu1  ;;  %v12395_v52 = vpop.f32.mrb[166].mxu0 }
 0x39a   : > { %14702 = vst [vmem:[#allocation132_spill] sm:$0xff] %v12382_v60  ;;  %v12384_v49 = vpop.f32.mrb[82].mxu1  ;;  %10425 = vmatpush3.bf16.msra.mxu1 %v11057_v29  ;;  %14705 = vst [vmem:[#allocation135_spill] sm:$0xff] %v12395_v52  ;;  %v12399_v13 = vpop.f32.mrb[167].mxu0  ;;  %v12402_v29 = vsel %vm5965_vm2, %v5969_v46, %v5971_v22  ;;  %v5973_v46 = vrot.slane %v5818_v44, 1  ;;  %v5820_v44 = vld [vmem:[#allocation2 + $0x30] sm:$0xff] }
 0x39b   : > { %14703 = vst [vmem:[#allocation133_spill] sm:$0xff] %v12384_v49  ;;  %v12388_v21 = vpop.f32.mrb[83].mxu1  ;;  %10426 = vmatprep.subr.bf16.mxu1 %v11059_v15  ;;  %14706 = vst [vmem:[#allocation136_spill] sm:$0xff] %v12399_v13  ;;  %v5819_v49 = vld [vmem:[#allocation2 + $0x28] sm:$0xff]  ;;  %10511 = vmatmul.mubr.bf16.vlgmr.msra.gmra.mrb[16].mxu0 %v5970_v61  ;;  %v12421_v61 = vpop.f32.mrb[168].mxu0 }
 0x39c   : > { %14704 = vst [vmem:[#allocation134_spill] sm:$0xff] %v12388_v21  ;;  %14707 = vst [vmem:[#allocation137_spill] sm:$0xff] %v12402_v29  ;;  %v11066_v21 = vld [vmem:[%s14478_s3 + $0x208] sm:$0xff]   ;;  %10655 = vmatpush3.bf16.msra.mxu0 %v12308_v59  ;;  %10514 = vmatprep.mubr.bf16.mxu0 %v12402_v29  ;;  %v5975_v13 = vrot.slane %v5819_v49, 1  ;;  %v12426_v52 = vpop.f32.mrb[169].mxu0  ;;  %v12431_v59 = vsel %vm5965_vm2, %v5971_v22, %v5973_v46  ;;  %v5821_v29 = vld [vmem:[#allocation2 + $0x38] sm:$0xff] }
 0x39d   : > { %10283 = vmatmul.mubr.bf16.gmra.mrb[188].mxu1 %v12076_v40  ;;  %10656 = vmatprep.subr.bf16.mxu0 %v11066_v21  ;;  %14713 = vst [vmem:[#allocation143_spill] sm:$0xff] %v12431_v59 }
 0x39e   : > { %10286 = vmatprep.mubr.bf16.mxu1 %v12081_v33  ;;  %10427 = vmatpush3.bf16.msra.mxu1 %v11059_v15 }
 0x39f   : > { %10428 = vmatprep.subr.bf16.mxu1 %v11061_v23 }
 0x3a0   : > { %v12413_v60 = vpop.f32.mrb[84].mxu1  ;;  %10657 = vmatpush3.bf16.msra.mxu0 %v11066_v21  ;;  %v5977_v21 = vrot.slane %v5820_v44, 1 }
 0x3a1   : > { %14708 = vst [vmem:[#allocation138_spill] sm:$0xff] %v12413_v60  ;;  %v12417_v40 = vpop.f32.mrb[85].mxu1  ;;  %v12428_v60 = vpop.f32.mrb[170].mxu0 }
 0x3a2   : > { %14709 = vst [vmem:[#allocation139_spill] sm:$0xff] %v12417_v40  ;;  %v12419_v15 = vpop.f32.mrb[86].mxu1  ;;  %10429 = vmatpush3.bf16.msra.mxu1 %v11061_v23  ;;  %14712 = vst [vmem:[#allocation142_spill] sm:$0xff] %v12428_v60  ;;  %v12434_v49 = vpop.f32.mrb[171].mxu0  ;;  %v12437_v23 = vsel %vm5965_vm2, %v5973_v46, %v5975_v13  ;;  %v5979_v46 = vrot.slane %v5821_v29, 1 }
 0x3a3   : > { %14710 = vst [vmem:[#allocation140_spill] sm:$0xff] %v12419_v15  ;;  %v12423_v33 = vpop.f32.mrb[87].mxu1  ;;  %10574 = vmatprep.subr.bf16.mxu1 %v12411_v35  ;;  %14714 = vst [vmem:[#allocation144_spill] sm:$0xff] %v12434_v49  ;;  %10515 = vmatmul.mubr.bf16.gmra.mrb[20].mxu0 %v12431_v59  ;;  %v12460_v59 = vsel %vm5965_vm2, %v5975_v13, %v5977_v21 }
 0x3a4   : > { %14711 = vst [vmem:[#allocation141_spill] sm:$0xff] %v12423_v33  ;;  %14715 = vst [vmem:[#allocation145_spill] sm:$0xff] %v12437_v23  ;;  %v11068_v33 = vld [vmem:[%s14478_s3 + $0x210] sm:$0xff]   ;;  %10518 = vmatprep.mubr.bf16.mxu0 %v12437_v23  ;;  %v12466_v29 = vsel %vm5965_vm2, %v5977_v21, %v5979_v46 }
 0x3a5   : > { %10287 = vmatmul.mubr.bf16.gmra.mrb[192].mxu1 %v12090_v19  ;;  %10658 = vmatprep.subr.bf16.mxu0 %v11068_v33  ;;  %14720 = vst [vmem:[#allocation150_spill] sm:$0xff] %v12460_v59  ;;  %14722 = vst [vmem:[#allocation152_spill] sm:$0xff] %v12466_v29 }
 0x3a6   : > { %10290 = vmatprep.mubr.bf16.mxu1 %v12095_v50  ;;  %10659 = vmatpush3.bf16.msra.mxu0 %v11068_v33  ;;  %v12451_v50 = vpop.f32.mrb[172].mxu0  ;;  %v5822_v33 = vld [vmem:[#allocation2 + $0x40] sm:$0xff] }
 0x3a7   : > { %v12455_v49 = vpop.f32.mrb[173].mxu0 }
 0x3a8   : > { %v12444_v22 = vpop.f32.mrb[88].mxu1  ;;  %v12457_v60 = vpop.f32.mrb[174].mxu0 }
 0x3a9   : > { %14716 = vst [vmem:[#allocation146_spill] sm:$0xff] %v12444_v22  ;;  %v12447_v15 = vpop.f32.mrb[89].mxu1  ;;  %v12463_v44 = vpop.f32.mrb[175].mxu0 }
 0x3aa   : > { %14717 = vst [vmem:[#allocation147_spill] sm:$0xff] %v12447_v15  ;;  %v12449_v40 = vpop.f32.mrb[90].mxu1  ;;  %14721 = vst [vmem:[#allocation151_spill] sm:$0xff] %v12463_v44  ;;  %v5981_v15 = vrot.slane %v5822_v33, 1  ;;  %v12477_v23 = vpop.f32.mrb[176].mxu0 }
 0x3ab   : > { %14718 = vst [vmem:[#allocation148_spill] sm:$0xff] %v12449_v40  ;;  %v12453_v19 = vpop.f32.mrb[91].mxu1  ;;  %v5823_v40 = vld [vmem:[#allocation2 + $0x48] sm:$0xff]  ;;  %10519 = vmatmul.mubr.bf16.gmra.mrb[24].mxu0 %v12460_v59  ;;  %v12481_v44 = vpop.f32.mrb[177].mxu0 }
 0x3ac   : > { %14719 = vst [vmem:[#allocation149_spill] sm:$0xff] %v12453_v19  ;;  %10522 = vmatprep.mubr.bf16.mxu0 %v12466_v29  ;;  %v5983_v22 = vrot.slane %v5823_v40, 1  ;;  %14727 = vst [vmem:[#allocation157_spill] sm:$0xff] %v12481_v44  ;;  %v12486_v59 = vsel %vm5965_vm2, %v5979_v46, %v5981_v15  ;;  %v5824_v40 = vld [vmem:[#allocation2 + $0x50] sm:$0xff] }
 0x3ad   : > { %10291 = vmatmul.mubr.bf16.gmra.mrb[196].mxu1 %v12107_v45  ;;  %14729 = vst [vmem:[#allocation159_spill] sm:$0xff] %v12486_v59  ;;  %v5985_v46 = vrot.slane %v5824_v40, 1 }
 0x3ae   : > { %10294 = vmatprep.mubr.bf16.mxu1 %v12112_v26  ;;  %v12483_v26 = vpop.f32.mrb[178].mxu0  ;;  %v12492_v33 = vsel %vm5965_vm2, %v5981_v15, %v5983_v22 }
 0x3af   : > { %14728 = vst [vmem:[#allocation158_spill] sm:$0xff] %v12483_v26  ;;  %14731 = vst [vmem:[#allocation161_spill] sm:$0xff] %v12492_v33 }
 0x3b0   : > { %v12470_v19 = vpop.f32.mrb[92].mxu1 }
 0x3b1   : > { %14723 = vst [vmem:[#allocation153_spill] sm:$0xff] %v12470_v19  ;;  %v12473_v13 = vpop.f32.mrb[93].mxu1  ;;  %v12489_v19 = vpop.f32.mrb[179].mxu0 }
 0x3b2   : > { %14724 = vst [vmem:[#allocation154_spill] sm:$0xff] %v12473_v13  ;;  %v12475_v45 = vpop.f32.mrb[94].mxu1  ;;  %14730 = vst [vmem:[#allocation160_spill] sm:$0xff] %v12489_v19 }
 0x3b3   : > { %14725 = vst [vmem:[#allocation155_spill] sm:$0xff] %v12475_v45  ;;  %v12479_v21 = vpop.f32.mrb[95].mxu1  ;;  %v5825_v45 = vld [vmem:[#allocation2 + $0x58] sm:$0xff]  ;;  %10523 = vmatmul.mubr.bf16.gmra.mrb[28].mxu0 %v12486_v59 }
 0x3b4   : > { %14726 = vst [vmem:[#allocation156_spill] sm:$0xff] %v12479_v21  ;;  %v11070_v21 = vld [vmem:[%s14478_s3 + $0x218] sm:$0xff]   ;;  %10526 = vmatprep.mubr.bf16.mxu0 %v12492_v33  ;;  %v5987_v15 = vrot.slane %v5825_v45, 1 }
 0x3b5   : > { %10295 = vmatmul.mubr.bf16.gmra.mrb[200].mxu1 %v12121_v12  ;;  %10660 = vmatprep.subr.bf16.mxu0 %v11070_v21 }
 0x3b6   : > { %10298 = vmatprep.mubr.bf16.mxu1 %v12126_v37  ;;  %10661 = vmatpush3.bf16.msra.mxu0 %v11070_v21  ;;  %v12506_v37 = vpop.f32.mrb[180].mxu0  ;;  %v12521_v45 = vsel %vm5965_vm2, %v5985_v46, %v5987_v15  ;;  %v5826_v21 = vld [vmem:[#allocation2 + $0x60] sm:$0xff] }
 0x3b7   : > { %v12510_v26 = vpop.f32.mrb[181].mxu0  ;;  %14738 = vst [vmem:[#allocation168_spill] sm:$0xff] %v12521_v45 }
 0x3b8   : > { %v12499_v13 = vpop.f32.mrb[96].mxu1  ;;  %v12512_v44 = vpop.f32.mrb[182].mxu0 }
 0x3b9   : > { %14732 = vst [vmem:[#allocation162_spill] sm:$0xff] %v12499_v13  ;;  %v12502_v12 = vpop.f32.mrb[97].mxu1  ;;  %v12515_v13 = vsel %vm5965_vm2, %v5983_v22, %v5985_v46  ;;  %v12518_v40 = vpop.f32.mrb[183].mxu0 }
 0x3ba   : > { %14733 = vst [vmem:[#allocation163_spill] sm:$0xff] %v12502_v12  ;;  %v12504_v29 = vpop.f32.mrb[98].mxu1  ;;  %14736 = vst [vmem:[#allocation166_spill] sm:$0xff] %v12515_v13  ;;  %v5989_v12 = vrot.slane %v5826_v21, 1  ;;  %v12532_v59 = vpop.f32.mrb[184].mxu0 }
 0x3bb   : > { %14734 = vst [vmem:[#allocation164_spill] sm:$0xff] %v12504_v29  ;;  %v12508_v19 = vpop.f32.mrb[99].mxu1  ;;  %14737 = vst [vmem:[#allocation167_spill] sm:$0xff] %v12518_v40  ;;  %v5827_v29 = vld [vmem:[#allocation2 + $0x68] sm:$0xff]  ;;  %10527 = vmatmul.mubr.bf16.gmra.mrb[32].mxu0 %v12515_v13  ;;  %v12536_v40 = vpop.f32.mrb[185].mxu0 }
 0x3bc   : > { %14735 = vst [vmem:[#allocation165_spill] sm:$0xff] %v12508_v19  ;;  %10530 = vmatprep.mubr.bf16.mxu0 %v12521_v45  ;;  %v5991_v33 = vrot.slane %v5827_v29, 1  ;;  %14743 = vst [vmem:[#allocation173_spill] sm:$0xff] %v12536_v40  ;;  %v12541_v13 = vsel %vm5965_vm2, %v5987_v15, %v5989_v12  ;;  %v5828_v29 = vld [vmem:[#allocation2 + $0x70] sm:$0xff] }
 0x3bd   : > { %10299 = vmatmul.mubr.bf16.gmra.mrb[204].mxu1 %v12138_v31  ;;  %14745 = vst [vmem:[#allocation175_spill] sm:$0xff] %v12541_v13  ;;  %v5993_v15 = vrot.slane %v5828_v29, 1 }
 0x3be   : > { %10302 = vmatprep.mubr.bf16.mxu1 %v12143_v58  ;;  %v12538_v58 = vpop.f32.mrb[186].mxu0  ;;  %v12547_v21 = vsel %vm5965_vm2, %v5989_v12, %v5991_v33 }
 0x3bf   : > { %14744 = vst [vmem:[#allocation174_spill] sm:$0xff] %v12538_v58  ;;  %14747 = vst [vmem:[#allocation177_spill] sm:$0xff] %v12547_v21 }
 0x3c0   : > { %v12525_v19 = vpop.f32.mrb[100].mxu1 }
 0x3c1   : > { %14739 = vst [vmem:[#allocation169_spill] sm:$0xff] %v12525_v19  ;;  %v12528_v22 = vpop.f32.mrb[101].mxu1  ;;  %v12544_v19 = vpop.f32.mrb[187].mxu0 }
 0x3c2   : > { %14740 = vst [vmem:[#allocation170_spill] sm:$0xff] %v12528_v22  ;;  %v12530_v31 = vpop.f32.mrb[102].mxu1  ;;  %14746 = vst [vmem:[#allocation176_spill] sm:$0xff] %v12544_v19 }
 0x3c3   : > { %14741 = vst [vmem:[#allocation171_spill] sm:$0xff] %v12530_v31  ;;  %v12534_v46 = vpop.f32.mrb[103].mxu1  ;;  %v5829_v31 = vld [vmem:[#allocation2 + $0x78] sm:$0xff]  ;;  %10531 = vmatmul.mubr.bf16.gmra.mrb[36].mxu0 %v12541_v13 }
 0x3c4   : > { %14742 = vst [vmem:[#allocation172_spill] sm:$0xff] %v12534_v46  ;;  %v11072_v46 = vld [vmem:[%s14478_s3 + $0x220] sm:$0xff]   ;;  %10534 = vmatprep.mubr.bf16.mxu0 %v12547_v21  ;;  %v5995_v12 = vrot.slane %v5829_v31, 1 }
 0x3c5   : > { %10303 = vmatmul.mubr.bf16.gmra.mrb[208].mxu1 %v12150_v30  ;;  %10662 = vmatprep.subr.bf16.mxu0 %v11072_v46 }
 0x3c6   : > { %10306 = vmatprep.mubr.bf16.mxu1 %v12154_v11  ;;  %10663 = vmatpush3.bf16.msra.mxu0 %v11072_v46  ;;  %v12561_v11 = vpop.f32.mrb[188].mxu0  ;;  %v12576_v31 = vsel %vm5965_vm2, %v5993_v15, %v5995_v12  ;;  %v5830_v46 = vld [vmem:[#allocation2 + $0x80] sm:$0xff] }
 0x3c7   : > { %v12565_v58 = vpop.f32.mrb[189].mxu0  ;;  %14754 = vst [vmem:[#allocation184_spill] sm:$0xff] %v12576_v31 }
 0x3c8   : > { %v12554_v22 = vpop.f32.mrb[104].mxu1  ;;  %v12567_v40 = vpop.f32.mrb[190].mxu0 }
 0x3c9   : > { %14748 = vst [vmem:[#allocation178_spill] sm:$0xff] %v12554_v22  ;;  %v12557_v30 = vpop.f32.mrb[105].mxu1  ;;  %v12570_v22 = vsel %vm5965_vm2, %v5991_v33, %v5993_v15  ;;  %v12573_v29 = vpop.f32.mrb[191].mxu0 }
 0x3ca   : > { %14749 = vst [vmem:[#allocation179_spill] sm:$0xff] %v12557_v30  ;;  %v12559_v45 = vpop.f32.mrb[106].mxu1  ;;  %14752 = vst [vmem:[#allocation182_spill] sm:$0xff] %v12570_v22  ;;  %v5997_v30 = vrot.slane %v5830_v46, 1  ;;  %v12587_v13 = vpop.f32.mrb[192].mxu0 }
 0x3cb   : > { %14750 = vst [vmem:[#allocation180_spill] sm:$0xff] %v12559_v45  ;;  %v12563_v19 = vpop.f32.mrb[107].mxu1  ;;  %14753 = vst [vmem:[#allocation183_spill] sm:$0xff] %v12573_v29  ;;  %v5831_v45 = vld [vmem:[#allocation2 + $0x88] sm:$0xff]  ;;  %10535 = vmatmul.mubr.bf16.gmra.mrb[40].mxu0 %v12570_v22  ;;  %v12591_v29 = vpop.f32.mrb[193].mxu0 }
 0x3cc   : > { %14751 = vst [vmem:[#allocation181_spill] sm:$0xff] %v12563_v19  ;;  %10538 = vmatprep.mubr.bf16.mxu0 %v12576_v31  ;;  %v5999_v21 = vrot.slane %v5831_v45, 1  ;;  %14759 = vst [vmem:[#allocation189_spill] sm:$0xff] %v12591_v29  ;;  %v12596_v22 = vsel %vm5965_vm2, %v5995_v12, %v5997_v30  ;;  %v5832_v45 = vld [vmem:[#allocation2 + $0x90] sm:$0xff]  ;;  %v2590_v12 = vadd.f32 %v12164_v7, %v11718_v8 }
 0x3cd   : > { %10307 = vmatmul.mubr.bf16.gmra.mrb[212].mxu1 %v12171_v18  ;;  %14761 = vst [vmem:[#allocation191_spill] sm:$0xff] %v12596_v22 }
 0x3ce   : > { %10310 = vmatprep.mubr.bf16.mxu1 %v12175_v20  ;;  %v12593_v20 = vpop.f32.mrb[194].mxu0  ;;  %v12602_v46 = vsel %vm5965_vm2, %v5997_v30, %v5999_v21  ;;  %v6001_v30 = vrot.slane %v5832_v45, 1 }
 0x3cf   : > { %14760 = vst [vmem:[#allocation190_spill] sm:$0xff] %v12593_v20  ;;  %14763 = vst [vmem:[#allocation193_spill] sm:$0xff] %v12602_v46 }
 0x3d0   : > { %v12580_v19 = vpop.f32.mrb[108].mxu1 }
 0x3d1   : > { %14755 = vst [vmem:[#allocation185_spill] sm:$0xff] %v12580_v19  ;;  %v12583_v33 = vpop.f32.mrb[109].mxu1  ;;  %v12599_v19 = vpop.f32.mrb[195].mxu0 }
 0x3d2   : > { %14756 = vst [vmem:[#allocation186_spill] sm:$0xff] %v12583_v33  ;;  %v12585_v18 = vpop.f32.mrb[110].mxu1  ;;  %14762 = vst [vmem:[#allocation192_spill] sm:$0xff] %v12599_v19  ;;  %v2592_v33 = vadd.f32 %v12161_v0, %v11715_v47  ;;  %v2591_v47 = vadd.f32 %v12168_v9, %v11724_v42  ;;  %v12618_v29 = vpop.f32.mrb[196].mxu0  ;;  %v5834_v9 = vld [vmem:[#allocation2 + $0xa0] sm:$0xff] }
 0x3d3   : > { %14757 = vst [vmem:[#allocation187_spill] sm:$0xff] %v12585_v18  ;;  %v12589_v15 = vpop.f32.mrb[111].mxu1  ;;  %v5833_v18 = vld [vmem:[#allocation2 + $0x98] sm:$0xff]  ;;  %10539 = vmatmul.mubr.bf16.gmra.mrb[44].mxu0 %v12596_v22 }
 0x3d4   : > { %14758 = vst [vmem:[#allocation188_spill] sm:$0xff] %v12589_v15  ;;  %v11074_v15 = vld [vmem:[%s14478_s3 + $0x228] sm:$0xff]   ;;  %10542 = vmatprep.mubr.bf16.mxu0 %v12602_v46  ;;  %v6003_v20 = vrot.slane %v5833_v18, 1  ;;  %v12623_v46 = vpop.f32.mrb[197].mxu0 }
 0x3d5   : > { %10311 = vmatmul.mubr.bf16.gmra.mrb[216].mxu1 %v12189_v34  ;;  %10664 = vmatprep.subr.bf16.mxu0 %v11074_v15  ;;  %v12628_v18 = vpop.f32.mrb[198].mxu0 }
 0x3d6   : > { %10314 = vmatprep.mubr.bf16.mxu1 %v12193_v5  ;;  %v2593_v5 = vadd.f32 %v12166_v36, %v11721_v14  ;;  %10665 = vmatpush3.bf16.msra.mxu0 %v11074_v15 }
 0x3d8   : > { %v10112_v34 = vpop.f32.mrb[112].mxu1 }
 0x3d9   : > { %v3138_v31 = vadd.f32 %v10112_v34, %v2592_v33  ;;  %v2881_v19 = vpop.f32.mrb[113].mxu1  ;;  %v12631_v34 = vsel %vm5965_vm2, %v5999_v21, %v6001_v30 }
 0x3da   : > { %v3136_v0 = vadd.f32 %v2881_v19, %v2590_v12  ;;  %v10113_v22 = vpop.f32.mrb[114].mxu1  ;;  %v12637_v19 = vpop.f32.mrb[199].mxu0  ;;  %v6005_v12 = vrot.slane %v5834_v9, 1 }
 0x3db   : > { %v12621_v8 = vadd.f32 %v12225_v28, %v3138_v31  ;;  %v3139_v7 = vadd.f32 %v10113_v22, %v2593_v5  ;;  %v2884_v45 = vpop.f32.mrb[115].mxu1  ;;  %v12640_v5 = vsel %vm5965_vm2, %v6001_v30, %v6003_v20  ;;  %v5835_v28 = vld [vmem:[#allocation2 + $0xa8] sm:$0xff]  ;;  %v14769_v22 = vld [vmem:[#allocation88_spill] sm:$0xff]  ;;  %10543 = vmatmul.mubr.bf16.gmra.mrb[48].mxu0 %v12631_v34  ;;  %v14771_v31 = vld [vmem:[#allocation89_spill] sm:$0xff] }
 0x3dc   : > { %v12626_v14 = vadd.f32 %v12229_v51, %v3136_v0  ;;  %v3137_v36 = vadd.f32 %v2884_v45, %v2591_v47  ;;  %14767 = vst [vmem:[#allocation197_spill] sm:$0xff] %v12640_v5  ;;  %v2596_v21 = vadd.f32 %v14769_v22, %v11727_v3  ;;  %10546 = vmatprep.mubr.bf16.mxu0 %v12640_v5  ;;  %v14772_v30 = vld [vmem:[#allocation61_spill] sm:$0xff]  ;;  %v14773_v47 = vld [vmem:[#allocation90_spill] sm:$0xff]  ;;  %v6007_v45 = vrot.slane %v5835_v28, 1  ;;  %v12656_v22 = vpop.f32.mrb[200].mxu0 }
 0x3dd   : > { %14764 = vst [vmem:[#allocation194_spill] sm:$0xff] %v12621_v8  ;;  %v12634_v42 = vadd.f32 %v12231_v48, %v3139_v7  ;;  %10315 = vmatmul.mubr.bf16.gmra.mrb[220].mxu1 %v12210_v55  ;;  %v14770_v48 = vld [vmem:[#allocation60_spill] sm:$0xff]  ;;  %v2597_v0 = vadd.f32 %v14773_v47, %v14772_v30  ;;  %v12661_v5 = vpop.f32.mrb[201].mxu0  ;;  %v12669_v28 = vsel %vm5965_vm2, %v6003_v20, %v6005_v12  ;;  %v14781_v47 = vld [vmem:[#allocation109_spill] sm:$0xff] }
 0x3de   : > { %14765 = vst [vmem:[#allocation195_spill] sm:$0xff] %v12626_v14  ;;  %v12643_v51 = vadd.f32 %v12237_v57, %v3137_v36  ;;  %10318 = vmatprep.mubr.bf16.mxu1 %v12214_v41  ;;  %v2594_v33 = vadd.f32 %v14771_v31, %v14770_v48  ;;  %v14774_v36 = vld [vmem:[#allocation62_spill] sm:$0xff]  ;;  %14778 = vst [vmem:[#allocation89_spill] sm:$0xff] %v12669_v28  ;;  %v5836_v30 = vld [vmem:[#allocation2 + $0xb0] sm:$0xff] }
 0x3df   : > { %14766 = vst [vmem:[#allocation196_spill] sm:$0xff] %v12634_v42  ;;  %v11076_v20 = vld [vmem:[%s14478_s3 + $0x230] sm:$0xff]  }
 0x3e0   : > { %14768 = vst [vmem:[#allocation198_spill] sm:$0xff] %v12643_v51  ;;  %v10116_v15 = vpop.f32.mrb[116].mxu1  ;;  %v14775_v51 = vld [vmem:[#allocation91_spill] sm:$0xff]  ;;  %10666 = vmatprep.subr.bf16.mxu0 %v11076_v20 }
 0x3e1   : > { %v3142_v57 = vadd.f32 %v10116_v15, %v2596_v21  ;;  %v2897_v7 = vpop.f32.mrb[117].mxu1  ;;  %v2595_v42 = vadd.f32 %v14775_v51, %v14774_v36  ;;  %v12666_v15 = vpop.f32.mrb[202].mxu0  ;;  %v14787_v36 = vld [vmem:[#allocation95_spill] sm:$0xff]  ;;  %10667 = vmatpush3.bf16.msra.mxu0 %v11076_v20 }
 0x3e2   : > { %v3140_v14 = vadd.f32 %v2897_v7, %v2594_v33  ;;  %v10117_v3 = vpop.f32.mrb[118].mxu1  ;;  %v12678_v33 = vsel %vm5965_vm2, %v6005_v12, %v6007_v45  ;;  %v14786_v7 = vld [vmem:[#allocation64_spill] sm:$0xff] }
 0x3e3   : > { %v12659_v8 = vadd.f32 %v12254_v27, %v3142_v57  ;;  %v3143_v48 = vadd.f32 %v10117_v3, %v2597_v0  ;;  %v2900_v31 = vpop.f32.mrb[119].mxu1  ;;  %v12675_v27 = vpop.f32.mrb[203].mxu0  ;;  %14780 = vst [vmem:[#allocation90_spill] sm:$0xff] %v12678_v33  ;;  %v14785_v0 = vld [vmem:[#allocation94_spill] sm:$0xff]  ;;  %10547 = vmatmul.mubr.bf16.gmra.mrb[52].mxu0 %v12669_v28  ;;  %v2598_v12 = vadd.f32 %v14787_v36, %v14786_v7 }
 0x3e4   : > { %v12664_v9 = vadd.f32 %v12259_v10, %v3140_v14  ;;  %v3141_v21 = vadd.f32 %v2900_v31, %v2595_v42  ;;  %v14783_v14 = vld [vmem:[#allocation103_spill] sm:$0xff]  ;;  %v5837_v42 = vld [vmem:[#allocation2 + $0xb8] sm:$0xff]  ;;  %10550 = vmatprep.mubr.bf16.mxu0 %v12678_v33 }
 0x3e5   : > { %14776 = vst [vmem:[#allocation88_spill] sm:$0xff] %v12659_v8  ;;  %v12672_v51 = vadd.f32 %v12261_v17, %v3143_v48  ;;  %10319 = vmatmul.mubr.bf16.gmra.mrb[224].mxu1 %v12234_v4  ;;  %v14784_v17 = vld [vmem:[#allocation63_spill] sm:$0xff]  ;;  %v6009_v48 = vrot.slane %v5836_v30, 1  ;;  %v14788_v31 = vld [vmem:[#allocation65_spill] sm:$0xff]  ;;  %v14790_v8 = vld [vmem:[#allocation66_spill] sm:$0xff]  ;;  %v12697_v4 = vpop.f32.mrb[204].mxu0 }
 0x3e6   : > { %14777 = vst [vmem:[#allocation60_spill] sm:$0xff] %v12664_v9  ;;  %v12681_v10 = vadd.f32 %v14781_v47, %v3141_v21  ;;  %10322 = vmatprep.mubr.bf16.mxu1 %v14783_v14  ;;  %v2600_v57 = vadd.f32 %v14785_v0, %v14784_v17  ;;  %v14789_v21 = vld [vmem:[#allocation96_spill] sm:$0xff]  ;;  %v6011_v9 = vrot.slane %v5837_v42, 1  ;;  %v14791_v14 = vld [vmem:[#allocation97_spill] sm:$0xff]  ;;  %v12702_v33 = vpop.f32.mrb[205].mxu0 }
 0x3e7   : > { %14779 = vst [vmem:[#allocation61_spill] sm:$0xff] %v12672_v51  ;;  %v2601_v47 = vadd.f32 %v14789_v21, %v14788_v31  ;;  %v2599_v17 = vadd.f32 %v14791_v14, %v14790_v8  ;;  %v12707_v42 = vpop.f32.mrb[206].mxu0  ;;  %v12710_v20 = vsel %vm5965_vm2, %v6007_v45, %v6009_v48  ;;  %v14799_v14 = vld [vmem:[#allocation110_spill] sm:$0xff] }
 0x3e8   : > { %14782 = vst [vmem:[#allocation62_spill] sm:$0xff] %v12681_v10  ;;  %v10120_v3 = vpop.f32.mrb[120].mxu1  ;;  %14794 = vst [vmem:[#allocation63_spill] sm:$0xff] %v12710_v20  ;;  %v14801_v45 = vld [vmem:[#allocation98_spill] sm:$0xff] }
 0x3e9   : > { %v3146_v10 = vadd.f32 %v10120_v3, %v2600_v57  ;;  %v2913_v51 = vpop.f32.mrb[121].mxu1  ;;  %v14800_v3 = vld [vmem:[#allocation67_spill] sm:$0xff] }
 0x3ea   : > { %v3144_v0 = vadd.f32 %v2913_v51, %v2598_v12  ;;  %v10121_v28 = vpop.f32.mrb[122].mxu1  ;;  %v5838_v51 = vld [vmem:[#allocation2 + $0xc0] sm:$0xff]  ;;  %v5839_v12 = vld [vmem:[#allocation2 + $0xc8] sm:$0xff]  ;;  %v2604_v21 = vadd.f32 %v14801_v45, %v14800_v3 }
 0x3eb   : > { %v12700_v7 = vadd.f32 %v12282_v63, %v3146_v10  ;;  %v3147_v36 = vadd.f32 %v10121_v28, %v2601_v47  ;;  %v2916_v30 = vpop.f32.mrb[123].mxu1  ;;  %v12716_v63 = vpop.f32.mrb[207].mxu0  ;;  %v12719_v28 = vsel %vm5965_vm2, %v6009_v48, %v6011_v9  ;;  %v14797_v10 = vld [vmem:[#allocation116_spill] sm:$0xff]  ;;  %10551 = vmatmul.mubr.bf16.gmra.mrb[56].mxu0 %v12710_v20  ;;  %v14803_v47 = vld [vmem:[#allocation99_spill] sm:$0xff]  ;;  %v6013_v48 = vrot.slane %v5838_v51, 1 }
 0x3ec   : > { %v12705_v31 = vadd.f32 %v12289_v2, %v3144_v0  ;;  %v3145_v57 = vadd.f32 %v2916_v30, %v2599_v17  ;;  %14796 = vst [vmem:[#allocation64_spill] sm:$0xff] %v12719_v28  ;;  %10554 = vmatprep.mubr.bf16.mxu0 %v12719_v28  ;;  %v14805_v30 = vld [vmem:[#allocation100_spill] sm:$0xff]  ;;  %v12735_v45 = vpop.f32.mrb[208].mxu0 }
 0x3ed   : > { %14792 = vst [vmem:[#allocation91_spill] sm:$0xff] %v12700_v7  ;;  %v12713_v8 = vadd.f32 %v12292_v6, %v3147_v36  ;;  %10323 = vmatmul.mubr.bf16.gmra.mrb[228].mxu1 %v12264_v1  ;;  %v14802_v6 = vld [vmem:[#allocation68_spill] sm:$0xff]  ;;  %v14804_v36 = vld [vmem:[#allocation69_spill] sm:$0xff]  ;;  %v12740_v28 = vpop.f32.mrb[209].mxu0 }
 0x3ee   : > { %14793 = vst [vmem:[#allocation109_spill] sm:$0xff] %v12705_v31  ;;  %v12722_v2 = vadd.f32 %v14797_v10, %v3145_v57  ;;  %10326 = vmatprep.mubr.bf16.mxu1 %v14799_v14  ;;  %v2602_v17 = vadd.f32 %v14803_v47, %v14802_v6  ;;  %v14806_v31 = vld [vmem:[#allocation70_spill] sm:$0xff]  ;;  %v14807_v7 = vld [vmem:[#allocation101_spill] sm:$0xff] }
 0x3ef   : > { %14795 = vst [vmem:[#allocation94_spill] sm:$0xff] %v12713_v8  ;;  %v2605_v8 = vadd.f32 %v14805_v30, %v14804_v36  ;;  %v2603_v14 = vadd.f32 %v14807_v7, %v14806_v31  ;;  %v14817_v36 = vld [vmem:[#allocation104_spill] sm:$0xff] }
 0x3f0   : > { %14798 = vst [vmem:[#allocation95_spill] sm:$0xff] %v12722_v2  ;;  %v10124_v0 = vpop.f32.mrb[124].mxu1  ;;  %v6015_v2 = vrot.slane %v5839_v12, 1  ;;  %v12748_v12 = vsel %vm5965_vm2, %v6011_v9, %v6013_v48  ;;  %v11078_v9 = vld [vmem:[%s14478_s3 + $0x238] sm:$0xff]  }
 0x3f1   : > { %v3150_v57 = vadd.f32 %v10124_v0, %v2604_v21  ;;  %v2929_v10 = vpop.f32.mrb[125].mxu1  ;;  %v12745_v0 = vpop.f32.mrb[210].mxu0  ;;  %14810 = vst [vmem:[#allocation66_spill] sm:$0xff] %v12748_v12  ;;  %10668 = vmatprep.subr.bf16.mxu0 %v11078_v9 }
 0x3f2   : > { %v3148_v1 = vadd.f32 %v2929_v10, %v2602_v17  ;;  %v10125_v3 = vpop.f32.mrb[126].mxu1  ;;  %v12757_v31 = vsel %vm5965_vm2, %v6013_v48, %v6015_v2  ;;  %v14813_v17 = vld [vmem:[#allocation123_spill] sm:$0xff]  ;;  %v14819_v10 = vld [vmem:[#allocation105_spill] sm:$0xff]  ;;  %10669 = vmatpush3.bf16.msra.mxu0 %v11078_v9 }
 0x3f3   : > { %v12738_v20 = vadd.f32 %v12322_v39, %v3150_v57  ;;  %v3151_v6 = vadd.f32 %v10125_v3, %v2605_v8  ;;  %v2932_v47 = vpop.f32.mrb[127].mxu1  ;;  %v12754_v39 = vpop.f32.mrb[211].mxu0  ;;  %14812 = vst [vmem:[#allocation116_spill] sm:$0xff] %v12757_v31  ;;  %v5840_v8 = vld [vmem:[#allocation2 + $0xd0] sm:$0xff]  ;;  %10555 = vmatmul.mubr.bf16.gmra.mrb[60].mxu0 %v12748_v12 }
 0x3f4   : > { %v12743_v51 = vadd.f32 %v12329_v56, %v3148_v1  ;;  %v3149_v21 = vadd.f32 %v2932_v47, %v2603_v14  ;;  %v14815_v56 = vld [vmem:[#allocation117_spill] sm:$0xff]  ;;  %v14818_v57 = vld [vmem:[#allocation12_spill] sm:$0xff]  ;;  %10558 = vmatprep.mubr.bf16.mxu0 %v12757_v31  ;;  %v14820_v47 = vld [vmem:[#allocation15_spill] sm:$0xff] }
 0x3f5   : > { %14808 = vst [vmem:[#allocation65_spill] sm:$0xff] %v12738_v20  ;;  %v12751_v7 = vadd.f32 %v12331_v54, %v3151_v6  ;;  %10327 = vmatmul.mubr.bf16.gmra.mrb[232].mxu1 %v12295_v25  ;;  %v5841_v14 = vld [vmem:[#allocation2 + $0xd8] sm:$0xff]  ;;  %v14816_v54 = vld [vmem:[#allocation14_spill] sm:$0xff]  ;;  %v2606_v48 = vadd.f32 %v14819_v10, %v14818_v57  ;;  %v6017_v6 = vrot.slane %v5840_v8, 1  ;;  %v12776_v25 = vpop.f32.mrb[212].mxu0 }
 0x3f6   : > { %14809 = vst [vmem:[#allocation96_spill] sm:$0xff] %v12743_v51  ;;  %v12760_v1 = vadd.f32 %v14813_v17, %v3149_v21  ;;  %10330 = vmatprep.mubr.bf16.mxu1 %v14815_v56  ;;  %v2608_v30 = vadd.f32 %v14817_v36, %v14816_v54  ;;  %v14821_v21 = vld [vmem:[#allocation106_spill] sm:$0xff]  ;;  %v6019_v51 = vrot.slane %v5841_v14, 1  ;;  %v14822_v20 = vld [vmem:[#allocation13_spill] sm:$0xff]  ;;  %v14823_v56 = vld [vmem:[#allocation107_spill] sm:$0xff]  ;;  %v12781_v31 = vpop.f32.mrb[213].mxu0 }
 0x3f7   : > { %14811 = vst [vmem:[#allocation97_spill] sm:$0xff] %v12751_v7  ;;  %v2609_v17 = vadd.f32 %v14821_v21, %v14820_v47  ;;  %v2607_v54 = vadd.f32 %v14823_v56, %v14822_v20  ;;  %v12786_v14 = vpop.f32.mrb[214].mxu0  ;;  %v12789_v9 = vsel %vm5965_vm2, %v6015_v2, %v6017_v6  ;;  %v5843_v56 = vld [vmem:[#allocation2 + $0xe8] sm:$0xff]  ;;  %v14834_v21 = vld [vmem:[#allocation112_spill] sm:$0xff] }
 0x3f8   : > { %14814 = vst [vmem:[#allocation67_spill] sm:$0xff] %v12760_v1  ;;  %v10128_v3 = vpop.f32.mrb[128].mxu1  ;;  %14826 = vst [vmem:[#allocation99_spill] sm:$0xff] %v12789_v9  ;;  %v14832_v2 = vld [vmem:[#allocation111_spill] sm:$0xff] }
 0x3f9   : > { %v3154_v1 = vadd.f32 %v10128_v3, %v2608_v30  ;;  %v2945_v7 = vpop.f32.mrb[129].mxu1 }
 0x3fa   : > { %v3152_v36 = vadd.f32 %v2945_v7, %v2606_v48  ;;  %v10129_v12 = vpop.f32.mrb[130].mxu1  ;;  %v5842_v7 = vld [vmem:[#allocation2 + $0xe0] sm:$0xff] }
 0x3fb   : > { %v12779_v57 = vadd.f32 %v12356_v32, %v3154_v1  ;;  %v3155_v10 = vadd.f32 %v10129_v12, %v2609_v17  ;;  %v2948_v8 = vpop.f32.mrb[131].mxu1  ;;  %v12795_v32 = vpop.f32.mrb[215].mxu0  ;;  %v12798_v12 = vsel %vm5965_vm2, %v6017_v6, %v6019_v51  ;;  %v14830_v1 = vld [vmem:[#allocation71_spill] sm:$0xff]  ;;  %v14831_v48 = vld [vmem:[#allocation18_spill] sm:$0xff]  ;;  %10559 = vmatmul.mubr.bf16.gmra.mrb[64].mxu0 %v12789_v9  ;;  %v6021_v6 = vrot.slane %v5842_v7, 1 }
 0x3fc   : > { %v12784_v47 = vadd.f32 %v12363_v38, %v3152_v36  ;;  %v3153_v30 = vadd.f32 %v2948_v8, %v2607_v54  ;;  %14828 = vst [vmem:[#allocation100_spill] sm:$0xff] %v12798_v12  ;;  %v2612_v3 = vadd.f32 %v14832_v2, %v14831_v48  ;;  %10562 = vmatprep.mubr.bf16.mxu0 %v12798_v12  ;;  %v14835_v36 = vld [vmem:[#allocation19_spill] sm:$0xff]  ;;  %v12814_v2 = vpop.f32.mrb[216].mxu0 }
 0x3fd   : > { %14824 = vst [vmem:[#allocation98_spill] sm:$0xff] %v12779_v57  ;;  %v12792_v20 = vadd.f32 %v12365_v16, %v3155_v10  ;;  %10331 = vmatmul.mubr.bf16.gmra.mrb[236].mxu1 %v12334_v43  ;;  %v14833_v16 = vld [vmem:[#allocation16_spill] sm:$0xff]  ;;  %v14836_v10 = vld [vmem:[#allocation113_spill] sm:$0xff]  ;;  %v11065_v7 = vld [vmem:[%s14478_s3 + $0x148] sm:$0xff]  }
 0x3fe   : > { %14825 = vst [vmem:[#allocation68_spill] sm:$0xff] %v12784_v47  ;;  %v12801_v38 = vadd.f32 %v12372_v62, %v3153_v30  ;;  %10430 = vmatprep.mubr.bf16.mxu1 %v14830_v1  ;;  %v2610_v17 = vadd.f32 %v14834_v21, %v14833_v16  ;;  %v2613_v8 = vadd.f32 %v14836_v10, %v14835_v36  ;;  %v14837_v1 = vld [vmem:[#allocation17_spill] sm:$0xff]  ;;  %v12822_v36 = vpop.f32.mrb[217].mxu0  ;;  %v14844_v10 = vld [vmem:[#allocation72_spill] sm:$0xff] }
 0x3ff   : > { %14827 = vst [vmem:[#allocation69_spill] sm:$0xff] %v12792_v20  ;;  %v14838_v20 = vld [vmem:[#allocation114_spill] sm:$0xff] }
 0x400   : > { %14829 = vst [vmem:[#allocation70_spill] sm:$0xff] %v12801_v38  ;;  %v10132_v54 = vpop.f32.mrb[132].mxu1  ;;  %v6023_v38 = vrot.slane %v5843_v56, 1  ;;  %v2611_v47 = vadd.f32 %v14838_v20, %v14837_v1  ;;  %v12827_v20 = vpop.f32.mrb[218].mxu0  ;;  %v14847_v1 = vld [vmem:[#allocation136_spill] sm:$0xff] }
 0x401   : > { %v3158_v62 = vadd.f32 %v10132_v54, %v2612_v3  ;;  %v2961_v30 = vpop.f32.mrb[133].mxu1  ;;  %v14842_v54 = vld [vmem:[#allocation135_spill] sm:$0xff] }
 0x402   : > { %v3156_v57 = vadd.f32 %v2961_v30, %v2610_v17  ;;  %v10133_v48 = vpop.f32.mrb[134].mxu1  ;;  %v12830_v17 = vsel %vm5965_vm2, %v6019_v51, %v6021_v6  ;;  %v5844_v30 = vld [vmem:[#allocation2 + $0xf0] sm:$0xff]  ;;  %v12846_v51 = vld [vmem:[#allocation2 + $0xf8] sm:$0xff] }
 0x403   : > { %v12817_v9 = vadd.f32 %v12386_v53, %v3158_v62  ;;  %v3159_v16 = vadd.f32 %v10133_v48, %v2613_v8  ;;  %v2964_v21 = vpop.f32.mrb[135].mxu1  ;;  %14841 = vst [vmem:[#allocation14_spill] sm:$0xff] %v12830_v17  ;;  %v12836_v8 = vpop.f32.mrb[219].mxu0  ;;  %v12839_v62 = vsel %vm5965_vm2, %v6021_v6, %v6023_v38  ;;  %v14851_v48 = vld [vmem:[#allocation118_spill] sm:$0xff]  ;;  %10563 = vmatmul.mubr.bf16.gmra.mrb[68].mxu0 %v12830_v17  ;;  %v14852_v6 = vld [vmem:[#allocation20_spill] sm:$0xff] }
 0x404   : > { %v12825_v56 = vadd.f32 %v12393_v24, %v3156_v57  ;;  %v3157_v3 = vadd.f32 %v2964_v21, %v2611_v47  ;;  %14845 = vst [vmem:[#allocation12_spill] sm:$0xff] %v12836_v8  ;;  %14846 = vst [vmem:[#allocation105_spill] sm:$0xff] %v12839_v62  ;;  %v14849_v57 = vld [vmem:[#allocation73_spill] sm:$0xff]  ;;  %v14850_v47 = vld [vmem:[#allocation22_spill] sm:$0xff]  ;;  %10566 = vmatprep.mubr.bf16.mxu0 %v12839_v62  ;;  %v12862_v17 = vpop.f32.mrb[220].mxu0 }
 0x405   : > { %14839 = vst [vmem:[#allocation101_spill] sm:$0xff] %v12817_v9  ;;  %v12833_v53 = vadd.f32 %v14842_v54, %v3159_v16  ;;  %10431 = vmatmul.mubr.bf16.vlgmr.msra.gmra.mrb[240].mxu1 %v14844_v10  ;;  %v2616_v16 = vadd.f32 %v14851_v48, %v14850_v47  ;;  %v11067_v21 = vld [vmem:[%s14478_s3 + $0x150] sm:$0xff]   ;;  %v14853_v54 = vld [vmem:[#allocation119_spill] sm:$0xff]  ;;  %v6027_v47 = vrot.slane %v12846_v51, 1  ;;  %v14856_v48 = vld [vmem:[#allocation21_spill] sm:$0xff] }
 0x406   : > { %14840 = vst [vmem:[#allocation123_spill] sm:$0xff] %v12825_v56  ;;  %v12842_v24 = vadd.f32 %v14847_v1, %v3157_v3  ;;  %10575 = vmatpush3.bf16.msra.mxu1 %v12411_v35  ;;  %10434 = vmatprep.mubr.bf16.mxu1 %v14849_v57  ;;  %v2614_v3 = vadd.f32 %v14853_v54, %v14852_v6  ;;  %v6025_v35 = vrot.slane %v5844_v30, 1  ;;  %v14854_v1 = vld [vmem:[#allocation23_spill] sm:$0xff]  ;;  %v14855_v57 = vld [vmem:[#allocation120_spill] sm:$0xff]  ;;  %v14857_v9 = vld [vmem:[#allocation121_spill] sm:$0xff] }
 0x407   : > { %14843 = vst [vmem:[#allocation104_spill] sm:$0xff] %v12833_v53  ;;  %10576 = vmatprep.subr.bf16.mxu1 %v11065_v7  ;;  %v2615_v12 = vadd.f32 %v14857_v9, %v14856_v48 }
 0x408   : > { %14848 = vst [vmem:[#allocation15_spill] sm:$0xff] %v12842_v24  ;;  %v10136_v10 = vpop.f32.mrb[136].mxu1  ;;  %v2617_v24 = vadd.f32 %v14855_v57, %v14854_v1  ;;  %v12889_v1 = vld [vmem:[#allocation2 + $0x100] sm:$0xff]  ;;  %v14870_v57 = vld [vmem:[#allocation125_spill] sm:$0xff] }
 0x409   : > { %v3162_v53 = vadd.f32 %v10136_v10, %v2616_v16  ;;  %v2977_v56 = vpop.f32.mrb[137].mxu1  ;;  %v11069_v16 = vld [vmem:[%s14478_s3 + $0x158] sm:$0xff]   ;;  %v12870_v10 = vpop.f32.mrb[221].mxu0  ;;  %14865 = vst [vmem:[#allocation111_spill] sm:$0xff] %v12889_v1 }
 0x40a   : > { %v3160_v8 = vadd.f32 %v2977_v56, %v2614_v3  ;;  %v10137_v43 = vpop.f32.mrb[138].mxu1  ;;  %10577 = vmatpush3.bf16.msra.mxu1 %v11065_v7  ;;  %v12875_v56 = vpop.f32.mrb[222].mxu0  ;;  %v12878_v7 = vsel %vm5965_vm2, %v6023_v38, %v6025_v35  ;;  %v12887_v3 = vsel %vm5965_vm2, %v6025_v35, %v6027_v47  ;;  %v14869_v38 = vld [vmem:[#allocation26_spill] sm:$0xff]  ;;  %v14871_v35 = vld [vmem:[#allocation24_spill] sm:$0xff] }
 0x40b   : > { %v12865_v6 = vadd.f32 %v12421_v61, %v3162_v53  ;;  %v3163_v54 = vadd.f32 %v10137_v43, %v2617_v24  ;;  %v2980_v30 = vpop.f32.mrb[139].mxu1  ;;  %10578 = vmatprep.subr.bf16.mxu1 %v11067_v21  ;;  %14860 = vst [vmem:[#allocation107_spill] sm:$0xff] %v12878_v7  ;;  %v14861_v61 = vld [vmem:[#allocation142_spill] sm:$0xff]  ;;  %v12884_v24 = vpop.f32.mrb[223].mxu0  ;;  %14864 = vst [vmem:[#allocation18_spill] sm:$0xff] %v12887_v3  ;;  %v2620_v48 = vadd.f32 %v14870_v57, %v14869_v38  ;;  %v14875_v57 = vld [vmem:[#allocation25_spill] sm:$0xff] }
 0x40c   : > { %v12873_v51 = vadd.f32 %v12426_v52, %v3160_v8  ;;  %v3161_v9 = vadd.f32 %v2980_v30, %v2615_v12  ;;  %v14863_v43 = vld [vmem:[#allocation74_spill] sm:$0xff]  ;;  %v14866_v52 = vld [vmem:[#allocation144_spill] sm:$0xff]  ;;  %v14868_v12 = vld [vmem:[#allocation75_spill] sm:$0xff]  ;;  %10567 = vmatmul.mubr.bf16.gmra.mrb[72].mxu0 %v12878_v7  ;;  %v12909_v7 = vpop.f32.mrb[224].mxu0 }
 0x40d   : > { %14858 = vst [vmem:[#allocation106_spill] sm:$0xff] %v12865_v6  ;;  %v12881_v53 = vadd.f32 %v14861_v61, %v3163_v54  ;;  %10435 = vmatmul.mubr.bf16.gmra.mrb[244].mxu1 %v14863_v43  ;;  %v11071_v54 = vld [vmem:[%s14478_s3 + $0x160] sm:$0xff]   ;;  %v14872_v30 = vld [vmem:[#allocation127_spill] sm:$0xff]  ;;  %10570 = vmatprep.mubr.bf16.mxu0 %v12887_v3 }
 0x40e   : > { %14859 = vst [vmem:[#allocation13_spill] sm:$0xff] %v12873_v51  ;;  %v12892_v8 = vadd.f32 %v14866_v52, %v3161_v9  ;;  %10438 = vmatprep.mubr.bf16.mxu1 %v14868_v12  ;;  %10579 = vmatpush3.bf16.msra.mxu1 %v11067_v21  ;;  %v2618_v61 = vadd.f32 %v14872_v30, %v14871_v35  ;;  %v14572_v9 = vrot.slane %v12889_v1, 1  ;;  %v14873_v52 = vld [vmem:[#allocation27_spill] sm:$0xff]  ;;  %v14874_v21 = vld [vmem:[#allocation128_spill] sm:$0xff] }
 0x40f   : > { %14862 = vst [vmem:[#allocation71_spill] sm:$0xff] %v12881_v53  ;;  %10580 = vmatprep.subr.bf16.mxu1 %v11069_v16  ;;  %v2621_v12 = vadd.f32 %v14874_v21, %v14873_v52  ;;  %v14876_v53 = vld [vmem:[#allocation129_spill] sm:$0xff]  ;;  %v11073_v52 = vld [vmem:[%s14478_s3 + $0x168] sm:$0xff]  }
 0x410   : > { %14867 = vst [vmem:[#allocation16_spill] sm:$0xff] %v12892_v8  ;;  %v10140_v43 = vpop.f32.mrb[140].mxu1  ;;  %v2619_v51 = vadd.f32 %v14876_v53, %v14875_v57  ;;  %v14882_v21 = vld [vmem:[#allocation151_spill] sm:$0xff] }
 0x411   : > { %v3166_v8 = vadd.f32 %v10140_v43, %v2620_v48  ;;  %v2993_v38 = vpop.f32.mrb[141].mxu1  ;;  %v12917_v48 = vpop.f32.mrb[225].mxu0 }
 0x412   : > { %v3164_v6 = vadd.f32 %v2993_v38, %v2618_v61  ;;  %v10141_v62 = vpop.f32.mrb[142].mxu1  ;;  %10581 = vmatpush3.bf16.msra.mxu1 %v11069_v16  ;;  %v12922_v61 = vpop.f32.mrb[226].mxu0  ;;  %v14881_v16 = vld [vmem:[#allocation76_spill] sm:$0xff] }
 0x413   : > { %v12912_v35 = vadd.f32 %v12451_v50, %v3166_v8  ;;  %v3167_v30 = vadd.f32 %v10141_v62, %v2621_v12  ;;  %v2996_v3 = vpop.f32.mrb[143].mxu1  ;;  %10582 = vmatprep.subr.bf16.mxu1 %v11071_v54  ;;  %v12927_v50 = vsel %vm5965_vm2, %v6027_v47, %v14572_v9  ;;  %v12933_v8 = vpop.f32.mrb[227].mxu0  ;;  %v11075_v47 = vld [vmem:[%s14478_s3 + $0x170] sm:$0xff]  }
 0x414   : > { %v12920_v43 = vadd.f32 %v12455_v49, %v3164_v6  ;;  %v3165_v53 = vadd.f32 %v2996_v3, %v2619_v51  ;;  %14879 = vst [vmem:[#allocation113_spill] sm:$0xff] %v12927_v50  ;;  %v14884_v49 = vld [vmem:[#allocation77_spill] sm:$0xff]  ;;  %v14885_v6 = vld [vmem:[#allocation30_spill] sm:$0xff]  ;;  %v14886_v51 = vld [vmem:[#allocation131_spill] sm:$0xff]  ;;  %10571 = vmatmul.mubr.bf16.gmra.mrb[76].mxu0 %v12927_v50 }
 0x415   : > { %14877 = vst [vmem:[#allocation112_spill] sm:$0xff] %v12912_v35  ;;  %v12930_v62 = vadd.f32 %v12457_v60, %v3167_v30  ;;  %10439 = vmatmul.mubr.bf16.gmra.mrb[248].mxu1 %v14881_v16  ;;  %v2624_v3 = vadd.f32 %v14886_v51, %v14885_v6  ;;  %v14887_v60 = vld [vmem:[#allocation28_spill] sm:$0xff]  ;;  %v14889_v16 = vld [vmem:[#allocation145_spill] sm:$0xff]  ;;  %v14893_v6 = vld [vmem:[#allocation134_spill] sm:$0xff]  ;;  %v12952_v35 = vpop.f32.mrb[228].mxu0 }
 0x416   : > { %14878 = vst [vmem:[#allocation19_spill] sm:$0xff] %v12920_v43  ;;  %v12936_v12 = vadd.f32 %v14882_v21, %v3165_v53  ;;  %10442 = vmatprep.mubr.bf16.mxu1 %v14884_v49  ;;  %10583 = vmatpush3.bf16.msra.mxu1 %v11071_v54  ;;  %v14888_v38 = vld [vmem:[#allocation132_spill] sm:$0xff]  ;;  %v14890_v53 = vld [vmem:[#allocation31_spill] sm:$0xff]  ;;  %v14891_v21 = vld [vmem:[#allocation133_spill] sm:$0xff] }
 0x417   : > { %14880 = vst [vmem:[#allocation17_spill] sm:$0xff] %v12930_v62  ;;  %10584 = vmatprep.subr.bf16.mxu1 %v11073_v52  ;;  %v2622_v57 = vadd.f32 %v14888_v38, %v14887_v60  ;;  %10670 = vmatprep.mubr.bf16.mxu0 %v14889_v16  ;;  %v2625_v49 = vadd.f32 %v14891_v21, %v14890_v53  ;;  %v11077_v53 = vld [vmem:[%s14478_s3 + $0x178] sm:$0xff]   ;;  %v14906_v16 = vld [vmem:[#allocation138_spill] sm:$0xff] }
 0x418   : > { %14883 = vst [vmem:[#allocation114_spill] sm:$0xff] %v12936_v12  ;;  %v10144_v30 = vpop.f32.mrb[144].mxu1  ;;  %v14892_v12 = vld [vmem:[#allocation29_spill] sm:$0xff] }
 0x419   : > { %v3170_v54 = vadd.f32 %v10144_v30, %v2624_v3  ;;  %v3009_v9 = vpop.f32.mrb[145].mxu1  ;;  %v2623_v51 = vadd.f32 %v14893_v6, %v14892_v12  ;;  %v12960_v3 = vpop.f32.mrb[229].mxu0  ;;  %v14895_v30 = vld [vmem:[#allocation157_spill] sm:$0xff]  ;;  %v14904_v6 = vld [vmem:[#allocation79_spill] sm:$0xff] }
 0x41a   : > { %v3168_v62 = vadd.f32 %v3009_v9, %v2622_v57  ;;  %v10145_v43 = vpop.f32.mrb[146].mxu1  ;;  %10585 = vmatpush3.bf16.msra.mxu1 %v11073_v52  ;;  %v12965_v12 = vpop.f32.mrb[230].mxu0  ;;  %v14898_v52 = vld [vmem:[#allocation158_spill] sm:$0xff] }
 0x41b   : > { %v12955_v50 = vadd.f32 %v12477_v23, %v3170_v54  ;;  %v3171_v60 = vadd.f32 %v10145_v43, %v2625_v49  ;;  %v3012_v38 = vpop.f32.mrb[147].mxu1  ;;  %10586 = vmatprep.subr.bf16.mxu1 %v11075_v47  ;;  %14897 = vst [vmem:[#allocation136_spill] sm:$0xff] %v12965_v12  ;;  %v14900_v23 = vld [vmem:[#allocation78_spill] sm:$0xff]  ;;  %v12971_v43 = vpop.f32.mrb[231].mxu0  ;;  %v14902_v49 = vld [vmem:[#allocation160_spill] sm:$0xff] }
 0x41c   : > { %v12963_v21 = vadd.f32 %v14895_v30, %v3168_v62  ;;  %v3169_v9 = vadd.f32 %v3012_v38, %v2623_v51  ;;  %14901 = vst [vmem:[#allocation22_spill] sm:$0xff] %v12971_v43  ;;  %v14907_v51 = vld [vmem:[#allocation150_spill] sm:$0xff]  ;;  %v14908_v38 = vld [vmem:[#allocation32_spill] sm:$0xff]  ;;  %v14909_v30 = vld [vmem:[#allocation139_spill] sm:$0xff] }
 0x41d   : > { %14894 = vst [vmem:[#allocation135_spill] sm:$0xff] %v12955_v50  ;;  %v12968_v57 = vadd.f32 %v14898_v52, %v3171_v60  ;;  %10443 = vmatmul.mubr.bf16.gmra.mrb[252].mxu1 %v14900_v23  ;;  %v14905_v50 = vld [vmem:[#allocation34_spill] sm:$0xff]  ;;  %10671 = vmatmul.mubr.bf16.vlgmr.msra.gmra.mrb[80].mxu0 %v14907_v51  ;;  %v2626_v60 = vadd.f32 %v14909_v30, %v14908_v38  ;;  %v14911_v23 = vld [vmem:[#allocation35_spill] sm:$0xff] }
 0x41e   : > { %14896 = vst [vmem:[#allocation72_spill] sm:$0xff] %v12963_v21  ;;  %v12974_v54 = vadd.f32 %v14902_v49, %v3169_v9  ;;  %10446 = vmatprep.mubr.bf16.mxu1 %v14904_v6  ;;  %10587 = vmatpush3.bf16.msra.mxu1 %v11075_v47  ;;  %v2628_v62 = vadd.f32 %v14906_v16, %v14905_v50  ;;  %v14912_v21 = vld [vmem:[#allocation140_spill] sm:$0xff]  ;;  %v14914_v6 = vld [vmem:[#allocation141_spill] sm:$0xff]  ;;  %v12987_v50 = vpop.f32.mrb[232].mxu0 }
 0x41f   : > { %14899 = vst [vmem:[#allocation73_spill] sm:$0xff] %v12968_v57  ;;  %10588 = vmatprep.subr.bf16.mxu1 %v11077_v53  ;;  %v14910_v57 = vld [vmem:[#allocation152_spill] sm:$0xff]  ;;  %v2629_v43 = vadd.f32 %v14912_v21, %v14911_v23  ;;  %v12992_v51 = vpop.f32.mrb[233].mxu0  ;;  %v14924_v23 = vld [vmem:[#allocation146_spill] sm:$0xff] }
 0x420   : > { %14903 = vst [vmem:[#allocation118_spill] sm:$0xff] %v12974_v54  ;;  %v10148_v52 = vpop.f32.mrb[148].mxu1  ;;  %10674 = vmatprep.mubr.bf16.mxu0 %v14910_v57  ;;  %v14913_v54 = vld [vmem:[#allocation33_spill] sm:$0xff] }
 0x421   : > { %v3174_v9 = vadd.f32 %v10148_v52, %v2628_v62  ;;  %v3025_v49 = vpop.f32.mrb[149].mxu1  ;;  %v2627_v47 = vadd.f32 %v14914_v6, %v14913_v54  ;;  %v12997_v62 = vpop.f32.mrb[234].mxu0  ;;  %v14920_v52 = vld [vmem:[#allocation167_spill] sm:$0xff] }
 0x422   : > { %v3172_v1 = vadd.f32 %v3025_v49, %v2626_v60  ;;  %v10149_v12 = vpop.f32.mrb[150].mxu1  ;;  %10589 = vmatpush3.bf16.msra.mxu1 %v11077_v53  ;;  %v14918_v60 = vld [vmem:[#allocation80_spill] sm:$0xff]  ;;  %v13003_v53 = vpop.f32.mrb[235].mxu0  ;;  %v14927_v49 = vld [vmem:[#allocation147_spill] sm:$0xff] }
 0x423   : > { %v12990_v16 = vadd.f32 %v12506_v37, %v3174_v9  ;;  %v3175_v38 = vadd.f32 %v10149_v12, %v2629_v43  ;;  %v3028_v30 = vpop.f32.mrb[151].mxu1  ;;  %14919 = vst [vmem:[#allocation120_spill] sm:$0xff] %v13003_v53  ;;  %v14922_v12 = vld [vmem:[#allocation81_spill] sm:$0xff]  ;;  %v14923_v43 = vld [vmem:[#allocation38_spill] sm:$0xff]  ;;  %v13019_v53 = vpop.f32.mrb[236].mxu0 }
 0x424   : > { %v12995_v57 = vadd.f32 %v12510_v26, %v3172_v1  ;;  %v3173_v21 = vadd.f32 %v3028_v30, %v2627_v47  ;;  %v2632_v9 = vadd.f32 %v14924_v23, %v14923_v43  ;;  %v14925_v26 = vld [vmem:[#allocation159_spill] sm:$0xff]  ;;  %v14926_v1 = vld [vmem:[#allocation36_spill] sm:$0xff] }
 0x425   : > { %14915 = vst [vmem:[#allocation20_spill] sm:$0xff] %v12990_v16  ;;  %v13000_v54 = vadd.f32 %v12512_v44, %v3175_v38  ;;  %10447 = vmatmul.mubr.bf16.gmra.mrb[0].mxu1 %v14918_v60  ;;  %10675 = vmatmul.mubr.bf16.gmra.mrb[84].mxu0 %v14925_v26  ;;  %v2630_v6 = vadd.f32 %v14927_v49, %v14926_v1  ;;  %v14928_v44 = vld [vmem:[#allocation161_spill] sm:$0xff]  ;;  %v14929_v38 = vld [vmem:[#allocation39_spill] sm:$0xff]  ;;  %v14930_v30 = vld [vmem:[#allocation148_spill] sm:$0xff]  ;;  %v13024_v49 = vpop.f32.mrb[237].mxu0 }
 0x426   : > { %14916 = vst [vmem:[#allocation119_spill] sm:$0xff] %v12995_v57  ;;  %v13006_v37 = vadd.f32 %v14920_v52, %v3173_v21  ;;  %10450 = vmatprep.mubr.bf16.mxu1 %v14922_v12  ;;  %10678 = vmatprep.mubr.bf16.mxu0 %v14928_v44  ;;  %v2633_v60 = vadd.f32 %v14930_v30, %v14929_v38  ;;  %v14931_v21 = vld [vmem:[#allocation37_spill] sm:$0xff]  ;;  %14934 = vst [vmem:[#allocation142_spill] sm:$0xff] %v13024_v49 }
 0x427   : > { %14917 = vst [vmem:[#allocation23_spill] sm:$0xff] %v13000_v54  ;;  %v14932_v52 = vld [vmem:[#allocation149_spill] sm:$0xff] }
 0x428   : > { %14921 = vst [vmem:[#allocation21_spill] sm:$0xff] %v13006_v37  ;;  %v10152_v47 = vpop.f32.mrb[152].mxu1  ;;  %v2631_v37 = vadd.f32 %v14932_v52, %v14931_v21  ;;  %v14935_v44 = vld [vmem:[#allocation173_spill] sm:$0xff]  ;;  %v14942_v21 = vld [vmem:[#allocation176_spill] sm:$0xff] }
 0x429   : > { %v3178_v54 = vadd.f32 %v10152_v47, %v2632_v9  ;;  %v3041_v57 = vpop.f32.mrb[153].mxu1  ;;  %v13029_v9 = vpop.f32.mrb[238].mxu0  ;;  %v14938_v47 = vld [vmem:[#allocation174_spill] sm:$0xff] }
 0x42a   : > { %v3176_v12 = vadd.f32 %v3041_v57, %v2630_v6  ;;  %v10153_v16 = vpop.f32.mrb[154].mxu1  ;;  %14937 = vst [vmem:[#allocation144_spill] sm:$0xff] %v13029_v9  ;;  %v14940_v57 = vld [vmem:[#allocation82_spill] sm:$0xff]  ;;  %v13035_v6 = vpop.f32.mrb[239].mxu0 }
 0x42b   : > { %v13022_v43 = vadd.f32 %v12532_v59, %v3178_v54  ;;  %v3179_v23 = vadd.f32 %v10153_v16, %v2633_v60  ;;  %v3044_v1 = vpop.f32.mrb[155].mxu1  ;;  %14941 = vst [vmem:[#allocation26_spill] sm:$0xff] %v13035_v6  ;;  %v14944_v16 = vld [vmem:[#allocation83_spill] sm:$0xff]  ;;  %v14945_v54 = vld [vmem:[#allocation42_spill] sm:$0xff]  ;;  %v14946_v60 = vld [vmem:[#allocation153_spill] sm:$0xff]  ;;  %v13051_v49 = vpop.f32.mrb[240].mxu0 }
 0x42c   : > { %v13027_v26 = vadd.f32 %v14935_v44, %v3176_v12  ;;  %v3177_v38 = vadd.f32 %v3044_v1, %v2631_v37  ;;  %v2636_v52 = vadd.f32 %v14946_v60, %v14945_v54  ;;  %v14947_v44 = vld [vmem:[#allocation166_spill] sm:$0xff]  ;;  %v14948_v37 = vld [vmem:[#allocation40_spill] sm:$0xff] }
 0x42d   : > { %14933 = vst [vmem:[#allocation121_spill] sm:$0xff] %v13022_v43  ;;  %v13032_v30 = vadd.f32 %v14938_v47, %v3179_v23  ;;  %10451 = vmatmul.mubr.bf16.gmra.mrb[4].mxu1 %v14940_v57  ;;  %10679 = vmatmul.mubr.bf16.gmra.mrb[88].mxu0 %v14947_v44  ;;  %v14949_v12 = vld [vmem:[#allocation154_spill] sm:$0xff]  ;;  %v14950_v23 = vld [vmem:[#allocation168_spill] sm:$0xff]  ;;  %v14951_v47 = vld [vmem:[#allocation43_spill] sm:$0xff] }
 0x42e   : > { %14936 = vst [vmem:[#allocation74_spill] sm:$0xff] %v13027_v26  ;;  %v13038_v59 = vadd.f32 %v14942_v21, %v3177_v38  ;;  %10454 = vmatprep.mubr.bf16.mxu1 %v14944_v16  ;;  %v2634_v1 = vadd.f32 %v14949_v12, %v14948_v37  ;;  %10682 = vmatprep.mubr.bf16.mxu0 %v14950_v23  ;;  %v14952_v57 = vld [vmem:[#allocation155_spill] sm:$0xff]  ;;  %v14953_v38 = vld [vmem:[#allocation41_spill] sm:$0xff]  ;;  %v14954_v21 = vld [vmem:[#allocation156_spill] sm:$0xff]  ;;  %v13056_v12 = vpop.f32.mrb[241].mxu0 }
 0x42f   : > { %14939 = vst [vmem:[#allocation75_spill] sm:$0xff] %v13032_v30  ;;  %v2637_v30 = vadd.f32 %v14952_v57, %v14951_v47  ;;  %v14960_v57 = vld [vmem:[#allocation183_spill] sm:$0xff] }
 0x430   : > { %14943 = vst [vmem:[#allocation125_spill] sm:$0xff] %v13038_v59  ;;  %v10156_v26 = vpop.f32.mrb[156].mxu1  ;;  %v2635_v59 = vadd.f32 %v14954_v21, %v14953_v38  ;;  %v14967_v21 = vld [vmem:[#allocation163_spill] sm:$0xff] }
 0x431   : > { %v3182_v43 = vadd.f32 %v10156_v26, %v2636_v52  ;;  %v3057_v6 = vpop.f32.mrb[157].mxu1  ;;  %v13061_v26 = vpop.f32.mrb[242].mxu0 }
 0x432   : > { %v3180_v16 = vadd.f32 %v3057_v6, %v2634_v1  ;;  %v10157_v9 = vpop.f32.mrb[158].mxu1  ;;  %v14958_v6 = vld [vmem:[#allocation84_spill] sm:$0xff]  ;;  %v13067_v1 = vpop.f32.mrb[243].mxu0 }
 0x433   : > { %v13054_v54 = vadd.f32 %v12561_v11, %v3182_v43  ;;  %v3183_v60 = vadd.f32 %v10157_v9, %v2637_v30  ;;  %v3060_v37 = vpop.f32.mrb[159].mxu1  ;;  %14959 = vst [vmem:[#allocation128_spill] sm:$0xff] %v13067_v1  ;;  %v14962_v43 = vld [vmem:[#allocation85_spill] sm:$0xff]  ;;  %v14963_v9 = vld [vmem:[#allocation46_spill] sm:$0xff]  ;;  %v13083_v44 = vpop.f32.mrb[244].mxu0 }
 0x434   : > { %v13059_v23 = vadd.f32 %v12565_v58, %v3180_v16  ;;  %v3181_v47 = vadd.f32 %v3060_v37, %v2635_v59  ;;  %v14964_v30 = vld [vmem:[#allocation162_spill] sm:$0xff]  ;;  %v14965_v58 = vld [vmem:[#allocation175_spill] sm:$0xff]  ;;  %v14966_v59 = vld [vmem:[#allocation44_spill] sm:$0xff] }
 0x435   : > { %14955 = vst [vmem:[#allocation24_spill] sm:$0xff] %v13054_v54  ;;  %v13064_v52 = vadd.f32 %v12567_v40, %v3183_v60  ;;  %10455 = vmatmul.mubr.bf16.gmra.mrb[8].mxu1 %v14958_v6  ;;  %v2640_v38 = vadd.f32 %v14964_v30, %v14963_v9  ;;  %10683 = vmatmul.mubr.bf16.gmra.mrb[92].mxu0 %v14965_v58  ;;  %v14968_v40 = vld [vmem:[#allocation177_spill] sm:$0xff]  ;;  %v14969_v60 = vld [vmem:[#allocation47_spill] sm:$0xff]  ;;  %v14970_v6 = vld [vmem:[#allocation164_spill] sm:$0xff] }
 0x436   : > { %14956 = vst [vmem:[#allocation127_spill] sm:$0xff] %v13059_v23  ;;  %v13070_v11 = vadd.f32 %v14960_v57, %v3181_v47  ;;  %10458 = vmatprep.mubr.bf16.mxu1 %v14962_v43  ;;  %v2638_v16 = vadd.f32 %v14967_v21, %v14966_v59  ;;  %10686 = vmatprep.mubr.bf16.mxu0 %v14968_v40  ;;  %v14971_v47 = vld [vmem:[#allocation45_spill] sm:$0xff]  ;;  %v13088_v21 = vpop.f32.mrb[245].mxu0 }
 0x437   : > { %14957 = vst [vmem:[#allocation27_spill] sm:$0xff] %v13064_v52  ;;  %v2641_v52 = vadd.f32 %v14970_v6, %v14969_v60  ;;  %v14972_v57 = vld [vmem:[#allocation165_spill] sm:$0xff]  ;;  %14974 = vst [vmem:[#allocation76_spill] sm:$0xff] %v13088_v21 }
 0x438   : > { %14961 = vst [vmem:[#allocation25_spill] sm:$0xff] %v13070_v11  ;;  %v10160_v37 = vpop.f32.mrb[160].mxu1  ;;  %v2639_v11 = vadd.f32 %v14972_v57, %v14971_v47  ;;  %v14975_v40 = vld [vmem:[#allocation189_spill] sm:$0xff]  ;;  %v14982_v47 = vld [vmem:[#allocation192_spill] sm:$0xff] }
 0x439   : > { %v3186_v23 = vadd.f32 %v10160_v37, %v2640_v38  ;;  %v3073_v54 = vpop.f32.mrb[161].mxu1  ;;  %v13093_v38 = vpop.f32.mrb[246].mxu0  ;;  %v14978_v37 = vld [vmem:[#allocation190_spill] sm:$0xff] }
 0x43a   : > { %v3184_v43 = vadd.f32 %v3073_v54, %v2638_v16  ;;  %v10161_v1 = vpop.f32.mrb[162].mxu1  ;;  %14977 = vst [vmem:[#allocation77_spill] sm:$0xff] %v13093_v38  ;;  %v14980_v54 = vld [vmem:[#allocation86_spill] sm:$0xff]  ;;  %v13099_v16 = vpop.f32.mrb[247].mxu0 }
 0x43b   : > { %v13086_v9 = vadd.f32 %v12587_v13, %v3186_v23  ;;  %v3187_v30 = vadd.f32 %v10161_v1, %v2641_v52  ;;  %v3076_v59 = vpop.f32.mrb[163].mxu1  ;;  %14981 = vst [vmem:[#allocation131_spill] sm:$0xff] %v13099_v16  ;;  %v14984_v23 = vld [vmem:[#allocation87_spill] sm:$0xff]  ;;  %v14985_v52 = vld [vmem:[#allocation50_spill] sm:$0xff]  ;;  %v14986_v1 = vld [vmem:[#allocation169_spill] sm:$0xff]  ;;  %v13115_v21 = vpop.f32.mrb[248].mxu0 }
 0x43c   : > { %v13091_v58 = vadd.f32 %v14975_v40, %v3184_v43  ;;  %v3185_v60 = vadd.f32 %v3076_v59, %v2639_v11  ;;  %v2644_v57 = vadd.f32 %v14986_v1, %v14985_v52  ;;  %v14987_v40 = vld [vmem:[#allocation182_spill] sm:$0xff]  ;;  %v14988_v11 = vld [vmem:[#allocation48_spill] sm:$0xff] }
 0x43d   : > { %14973 = vst [vmem:[#allocation129_spill] sm:$0xff] %v13086_v9  ;;  %v13096_v6 = vadd.f32 %v14978_v37, %v3187_v30  ;;  %10459 = vmatmul.mubr.bf16.gmra.mrb[12].mxu1 %v14980_v54  ;;  %10687 = vmatmul.mubr.bf16.gmra.mrb[96].mxu0 %v14987_v40  ;;  %v14989_v43 = vld [vmem:[#allocation170_spill] sm:$0xff]  ;;  %v14990_v30 = vld [vmem:[#allocation184_spill] sm:$0xff]  ;;  %v14991_v37 = vld [vmem:[#allocation51_spill] sm:$0xff] }
 0x43e   : > { %14976 = vst [vmem:[#allocation151_spill] sm:$0xff] %v13091_v58  ;;  %v13102_v13 = vadd.f32 %v14982_v47, %v3185_v60  ;;  %10462 = vmatprep.mubr.bf16.mxu1 %v14984_v23  ;;  %v2642_v59 = vadd.f32 %v14989_v43, %v14988_v11  ;;  %10690 = vmatprep.mubr.bf16.mxu0 %v14990_v30  ;;  %v14992_v54 = vld [vmem:[#allocation171_spill] sm:$0xff]  ;;  %v14993_v60 = vld [vmem:[#allocation49_spill] sm:$0xff]  ;;  %v14994_v47 = vld [vmem:[#allocation172_spill] sm:$0xff]  ;;  %v13120_v43 = vpop.f32.mrb[249].mxu0 }
 0x43f   : > { %14979 = vst [vmem:[#allocation30_spill] sm:$0xff] %v13096_v6  ;;  %v2645_v6 = vadd.f32 %v14992_v54, %v14991_v37 }
 0x440   : > { %14983 = vst [vmem:[#allocation28_spill] sm:$0xff] %v13102_v13  ;;  %v10164_v58 = vpop.f32.mrb[164].mxu1  ;;  %v2643_v13 = vadd.f32 %v14994_v47, %v14993_v60  ;;  %v15006_v60 = vld [vmem:[#allocation179_spill] sm:$0xff] }
 0x441   : > { %v3190_v9 = vadd.f32 %v10164_v58, %v2644_v57  ;;  %v3089_v16 = vpop.f32.mrb[165].mxu1  ;;  %v13125_v58 = vpop.f32.mrb[250].mxu0 }
 0x442   : > { %v3188_v23 = vadd.f32 %v3089_v16, %v2642_v59  ;;  %v10165_v38 = vpop.f32.mrb[166].mxu1  ;;  %v14998_v16 = vld [vmem:[#allocation92_spill] sm:$0xff]  ;;  %v13131_v59 = vpop.f32.mrb[251].mxu0 }
 0x443   : > { %v13118_v52 = vadd.f32 %v12618_v29, %v3190_v9  ;;  %v3191_v1 = vadd.f32 %v10165_v38, %v2645_v6  ;;  %v3092_v11 = vpop.f32.mrb[167].mxu1  ;;  %14999 = vst [vmem:[#allocation29_spill] sm:$0xff] %v13131_v59  ;;  %v15001_v9 = vld [vmem:[#allocation93_spill] sm:$0xff]  ;;  %v15002_v38 = vld [vmem:[#allocation54_spill] sm:$0xff]  ;;  %v13147_v59 = vpop.f32.mrb[252].mxu0 }
 0x444   : > { %v13123_v30 = vadd.f32 %v12623_v46, %v3188_v23  ;;  %v3189_v37 = vadd.f32 %v3092_v11, %v2643_v13  ;;  %v15003_v6 = vld [vmem:[#allocation178_spill] sm:$0xff]  ;;  %v15004_v46 = vld [vmem:[#allocation191_spill] sm:$0xff]  ;;  %v15005_v13 = vld [vmem:[#allocation52_spill] sm:$0xff] }
 0x445   : > { %14995 = vst [vmem:[#allocation132_spill] sm:$0xff] %v13118_v52  ;;  %v13128_v57 = vadd.f32 %v12628_v18, %v3191_v1  ;;  %10463 = vmatmul.mubr.bf16.gmra.mrb[16].mxu1 %v14998_v16  ;;  %v2648_v54 = vadd.f32 %v15003_v6, %v15002_v38  ;;  %10691 = vmatmul.mubr.bf16.gmra.mrb[100].mxu0 %v15004_v46  ;;  %v15007_v18 = vld [vmem:[#allocation193_spill] sm:$0xff]  ;;  %v15008_v1 = vld [vmem:[#allocation55_spill] sm:$0xff]  ;;  %v15009_v11 = vld [vmem:[#allocation180_spill] sm:$0xff] }
 0x446   : > { %14996 = vst [vmem:[#allocation31_spill] sm:$0xff] %v13123_v30  ;;  %v13134_v29 = vadd.f32 %v12637_v19, %v3189_v37  ;;  %10466 = vmatprep.mubr.bf16.mxu1 %v15001_v9  ;;  %v2646_v47 = vadd.f32 %v15006_v60, %v15005_v13  ;;  %10694 = vmatprep.mubr.bf16.mxu0 %v15007_v18  ;;  %v15010_v19 = vld [vmem:[#allocation53_spill] sm:$0xff]  ;;  %v13152_v60 = vpop.f32.mrb[253].mxu0 }
 0x447   : > { %14997 = vst [vmem:[#allocation133_spill] sm:$0xff] %v13128_v57  ;;  %v2649_v16 = vadd.f32 %v15009_v11, %v15008_v1  ;;  %v15011_v37 = vld [vmem:[#allocation181_spill] sm:$0xff] }
 0x448   : > { %15000 = vst [vmem:[#allocation134_spill] sm:$0xff] %v13134_v29  ;;  %v10168_v23 = vpop.f32.mrb[168].mxu1  ;;  %v2647_v29 = vadd.f32 %v15011_v37, %v15010_v19  ;;  %v15020_v19 = vld [vmem:[#allocation59_spill] sm:$0xff] }
 0x449   : > { %v3194_v57 = vadd.f32 %v10168_v23, %v2648_v54  ;;  %v3105_v30 = vpop.f32.mrb[169].mxu1  ;;  %v13157_v54 = vpop.f32.mrb[254].mxu0 }
 0x44a   : > { %v3192_v9 = vadd.f32 %v3105_v30, %v2646_v47  ;;  %v10169_v52 = vpop.f32.mrb[170].mxu1  ;;  %v13163_v30 = vpop.f32.mrb[255].mxu0 }
 0x44b   : > { %v13150_v38 = vadd.f32 %v12656_v22, %v3194_v57  ;;  %v3195_v6 = vadd.f32 %v10169_v52, %v2649_v16  ;;  %v3108_v13 = vpop.f32.mrb[171].mxu1  ;;  %v15015_v52 = vld [vmem:[#allocation58_spill] sm:$0xff]  ;;  %v15016_v57 = vld [vmem:[#allocation185_spill] sm:$0xff] }
 0x44c   : > { %v13155_v18 = vadd.f32 %v12661_v5, %v3192_v9  ;;  %v3193_v1 = vadd.f32 %v3108_v13, %v2647_v29  ;;  %v2652_v47 = vadd.f32 %v15016_v57, %v15015_v52  ;;  %v15017_v5 = vld [vmem:[#allocation56_spill] sm:$0xff]  ;;  %v15018_v29 = vld [vmem:[#allocation186_spill] sm:$0xff] }
 0x44d   : > { %v13160_v23 = vadd.f32 %v12666_v15, %v3195_v6  ;;  %10467 = vmatmul.mubr.bf16.gmra.mrb[20].mxu1 %v12210_v55  ;;  %10695 = vmatmul.mubr.bf16.gmra.mrb[104].mxu0 %v12631_v34  ;;  %v2650_v11 = vadd.f32 %v15018_v29, %v15017_v5  ;;  %v15019_v15 = vld [vmem:[#allocation197_spill] sm:$0xff]  ;;  %v15021_v55 = vld [vmem:[#allocation187_spill] sm:$0xff]  ;;  %v15023_v13 = vld [vmem:[#allocation188_spill] sm:$0xff] }
 0x44e   : > { %15012 = vst [vmem:[#allocation157_spill] sm:$0xff] %v13155_v18  ;;  %v13166_v22 = vadd.f32 %v12675_v27, %v3193_v1  ;;  %10470 = vmatprep.mubr.bf16.mxu1 %v12214_v41  ;;  %10698 = vmatprep.mubr.bf16.mxu0 %v15019_v15  ;;  %v2653_v37 = vadd.f32 %v15021_v55, %v15020_v19  ;;  %v15022_v27 = vld [vmem:[#allocation57_spill] sm:$0xff] }
 0x44f   : > { %15013 = vst [vmem:[#allocation158_spill] sm:$0xff] %v13160_v23  ;;  %v2651_v1 = vadd.f32 %v15023_v13, %v15022_v27  ;;  %v13179_v23 = vpop.f32.mrb[0].mxu0 }
 0x450   : > { %15014 = vst [vmem:[#allocation78_spill] sm:$0xff] %v13166_v22  ;;  %v10172_v16 = vpop.f32.mrb[172].mxu1  ;;  %v13184_v29 = vpop.f32.mrb[1].mxu0 }
 0x451   : > { %v3198_v9 = vadd.f32 %v10172_v16, %v2652_v47  ;;  %v3121_v6 = vpop.f32.mrb[173].mxu1  ;;  %v13189_v47 = vpop.f32.mrb[2].mxu0 }
 0x452   : > { %v3196_v41 = vadd.f32 %v3121_v6, %v2650_v11  ;;  %v10173_v22 = vpop.f32.mrb[174].mxu1  ;;  %v15027_v11 = vld [vmem:[#allocation102_spill] sm:$0xff]  ;;  %v13195_v55 = vpop.f32.mrb[3].mxu0 }
 0x453   : > { %v13182_v52 = vadd.f32 %v12697_v4, %v3198_v9  ;;  %v3199_v57 = vadd.f32 %v10173_v22, %v2653_v37  ;;  %v3124_v5 = vpop.f32.mrb[175].mxu1  ;;  %v15029_v22 = vld [vmem:[#allocation103_spill] sm:$0xff]  ;;  %v15030_v37 = vld [vmem:[#allocation89_spill] sm:$0xff]  ;;  %v15032_v6 = vld [vmem:[#allocation194_spill] sm:$0xff] }
 0x454   : > { %v13187_v18 = vadd.f32 %v12702_v33, %v3196_v41  ;;  %v3197_v19 = vadd.f32 %v3124_v5, %v2651_v1  ;;  %v15031_v33 = vld [vmem:[#allocation90_spill] sm:$0xff]  ;;  %v15033_v1 = vld [vmem:[#allocation195_spill] sm:$0xff] }
 0x455   : > { %15024 = vst [vmem:[#allocation160_spill] sm:$0xff] %v13182_v52  ;;  %v13192_v16 = vadd.f32 %v12707_v42, %v3199_v57  ;;  %10471 = vmatmul.mubr.bf16.gmra.mrb[24].mxu1 %v15027_v11  ;;  %10699 = vmatmul.mubr.bf16.gmra.mrb[108].mxu0 %v15030_v37  ;;  %v15049_v52 = vld [vmem:[#allocation62_spill] sm:$0xff] }
 0x456   : > { %15025 = vst [vmem:[#allocation79_spill] sm:$0xff] %v13187_v18  ;;  %v13198_v4 = vadd.f32 %v12716_v63, %v3197_v19  ;;  %10474 = vmatprep.mubr.bf16.mxu1 %v15029_v22  ;;  %10702 = vmatprep.mubr.bf16.mxu0 %v15031_v33  ;;  %v13205_v57 = vpop.f32.mrb[4].mxu0  ;;  %v15035_v63 = vld [vmem:[#allocation196_spill] sm:$0xff] }
 0x457   : > { %15026 = vst [vmem:[#allocation34_spill] sm:$0xff] %v13192_v16  ;;  %v13211_v22 = vpop.f32.mrb[5].mxu0  ;;  %v15037_v16 = vld [vmem:[#allocation198_spill] sm:$0xff] }
 0x458   : > { %15028 = vst [vmem:[#allocation138_spill] sm:$0xff] %v13198_v4  ;;  %v10272_v9 = vpop.f32.mrb[176].mxu1 }
 0x459   : > { %v4560_v27 = vadd.f32 %v10272_v9, %v15032_v6  ;;  %v4303_v13 = vpop.f32.mrb[177].mxu1  ;;  %v13217_v9 = vpop.f32.mrb[6].mxu0 }
 0x45a   : > { %v4558_v42 = vadd.f32 %v4303_v13, %v15033_v1  ;;  %v10273_v41 = vpop.f32.mrb[178].mxu1  ;;  %v15039_v13 = vld [vmem:[#allocation108_spill] sm:$0xff]  ;;  %v13223_v1 = vpop.f32.mrb[7].mxu0 }
 0x45b   : > { %v13208_v5 = vadd.f32 %v12735_v45, %v4560_v27  ;;  %v4561_v19 = vadd.f32 %v10273_v41, %v15035_v63  ;;  %v4306_v11 = vpop.f32.mrb[179].mxu1  ;;  %v15041_v27 = vld [vmem:[#allocation110_spill] sm:$0xff]  ;;  %v15042_v41 = vld [vmem:[#allocation63_spill] sm:$0xff] }
 0x45c   : > { %v13214_v4 = vadd.f32 %v12740_v28, %v4558_v42  ;;  %v4559_v18 = vadd.f32 %v4306_v11, %v15037_v16  ;;  %v15043_v42 = vld [vmem:[#allocation64_spill] sm:$0xff] }
 0x45d   : > { %15034 = vst [vmem:[#allocation32_spill] sm:$0xff] %v13208_v5  ;;  %v13220_v6 = vadd.f32 %v12745_v0, %v4561_v19  ;;  %10475 = vmatmul.mubr.bf16.gmra.mrb[28].mxu1 %v15039_v13  ;;  %10703 = vmatmul.mubr.bf16.gmra.mrb[112].mxu0 %v15042_v41  ;;  %v15044_v16 = vld [vmem:[#allocation88_spill] sm:$0xff] }
 0x45e   : > { %15036 = vst [vmem:[#allocation139_spill] sm:$0xff] %v13214_v4  ;;  %v13226_v45 = vadd.f32 %v12754_v39, %v4559_v18  ;;  %10478 = vmatprep.mubr.bf16.mxu1 %v15041_v27  ;;  %10706 = vmatprep.mubr.bf16.mxu0 %v15043_v42  ;;  %v15045_v4 = vld [vmem:[#allocation60_spill] sm:$0xff]  ;;  %v15047_v39 = vld [vmem:[#allocation61_spill] sm:$0xff] }
 0x45f   : > { %15038 = vst [vmem:[#allocation35_spill] sm:$0xff] %v13220_v6  ;;  %v13233_v6 = vpop.f32.mrb[8].mxu0 }
 0x460   : > { %15040 = vst [vmem:[#allocation140_spill] sm:$0xff] %v13226_v45  ;;  %v10276_v28 = vpop.f32.mrb[180].mxu1  ;;  %v13239_v27 = vpop.f32.mrb[9].mxu0 }
 0x461   : > { %v4564_v63 = vadd.f32 %v10276_v28, %v15044_v16  ;;  %v4319_v11 = vpop.f32.mrb[181].mxu1  ;;  %v13245_v28 = vpop.f32.mrb[10].mxu0  ;;  %v15051_v16 = vld [vmem:[#allocation115_spill] sm:$0xff] }
 0x462   : > { %v4562_v0 = vadd.f32 %v4319_v11, %v15045_v4  ;;  %v10277_v19 = vpop.f32.mrb[182].mxu1  ;;  %v13251_v11 = vpop.f32.mrb[11].mxu0 }
 0x463   : > { %v13236_v13 = vadd.f32 %v12776_v25, %v4564_v63  ;;  %v4565_v18 = vadd.f32 %v10277_v19, %v15047_v39  ;;  %v4322_v45 = vpop.f32.mrb[183].mxu1  ;;  %15052 = vst [vmem:[#allocation167_spill] sm:$0xff] %v13251_v11  ;;  %v15054_v63 = vld [vmem:[#allocation117_spill] sm:$0xff]  ;;  %v15055_v19 = vld [vmem:[#allocation66_spill] sm:$0xff] }
 0x464   : > { %v13242_v5 = vadd.f32 %v12781_v31, %v4562_v0  ;;  %v4563_v42 = vadd.f32 %v4322_v45, %v15049_v52  ;;  %v13258_v0 = vld [vmem:[#allocation2 + $0x118] sm:$0xff]  ;;  %v15056_v52 = vld [vmem:[#allocation116_spill] sm:$0xff]  ;;  %v15057_v45 = vld [vmem:[#allocation91_spill] sm:$0xff] }
 0x465   : > { %15046 = vst [vmem:[#allocation33_spill] sm:$0xff] %v13236_v13  ;;  %v13248_v4 = vadd.f32 %v12786_v14, %v4565_v18  ;;  %10479 = vmatmul.mubr.bf16.gmra.mrb[32].mxu1 %v15051_v16  ;;  %10707 = vmatmul.mubr.bf16.gmra.mrb[116].mxu0 %v15055_v19  ;;  %v15058_v18 = vld [vmem:[#allocation109_spill] sm:$0xff]  ;;  %v11089_v13 = vld [vmem:[#allocation2 + $0x110] sm:$0xff]  ;;  %v5335_v11 = vshll.u32 %v13258_v0, 16 }
 0x466   : > { %15048 = vst [vmem:[#allocation141_spill] sm:$0xff] %v13242_v5  ;;  %v13254_v25 = vadd.f32 %v12795_v32, %v4563_v42  ;;  %10482 = vmatprep.mubr.bf16.mxu1 %v15054_v63  ;;  %10710 = vmatprep.mubr.bf16.mxu0 %v15056_v52  ;;  %v13263_v5 = vpop.f32.mrb[12].mxu0  ;;  %v15061_v42 = vld [vmem:[#allocation94_spill] sm:$0xff]  ;;  %v5331_v19 = vshrl.u32 %v11089_v13, 16  ;;  %v15073_v52 = vld [vmem:[#allocation99_spill] sm:$0xff] }
 0x467   : > { %15050 = vst [vmem:[#allocation80_spill] sm:$0xff] %v13248_v4  ;;  %15059 = vst [vmem:[#allocation38_spill] sm:$0xff] %v13263_v5  ;;  %v13270_v41 = vpop.f32.mrb[13].mxu0  ;;  %v15067_v13 = vld [vmem:[#allocation122_spill] sm:$0xff] }
 0x468   : > { %15053 = vst [vmem:[#allocation81_spill] sm:$0xff] %v13254_v25  ;;  %v10280_v31 = vpop.f32.mrb[184].mxu1  ;;  %15062 = vst [vmem:[#allocation36_spill] sm:$0xff] %v13270_v41 }
 0x469   : > { %v4568_v39 = vadd.f32 %v10280_v31, %v15057_v45  ;;  %v4335_v14 = vpop.f32.mrb[185].mxu1  ;;  %v15064_v45 = vld [vmem:[#allocation95_spill] sm:$0xff] }
 0x46a   : > { %v4566_v4 = vadd.f32 %v4335_v14, %v15058_v18  ;;  %v10281_v16 = vpop.f32.mrb[186].mxu1  ;;  %v13276_v18 = vpop.f32.mrb[14].mxu0 }
 0x46b   : > { %v13266_v32 = vadd.f32 %v12814_v2, %v4568_v39  ;;  %v4569_v63 = vadd.f32 %v10281_v16, %v15061_v42  ;;  %v4338_v25 = vpop.f32.mrb[187].mxu1  ;;  %15065 = vst [vmem:[#allocation39_spill] sm:$0xff] %v13276_v18  ;;  %v13281_v2 = vld [vmem:[%s14481_s6] sm:$0xff]   ;;  %v13287_v16 = vpop.f32.mrb[15].mxu0  ;;  %v15069_v42 = vld [vmem:[#allocation12_spill] sm:$0xff] }
 0x46c   : > { %v13273_v31 = vadd.f32 %v12822_v36, %v4566_v4  ;;  %v4567_v14 = vadd.f32 %v4338_v25, %v15064_v45  ;;  %15068 = vst [vmem:[#allocation37_spill] sm:$0xff] %v13287_v16  ;;  %v15071_v36 = vld [vmem:[#allocation124_spill] sm:$0xff]  ;;  %10734 = vmatprep.subr.bf16.mxu1 %v13281_v2  ;;  %v15072_v4 = vld [vmem:[#allocation126_spill] sm:$0xff]  ;;  %v5337_v45 = vrot.slane %v5335_v11, 1  ;;  %v15079_v11 = vld [vmem:[#allocation97_spill] sm:$0xff] }
 0x46d   : > { %15060 = vst [vmem:[#allocation146_spill] sm:$0xff] %v13266_v32  ;;  %v13284_v39 = vadd.f32 %v12827_v20, %v4569_v63  ;;  %10483 = vmatmul.mubr.bf16.gmra.mrb[36].mxu1 %v15067_v13  ;;  %v5333_v25 = vor.u32 %v5331_v19, %v15072_v4  ;;  %10711 = vmatmul.mubr.bf16.gmra.mrb[120].mxu0 %v15073_v52  ;;  %v15074_v20 = vld [vmem:[#allocation100_spill] sm:$0xff]  ;;  %v15075_v63 = vld [vmem:[#allocation65_spill] sm:$0xff] }
 0x46e   : > { %15063 = vst [vmem:[#allocation147_spill] sm:$0xff] %v13273_v31  ;;  %v13290_v32 = vadd.f32 %v15069_v42, %v4567_v14  ;;  %10486 = vmatprep.mubr.bf16.mxu1 %v15071_v36  ;;  %v3846_v31 = vld [vmem:[#allocation2 + $0x120] sm:$0x1]  ;;  %10714 = vmatprep.mubr.bf16.mxu0 %v15074_v20  ;;  %v15076_v16 = vld [vmem:[#allocation96_spill] sm:$0xff]  ;;  %v5339_v42 = vshrl.u32 %v13258_v0, 16 }
 0x46f   : > { %15066 = vst [vmem:[#allocation148_spill] sm:$0xff] %v13284_v39  ;;  %v5343_v36 = vshll.u32 %v3846_v31, 16  ;;  %v5338_v5 = vsel %vm3928_vm1, %v5333_v25, %v5337_v45 }
 0x470   : > { %15070 = vst [vmem:[#allocation149_spill] sm:$0xff] %v13290_v32  ;;  %v10284_v18 = vpop.f32.mrb[188].mxu1  ;;  %v13300_v32 = vpop.f32.mrb[16].mxu0  ;;  %v5341_v25 = vor.u32 %v5339_v42, %v5337_v45 }
 0x471   : > { %v4572_v13 = vadd.f32 %v10284_v18, %v15075_v63  ;;  %v4351_v39 = vpop.f32.mrb[189].mxu1  ;;  %15077 = vst [vmem:[#allocation173_spill] sm:$0xff] %v13300_v32  ;;  %v13307_v20 = vpop.f32.mrb[17].mxu0  ;;  %v15083_v32 = vld [vmem:[#allocation130_spill] sm:$0xff] }
 0x472   : > { %v4570_v41 = vadd.f32 %v4351_v39, %v15076_v16  ;;  %v10285_v14 = vpop.f32.mrb[190].mxu1  ;;  %v15081_v39 = vld [vmem:[#allocation67_spill] sm:$0xff]  ;;  %v13313_v63 = vpop.f32.mrb[18].mxu0 }
 0x473   : > { %v13303_v19 = vadd.f32 %v12862_v17, %v4572_v13  ;;  %v4573_v4 = vadd.f32 %v10285_v14, %v15079_v11  ;;  %v4354_v52 = vpop.f32.mrb[191].mxu1  ;;  %v13319_v17 = vpop.f32.mrb[19].mxu0  ;;  %v5345_v14 = vrot.slane %v5343_v36, 1  ;;  %v15085_v11 = vld [vmem:[#allocation14_spill] sm:$0xff] }
 0x474   : > { %v13310_v18 = vadd.f32 %v12870_v10, %v4570_v41  ;;  %v4571_v16 = vadd.f32 %v4354_v52, %v15081_v39  ;;  %v15086_v41 = vld [vmem:[#allocation105_spill] sm:$0xff]  ;;  %v15087_v52 = vld [vmem:[#allocation98_spill] sm:$0xff] }
 0x475   : > { %15078 = vst [vmem:[#allocation174_spill] sm:$0xff] %v13303_v19  ;;  %v13316_v31 = vadd.f32 %v12875_v56, %v4573_v4  ;;  %10487 = vmatmul.mubr.bf16.gmra.mrb[40].mxu1 %v15083_v32  ;;  %10715 = vmatmul.mubr.bf16.gmra.mrb[124].mxu0 %v15085_v11  ;;  %v15088_v56 = vld [vmem:[#allocation68_spill] sm:$0xff]  ;;  %v5346_v32 = vsel %vm3928_vm1, %v5341_v25, %v5345_v14  ;;  %v5847_v14 = vld [vmem:[#allocation2 + $0x108] sm:$0xff] }
 0x476   : > { %15080 = vst [vmem:[#allocation82_spill] sm:$0xff] %v13310_v18  ;;  %v13322_v13 = vadd.f32 %v12884_v24, %v4571_v16  ;;  %10490 = vmatprep.mubr.bf16.mxu1 %v5338_v5  ;;  %10718 = vmatprep.mubr.bf16.mxu0 %v15086_v41  ;;  %v13329_v19 = vpop.f32.mrb[20].mxu0  ;;  %v15090_v5 = vld [vmem:[#allocation69_spill] sm:$0xff] }
 0x477   : > { %15082 = vst [vmem:[#allocation176_spill] sm:$0xff] %v13316_v31  ;;  %v13335_v36 = vpop.f32.mrb[21].mxu0 }
 0x478   : > { %15084 = vst [vmem:[#allocation83_spill] sm:$0xff] %v13322_v13  ;;  %v10288_v10 = vpop.f32.mrb[192].mxu1  ;;  %v13341_v13 = vpop.f32.mrb[22].mxu0 }
 0x479   : > { %v4576_v39 = vadd.f32 %v10288_v10, %v15087_v52  ;;  %v4367_v18 = vpop.f32.mrb[193].mxu1  ;;  %v15092_v10 = vld [vmem:[#allocation70_spill] sm:$0xff]  ;;  %v13346_v25 = vpop.f32.mrb[23].mxu0 }
 0x47a   : > { %v4574_v4 = vadd.f32 %v4367_v18, %v15088_v56  ;;  %v10289_v31 = vpop.f32.mrb[194].mxu1  ;;  %v15097_v56 = vld [vmem:[#allocation18_spill] sm:$0xff] }
 0x47b   : > { %v13332_v24 = vadd.f32 %v12909_v7, %v4576_v39  ;;  %v4577_v45 = vadd.f32 %v10289_v31, %v15090_v5  ;;  %v4370_v42 = vpop.f32.mrb[195].mxu1  ;;  %v15095_v31 = vld [vmem:[#allocation137_spill] sm:$0xff]  ;;  %v15096_v39 = vld [vmem:[#allocation107_spill] sm:$0xff] }
 0x47c   : > { %v13338_v16 = vadd.f32 %v12917_v48, %v4574_v4  ;;  %v4575_v52 = vadd.f32 %v4370_v42, %v15092_v10  ;;  %v15098_v4 = vld [vmem:[#allocation101_spill] sm:$0xff]  ;;  %v6611_v10 = vrot.slane %v5847_v14, 1  ;;  %v15104_v14 = vld [vmem:[#allocation15_spill] sm:$0xff] }
 0x47d   : > { %15089 = vst [vmem:[#allocation42_spill] sm:$0xff] %v13332_v24  ;;  %v13344_v18 = vadd.f32 %v12922_v61, %v4577_v45  ;;  %10491 = vmatmul.mubr.bf16.gmra.mrb[44].mxu1 %v5346_v32  ;;  %10719 = vmatmul.mubr.bf16.gmra.mrb[128].mxu0 %v15096_v39  ;;  %v15099_v61 = vld [vmem:[#allocation123_spill] sm:$0xff]  ;;  %v5848_v39 = vld [vmem:[#allocation2 + $0x110] sm:$0xff] }
 0x47e   : > { %15091 = vst [vmem:[#allocation153_spill] sm:$0xff] %v13338_v16  ;;  %v13349_v7 = vadd.f32 %v12933_v8, %v4575_v52  ;;  %10590 = vmatprep.mubr.bf16.mxu1 %v15095_v31  ;;  %10722 = vmatprep.mubr.bf16.mxu0 %v15097_v56  ;;  %v15101_v52 = vld [vmem:[#allocation104_spill] sm:$0xff]  ;;  %v11080_v24 = vld [vmem:[%s14481_s6 + $0x8] sm:$0xff]  }
 0x47f   : > { %15093 = vst [vmem:[#allocation40_spill] sm:$0xff] %v13344_v18  ;;  %v13356_v18 = vpop.f32.mrb[24].mxu0 }
 0x480   : > { %15094 = vst [vmem:[#allocation154_spill] sm:$0xff] %v13349_v7  ;;  %v10292_v48 = vpop.f32.mrb[196].mxu1  ;;  %v13362_v16 = vpop.f32.mrb[25].mxu0 }
 0x481   : > { %v4580_v5 = vadd.f32 %v10292_v48, %v15098_v4  ;;  %v4383_v42 = vpop.f32.mrb[197].mxu1  ;;  %15102 = vst [vmem:[#allocation155_spill] sm:$0xff] %v13362_v16  ;;  %v15112_v16 = vld [vmem:[#allocation22_spill] sm:$0xff] }
 0x482   : > { %v4578_v45 = vadd.f32 %v4383_v42, %v15099_v61  ;;  %v10293_v32 = vpop.f32.mrb[198].mxu1  ;;  %v13371_v42 = vpop.f32.mrb[26].mxu0  ;;  %v15105_v61 = vld [vmem:[#allocation136_spill] sm:$0xff] }
 0x483   : > { %v13359_v8 = vadd.f32 %v12952_v35, %v4580_v5  ;;  %v4581_v31 = vadd.f32 %v10293_v32, %v15101_v52  ;;  %v4386_v7 = vpop.f32.mrb[199].mxu1  ;;  %v15107_v35 = vld [vmem:[#allocation143_spill] sm:$0xff]  ;;  %v13377_v5 = vpop.f32.mrb[27].mxu0 }
 0x484   : > { %v13368_v48 = vadd.f32 %v12960_v3, %v4578_v45  ;;  %v4579_v4 = vadd.f32 %v4386_v7, %v15104_v14  ;;  %15108 = vst [vmem:[#allocation84_spill] sm:$0xff] %v13377_v5  ;;  %v15109_v32 = vld [vmem:[#allocation111_spill] sm:$0xff]  ;;  %v15114_v45 = vld [vmem:[#allocation145_spill] sm:$0xff]  ;;  %v6613_v14 = vrot.slane %v5848_v39, 1 }
 0x485   : > { %15100 = vst [vmem:[#allocation43_spill] sm:$0xff] %v13359_v8  ;;  %v13374_v56 = vadd.f32 %v15105_v61, %v4581_v31  ;;  %10591 = vmatmul.mubr.bf16.vlgmr.msra.gmra.mrb[48].mxu1 %v15107_v35  ;;  %v15110_v52 = vrot.slane %v15109_v32, 1  ;;  %v15115_v7 = vld [vmem:[#allocation113_spill] sm:$0xff]  ;;  %v15116_v61 = vld [vmem:[#allocation106_spill] sm:$0xff] }
 0x486   : > { %15103 = vst [vmem:[#allocation41_spill] sm:$0xff] %v13368_v48  ;;  %v13385_v3 = vadd.f32 %v15112_v16, %v4579_v4  ;;  %10594 = vmatprep.mubr.bf16.mxu1 %v15114_v45  ;;  %10735 = vmatpush3.bf16.msra.mxu1 %v13281_v2  ;;  %v13394_v4 = vpop.f32.mrb[28].mxu0  ;;  %v15119_v45 = vld [vmem:[#allocation71_spill] sm:$0xff] }
 0x487   : > { %15106 = vst [vmem:[#allocation156_spill] sm:$0xff] %v13374_v56  ;;  %v13382_v8 = vsel %vm5965_vm2, %v15110_v52, %v6611_v10  ;;  %10723 = vmatmul.mubr.bf16.gmra.mrb[132].mxu0 %v15115_v7  ;;  %10736 = vmatprep.subr.bf16.mxu1 %v11080_v24  ;;  %v7165_v52 = vrot.slane %v13258_v0, 1  ;;  %v15117_v56 = vld [vmem:[#allocation13_spill] sm:$0xff]  ;;  %v13400_v5 = vpop.f32.mrb[29].mxu0 }
 0x488   : > { %15111 = vst [vmem:[#allocation183_spill] sm:$0xff] %v13382_v8  ;;  %15113 = vst [vmem:[#allocation85_spill] sm:$0xff] %v13385_v3  ;;  %v10296_v31 = vpop.f32.mrb[200].mxu1  ;;  %10726 = vmatprep.mubr.bf16.mxu0 %v13382_v8  ;;  %v13406_v0 = vpop.f32.mrb[30].mxu0 }
 0x489   : > { %v4584_v35 = vadd.f32 %v10296_v31, %v15116_v61  ;;  %v4399_v32 = vpop.f32.mrb[201].mxu1  ;;  %v15121_v31 = vld [vmem:[#allocation16_spill] sm:$0xff] }
 0x48a   : > { %v4582_v48 = vadd.f32 %v4399_v32, %v15117_v56  ;;  %v10297_v16 = vpop.f32.mrb[202].mxu1  ;;  %10737 = vmatpush3.bf16.msra.mxu1 %v11080_v24  ;;  %v13409_v56 = vsel %vm5965_vm2, %v6611_v10, %v6613_v14  ;;  %v13418_v32 = vpop.f32.mrb[31].mxu0 }
 0x48b   : > { %v13397_v2 = vadd.f32 %v12987_v50, %v4584_v35  ;;  %v4585_v3 = vadd.f32 %v10297_v16, %v15119_v45  ;;  %v4402_v7 = vpop.f32.mrb[203].mxu1  ;;  %15122 = vst [vmem:[#allocation44_spill] sm:$0xff] %v13409_v56  ;;  %v11081_v50 = vld [vmem:[%s14481_s6 + $0x10] sm:$0xff]   ;;  %v15124_v35 = vld [vmem:[#allocation150_spill] sm:$0xff] }
 0x48c   : > { %v13403_v39 = vadd.f32 %v12992_v51, %v4582_v48  ;;  %v4583_v61 = vadd.f32 %v4402_v7, %v15121_v31  ;;  %v7166_v51 = vsel %vm5965_vm2, %v6613_v14, %v7165_v52  ;;  %v5850_v48 = vld [vmem:[#allocation2 + $0x120] sm:$0x1]  ;;  %v15125_v7 = vld [vmem:[#allocation120_spill] sm:$0xff]  ;;  %10738 = vmatprep.subr.bf16.mxu1 %v11081_v50 }
 0x48d   : > { %15118 = vst [vmem:[#allocation46_spill] sm:$0xff] %v13397_v2  ;;  %v13415_v24 = vadd.f32 %v12997_v62, %v4585_v3  ;;  %10595 = vmatmul.mubr.bf16.gmra.mrb[52].mxu1 %v15124_v35  ;;  %v15127_v45 = vld [vmem:[#allocation152_spill] sm:$0xff]  ;;  %v7167_v62 = vrot.slane %v5850_v48, 1 }
 0x48e   : > { %15120 = vst [vmem:[#allocation162_spill] sm:$0xff] %v13403_v39  ;;  %v13422_v16 = vadd.f32 %v15125_v7, %v4583_v61  ;;  %10598 = vmatprep.mubr.bf16.mxu1 %v15127_v45  ;;  %10739 = vmatpush3.bf16.msra.mxu1 %v11081_v50  ;;  %v15128_v3 = vld [vmem:[#allocation112_spill] sm:$0xff]  ;;  %v13428_v14 = vpop.f32.mrb[32].mxu0  ;;  %v15132_v7 = vld [vmem:[#allocation17_spill] sm:$0xff]  ;;  %v15133_v50 = vld [vmem:[#allocation142_spill] sm:$0xff] }
 0x48f   : > { %15123 = vst [vmem:[#allocation163_spill] sm:$0xff] %v13415_v24  ;;  %10727 = vmatmul.mubr.bf16.gmra.mrb[136].mxu0 %v13409_v56  ;;  %v15129_v24 = vld [vmem:[#allocation19_spill] sm:$0xff]  ;;  %15130 = vst [vmem:[#allocation164_spill] sm:$0xff] %v13428_v14  ;;  %v13434_v8 = vpop.f32.mrb[33].mxu0 }
 0x490   : > { %15126 = vst [vmem:[#allocation47_spill] sm:$0xff] %v13422_v16  ;;  %v10300_v10 = vpop.f32.mrb[204].mxu1  ;;  %10730 = vmatprep.mubr.bf16.mxu0 %v7166_v51  ;;  %v15135_v51 = vld [vmem:[#allocation114_spill] sm:$0xff]  ;;  %v15138_v14 = vld [vmem:[#allocation159_spill] sm:$0xff] }
 0x491   : > { %v4588_v31 = vadd.f32 %v10300_v10, %v15128_v3  ;;  %v4415_v35 = vpop.f32.mrb[205].mxu1  ;;  %v13440_v10 = vpop.f32.mrb[34].mxu0  ;;  %v15136_v3 = vld [vmem:[#allocation144_spill] sm:$0xff] }
 0x492   : > { %v4586_v39 = vadd.f32 %v4415_v35, %v15129_v24  ;;  %v10301_v2 = vpop.f32.mrb[206].mxu1  ;;  %v7168_v24 = vsel %vm5965_vm2, %v7165_v52, %v7167_v62 }
 0x493   : > { %v13431_v61 = vadd.f32 %v13019_v53, %v4588_v31  ;;  %v4589_v45 = vadd.f32 %v10301_v2, %v15132_v7  ;;  %v4418_v16 = vpop.f32.mrb[207].mxu1  ;;  %v13447_v53 = vpop.f32.mrb[35].mxu0  ;;  %v15139_v2 = vld [vmem:[#allocation26_spill] sm:$0xff]  ;;  %v15141_v7 = vld [vmem:[#allocation161_spill] sm:$0xff] }
 0x494   : > { %v13437_v56 = vadd.f32 %v15133_v50, %v4586_v39  ;;  %v4587_v48 = vadd.f32 %v4418_v16, %v15135_v51  ;;  %v15142_v50 = vld [vmem:[#allocation135_spill] sm:$0xff] }
 0x495   : > { %15131 = vst [vmem:[#allocation45_spill] sm:$0xff] %v13431_v61  ;;  %v13444_v35 = vadd.f32 %v15136_v3, %v4589_v45  ;;  %10599 = vmatmul.mubr.bf16.gmra.mrb[56].mxu1 %v15138_v14  ;;  %v15145_v14 = vld [vmem:[#allocation73_spill] sm:$0xff] }
 0x496   : > { %15134 = vst [vmem:[#allocation165_spill] sm:$0xff] %v13437_v56  ;;  %v13450_v31 = vadd.f32 %v15139_v2, %v4587_v48  ;;  %10602 = vmatprep.mubr.bf16.mxu1 %v15141_v7  ;;  %v15143_v56 = vld [vmem:[#allocation72_spill] sm:$0xff]  ;;  %v13455_v62 = vpop.f32.mrb[36].mxu0 }
 0x497   : > { %15137 = vst [vmem:[#allocation189_spill] sm:$0xff] %v13444_v35  ;;  %10731 = vmatmul.mubr.bf16.gmra.mrb[140].mxu0 %v7168_v24  ;;  %v13461_v48 = vpop.f32.mrb[37].mxu0  ;;  %v15147_v24 = vld [vmem:[#allocation118_spill] sm:$0xff] }
 0x498   : > { %15140 = vst [vmem:[#allocation190_spill] sm:$0xff] %v13450_v31  ;;  %v10304_v39 = vpop.f32.mrb[208].mxu1 }
 0x499   : > { %v4592_v16 = vadd.f32 %v10304_v39, %v15142_v50  ;;  %v4431_v51 = vpop.f32.mrb[209].mxu1  ;;  %v13467_v39 = vpop.f32.mrb[38].mxu0 }
 0x49a   : > { %v4590_v61 = vadd.f32 %v4431_v51, %v15143_v56  ;;  %v10305_v52 = vpop.f32.mrb[210].mxu1  ;;  %v11082_v56 = vld [vmem:[%s14481_s6 + $0x18] sm:$0xff]   ;;  %v15151_v51 = vld [vmem:[#allocation128_spill] sm:$0xff] }
 0x49b   : > { %v13458_v45 = vadd.f32 %v13051_v49, %v4592_v16  ;;  %v4593_v3 = vadd.f32 %v10305_v52, %v15145_v14  ;;  %v4434_v35 = vpop.f32.mrb[211].mxu1  ;;  %v15149_v49 = vld [vmem:[#allocation166_spill] sm:$0xff]  ;;  %v13476_v16 = vpop.f32.mrb[39].mxu0  ;;  %10740 = vmatprep.subr.bf16.mxu1 %v11082_v56 }
 0x49c   : > { %v13464_v2 = vadd.f32 %v13056_v12, %v4590_v61  ;;  %v4591_v7 = vadd.f32 %v4434_v35, %v15147_v24  ;;  %15150 = vst [vmem:[#allocation50_spill] sm:$0xff] %v13476_v16  ;;  %v15153_v12 = vld [vmem:[#allocation168_spill] sm:$0xff]  ;;  %10741 = vmatpush3.bf16.msra.mxu1 %v11082_v56  ;;  %v15161_v56 = vld [vmem:[#allocation21_spill] sm:$0xff] }
 0x49d   : > { %15144 = vst [vmem:[#allocation86_spill] sm:$0xff] %v13458_v45  ;;  %v13473_v50 = vadd.f32 %v13061_v26, %v4593_v3  ;;  %10603 = vmatmul.mubr.bf16.gmra.mrb[60].mxu1 %v15149_v49  ;;  %v15154_v35 = vld [vmem:[#allocation20_spill] sm:$0xff]  ;;  %v15158_v49 = vld [vmem:[#allocation23_spill] sm:$0xff] }
 0x49e   : > { %15146 = vst [vmem:[#allocation192_spill] sm:$0xff] %v13464_v2  ;;  %v13479_v52 = vadd.f32 %v15151_v51, %v4591_v7  ;;  %10606 = vmatprep.mubr.bf16.mxu1 %v15153_v12  ;;  %v15155_v2 = vld [vmem:[#allocation119_spill] sm:$0xff]  ;;  %v13484_v26 = vpop.f32.mrb[40].mxu0  ;;  %v15159_v12 = vld [vmem:[#allocation76_spill] sm:$0xff] }
 0x49f   : > { %15148 = vst [vmem:[#allocation87_spill] sm:$0xff] %v13473_v50  ;;  %15156 = vst [vmem:[#allocation182_spill] sm:$0xff] %v13484_v26  ;;  %v13490_v51 = vpop.f32.mrb[41].mxu0 }
 0x4a0   : > { %15152 = vst [vmem:[#allocation169_spill] sm:$0xff] %v13479_v52  ;;  %v10308_v61 = vpop.f32.mrb[212].mxu1 }
 0x4a1   : > { %v4596_v14 = vadd.f32 %v10308_v61, %v15154_v35  ;;  %v4447_v24 = vpop.f32.mrb[213].mxu1  ;;  %v13496_v61 = vpop.f32.mrb[42].mxu0  ;;  %v15163_v35 = vld [vmem:[#allocation77_spill] sm:$0xff] }
 0x4a2   : > { %v4594_v45 = vadd.f32 %v4447_v24, %v15155_v2  ;;  %v10309_v31 = vpop.f32.mrb[214].mxu1  ;;  %15162 = vst [vmem:[#allocation51_spill] sm:$0xff] %v13496_v61  ;;  %v15165_v24 = vld [vmem:[#allocation175_spill] sm:$0xff]  ;;  %v13502_v26 = vpop.f32.mrb[43].mxu0 }
 0x4a3   : > { %v13487_v3 = vadd.f32 %v13083_v44, %v4596_v14  ;;  %v4597_v50 = vadd.f32 %v10309_v31, %v15158_v49  ;;  %v4450_v7 = vpop.f32.mrb[215].mxu1  ;;  %15166 = vst [vmem:[#allocation49_spill] sm:$0xff] %v13502_v26  ;;  %v15167_v44 = vld [vmem:[#allocation131_spill] sm:$0xff]  ;;  %v15168_v31 = vld [vmem:[#allocation177_spill] sm:$0xff] }
 0x4a4   : > { %v13493_v52 = vadd.f32 %v15159_v12, %v4594_v45  ;;  %v4595_v16 = vadd.f32 %v4450_v7, %v15161_v56 }
 0x4a5   : > { %15157 = vst [vmem:[#allocation48_spill] sm:$0xff] %v13487_v3  ;;  %v13499_v2 = vadd.f32 %v15163_v35, %v4597_v50  ;;  %10607 = vmatmul.mubr.bf16.gmra.mrb[64].mxu1 %v15165_v24  ;;  %v15169_v3 = vld [vmem:[#allocation121_spill] sm:$0xff]  ;;  %v15172_v35 = vld [vmem:[#allocation75_spill] sm:$0xff] }
 0x4a6   : > { %15160 = vst [vmem:[#allocation170_spill] sm:$0xff] %v13493_v52  ;;  %v13505_v14 = vadd.f32 %v15167_v44, %v4595_v16  ;;  %10610 = vmatprep.mubr.bf16.mxu1 %v15168_v31  ;;  %v15170_v52 = vld [vmem:[#allocation74_spill] sm:$0xff]  ;;  %v13510_v61 = vpop.f32.mrb[44].mxu0  ;;  %v15174_v44 = vld [vmem:[#allocation125_spill] sm:$0xff] }
 0x4a7   : > { %15164 = vst [vmem:[#allocation171_spill] sm:$0xff] %v13499_v2  ;;  %v13516_v26 = vpop.f32.mrb[45].mxu0 }
 0x4a8   : > { %v10312_v49 = vpop.f32.mrb[216].mxu1 }
 0x4a9   : > { %v4600_v45 = vadd.f32 %v10312_v49, %v15169_v3  ;;  %v4463_v12 = vpop.f32.mrb[217].mxu1  ;;  %v13522_v3 = vpop.f32.mrb[46].mxu0 }
 0x4aa   : > { %v4598_v7 = vadd.f32 %v4463_v12, %v15170_v52  ;;  %v10313_v56 = vpop.f32.mrb[218].mxu1  ;;  %v11083_v52 = vld [vmem:[%s14481_s6 + $0x20] sm:$0xff]  }
 0x4ab   : > { %v13513_v50 = vadd.f32 %v13115_v21, %v4600_v45  ;;  %v4601_v24 = vadd.f32 %v10313_v56, %v15172_v35  ;;  %v4466_v2 = vpop.f32.mrb[219].mxu1  ;;  %v13531_v21 = vpop.f32.mrb[47].mxu0  ;;  %v15176_v45 = vld [vmem:[#allocation29_spill] sm:$0xff]  ;;  %10742 = vmatprep.subr.bf16.mxu1 %v11083_v52 }
 0x4ac   : > { %v13519_v16 = vadd.f32 %v13120_v43, %v4598_v7  ;;  %v4599_v31 = vadd.f32 %v4466_v2, %v15174_v44  ;;  %v15178_v43 = vld [vmem:[#allocation184_spill] sm:$0xff]  ;;  %10743 = vmatpush3.bf16.msra.mxu1 %v11083_v52  ;;  %v15180_v44 = vld [vmem:[#allocation127_spill] sm:$0xff]  ;;  %v15184_v52 = vld [vmem:[#allocation25_spill] sm:$0xff] }
 0x4ad   : > { %15171 = vst [vmem:[#allocation172_spill] sm:$0xff] %v13513_v50  ;;  %v13528_v49 = vadd.f32 %v13125_v58, %v4601_v24  ;;  %10611 = vmatmul.mubr.bf16.gmra.mrb[68].mxu1 %v14987_v40  ;;  %v15179_v7 = vld [vmem:[#allocation24_spill] sm:$0xff]  ;;  %v15182_v24 = vld [vmem:[#allocation27_spill] sm:$0xff] }
 0x4ae   : > { %15173 = vst [vmem:[#allocation92_spill] sm:$0xff] %v13519_v16  ;;  %v13534_v12 = vadd.f32 %v15176_v45, %v4599_v31  ;;  %10614 = vmatprep.mubr.bf16.mxu1 %v15178_v43  ;;  %v13539_v58 = vpop.f32.mrb[48].mxu0 }
 0x4af   : > { %15175 = vst [vmem:[#allocation93_spill] sm:$0xff] %v13528_v49  ;;  %v13545_v45 = vpop.f32.mrb[49].mxu0 }
 0x4b0   : > { %15177 = vst [vmem:[#allocation54_spill] sm:$0xff] %v13534_v12  ;;  %v10316_v2 = vpop.f32.mrb[220].mxu1 }
 0x4b1   : > { %v4604_v56 = vadd.f32 %v10316_v2, %v15179_v7  ;;  %v4479_v35 = vpop.f32.mrb[221].mxu1  ;;  %v13551_v2 = vpop.f32.mrb[50].mxu0 }
 0x4b2   : > { %v4602_v16 = vadd.f32 %v4479_v35, %v15180_v44  ;;  %v10317_v50 = vpop.f32.mrb[222].mxu1  ;;  %v13557_v35 = vpop.f32.mrb[51].mxu0  ;;  %v15187_v44 = vld [vmem:[#allocation129_spill] sm:$0xff] }
 0x4b3   : > { %v13542_v40 = vadd.f32 %v13147_v59, %v4604_v56  ;;  %v4605_v49 = vadd.f32 %v10317_v50, %v15182_v24  ;;  %v4482_v31 = vpop.f32.mrb[223].mxu1  ;;  %v15186_v50 = vld [vmem:[#allocation193_spill] sm:$0xff]  ;;  %v15188_v24 = vld [vmem:[#allocation151_spill] sm:$0xff] }
 0x4b4   : > { %v13548_v43 = vadd.f32 %v13152_v60, %v4602_v16  ;;  %v4603_v12 = vadd.f32 %v4482_v31, %v15184_v52 }
 0x4b5   : > { %15181 = vst [vmem:[#allocation178_spill] sm:$0xff] %v13542_v40  ;;  %v13554_v7 = vadd.f32 %v13157_v54, %v4605_v49  ;;  %10615 = vmatmul.mubr.bf16.gmra.mrb[72].mxu1 %v15004_v46  ;;  %v15189_v46 = vld [vmem:[#allocation30_spill] sm:$0xff] }
 0x4b6   : > { %15183 = vst [vmem:[#allocation191_spill] sm:$0xff] %v13548_v43  ;;  %v13560_v59 = vadd.f32 %v13163_v30, %v4603_v12  ;;  %10618 = vmatprep.mubr.bf16.mxu1 %v15186_v50  ;;  %v13565_v43 = vpop.f32.mrb[52].mxu0  ;;  %v15190_v12 = vld [vmem:[#allocation28_spill] sm:$0xff] }
 0x4b7   : > { %15185 = vst [vmem:[#allocation52_spill] sm:$0xff] %v13554_v7  ;;  %v13571_v40 = vpop.f32.mrb[53].mxu0 }
 0x4b8   : > { %v10320_v56 = vpop.f32.mrb[224].mxu1 }
 0x4b9   : > { %v4608_v60 = vadd.f32 %v10320_v56, %v15187_v44  ;;  %v4495_v16 = vpop.f32.mrb[225].mxu1  ;;  %v13577_v56 = vpop.f32.mrb[54].mxu0  ;;  %v11084_v44 = vld [vmem:[%s14481_s6 + $0x28] sm:$0xff]  }
 0x4ba   : > { %v4606_v31 = vadd.f32 %v4495_v16, %v15188_v24  ;;  %v10321_v52 = vpop.f32.mrb[226].mxu1  ;;  %10744 = vmatprep.subr.bf16.mxu1 %v11084_v44 }
 0x4bb   : > { %v13568_v54 = vadd.f32 %v13179_v23, %v4608_v60  ;;  %v4609_v49 = vadd.f32 %v10321_v52, %v15189_v46  ;;  %v4498_v7 = vpop.f32.mrb[227].mxu1  ;;  %v13586_v23 = vpop.f32.mrb[55].mxu0  ;;  %10745 = vmatpush3.bf16.msra.mxu1 %v11084_v44  ;;  %v15194_v52 = vld [vmem:[#allocation31_spill] sm:$0xff]  ;;  %v15198_v44 = vld [vmem:[#allocation134_spill] sm:$0xff] }
 0x4bc   : > { %v13574_v30 = vadd.f32 %v13184_v29, %v4606_v31  ;;  %v4607_v50 = vadd.f32 %v4498_v7, %v15190_v12  ;;  %v15193_v7 = vld [vmem:[#allocation132_spill] sm:$0xff] }
 0x4bd   : > { %v13583_v16 = vadd.f32 %v13189_v47, %v4609_v49  ;;  %10619 = vmatmul.mubr.bf16.gmra.mrb[76].mxu1 %v12631_v34  ;;  %v15196_v49 = vld [vmem:[#allocation133_spill] sm:$0xff] }
 0x4be   : > { %v13589_v60 = vadd.f32 %v13195_v55, %v4607_v50  ;;  %10622 = vmatprep.mubr.bf16.mxu1 %v15019_v15  ;;  %v13594_v47 = vpop.f32.mrb[56].mxu0 }
 0x4bf   : > { %15191 = vst [vmem:[#allocation179_spill] sm:$0xff] %v13583_v16  ;;  %v13600_v50 = vpop.f32.mrb[57].mxu0 }
 0x4c0   : > { %15192 = vst [vmem:[#allocation55_spill] sm:$0xff] %v13589_v60  ;;  %v10324_v29 = vpop.f32.mrb[228].mxu1 }
 0x4c1   : > { %v4612_v24 = vadd.f32 %v10324_v29, %v15193_v7  ;;  %v4511_v31 = vpop.f32.mrb[229].mxu1  ;;  %v13606_v29 = vpop.f32.mrb[58].mxu0 }
 0x4c2   : > { %v4610_v46 = vadd.f32 %v4511_v31, %v15194_v52  ;;  %v10325_v12 = vpop.f32.mrb[230].mxu1  ;;  %v13612_v31 = vpop.f32.mrb[59].mxu0 }
 0x4c3   : > { %v13597_v34 = vadd.f32 %v13205_v57, %v4612_v24  ;;  %v4613_v16 = vadd.f32 %v10325_v12, %v15196_v49  ;;  %v4514_v55 = vpop.f32.mrb[231].mxu1 }
 0x4c4   : > { %v13603_v15 = vadd.f32 %v13211_v22, %v4610_v46  ;;  %v4611_v60 = vadd.f32 %v4514_v55, %v15198_v44  ;;  %v15201_v46 = vld [vmem:[#allocation157_spill] sm:$0xff] }
 0x4c5   : > { %15195 = vst [vmem:[#allocation180_spill] sm:$0xff] %v13597_v34  ;;  %v13609_v7 = vadd.f32 %v13217_v9, %v4613_v16  ;;  %10623 = vmatmul.mubr.bf16.gmra.mrb[80].mxu1 %v15030_v37  ;;  %v15203_v37 = vld [vmem:[#allocation158_spill] sm:$0xff] }
 0x4c6   : > { %15197 = vst [vmem:[#allocation53_spill] sm:$0xff] %v13603_v15  ;;  %v13615_v57 = vadd.f32 %v13223_v1, %v4611_v60  ;;  %10626 = vmatprep.mubr.bf16.mxu1 %v15031_v33  ;;  %v13620_v55 = vpop.f32.mrb[60].mxu0  ;;  %v15205_v33 = vld [vmem:[#allocation78_spill] sm:$0xff] }
 0x4c7   : > { %15199 = vst [vmem:[#allocation181_spill] sm:$0xff] %v13609_v7  ;;  %v13626_v7 = vpop.f32.mrb[61].mxu0 }
 0x4c8   : > { %15200 = vst [vmem:[#allocation58_spill] sm:$0xff] %v13615_v57  ;;  %v10328_v24 = vpop.f32.mrb[232].mxu1 }
 0x4c9   : > { %v4616_v22 = vadd.f32 %v10328_v24, %v13150_v38  ;;  %v4527_v52 = vpop.f32.mrb[233].mxu1  ;;  %v13632_v38 = vpop.f32.mrb[62].mxu0  ;;  %v11085_v24 = vld [vmem:[%s14481_s6 + $0x30] sm:$0xff]  }
 0x4ca   : > { %v4614_v12 = vadd.f32 %v4527_v52, %v15201_v46  ;;  %v10329_v49 = vpop.f32.mrb[234].mxu1  ;;  %v15208_v46 = vld [vmem:[#allocation167_spill] sm:$0xff]  ;;  %10746 = vmatprep.subr.bf16.mxu1 %v11085_v24 }
 0x4cb   : > { %v13623_v9 = vadd.f32 %v13233_v6, %v4616_v22  ;;  %v4617_v16 = vadd.f32 %v10329_v49, %v15203_v37  ;;  %v4530_v44 = vpop.f32.mrb[235].mxu1  ;;  %v15207_v6 = vld [vmem:[#allocation63_spill] sm:$0xff]  ;;  %v13641_v22 = vpop.f32.mrb[63].mxu0  ;;  %10747 = vmatpush3.bf16.msra.mxu1 %v11085_v24  ;;  %v15211_v37 = vld [vmem:[#allocation160_spill] sm:$0xff]  ;;  %v15220_v24 = vld [vmem:[#allocation138_spill] sm:$0xff] }
 0x4cc   : > { %v13629_v1 = vadd.f32 %v13239_v27, %v4614_v12  ;;  %v4615_v60 = vadd.f32 %v4530_v44, %v15205_v33  ;;  %v15210_v27 = vld [vmem:[#allocation64_spill] sm:$0xff] }
 0x4cd   : > { %15202 = vst [vmem:[#allocation185_spill] sm:$0xff] %v13623_v9  ;;  %v13638_v52 = vadd.f32 %v13245_v28, %v4617_v16  ;;  %10627 = vmatmul.mubr.bf16.gmra.mrb[84].mxu1 %v15207_v6  ;;  %v15214_v16 = vld [vmem:[#allocation38_spill] sm:$0xff] }
 0x4ce   : > { %15204 = vst [vmem:[#allocation56_spill] sm:$0xff] %v13629_v1  ;;  %v13644_v49 = vadd.f32 %v15208_v46, %v4615_v60  ;;  %10630 = vmatprep.mubr.bf16.mxu1 %v15210_v27  ;;  %v15212_v1 = vld [vmem:[#allocation79_spill] sm:$0xff]  ;;  %v13649_v28 = vpop.f32.mrb[64].mxu0  ;;  %v15218_v27 = vld [vmem:[#allocation36_spill] sm:$0xff] }
 0x4cf   : > { %15206 = vst [vmem:[#allocation186_spill] sm:$0xff] %v13638_v52  ;;  %15213 = vst [vmem:[#allocation59_spill] sm:$0xff] %v13649_v28  ;;  %v15216_v52 = vld [vmem:[#allocation34_spill] sm:$0xff]  ;;  %v13655_v46 = vpop.f32.mrb[65].mxu0 }
 0x4d0   : > { %15209 = vst [vmem:[#allocation197_spill] sm:$0xff] %v13644_v49  ;;  %v10332_v12 = vpop.f32.mrb[236].mxu1  ;;  %15217 = vst [vmem:[#allocation57_spill] sm:$0xff] %v13655_v46 }
 0x4d1   : > { %v4620_v44 = vadd.f32 %v10332_v12, %v15211_v37  ;;  %v4543_v33 = vpop.f32.mrb[237].mxu1  ;;  %v13661_v12 = vpop.f32.mrb[66].mxu0  ;;  %v15222_v37 = vld [vmem:[#allocation39_spill] sm:$0xff] }
 0x4d2   : > { %v4618_v9 = vadd.f32 %v4543_v33, %v15212_v1  ;;  %v10333_v57 = vpop.f32.mrb[238].mxu1  ;;  %15221 = vst [vmem:[#allocation102_spill] sm:$0xff] %v13661_v12  ;;  %v15224_v33 = vld [vmem:[#allocation66_spill] sm:$0xff]  ;;  %v13667_v28 = vpop.f32.mrb[67].mxu0 }
 0x4d3   : > { %v13652_v6 = vadd.f32 %v15214_v16, %v4620_v44  ;;  %v4621_v15 = vadd.f32 %v10333_v57, %v15216_v52  ;;  %v4546_v60 = vpop.f32.mrb[239].mxu1  ;;  %15225 = vst [vmem:[#allocation89_spill] sm:$0xff] %v13667_v28  ;;  %v15226_v44 = vld [vmem:[#allocation37_spill] sm:$0xff]  ;;  %v15227_v57 = vld [vmem:[#allocation116_spill] sm:$0xff] }
 0x4d4   : > { %v13658_v49 = vadd.f32 %v15218_v27, %v4618_v9  ;;  %v4619_v34 = vadd.f32 %v4546_v60, %v15220_v24 }
 0x4d5   : > { %15215 = vst [vmem:[#allocation187_spill] sm:$0xff] %v13652_v6  ;;  %v13664_v1 = vadd.f32 %v15222_v37, %v4621_v15  ;;  %10631 = vmatmul.mubr.bf16.gmra.mrb[88].mxu1 %v15224_v33  ;;  %v15228_v6 = vld [vmem:[#allocation32_spill] sm:$0xff]  ;;  %v15230_v15 = vld [vmem:[#allocation173_spill] sm:$0xff]  ;;  %v15232_v33 = vld [vmem:[#allocation35_spill] sm:$0xff] }
 0x4d6   : > { %15219 = vst [vmem:[#allocation188_spill] sm:$0xff] %v13658_v49  ;;  %v13670_v16 = vadd.f32 %v15226_v44, %v4619_v34  ;;  %10634 = vmatprep.mubr.bf16.mxu1 %v15227_v57  ;;  %v15229_v49 = vld [vmem:[#allocation139_spill] sm:$0xff]  ;;  %v13675_v12 = vpop.f32.mrb[68].mxu0  ;;  %v15234_v44 = vld [vmem:[#allocation140_spill] sm:$0xff] }
 0x4d7   : > { %15223 = vst [vmem:[#allocation103_spill] sm:$0xff] %v13664_v1  ;;  %v13681_v46 = vpop.f32.mrb[69].mxu0 }
 0x4d8   : > { %v10432_v52 = vpop.f32.mrb[240].mxu1 }
 0x4d9   : > { %v5688_v9 = vadd.f32 %v10432_v52, %v15228_v6  ;;  %v5431_v27 = vpop.f32.mrb[241].mxu1  ;;  %v13687_v6 = vpop.f32.mrb[70].mxu0  ;;  %v15236_v52 = vld [vmem:[#allocation99_spill] sm:$0xff] }
 0x4da   : > { %v5686_v60 = vadd.f32 %v5431_v27, %v15229_v49  ;;  %v10433_v24 = vpop.f32.mrb[242].mxu1  ;;  %v13693_v27 = vpop.f32.mrb[71].mxu0 }
 0x4db   : > { %v13678_v37 = vadd.f32 %v15230_v15, %v5688_v9  ;;  %v5689_v1 = vadd.f32 %v10433_v24, %v15232_v33  ;;  %v5434_v28 = vpop.f32.mrb[243].mxu1  ;;  %v15238_v24 = vld [vmem:[#allocation100_spill] sm:$0xff]  ;;  %v15239_v33 = vld [vmem:[#allocation33_spill] sm:$0xff] }
 0x4dc   : > { %v13684_v34 = vadd.f32 %v13307_v20, %v5686_v60  ;;  %v5687_v57 = vadd.f32 %v5434_v28, %v15234_v44 }
 0x4dd   : > { %15231 = vst [vmem:[#allocation90_spill] sm:$0xff] %v13678_v37  ;;  %v13690_v49 = vadd.f32 %v13313_v63, %v5689_v1  ;;  %10635 = vmatmul.mubr.bf16.gmra.mrb[92].mxu1 %v15236_v52  ;;  %v11086_v63 = vld [vmem:[%s14481_s6 + $0x38] sm:$0xff]  }
 0x4de   : > { %15233 = vst [vmem:[#allocation194_spill] sm:$0xff] %v13684_v34  ;;  %v13696_v9 = vadd.f32 %v13319_v17, %v5687_v57  ;;  %10638 = vmatprep.mubr.bf16.mxu1 %v15238_v24  ;;  %v15240_v34 = vld [vmem:[#allocation141_spill] sm:$0xff]  ;;  %v15242_v17 = vld [vmem:[#allocation80_spill] sm:$0xff]  ;;  %10748 = vmatprep.subr.bf16.mxu1 %v11086_v63 }
 0x4df   : > { %15235 = vst [vmem:[#allocation195_spill] sm:$0xff] %v13690_v49  ;;  %v13701_v37 = vpop.f32.mrb[72].mxu0  ;;  %10749 = vmatpush3.bf16.msra.mxu1 %v11086_v63  ;;  %v15253_v63 = vld [vmem:[#allocation149_spill] sm:$0xff] }
 0x4e0   : > { %15237 = vst [vmem:[#allocation196_spill] sm:$0xff] %v13696_v9  ;;  %v10436_v15 = vpop.f32.mrb[244].mxu1  ;;  %v13710_v24 = vpop.f32.mrb[73].mxu0 }
 0x4e1   : > { %v5692_v20 = vadd.f32 %v10436_v15, %v15239_v33  ;;  %v5447_v60 = vpop.f32.mrb[245].mxu1  ;;  %v15244_v33 = vld [vmem:[#allocation81_spill] sm:$0xff] }
 0x4e2   : > { %v5690_v28 = vadd.f32 %v5447_v60, %v15240_v34  ;;  %v10437_v44 = vpop.f32.mrb[246].mxu1  ;;  %v13716_v60 = vpop.f32.mrb[74].mxu0 }
 0x4e3   : > { %v13707_v1 = vadd.f32 %v13329_v19, %v5692_v20  ;;  %v5693_v57 = vadd.f32 %v10437_v44, %v15242_v17  ;;  %v5450_v52 = vpop.f32.mrb[247].mxu1  ;;  %v13722_v19 = vpop.f32.mrb[75].mxu0 }
 0x4e4   : > { %v13713_v15 = vadd.f32 %v13335_v36, %v5690_v28  ;;  %v5691_v34 = vadd.f32 %v5450_v52, %v15244_v33  ;;  %v15247_v28 = vld [vmem:[#allocation146_spill] sm:$0xff]  ;;  %v15248_v52 = vld [vmem:[#allocation147_spill] sm:$0xff] }
 0x4e5   : > { %15241 = vst [vmem:[#allocation198_spill] sm:$0xff] %v13707_v1  ;;  %v13719_v9 = vadd.f32 %v13341_v13, %v5693_v57  ;;  %10639 = vmatmul.mubr.bf16.gmra.mrb[96].mxu1 %v15085_v11  ;;  %v15250_v11 = vld [vmem:[#allocation148_spill] sm:$0xff] }
 0x4e6   : > { %15243 = vst [vmem:[#allocation108_spill] sm:$0xff] %v13713_v15  ;;  %v13725_v20 = vadd.f32 %v13346_v25, %v5691_v34  ;;  %10642 = vmatprep.mubr.bf16.mxu1 %v15086_v41  ;;  %v15251_v34 = vld [vmem:[#allocation155_spill] sm:$0xff] }
 0x4e7   : > { %15245 = vst [vmem:[#allocation110_spill] sm:$0xff] %v13719_v9  ;;  %v13730_v1 = vpop.f32.mrb[76].mxu0 }
 0x4e8   : > { %15246 = vst [vmem:[#allocation88_spill] sm:$0xff] %v13725_v20  ;;  %v10440_v36 = vpop.f32.mrb[248].mxu1  ;;  %v13736_v25 = vpop.f32.mrb[77].mxu0 }
 0x4e9   : > { %v5696_v44 = vadd.f32 %v10440_v36, %v15247_v28  ;;  %v5463_v17 = vpop.f32.mrb[249].mxu1  ;;  %v13742_v36 = vpop.f32.mrb[78].mxu0 }
 0x4ea   : > { %v5694_v33 = vadd.f32 %v5463_v17, %v15248_v52  ;;  %v10441_v15 = vpop.f32.mrb[250].mxu1  ;;  %v15255_v17 = vld [vmem:[#allocation107_spill] sm:$0xff]  ;;  %v13748_v52 = vpop.f32.mrb[79].mxu0 }
 0x4eb   : > { %v13733_v13 = vadd.f32 %v13356_v18, %v5696_v44  ;;  %v5697_v57 = vadd.f32 %v10441_v15, %v15250_v11  ;;  %v5466_v9 = vpop.f32.mrb[251].mxu1  ;;  %15256 = vst [vmem:[#allocation115_spill] sm:$0xff] %v13748_v52  ;;  %v15257_v18 = vld [vmem:[#allocation84_spill] sm:$0xff]  ;;  %v15259_v15 = vld [vmem:[#allocation18_spill] sm:$0xff] }
 0x4ec   : > { %v13739_v41 = vadd.f32 %v15251_v34, %v5694_v33  ;;  %v5695_v20 = vadd.f32 %v5466_v9, %v15253_v63 }
 0x4ed   : > { %15249 = vst [vmem:[#allocation60_spill] sm:$0xff] %v13733_v13  ;;  %v13745_v28 = vadd.f32 %v13371_v42, %v5697_v57  ;;  %10643 = vmatmul.mubr.bf16.gmra.mrb[100].mxu1 %v15255_v17  ;;  %v15260_v13 = vld [vmem:[#allocation174_spill] sm:$0xff]  ;;  %v15263_v57 = vld [vmem:[#allocation176_spill] sm:$0xff] }
 0x4ee   : > { %15252 = vst [vmem:[#allocation61_spill] sm:$0xff] %v13739_v41  ;;  %v13751_v44 = vadd.f32 %v15257_v18, %v5695_v20  ;;  %10646 = vmatprep.mubr.bf16.mxu1 %v15259_v15  ;;  %v15261_v41 = vld [vmem:[#allocation82_spill] sm:$0xff]  ;;  %v15265_v18 = vld [vmem:[#allocation83_spill] sm:$0xff] }
 0x4ef   : > { %15254 = vst [vmem:[#allocation62_spill] sm:$0xff] %v13745_v28 }
 0x4f0   : > { %15258 = vst [vmem:[#allocation117_spill] sm:$0xff] %v13751_v44  ;;  %v10444_v11 = vpop.f32.mrb[252].mxu1  ;;  %v13756_v49 = vpop.f32.mrb[80].mxu0 }
 0x4f1   : > { %v5700_v33 = vadd.f32 %v10444_v11, %v15260_v13  ;;  %v5479_v34 = vpop.f32.mrb[253].mxu1  ;;  %v13762_v52 = vpop.f32.mrb[81].mxu0  ;;  %v15267_v11 = vld [vmem:[#allocation113_spill] sm:$0xff] }
 0x4f2   : > { %v5698_v9 = vadd.f32 %v5479_v34, %v15261_v41  ;;  %v10445_v63 = vpop.f32.mrb[254].mxu1  ;;  %v13768_v13 = vpop.f32.mrb[82].mxu0 }
 0x4f3   : > { %v13759_v42 = vadd.f32 %v13394_v4, %v5700_v33  ;;  %v5701_v17 = vadd.f32 %v10445_v63, %v15263_v57  ;;  %v5482_v28 = vpop.f32.mrb[255].mxu1  ;;  %v13774_v34 = vpop.f32.mrb[83].mxu0  ;;  %v15270_v33 = vld [vmem:[#allocation183_spill] sm:$0xff]  ;;  %v15271_v57 = vld [vmem:[#allocation42_spill] sm:$0xff] }
 0x4f4   : > { %v13765_v20 = vadd.f32 %v13400_v5, %v5698_v9  ;;  %v5699_v15 = vadd.f32 %v5482_v28, %v15265_v18  ;;  %15268 = vst [vmem:[#allocation95_spill] sm:$0xff] %v13774_v34 }
 0x4f5   : > { %15262 = vst [vmem:[#allocation91_spill] sm:$0xff] %v13759_v42  ;;  %v13771_v41 = vadd.f32 %v13406_v0, %v5701_v17  ;;  %10647 = vmatmul.mubr.bf16.gmra.mrb[104].mxu1 %v15267_v11  ;;  %v15273_v0 = vld [vmem:[#allocation164_spill] sm:$0xff] }
 0x4f6   : > { %15264 = vst [vmem:[#allocation109_spill] sm:$0xff] %v13765_v20  ;;  %v13777_v4 = vadd.f32 %v13418_v32, %v5699_v15  ;;  %10650 = vmatprep.mubr.bf16.mxu1 %v15270_v33  ;;  %v15272_v20 = vld [vmem:[#allocation153_spill] sm:$0xff]  ;;  %v15275_v11 = vld [vmem:[#allocation40_spill] sm:$0xff]  ;;  %v15277_v15 = vld [vmem:[#allocation154_spill] sm:$0xff] }
 0x4f7   : > { %15266 = vst [vmem:[#allocation94_spill] sm:$0xff] %v13771_v41 }
 0x4f8   : > { %15269 = vst [vmem:[#allocation122_spill] sm:$0xff] %v13777_v4  ;;  %v10448_v63 = vpop.f32.mrb[0].mxu1  ;;  %v13782_v42 = vpop.f32.mrb[84].mxu0  ;;  %v15293_v4 = vld [vmem:[#allocation162_spill] sm:$0xff] }
 0x4f9   : > { %v5704_v5 = vadd.f32 %v10448_v63, %v15271_v57  ;;  %v5495_v9 = vpop.f32.mrb[1].mxu1  ;;  %v13788_v34 = vpop.f32.mrb[85].mxu0  ;;  %v15279_v57 = vld [vmem:[#allocation44_spill] sm:$0xff] }
 0x4fa   : > { %v5702_v28 = vadd.f32 %v5495_v9, %v15272_v20  ;;  %v10449_v18 = vpop.f32.mrb[2].mxu1  ;;  %v13794_v63 = vpop.f32.mrb[86].mxu0 }
 0x4fb   : > { %v13785_v17 = vadd.f32 %v15273_v0, %v5704_v5  ;;  %v5705_v41 = vadd.f32 %v10449_v18, %v15275_v11  ;;  %v5498_v44 = vpop.f32.mrb[3].mxu1  ;;  %v13800_v9 = vpop.f32.mrb[87].mxu0  ;;  %v15281_v0 = vld [vmem:[#allocation43_spill] sm:$0xff] }
 0x4fc   : > { %v13791_v32 = vadd.f32 %v13434_v8, %v5702_v28  ;;  %v5703_v33 = vadd.f32 %v5498_v44, %v15277_v15  ;;  %v15282_v8 = vld [vmem:[#allocation41_spill] sm:$0xff] }
 0x4fd   : > { %15274 = vst [vmem:[#allocation12_spill] sm:$0xff] %v13785_v17  ;;  %v13797_v20 = vadd.f32 %v13440_v10, %v5705_v41  ;;  %10651 = vmatmul.mubr.bf16.gmra.mrb[108].mxu1 %v15279_v57  ;;  %v15284_v10 = vld [vmem:[#allocation156_spill] sm:$0xff] }
 0x4fe   : > { %15276 = vst [vmem:[#allocation124_spill] sm:$0xff] %v13791_v32  ;;  %v13803_v5 = vadd.f32 %v13447_v53, %v5703_v33  ;;  %v15287_v33 = vld [vmem:[#allocation85_spill] sm:$0xff] }
 0x4ff   : > { %15278 = vst [vmem:[#allocation126_spill] sm:$0xff] %v13797_v20 }
 0x500   : > { %15280 = vst [vmem:[#allocation65_spill] sm:$0xff] %v13803_v5  ;;  %v10452_v18 = vpop.f32.mrb[4].mxu1  ;;  %v13807_v44 = vpop.f32.mrb[88].mxu0 }
 0x501   : > { %v5708_v11 = vadd.f32 %v10452_v18, %v15281_v0  ;;  %v5511_v17 = vpop.f32.mrb[5].mxu1  ;;  %v13813_v20 = vpop.f32.mrb[89].mxu0 }
 0x502   : > { %v5706_v28 = vadd.f32 %v5511_v17, %v15282_v8  ;;  %v10453_v32 = vpop.f32.mrb[6].mxu1  ;;  %15285 = vst [vmem:[#allocation97_spill] sm:$0xff] %v13813_v20  ;;  %v13819_v18 = vpop.f32.mrb[90].mxu0  ;;  %v15290_v8 = vld [vmem:[#allocation50_spill] sm:$0xff] }
 0x503   : > { %v13810_v15 = vadd.f32 %v13455_v62, %v5708_v11  ;;  %v5709_v41 = vadd.f32 %v10453_v32, %v15284_v10  ;;  %v5514_v57 = vpop.f32.mrb[7].mxu1  ;;  %v13824_v0 = vpop.f32.mrb[91].mxu0  ;;  %v15292_v32 = vld [vmem:[#allocation46_spill] sm:$0xff] }
 0x504   : > { %v13816_v53 = vadd.f32 %v13461_v48, %v5706_v28  ;;  %v5707_v5 = vadd.f32 %v5514_v57, %v15287_v33  ;;  %15289 = vst [vmem:[#allocation14_spill] sm:$0xff] %v13824_v0  ;;  %v15295_v57 = vld [vmem:[#allocation182_spill] sm:$0xff] }
 0x505   : > { %15283 = vst [vmem:[#allocation96_spill] sm:$0xff] %v13810_v15  ;;  %v13822_v17 = vadd.f32 %v13467_v39, %v5709_v41 }
 0x506   : > { %15286 = vst [vmem:[#allocation67_spill] sm:$0xff] %v13816_v53  ;;  %v13827_v62 = vadd.f32 %v15290_v8, %v5707_v5  ;;  %v15297_v53 = vld [vmem:[#allocation163_spill] sm:$0xff] }
 0x507   : > { %15288 = vst [vmem:[#allocation130_spill] sm:$0xff] %v13822_v17  ;;  %v15300_v8 = vld [vmem:[#allocation47_spill] sm:$0xff] }
 0x508   : > { %15291 = vst [vmem:[#allocation105_spill] sm:$0xff] %v13827_v62  ;;  %v10456_v11 = vpop.f32.mrb[8].mxu1  ;;  %v13831_v28 = vpop.f32.mrb[92].mxu0 }
 0x509   : > { %v5712_v10 = vadd.f32 %v10456_v11, %v15292_v32  ;;  %v5527_v15 = vpop.f32.mrb[9].mxu1  ;;  %15294 = vst [vmem:[#allocation98_spill] sm:$0xff] %v13831_v28  ;;  %v13837_v17 = vpop.f32.mrb[93].mxu0  ;;  %v15301_v32 = vld [vmem:[#allocation51_spill] sm:$0xff]  ;;  %v15303_v28 = vld [vmem:[#allocation49_spill] sm:$0xff] }
 0x50a   : > { %v5710_v20 = vadd.f32 %v5527_v15, %v15293_v4  ;;  %v10457_v48 = vpop.f32.mrb[10].mxu1  ;;  %15298 = vst [vmem:[#allocation69_spill] sm:$0xff] %v13837_v17  ;;  %v13843_v11 = vpop.f32.mrb[94].mxu0  ;;  %v15306_v17 = vld [vmem:[#allocation165_spill] sm:$0xff] }
 0x50b   : > { %v13834_v33 = vadd.f32 %v15295_v57, %v5712_v10  ;;  %v5713_v39 = vadd.f32 %v10457_v48, %v15297_v53  ;;  %v5530_v41 = vpop.f32.mrb[11].mxu1  ;;  %v13848_v15 = vpop.f32.mrb[95].mxu0  ;;  %v15305_v53 = vld [vmem:[#allocation45_spill] sm:$0xff] }
 0x50c   : > { %v13840_v5 = vadd.f32 %v13490_v51, %v5710_v20  ;;  %v5711_v62 = vadd.f32 %v5530_v41, %v15300_v8  ;;  %v15308_v8 = vld [vmem:[#allocation189_spill] sm:$0xff] }
 0x50d   : > { %15296 = vst [vmem:[#allocation68_spill] sm:$0xff] %v13834_v33  ;;  %v13846_v4 = vadd.f32 %v15301_v32, %v5713_v39 }
 0x50e   : > { %15299 = vst [vmem:[#allocation70_spill] sm:$0xff] %v13840_v5  ;;  %v13851_v10 = vadd.f32 %v15303_v28, %v5711_v62  ;;  %v15310_v28 = vld [vmem:[#allocation190_spill] sm:$0xff] }
 0x50f   : > { %15302 = vst [vmem:[#allocation137_spill] sm:$0xff] %v13846_v4 }
 0x510   : > { %15304 = vst [vmem:[#allocation101_spill] sm:$0xff] %v13851_v10  ;;  %v10460_v57 = vpop.f32.mrb[12].mxu1  ;;  %v13855_v20 = vpop.f32.mrb[96].mxu0 }
 0x511   : > { %v5716_v48 = vadd.f32 %v10460_v57, %v15305_v53  ;;  %v5543_v33 = vpop.f32.mrb[13].mxu1  ;;  %v13861_v4 = vpop.f32.mrb[97].mxu0 }
 0x512   : > { %v5714_v0 = vadd.f32 %v5543_v33, %v15306_v17  ;;  %v10461_v51 = vpop.f32.mrb[14].mxu1  ;;  %v13867_v57 = vpop.f32.mrb[98].mxu0 }
 0x513   : > { %v13858_v41 = vadd.f32 %v13510_v61, %v5716_v48  ;;  %v5717_v39 = vadd.f32 %v10461_v51, %v15308_v8  ;;  %v5546_v32 = vpop.f32.mrb[15].mxu1  ;;  %v13872_v33 = vpop.f32.mrb[99].mxu0  ;;  %v15313_v48 = vld [vmem:[#allocation86_spill] sm:$0xff] }
 0x514   : > { %v13864_v62 = vadd.f32 %v13516_v26, %v5714_v0  ;;  %v5715_v10 = vadd.f32 %v5546_v32, %v15310_v28  ;;  %v15316_v28 = vld [vmem:[#allocation87_spill] sm:$0xff] }
 0x515   : > { %15307 = vst [vmem:[#allocation123_spill] sm:$0xff] %v13858_v41  ;;  %v13870_v17 = vadd.f32 %v13522_v3, %v5717_v39  ;;  %v15314_v41 = vld [vmem:[#allocation192_spill] sm:$0xff] }
 0x516   : > { %15309 = vst [vmem:[#allocation104_spill] sm:$0xff] %v13864_v62  ;;  %v13875_v61 = vadd.f32 %v13531_v21, %v5715_v10  ;;  %v15317_v10 = vld [vmem:[#allocation169_spill] sm:$0xff] }
 0x517   : > { %15311 = vst [vmem:[#allocation15_spill] sm:$0xff] %v13870_v17 }
 0x518   : > { %15312 = vst [vmem:[#allocation136_spill] sm:$0xff] %v13875_v61  ;;  %v10464_v53 = vpop.f32.mrb[16].mxu1  ;;  %v13879_v0 = vpop.f32.mrb[100].mxu0 }
 0x519   : > { %v5720_v51 = vadd.f32 %v10464_v53, %v15313_v48  ;;  %v5559_v8 = vpop.f32.mrb[17].mxu1  ;;  %v13885_v17 = vpop.f32.mrb[101].mxu0 }
 0x51a   : > { %v5718_v5 = vadd.f32 %v5559_v8, %v15314_v41  ;;  %v10465_v26 = vpop.f32.mrb[18].mxu1  ;;  %v13891_v53 = vpop.f32.mrb[102].mxu0  ;;  %v15320_v8 = vld [vmem:[#allocation48_spill] sm:$0xff] }
 0x51b   : > { %v13882_v32 = vadd.f32 %v13539_v58, %v5720_v51  ;;  %v5721_v3 = vadd.f32 %v10465_v26, %v15316_v28  ;;  %v5562_v39 = vpop.f32.mrb[19].mxu1  ;;  %v13896_v48 = vpop.f32.mrb[103].mxu0 }
 0x51c   : > { %v13888_v21 = vadd.f32 %v13545_v45, %v5718_v5  ;;  %v5719_v61 = vadd.f32 %v5562_v39, %v15317_v10  ;;  %v15323_v10 = vld [vmem:[#allocation171_spill] sm:$0xff] }
 0x51d   : > { %15315 = vst [vmem:[#allocation143_spill] sm:$0xff] %v13882_v32  ;;  %v13894_v41 = vadd.f32 %v13551_v2, %v5721_v3  ;;  %v15321_v32 = vld [vmem:[#allocation170_spill] sm:$0xff] }
 0x51e   : > { %v13899_v58 = vadd.f32 %v13557_v35, %v5719_v61 }
 0x51f   : > { %15318 = vst [vmem:[#allocation111_spill] sm:$0xff] %v13894_v41 }
 0x520   : > { %15319 = vst [vmem:[#allocation22_spill] sm:$0xff] %v13899_v58  ;;  %v10468_v51 = vpop.f32.mrb[20].mxu1  ;;  %v13903_v5 = vpop.f32.mrb[104].mxu0 }
 0x521   : > { %v5724_v26 = vadd.f32 %v10468_v51, %v15320_v8  ;;  %v5575_v28 = vpop.f32.mrb[21].mxu1  ;;  %v13909_v41 = vpop.f32.mrb[105].mxu0 }
 0x522   : > { %v5722_v62 = vadd.f32 %v5575_v28, %v15321_v32  ;;  %v10469_v45 = vpop.f32.mrb[22].mxu1  ;;  %v13915_v51 = vpop.f32.mrb[106].mxu0  ;;  %v15327_v28 = vld [vmem:[#allocation172_spill] sm:$0xff] }
 0x523   : > { %v13906_v39 = vadd.f32 %v13565_v43, %v5724_v26  ;;  %v5725_v2 = vadd.f32 %v10469_v45, %v15323_v10  ;;  %v5578_v3 = vpop.f32.mrb[23].mxu1  ;;  %v13920_v8 = vpop.f32.mrb[107].mxu0 }
 0x524   : > { %v13912_v35 = vadd.f32 %v13571_v40, %v5722_v62  ;;  %v5723_v61 = vadd.f32 %v5578_v3, %v13505_v14  ;;  %v15330_v3 = vld [vmem:[#allocation93_spill] sm:$0xff] }
 0x525   : > { %15322 = vst [vmem:[#allocation145_spill] sm:$0xff] %v13906_v39  ;;  %v13918_v32 = vadd.f32 %v13577_v56, %v5725_v2  ;;  %v15328_v39 = vld [vmem:[#allocation92_spill] sm:$0xff] }
 0x526   : > { %15324 = vst [vmem:[#allocation106_spill] sm:$0xff] %v13912_v35  ;;  %v13923_v43 = vadd.f32 %v13586_v23, %v5723_v61  ;;  %v15332_v61 = vld [vmem:[#allocation54_spill] sm:$0xff] }
 0x527   : > { %15325 = vst [vmem:[#allocation13_spill] sm:$0xff] %v13918_v32 }
 0x528   : > { %15326 = vst [vmem:[#allocation71_spill] sm:$0xff] %v13923_v43  ;;  %v10472_v26 = vpop.f32.mrb[24].mxu1  ;;  %v13927_v62 = vpop.f32.mrb[108].mxu0 }
 0x529   : > { %v5728_v45 = vadd.f32 %v10472_v26, %v15327_v28  ;;  %v5591_v10 = vpop.f32.mrb[25].mxu1  ;;  %v13933_v32 = vpop.f32.mrb[109].mxu0 }
 0x52a   : > { %v5726_v58 = vadd.f32 %v5591_v10, %v15328_v39  ;;  %v10473_v40 = vpop.f32.mrb[26].mxu1  ;;  %v13939_v26 = vpop.f32.mrb[110].mxu0  ;;  %v15335_v10 = vld [vmem:[#allocation178_spill] sm:$0xff] }
 0x52b   : > { %v13930_v14 = vadd.f32 %v13594_v47, %v5728_v45  ;;  %v5729_v56 = vadd.f32 %v10473_v40, %v15330_v3  ;;  %v5594_v2 = vpop.f32.mrb[27].mxu1  ;;  %v13944_v28 = vpop.f32.mrb[111].mxu0 }
 0x52c   : > { %v13936_v23 = vadd.f32 %v13600_v50, %v5726_v58  ;;  %v5727_v43 = vadd.f32 %v5594_v2, %v15332_v61  ;;  %v15338_v61 = vld [vmem:[#allocation52_spill] sm:$0xff] }
 0x52d   : > { %15329 = vst [vmem:[#allocation16_spill] sm:$0xff] %v13930_v14  ;;  %v13942_v39 = vadd.f32 %v13606_v29, %v5729_v56  ;;  %v15336_v14 = vld [vmem:[#allocation191_spill] sm:$0xff] }
 0x52e   : > { %15331 = vst [vmem:[#allocation150_spill] sm:$0xff] %v13936_v23  ;;  %v13947_v47 = vadd.f32 %v13612_v31, %v5727_v43  ;;  %v15354_v23 = vld [vmem:[#allocation53_spill] sm:$0xff] }
 0x52f   : > { %15333 = vst [vmem:[#allocation120_spill] sm:$0xff] %v13942_v39 }
 0x530   : > { %15334 = vst [vmem:[#allocation152_spill] sm:$0xff] %v13947_v47  ;;  %v10476_v45 = vpop.f32.mrb[28].mxu1  ;;  %v13951_v58 = vpop.f32.mrb[112].mxu0  ;;  %v15351_v47 = vld [vmem:[#allocation89_spill] sm:$0xff] }
 0x531   : > { %v5732_v40 = vadd.f32 %v10476_v45, %v15335_v10  ;;  %v5607_v3 = vpop.f32.mrb[29].mxu1  ;;  %v13957_v39 = vpop.f32.mrb[113].mxu0 }
 0x532   : > { %v5730_v35 = vadd.f32 %v5607_v3, %v15336_v14  ;;  %v10477_v50 = vpop.f32.mrb[30].mxu1  ;;  %v13963_v45 = vpop.f32.mrb[114].mxu0 }
 0x533   : > { %v13954_v2 = vadd.f32 %v13620_v55, %v5732_v40  ;;  %v5733_v29 = vadd.f32 %v10477_v50, %v15338_v61  ;;  %v5610_v56 = vpop.f32.mrb[31].mxu1  ;;  %v13968_v10 = vpop.f32.mrb[115].mxu0 }
 0x534   : > { %v13960_v31 = vadd.f32 %v13626_v7, %v5730_v35  ;;  %v5731_v43 = vadd.f32 %v5610_v56, %v13560_v59  ;;  %v15342_v59 = vld [vmem:[#allocation59_spill] sm:$0xff] }
 0x535   : > { %15337 = vst [vmem:[#allocation112_spill] sm:$0xff] %v13954_v2  ;;  %v13966_v14 = vadd.f32 %v13632_v38, %v5733_v29  ;;  %v15346_v2 = vld [vmem:[#allocation57_spill] sm:$0xff] }
 0x536   : > { %15339 = vst [vmem:[#allocation19_spill] sm:$0xff] %v13960_v31  ;;  %v13971_v55 = vadd.f32 %v13641_v22, %v5731_v43  ;;  %v15344_v31 = vld [vmem:[#allocation179_spill] sm:$0xff] }
 0x537   : > { %15340 = vst [vmem:[#allocation17_spill] sm:$0xff] %v13966_v14  ;;  %v15348_v43 = vld [vmem:[#allocation55_spill] sm:$0xff] }
 0x538   : > { %15341 = vst [vmem:[#allocation142_spill] sm:$0xff] %v13971_v55  ;;  %v10480_v40 = vpop.f32.mrb[32].mxu1  ;;  %v13975_v35 = vpop.f32.mrb[116].mxu0 }
 0x539   : > { %v5736_v3 = vadd.f32 %v10480_v40, %v13568_v54  ;;  %v5623_v50 = vpop.f32.mrb[33].mxu1  ;;  %v13981_v14 = vpop.f32.mrb[117].mxu0  ;;  %v15349_v40 = vld [vmem:[#allocation102_spill] sm:$0xff] }
 0x53a   : > { %v5734_v61 = vadd.f32 %v5623_v50, %v13574_v30  ;;  %v10481_v7 = vpop.f32.mrb[34].mxu1  ;;  %15345 = vst [vmem:[#allocation144_spill] sm:$0xff] %v13981_v14  ;;  %v13987_v54 = vpop.f32.mrb[118].mxu0 }
 0x53b   : > { %v13978_v56 = vadd.f32 %v15342_v59, %v5736_v3  ;;  %v5737_v38 = vadd.f32 %v10481_v7, %v15344_v31  ;;  %v5626_v29 = vpop.f32.mrb[35].mxu1  ;;  %v13992_v50 = vpop.f32.mrb[119].mxu0  ;;  %v15353_v31 = vld [vmem:[#allocation180_spill] sm:$0xff] }
 0x53c   : > { %v13984_v22 = vadd.f32 %v15346_v2, %v5734_v61  ;;  %v5735_v55 = vadd.f32 %v5626_v29, %v15348_v43  ;;  %v15356_v43 = vld [vmem:[#allocation181_spill] sm:$0xff] }
 0x53d   : > { %15343 = vst [vmem:[#allocation114_spill] sm:$0xff] %v13978_v56  ;;  %v13990_v30 = vadd.f32 %v15349_v40, %v5737_v38 }
 0x53e   : > { %15347 = vst [vmem:[#allocation159_spill] sm:$0xff] %v13984_v22  ;;  %v13995_v3 = vadd.f32 %v15351_v47, %v5735_v55  ;;  %v15358_v55 = vld [vmem:[#allocation58_spill] sm:$0xff] }
 0x53f   : > { %15350 = vst [vmem:[#allocation26_spill] sm:$0xff] %v13990_v30 }
 0x540   : > { %15352 = vst [vmem:[#allocation161_spill] sm:$0xff] %v13995_v3  ;;  %v10484_v59 = vpop.f32.mrb[36].mxu1  ;;  %v13999_v61 = vpop.f32.mrb[120].mxu0 }
 0x541   : > { %v5740_v7 = vadd.f32 %v10484_v59, %v15353_v31  ;;  %v5639_v56 = vpop.f32.mrb[37].mxu1  ;;  %v14005_v30 = vpop.f32.mrb[121].mxu0 }
 0x542   : > { %v5738_v14 = vadd.f32 %v5639_v56, %v15354_v23  ;;  %v10485_v2 = vpop.f32.mrb[38].mxu1  ;;  %v14011_v59 = vpop.f32.mrb[122].mxu0 }
 0x543   : > { %v14002_v29 = vadd.f32 %v13675_v12, %v5740_v7  ;;  %v5741_v38 = vadd.f32 %v10485_v2, %v15356_v43  ;;  %v5642_v40 = vpop.f32.mrb[39].mxu1  ;;  %v14016_v56 = vpop.f32.mrb[123].mxu0  ;;  %v15361_v7 = vld [vmem:[#allocation185_spill] sm:$0xff] }
 0x544   : > { %v14008_v47 = vadd.f32 %v13681_v46, %v5738_v14  ;;  %v5739_v3 = vadd.f32 %v5642_v40, %v15358_v55  ;;  %v15364_v55 = vld [vmem:[#allocation186_spill] sm:$0xff] }
 0x545   : > { %15355 = vst [vmem:[#allocation135_spill] sm:$0xff] %v14002_v29  ;;  %v14014_v23 = vadd.f32 %v13687_v6, %v5741_v38  ;;  %v15362_v29 = vld [vmem:[#allocation56_spill] sm:$0xff] }
 0x546   : > { %15357 = vst [vmem:[#allocation72_spill] sm:$0xff] %v14008_v47  ;;  %v14019_v12 = vadd.f32 %v13693_v27, %v5739_v3  ;;  %v15366_v3 = vld [vmem:[#allocation197_spill] sm:$0xff] }
 0x547   : > { %15359 = vst [vmem:[#allocation73_spill] sm:$0xff] %v14014_v23 }
 0x548   : > { %15360 = vst [vmem:[#allocation118_spill] sm:$0xff] %v14019_v12  ;;  %v10488_v31 = vpop.f32.mrb[40].mxu1  ;;  %v14023_v14 = vpop.f32.mrb[124].mxu0 }
 0x549   : > { %v5744_v2 = vadd.f32 %v10488_v31, %v15361_v7  ;;  %v5655_v43 = vpop.f32.mrb[41].mxu1  ;;  %v14029_v23 = vpop.f32.mrb[125].mxu0 }
 0x54a   : > { %v5742_v22 = vadd.f32 %v5655_v43, %v15362_v29  ;;  %v10489_v46 = vpop.f32.mrb[42].mxu1  ;;  %v14035_v31 = vpop.f32.mrb[126].mxu0  ;;  %v15370_v43 = vld [vmem:[#allocation187_spill] sm:$0xff] }
 0x54b   : > { %v14026_v40 = vadd.f32 %v13701_v37, %v5744_v2  ;;  %v5745_v6 = vadd.f32 %v10489_v46, %v15364_v55  ;;  %v5658_v38 = vpop.f32.mrb[43].mxu1  ;;  %v14040_v7 = vpop.f32.mrb[127].mxu0 }
 0x54c   : > { %v14032_v27 = vadd.f32 %v13710_v24, %v5742_v22  ;;  %v5743_v12 = vadd.f32 %v5658_v38, %v15366_v3  ;;  %15368 = vst [vmem:[#allocation20_spill] sm:$0xff] %v14040_v7  ;;  %v15374_v3 = vld [vmem:[#allocation103_spill] sm:$0xff] }
 0x54d   : > { %15363 = vst [vmem:[#allocation166_spill] sm:$0xff] %v14026_v40  ;;  %v14038_v29 = vadd.f32 %v13716_v60, %v5745_v6  ;;  %v15371_v40 = vld [vmem:[#allocation188_spill] sm:$0xff] }
 0x54e   : > { %15365 = vst [vmem:[#allocation128_spill] sm:$0xff] %v14032_v27  ;;  %v14043_v37 = vadd.f32 %v13722_v19, %v5743_v12 }
 0x54f   : > { %15367 = vst [vmem:[#allocation168_spill] sm:$0xff] %v14038_v29 }
 0x550   : > { %15369 = vst [vmem:[#allocation119_spill] sm:$0xff] %v14043_v37  ;;  %v10492_v2 = vpop.f32.mrb[44].mxu1  ;;  %v14047_v22 = vpop.f32.mrb[128].mxu0 }
 0x551   : > { %v5748_v46 = vadd.f32 %v10492_v2, %v15370_v43  ;;  %v5671_v55 = vpop.f32.mrb[45].mxu1  ;;  %15372 = vst [vmem:[#allocation23_spill] sm:$0xff] %v14047_v22  ;;  %v14053_v29 = vpop.f32.mrb[129].mxu0 }
 0x552   : > { %v5746_v47 = vadd.f32 %v5671_v55, %v15371_v40  ;;  %v10493_v24 = vpop.f32.mrb[46].mxu1  ;;  %15375 = vst [vmem:[#allocation21_spill] sm:$0xff] %v14053_v29  ;;  %v14059_v2 = vpop.f32.mrb[130].mxu0  ;;  %v15380_v55 = vld [vmem:[#allocation115_spill] sm:$0xff] }
 0x553   : > { %v14050_v38 = vadd.f32 %v13730_v1, %v5748_v46  ;;  %v5749_v60 = vadd.f32 %v10493_v24, %v15374_v3  ;;  %v5674_v6 = vpop.f32.mrb[47].mxu1  ;;  %15377 = vst [vmem:[#allocation175_spill] sm:$0xff] %v14059_v2  ;;  %v14064_v43 = vpop.f32.mrb[131].mxu0  ;;  %v15382_v24 = vld [vmem:[#allocation90_spill] sm:$0xff] }
 0x554   : > { %v14056_v19 = vadd.f32 %v13736_v25, %v5746_v47  ;;  %v5747_v12 = vadd.f32 %v5674_v6, %v13670_v16  ;;  %15379 = vst [vmem:[#allocation177_spill] sm:$0xff] %v14064_v43  ;;  %v14073_v25 = vld [vmem:[%s14479_s4] ss:$0 sm:$0xff] }
 0x555   : > { %15373 = vst [vmem:[#allocation76_spill] sm:$0xff] %v14050_v38  ;;  %v14062_v40 = vadd.f32 %v13742_v36, %v5749_v60  ;;  %v15383_v16 = vld [vmem:[#allocation194_spill] sm:$0xff]  ;;  %v15385_v60 = vld [vmem:[#allocation195_spill] sm:$0xff] }
 0x556   : > { %15376 = vst [vmem:[#allocation77_spill] sm:$0xff] %v14056_v19  ;;  %v14067_v1 = vadd.f32 %v15380_v55, %v5747_v12 }
 0x557   : > { %15378 = vst [vmem:[#allocation131_spill] sm:$0xff] %v14062_v40 }
 0x558   : > { %15381 = vst [vmem:[#allocation121_spill] sm:$0xff] %v14067_v1  ;;  %v10592_v46 = vpop.f32.mrb[48].mxu1  ;;  %v15387_v1 = vld [vmem:[#allocation196_spill] sm:$0xff] }
 0x559   : > { %v6956_v3 = vadd.f32 %v10592_v46, %v15382_v24  ;;  %v6699_v38 = vpop.f32.mrb[49].mxu1  ;;  %v14085_v46 = vld [vmem:[%s14480_s5] ss:$0 sm:$0xff] }
 0x55a   : > { %v6954_v47 = vadd.f32 %v6699_v38, %v15383_v16  ;;  %v10593_v6 = vpop.f32.mrb[50].mxu1  ;;  %v14076_v19 = vpop.f32.mrb[132].mxu0 }
 0x55b   : > { %15384 = vst [vmem:[#allocation74_spill] sm:$0xff] %v14076_v19  ;;  %v7510_v36 = vadd.f32 %v13756_v49, %v6956_v3  ;;  %v6957_v40 = vadd.f32 %v10593_v6, %v15385_v60  ;;  %v6702_v12 = vpop.f32.mrb[51].mxu1  ;;  %v14080_v55 = vpop.f32.mrb[133].mxu0  ;;  %v15390_v60 = vld [vmem:[#allocation95_spill] sm:$0xff] }
 0x55c   : > { %15386 = vst [vmem:[#allocation75_spill] sm:$0xff] %v14080_v55  ;;  %v7508_v24 = vadd.f32 %v13762_v52, %v6954_v47  ;;  %v6955_v37 = vadd.f32 %v6702_v12, %v15387_v1  ;;  %v14089_v38 = vpop.f32.mrb[134].mxu0 }
 0x55d   : > { %15388 = vst [vmem:[#allocation125_spill] sm:$0xff] %v14089_v38  ;;  %v7712_v16 = vmul.f32 %v14073_v25, %v7510_v36  ;;  %v7511_v49 = vadd.f32 %v13768_v13, %v6957_v40  ;;  %v14093_v3 = vpop.f32.mrb[135].mxu0  ;;  %v15391_v36 = vld [vmem:[#allocation198_spill] sm:$0xff] }
 0x55e   : > { %15389 = vst [vmem:[#allocation29_spill] sm:$0xff] %v14093_v3  ;;  %v7710_v6 = vmul.f32 %v14073_v25, %v7508_v24  ;;  %v7509_v27 = vadd.f32 %v15390_v60, %v6955_v37  ;;  %v15392_v3 = vld [vmem:[#allocation108_spill] sm:$0xff] }
 0x55f   : > { %v7783_v55 = vadd.f32 %v14085_v46, %v7712_v16  ;;  %v7713_v19 = vmul.f32 %v14073_v25, %v7511_v49 }
 0x560   : > { %v7781_v52 = vadd.f32 %v14085_v46, %v7710_v6  ;;  %v7711_v1 = vmul.f32 %v14073_v25, %v7509_v27  ;;  %v10596_v47 = vpop.f32.mrb[52].mxu1  ;;  %v15393_v6 = vld [vmem:[#allocation110_spill] sm:$0xff] }
 0x561   : > { %v7784_v12 = vadd.f32 %v14085_v46, %v7713_v19  ;;  %v6960_v38 = vadd.f32 %v10596_v47, %v15391_v36  ;;  %v6715_v13 = vpop.f32.mrb[53].mxu1  ;;  %v7847_v16 = vmax.f32 %v7783_v55, 0.0  ;;  %v15394_v36 = vld [vmem:[#allocation88_spill] sm:$0xff] }
 0x562   : > { %v7782_v40 = vadd.f32 %v14085_v46, %v7711_v1  ;;  %v6958_v24 = vadd.f32 %v6715_v13, %v15392_v3  ;;  %v10597_v43 = vpop.f32.mrb[54].mxu1  ;;  %v14105_v37 = vpop.f32.mrb[136].mxu0  ;;  %v7845_v19 = vmax.f32 %v7781_v52, 0.0 }
 0x563   : > { %v7848_v60 = vmax.f32 %v7784_v12, 0.0  ;;  %v7514_v49 = vadd.f32 %v13782_v42, %v6960_v38  ;;  %v6961_v2 = vadd.f32 %v10597_v43, %v15393_v6  ;;  %v6718_v27 = vpop.f32.mrb[55].mxu1  ;;  %v14109_v29 = vpop.f32.mrb[137].mxu0 }
 0x564   : > { %v7846_v22 = vmax.f32 %v7782_v40, 0.0  ;;  %v7512_v47 = vadd.f32 %v13788_v34, %v6958_v24  ;;  %v6959_v1 = vadd.f32 %v6718_v27, %v15394_v36  ;;  %v14113_v7 = vpop.f32.mrb[138].mxu0 }
 0x565   : > { %v7910_v3 = vpack.c.bf16 %v7848_v60, %v7847_v16  ;;  %v7716_v13 = vmul.f32 %v14073_v25, %v7514_v49  ;;  %v7515_v55 = vadd.f32 %v13794_v63, %v6961_v2  ;;  %v14117_v12 = vpop.f32.mrb[139].mxu0  ;;  %v15396_v63 = vld [vmem:[#allocation60_spill] sm:$0xff] }
 0x566   : > { %15395 = vst [vmem:[#allocation184_spill] sm:$0xff] %v14117_v12  ;;  %v7714_v42 = vmul.f32 %v14073_v25, %v7512_v47  ;;  %v7513_v43 = vadd.f32 %v13800_v9, %v6959_v1  ;;  %v7909_v38 = vpack.c.bf16 %v7846_v22, %v7845_v19  ;;  %v15397_v9 = vld [vmem:[#allocation61_spill] sm:$0xff] }
 0x567   : > { %v7787_v52 = vadd.f32 %v14085_v46, %v7716_v13  ;;  %v7717_v34 = vmul.f32 %v14073_v25, %v7515_v55  ;;  %v15398_v13 = vld [vmem:[#allocation62_spill] sm:$0xff] }
 0x568   : > { %v7785_v40 = vadd.f32 %v14085_v46, %v7714_v42  ;;  %v7715_v24 = vmul.f32 %v14073_v25, %v7513_v43  ;;  %v10600_v16 = vpop.f32.mrb[56].mxu1  ;;  %10750 = vmatprep.mubr.bf16.mxu1 %v7909_v38 }
 0x569   : > { %v7788_v60 = vadd.f32 %v14085_v46, %v7717_v34  ;;  %v6964_v2 = vadd.f32 %v10600_v16, %v15396_v63  ;;  %v6731_v49 = vpop.f32.mrb[57].mxu1  ;;  %10751 = vmatmul.mubr.bf16.vlgmr.msra.gmra.mrb[112].mxu1 %v7910_v3  ;;  %v7851_v47 = vmax.f32 %v7787_v52, 0.0  ;;  %v15400_v16 = vld [vmem:[#allocation97_spill] sm:$0xff] }
 0x56a   : > { %v7786_v6 = vadd.f32 %v14085_v46, %v7715_v24  ;;  %v6962_v22 = vadd.f32 %v6731_v49, %v15397_v9  ;;  %v10601_v27 = vpop.f32.mrb[58].mxu1  ;;  %v14129_v19 = vpop.f32.mrb[140].mxu0  ;;  %v7849_v38 = vmax.f32 %v7785_v40, 0.0  ;;  %v15401_v63 = vld [vmem:[#allocation117_spill] sm:$0xff] }
 0x56b   : > { %v7852_v36 = vmax.f32 %v7788_v60, 0.0  ;;  %v7518_v1 = vadd.f32 %v13807_v44, %v6964_v2  ;;  %v6965_v55 = vadd.f32 %v10601_v27, %v15398_v13  ;;  %v6734_v42 = vpop.f32.mrb[59].mxu1  ;;  %v14133_v43 = vpop.f32.mrb[141].mxu0  ;;  %v15404_v2 = vld [vmem:[#allocation14_spill] sm:$0xff] }
 0x56c   : > { %15399 = vst [vmem:[#allocation24_spill] sm:$0xff] %v14133_v43  ;;  %v7850_v34 = vmax.f32 %v7786_v6, 0.0  ;;  %v7516_v3 = vadd.f32 %v15400_v16, %v6962_v22  ;;  %v6963_v24 = vadd.f32 %v6734_v42, %v15401_v63  ;;  %v14137_v12 = vpop.f32.mrb[142].mxu0  ;;  %v15410_v43 = vld [vmem:[#allocation122_spill] sm:$0xff] }
 0x56d   : > { %15402 = vst [vmem:[#allocation127_spill] sm:$0xff] %v14137_v12  ;;  %v7912_v49 = vpack.c.bf16 %v7852_v36, %v7851_v47  ;;  %v7720_v9 = vmul.f32 %v14073_v25, %v7518_v1  ;;  %v7519_v52 = vadd.f32 %v13819_v18, %v6965_v55  ;;  %v14141_v60 = vpop.f32.mrb[143].mxu0  ;;  %v15405_v18 = vld [vmem:[#allocation91_spill] sm:$0xff]  ;;  %v15409_v12 = vld [vmem:[#allocation69_spill] sm:$0xff] }
 0x56e   : > { %15403 = vst [vmem:[#allocation27_spill] sm:$0xff] %v14141_v60  ;;  %v7718_v44 = vmul.f32 %v14073_v25, %v7516_v3  ;;  %v7517_v27 = vadd.f32 %v15404_v2, %v6963_v24  ;;  %v7911_v13 = vpack.c.bf16 %v7850_v34, %v7849_v38  ;;  %v15406_v3 = vld [vmem:[#allocation109_spill] sm:$0xff] }
 0x56f   : > { %v7791_v40 = vadd.f32 %v14085_v46, %v7720_v9  ;;  %v7721_v6 = vmul.f32 %v14073_v25, %v7519_v52  ;;  %v15407_v9 = vld [vmem:[#allocation98_spill] sm:$0xff] }
 0x570   : > { %v7789_v22 = vadd.f32 %v14085_v46, %v7718_v44  ;;  %v7719_v42 = vmul.f32 %v14073_v25, %v7517_v27  ;;  %v10604_v47 = vpop.f32.mrb[60].mxu1  ;;  %10754 = vmatprep.mubr.bf16.mxu1 %v7911_v13  ;;  %v15408_v44 = vld [vmem:[#allocation94_spill] sm:$0xff] }
 0x571   : > { %v7792_v36 = vadd.f32 %v14085_v46, %v7721_v6  ;;  %v6968_v1 = vadd.f32 %v10604_v47, %v15405_v18  ;;  %v6747_v55 = vpop.f32.mrb[61].mxu1  ;;  %10755 = vmatmul.mubr.bf16.gmra.mrb[116].mxu1 %v7912_v49  ;;  %v7855_v63 = vmax.f32 %v7791_v40, 0.0 }
 0x572   : > { %v7790_v16 = vadd.f32 %v14085_v46, %v7719_v42  ;;  %v6966_v38 = vadd.f32 %v6747_v55, %v15406_v3  ;;  %v10605_v34 = vpop.f32.mrb[62].mxu1  ;;  %v7853_v60 = vmax.f32 %v7789_v22, 0.0 }
 0x573   : > { %v7856_v24 = vmax.f32 %v7792_v36, 0.0  ;;  %v7522_v52 = vadd.f32 %v15407_v9, %v6968_v1  ;;  %v6969_v2 = vadd.f32 %v10605_v34, %v15408_v44  ;;  %v6750_v27 = vpop.f32.mrb[63].mxu1 }
 0x574   : > { %v7854_v13 = vmax.f32 %v7790_v16, 0.0  ;;  %v7520_v6 = vadd.f32 %v15409_v12, %v6966_v38  ;;  %v6967_v47 = vadd.f32 %v6750_v27, %v15410_v43  ;;  %v15411_v38 = vld [vmem:[#allocation12_spill] sm:$0xff] }
 0x575   : > { %v7914_v18 = vpack.c.bf16 %v7856_v24, %v7855_v63  ;;  %v7724_v49 = vmul.f32 %v14073_v25, %v7522_v52  ;;  %v7523_v42 = vadd.f32 %v13843_v11, %v6969_v2  ;;  %v15413_v2 = vld [vmem:[#allocation126_spill] sm:$0xff] }
 0x576   : > { %v7722_v55 = vmul.f32 %v14073_v25, %v7520_v6  ;;  %v7521_v40 = vadd.f32 %v13848_v15, %v6967_v47  ;;  %v7913_v36 = vpack.c.bf16 %v7854_v13, %v7853_v60  ;;  %v15412_v15 = vld [vmem:[#allocation124_spill] sm:$0xff] }
 0x577   : > { %v7795_v1 = vadd.f32 %v14085_v46, %v7724_v49  ;;  %v7725_v3 = vmul.f32 %v14073_v25, %v7523_v42  ;;  %v15414_v42 = vld [vmem:[#allocation65_spill] sm:$0xff] }
 0x578   : > { %v7793_v22 = vadd.f32 %v14085_v46, %v7722_v55  ;;  %v7723_v12 = vmul.f32 %v14073_v25, %v7521_v40  ;;  %v10608_v16 = vpop.f32.mrb[64].mxu1  ;;  %10758 = vmatprep.mubr.bf16.mxu1 %v7913_v36 }
 0x579   : > { %v7796_v43 = vadd.f32 %v14085_v46, %v7725_v3  ;;  %v6972_v34 = vadd.f32 %v10608_v16, %v15411_v38  ;;  %v6763_v11 = vpop.f32.mrb[65].mxu1  ;;  %10759 = vmatmul.mubr.bf16.gmra.mrb[120].mxu1 %v7914_v18  ;;  %v7859_v9 = vmax.f32 %v7795_v1, 0.0 }
 0x57a   : > { %v7794_v63 = vadd.f32 %v14085_v46, %v7723_v12  ;;  %v6970_v60 = vadd.f32 %v6763_v11, %v15412_v15  ;;  %v10609_v24 = vpop.f32.mrb[66].mxu1  ;;  %v7857_v6 = vmax.f32 %v7793_v22, 0.0 }
 0x57b   : > { %v7860_v52 = vmax.f32 %v7796_v43, 0.0  ;;  %v7526_v44 = vadd.f32 %v13855_v20, %v6972_v34  ;;  %v6973_v27 = vadd.f32 %v10609_v24, %v15413_v2  ;;  %v6766_v13 = vpop.f32.mrb[67].mxu1  ;;  %v15415_v34 = vld [vmem:[#allocation96_spill] sm:$0xff] }
 0x57c   : > { %v7858_v47 = vmax.f32 %v7794_v63, 0.0  ;;  %v7524_v49 = vadd.f32 %v13861_v4, %v6970_v60  ;;  %v6971_v55 = vadd.f32 %v6766_v13, %v15414_v42 }
 0x57d   : > { %v7916_v40 = vpack.c.bf16 %v7860_v52, %v7859_v9  ;;  %v7728_v18 = vmul.f32 %v14073_v25, %v7526_v44  ;;  %v7527_v36 = vadd.f32 %v13867_v57, %v6973_v27  ;;  %v15417_v44 = vld [vmem:[#allocation130_spill] sm:$0xff] }
 0x57e   : > { %v7726_v3 = vmul.f32 %v14073_v25, %v7524_v49  ;;  %v7525_v1 = vadd.f32 %v13872_v33, %v6971_v55  ;;  %v7915_v12 = vpack.c.bf16 %v7858_v47, %v7857_v6  ;;  %v15416_v33 = vld [vmem:[#allocation67_spill] sm:$0xff]  ;;  %v15418_v49 = vld [vmem:[#allocation105_spill] sm:$0xff] }
 0x57f   : > { %v7799_v20 = vadd.f32 %v14085_v46, %v7728_v18  ;;  %v7729_v16 = vmul.f32 %v14073_v25, %v7527_v36 }
 0x580   : > { %v7797_v22 = vadd.f32 %v14085_v46, %v7726_v3  ;;  %v7727_v4 = vmul.f32 %v14073_v25, %v7525_v1  ;;  %v10612_v43 = vpop.f32.mrb[68].mxu1  ;;  %10762 = vmatprep.mubr.bf16.mxu1 %v7915_v12 }
 0x581   : > { %v7800_v38 = vadd.f32 %v14085_v46, %v7729_v16  ;;  %v6976_v11 = vadd.f32 %v10612_v43, %v15415_v34  ;;  %v6779_v57 = vpop.f32.mrb[69].mxu1  ;;  %10763 = vmatmul.mubr.bf16.gmra.mrb[124].mxu1 %v7916_v40  ;;  %v7863_v24 = vmax.f32 %v7799_v20, 0.0 }
 0x582   : > { %v7798_v63 = vadd.f32 %v14085_v46, %v7727_v4  ;;  %v6974_v15 = vadd.f32 %v6779_v57, %v15416_v33  ;;  %v10613_v60 = vpop.f32.mrb[70].mxu1  ;;  %v7861_v13 = vmax.f32 %v7797_v22, 0.0  ;;  %v15419_v4 = vld [vmem:[#allocation68_spill] sm:$0xff] }
 0x583   : > { %v7864_v9 = vmax.f32 %v7800_v38, 0.0  ;;  %v7530_v52 = vadd.f32 %v13879_v0, %v6976_v11  ;;  %v6977_v2 = vadd.f32 %v10613_v60, %v15417_v44  ;;  %v6782_v27 = vpop.f32.mrb[71].mxu1 }
 0x584   : > { %v7862_v6 = vmax.f32 %v7798_v63, 0.0  ;;  %v7528_v47 = vadd.f32 %v13885_v17, %v6974_v15  ;;  %v6975_v42 = vadd.f32 %v6782_v27, %v15418_v49  ;;  %v15421_v15 = vld [vmem:[#allocation137_spill] sm:$0xff] }
 0x585   : > { %v7918_v55 = vpack.c.bf16 %v7864_v9, %v7863_v24  ;;  %v7732_v40 = vmul.f32 %v14073_v25, %v7530_v52  ;;  %v7531_v18 = vadd.f32 %v13891_v53, %v6977_v2  ;;  %v15422_v2 = vld [vmem:[#allocation101_spill] sm:$0xff] }
 0x586   : > { %v7730_v36 = vmul.f32 %v14073_v25, %v7528_v47  ;;  %v7529_v3 = vadd.f32 %v13896_v48, %v6975_v42  ;;  %v7917_v1 = vpack.c.bf16 %v7862_v6, %v7861_v13  ;;  %v15420_v48 = vld [vmem:[#allocation70_spill] sm:$0xff] }
 0x587   : > { %v7803_v0 = vadd.f32 %v14085_v46, %v7732_v40  ;;  %v7733_v12 = vmul.f32 %v14073_v25, %v7531_v18 }
 0x588   : > { %v7801_v20 = vadd.f32 %v14085_v46, %v7730_v36  ;;  %v7731_v17 = vmul.f32 %v14073_v25, %v7529_v3  ;;  %v10616_v16 = vpop.f32.mrb[72].mxu1  ;;  %10766 = vmatprep.mubr.bf16.mxu1 %v7917_v1  ;;  %v15423_v1 = vld [vmem:[#allocation123_spill] sm:$0xff] }
 0x589   : > { %v7804_v22 = vadd.f32 %v14085_v46, %v7733_v12  ;;  %v6980_v43 = vadd.f32 %v10616_v16, %v15419_v4  ;;  %v6795_v53 = vpop.f32.mrb[73].mxu1  ;;  %10767 = vmatmul.mubr.bf16.gmra.mrb[128].mxu1 %v7918_v55  ;;  %v7867_v57 = vmax.f32 %v7803_v0, 0.0 }
 0x58a   : > { %v7802_v38 = vadd.f32 %v14085_v46, %v7731_v17  ;;  %v6978_v34 = vadd.f32 %v6795_v53, %v15420_v48  ;;  %v10617_v11 = vpop.f32.mrb[74].mxu1  ;;  %v7865_v9 = vmax.f32 %v7801_v20, 0.0 }
 0x58b   : > { %v7868_v63 = vmax.f32 %v7804_v22, 0.0  ;;  %v7534_v33 = vadd.f32 %v13903_v5, %v6980_v43  ;;  %v6981_v60 = vadd.f32 %v10617_v11, %v15421_v15  ;;  %v6798_v24 = vpop.f32.mrb[75].mxu1  ;;  %v15425_v43 = vld [vmem:[#allocation15_spill] sm:$0xff] }
 0x58c   : > { %v7866_v52 = vmax.f32 %v7802_v38, 0.0  ;;  %v7532_v44 = vadd.f32 %v13909_v41, %v6978_v34  ;;  %v6979_v27 = vadd.f32 %v6798_v24, %v15422_v2 }
 0x58d   : > { %v7920_v13 = vpack.c.bf16 %v7868_v63, %v7867_v57  ;;  %v7736_v6 = vmul.f32 %v14073_v25, %v7534_v33  ;;  %v7535_v47 = vadd.f32 %v13915_v51, %v6981_v60  ;;  %v15426_v57 = vld [vmem:[#allocation136_spill] sm:$0xff] }
 0x58e   : > { %v7734_v49 = vmul.f32 %v14073_v25, %v7532_v44  ;;  %v7533_v42 = vadd.f32 %v13920_v8, %v6979_v27  ;;  %v7919_v55 = vpack.c.bf16 %v7866_v52, %v7865_v9  ;;  %v15424_v8 = vld [vmem:[#allocation104_spill] sm:$0xff] }
 0x58f   : > { %v7807_v5 = vadd.f32 %v14085_v46, %v7736_v6  ;;  %v7737_v40 = vmul.f32 %v14073_v25, %v7535_v47  ;;  %v15427_v6 = vld [vmem:[#allocation143_spill] sm:$0xff] }
 0x590   : > { %v7805_v18 = vadd.f32 %v14085_v46, %v7734_v49  ;;  %v7735_v41 = vmul.f32 %v14073_v25, %v7533_v42  ;;  %v10620_v36 = vpop.f32.mrb[76].mxu1  ;;  %10770 = vmatprep.mubr.bf16.mxu1 %v7919_v55 }
 0x591   : > { %v7808_v3 = vadd.f32 %v14085_v46, %v7737_v40  ;;  %v6984_v0 = vadd.f32 %v10620_v36, %v15423_v1  ;;  %v6811_v51 = vpop.f32.mrb[77].mxu1  ;;  %10771 = vmatmul.mubr.bf16.gmra.mrb[132].mxu1 %v7920_v13  ;;  %v7871_v16 = vmax.f32 %v7807_v5, 0.0 }
 0x592   : > { %v7806_v12 = vadd.f32 %v14085_v46, %v7735_v41  ;;  %v6982_v20 = vadd.f32 %v6811_v51, %v15424_v8  ;;  %v10621_v17 = vpop.f32.mrb[78].mxu1  ;;  %v7869_v48 = vmax.f32 %v7805_v18, 0.0  ;;  %v15428_v18 = vld [vmem:[#allocation111_spill] sm:$0xff]  ;;  %v15429_v51 = vld [vmem:[#allocation22_spill] sm:$0xff] }
 0x593   : > { %v7872_v22 = vmax.f32 %v7808_v3, 0.0  ;;  %v7538_v4 = vadd.f32 %v13927_v62, %v6984_v0  ;;  %v6985_v53 = vadd.f32 %v10621_v17, %v15425_v43  ;;  %v6814_v38 = vpop.f32.mrb[79].mxu1 }
 0x594   : > { %v7870_v34 = vmax.f32 %v7806_v12, 0.0  ;;  %v7536_v11 = vadd.f32 %v13933_v32, %v6982_v20  ;;  %v6983_v63 = vadd.f32 %v6814_v38, %v15426_v57 }
 0x595   : > { %v7922_v33 = vpack.c.bf16 %v7872_v22, %v7871_v16  ;;  %v7740_v15 = vmul.f32 %v14073_v25, %v7538_v4  ;;  %v7539_v60 = vadd.f32 %v13939_v26, %v6985_v53 }
 0x596   : > { %v7738_v24 = vmul.f32 %v14073_v25, %v7536_v11  ;;  %v7537_v9 = vadd.f32 %v13944_v28, %v6983_v63  ;;  %v7921_v52 = vpack.c.bf16 %v7870_v34, %v7869_v48  ;;  %v15430_v48 = vld [vmem:[#allocation145_spill] sm:$0xff] }
 0x597   : > { %v7811_v62 = vadd.f32 %v14085_v46, %v7740_v15  ;;  %v7741_v44 = vmul.f32 %v14073_v25, %v7539_v60 }
 0x598   : > { %v7809_v2 = vadd.f32 %v14085_v46, %v7738_v24  ;;  %v7739_v32 = vmul.f32 %v14073_v25, %v7537_v9  ;;  %v10624_v27 = vpop.f32.mrb[80].mxu1  ;;  %10774 = vmatprep.mubr.bf16.mxu1 %v7921_v52  ;;  %v15432_v24 = vld [vmem:[#allocation13_spill] sm:$0xff] }
 0x599   : > { %v7812_v13 = vadd.f32 %v14085_v46, %v7741_v44  ;;  %v6988_v47 = vadd.f32 %v10624_v27, %v15427_v6  ;;  %v6827_v26 = vpop.f32.mrb[81].mxu1  ;;  %10775 = vmatmul.mubr.bf16.gmra.mrb[136].mxu1 %v7922_v33  ;;  %v7875_v55 = vmax.f32 %v7811_v62, 0.0  ;;  %v15434_v27 = vld [vmem:[#allocation71_spill] sm:$0xff] }
 0x59a   : > { %v7810_v49 = vadd.f32 %v14085_v46, %v7739_v32  ;;  %v6986_v28 = vadd.f32 %v6827_v26, %v13888_v21  ;;  %v10625_v42 = vpop.f32.mrb[82].mxu1  ;;  %v7873_v3 = vmax.f32 %v7809_v2, 0.0  ;;  %v15433_v2 = vld [vmem:[#allocation144_spill] sm:$0xff] }
 0x59b   : > { %v7876_v5 = vmax.f32 %v7812_v13, 0.0  ;;  %v7542_v40 = vadd.f32 %v13951_v58, %v6988_v47  ;;  %v6989_v41 = vadd.f32 %v10625_v42, %v15428_v18  ;;  %v6830_v36 = vpop.f32.mrb[83].mxu1 }
 0x59c   : > { %v7874_v1 = vmax.f32 %v7810_v49, 0.0  ;;  %v7540_v0 = vadd.f32 %v13957_v39, %v6986_v28  ;;  %v6987_v12 = vadd.f32 %v6830_v36, %v15429_v51  ;;  %v15435_v36 = vld [vmem:[#allocation16_spill] sm:$0xff] }
 0x59d   : > { %v7924_v8 = vpack.c.bf16 %v7876_v5, %v7875_v55  ;;  %v7744_v20 = vmul.f32 %v14073_v25, %v7542_v40  ;;  %v7543_v17 = vadd.f32 %v13963_v45, %v6989_v41 }
 0x59e   : > { %v7742_v21 = vmul.f32 %v14073_v25, %v7540_v0  ;;  %v7541_v16 = vadd.f32 %v13968_v10, %v6987_v12  ;;  %v7923_v22 = vpack.c.bf16 %v7874_v1, %v7873_v3  ;;  %v15431_v10 = vld [vmem:[#allocation106_spill] sm:$0xff] }
 0x59f   : > { %v7815_v58 = vadd.f32 %v14085_v46, %v7744_v20  ;;  %v7745_v4 = vmul.f32 %v14073_v25, %v7543_v17  ;;  %v15437_v17 = vld [vmem:[#allocation120_spill] sm:$0xff] }
 0x5a0   : > { %v7813_v43 = vadd.f32 %v14085_v46, %v7742_v21  ;;  %v7743_v39 = vmul.f32 %v14073_v25, %v7541_v16  ;;  %v10628_v53 = vpop.f32.mrb[84].mxu1  ;;  %10778 = vmatprep.mubr.bf16.mxu1 %v7923_v22 }
 0x5a1   : > { %v7816_v38 = vadd.f32 %v14085_v46, %v7745_v4  ;;  %v6992_v34 = vadd.f32 %v10628_v53, %v15430_v48  ;;  %v6843_v45 = vpop.f32.mrb[85].mxu1  ;;  %10779 = vmatmul.mubr.bf16.gmra.mrb[140].mxu1 %v7924_v8  ;;  %v7879_v33 = vmax.f32 %v7815_v58, 0.0 }
 0x5a2   : > { %v7814_v11 = vadd.f32 %v14085_v46, %v7743_v39  ;;  %v6990_v57 = vadd.f32 %v6843_v45, %v15431_v10  ;;  %v10629_v63 = vpop.f32.mrb[86].mxu1  ;;  %v7877_v62 = vmax.f32 %v7813_v43, 0.0  ;;  %v15438_v43 = vld [vmem:[#allocation152_spill] sm:$0xff] }
 0x5a3   : > { %v7880_v15 = vmax.f32 %v7816_v38, 0.0  ;;  %v7546_v60 = vadd.f32 %v13975_v35, %v6992_v34  ;;  %v6993_v9 = vadd.f32 %v10629_v63, %v15432_v24  ;;  %v6846_v52 = vpop.f32.mrb[87].mxu1 }
 0x5a4   : > { %v7878_v44 = vmax.f32 %v7814_v11, 0.0  ;;  %v7544_v32 = vadd.f32 %v15433_v2, %v6990_v57  ;;  %v6991_v13 = vadd.f32 %v6846_v52, %v15434_v27 }
 0x5a5   : > { %v7926_v6 = vpack.c.bf16 %v7880_v15, %v7879_v33  ;;  %v7748_v47 = vmul.f32 %v14073_v25, %v7546_v60  ;;  %v7547_v26 = vadd.f32 %v13987_v54, %v6993_v9  ;;  %v15439_v15 = vld [vmem:[#allocation112_spill] sm:$0xff] }
 0x5a6   : > { %v7746_v49 = vmul.f32 %v14073_v25, %v7544_v32  ;;  %v7545_v28 = vadd.f32 %v13992_v50, %v6991_v13  ;;  %v7925_v42 = vpack.c.bf16 %v7878_v44, %v7877_v62  ;;  %v15436_v50 = vld [vmem:[#allocation150_spill] sm:$0xff]  ;;  %v15441_v32 = vld [vmem:[#allocation17_spill] sm:$0xff] }
 0x5a7   : > { %v7819_v35 = vadd.f32 %v14085_v46, %v7748_v47  ;;  %v7749_v55 = vmul.f32 %v14073_v25, %v7547_v26 }
 0x5a8   : > { %v7817_v5 = vadd.f32 %v14085_v46, %v7746_v49  ;;  %v7747_v40 = vmul.f32 %v14073_v25, %v7545_v28  ;;  %v10632_v18 = vpop.f32.mrb[88].mxu1  ;;  %10782 = vmatprep.mubr.bf16.mxu1 %v7925_v42  ;;  %v15442_v49 = vld [vmem:[#allocation142_spill] sm:$0xff] }
 0x5a9   : > { %v7820_v41 = vadd.f32 %v14085_v46, %v7749_v55  ;;  %v6996_v3 = vadd.f32 %v10632_v18, %v15435_v36  ;;  %v6859_v54 = vpop.f32.mrb[89].mxu1  ;;  %10783 = vmatmul.mubr.bf16.gmra.mrb[144].mxu1 %v7926_v6  ;;  %v7883_v12 = vmax.f32 %v7819_v35, 0.0 }
 0x5aa   : > { %v7818_v1 = vadd.f32 %v14085_v46, %v7747_v40  ;;  %v6994_v0 = vadd.f32 %v6859_v54, %v15436_v50  ;;  %v10633_v51 = vpop.f32.mrb[90].mxu1  ;;  %v7881_v22 = vmax.f32 %v7817_v5, 0.0  ;;  %v15443_v40 = vld [vmem:[#allocation20_spill] sm:$0xff]  ;;  %v15444_v50 = vld [vmem:[#allocation114_spill] sm:$0xff] }
 0x5ab   : > { %v7884_v8 = vmax.f32 %v7820_v41, 0.0  ;;  %v7550_v20 = vadd.f32 %v13999_v61, %v6996_v3  ;;  %v6997_v21 = vadd.f32 %v10633_v51, %v15437_v17  ;;  %v6862_v16 = vpop.f32.mrb[91].mxu1 }
 0x5ac   : > { %v7882_v58 = vmax.f32 %v7818_v1, 0.0  ;;  %v7548_v4 = vadd.f32 %v14005_v30, %v6994_v0  ;;  %v6995_v39 = vadd.f32 %v6862_v16, %v15438_v43  ;;  %v15446_v16 = vld [vmem:[#allocation23_spill] sm:$0xff] }
 0x5ad   : > { %v7928_v53 = vpack.c.bf16 %v7884_v8, %v7883_v12  ;;  %v7752_v38 = vmul.f32 %v14073_v25, %v7550_v20  ;;  %v7551_v48 = vadd.f32 %v14011_v59, %v6997_v21  ;;  %v15445_v12 = vld [vmem:[#allocation159_spill] sm:$0xff] }
 0x5ae   : > { %v7750_v34 = vmul.f32 %v14073_v25, %v7548_v4  ;;  %v7549_v45 = vadd.f32 %v14016_v56, %v6995_v39  ;;  %v7927_v11 = vpack.c.bf16 %v7882_v58, %v7881_v22  ;;  %v15440_v56 = vld [vmem:[#allocation19_spill] sm:$0xff]  ;;  %v15447_v58 = vld [vmem:[#allocation26_spill] sm:$0xff] }
 0x5af   : > { %v7823_v61 = vadd.f32 %v14085_v46, %v7752_v38  ;;  %v7753_v10 = vmul.f32 %v14073_v25, %v7551_v48  ;;  %v15448_v38 = vld [vmem:[#allocation21_spill] sm:$0xff] }
 0x5b0   : > { %v7821_v57 = vadd.f32 %v14085_v46, %v7750_v34  ;;  %v7751_v30 = vmul.f32 %v14073_v25, %v7549_v45  ;;  %v10636_v63 = vpop.f32.mrb[92].mxu1  ;;  %10786 = vmatprep.mubr.bf16.mxu1 %v7927_v11  ;;  %v15449_v34 = vld [vmem:[#allocation161_spill] sm:$0xff] }
 0x5b1   : > { %v7824_v33 = vadd.f32 %v14085_v46, %v7753_v10  ;;  %v7000_v60 = vadd.f32 %v10636_v63, %v15439_v15  ;;  %v6875_v59 = vpop.f32.mrb[93].mxu1  ;;  %10787 = vmatmul.mubr.bf16.gmra.mrb[148].mxu1 %v7928_v53  ;;  %v7887_v62 = vmax.f32 %v7823_v61, 0.0  ;;  %v15450_v10 = vld [vmem:[#allocation175_spill] sm:$0xff]  ;;  %v15451_v63 = vld [vmem:[#allocation177_spill] sm:$0xff] }
 0x5b2   : > { %v7822_v24 = vadd.f32 %v14085_v46, %v7751_v30  ;;  %v6998_v9 = vadd.f32 %v6875_v59, %v15440_v56  ;;  %v10637_v52 = vpop.f32.mrb[94].mxu1  ;;  %v7885_v6 = vmax.f32 %v7821_v57, 0.0 }
 0x5b3   : > { %v7888_v44 = vmax.f32 %v7824_v33, 0.0  ;;  %v7554_v2 = vadd.f32 %v14023_v14, %v7000_v60  ;;  %v7001_v27 = vadd.f32 %v10637_v52, %v15441_v32  ;;  %v6878_v13 = vpop.f32.mrb[95].mxu1 }
 0x5b4   : > { %v7886_v47 = vmax.f32 %v7822_v24, 0.0  ;;  %v7552_v26 = vadd.f32 %v14029_v23, %v6998_v9  ;;  %v6999_v28 = vadd.f32 %v6878_v13, %v15442_v49  ;;  %v15454_v49 = vld [vmem:[#allocation74_spill] sm:$0xff] }
 0x5b5   : > { %v7930_v42 = vpack.c.bf16 %v7888_v44, %v7887_v62  ;;  %v7756_v35 = vmul.f32 %v14073_v25, %v7554_v2  ;;  %v7555_v55 = vadd.f32 %v14035_v31, %v7001_v27  ;;  %v15452_v62 = vld [vmem:[#allocation135_spill] sm:$0xff]  ;;  %v15453_v27 = vld [vmem:[#allocation72_spill] sm:$0xff] }
 0x5b6   : > { %v7754_v5 = vmul.f32 %v14073_v25, %v7552_v26  ;;  %v7553_v18 = vadd.f32 %v15443_v40, %v6999_v28  ;;  %v7929_v41 = vpack.c.bf16 %v7886_v47, %v7885_v6 }
 0x5b7   : > { %v7827_v14 = vadd.f32 %v14085_v46, %v7756_v35  ;;  %v7757_v36 = vmul.f32 %v14073_v25, %v7555_v55 }
 0x5b8   : > { %v7825_v3 = vadd.f32 %v14085_v46, %v7754_v5  ;;  %v7755_v23 = vmul.f32 %v14073_v25, %v7553_v18  ;;  %v10640_v54 = vpop.f32.mrb[96].mxu1  ;;  %10790 = vmatprep.mubr.bf16.mxu1 %v7929_v41  ;;  %v15456_v18 = vld [vmem:[#allocation75_spill] sm:$0xff] }
 0x5b9   : > { %v7828_v1 = vadd.f32 %v14085_v46, %v7757_v36  ;;  %v7004_v0 = vadd.f32 %v10640_v54, %v15444_v50  ;;  %v6891_v31 = vpop.f32.mrb[97].mxu1  ;;  %10791 = vmatmul.mubr.bf16.gmra.mrb[152].mxu1 %v7930_v42  ;;  %v7891_v17 = vmax.f32 %v7827_v14, 0.0  ;;  %v15455_v42 = vld [vmem:[#allocation73_spill] sm:$0xff]  ;;  %v15457_v14 = vld [vmem:[#allocation118_spill] sm:$0xff] }
 0x5ba   : > { %v7826_v51 = vadd.f32 %v14085_v46, %v7755_v23  ;;  %v7002_v8 = vadd.f32 %v6891_v31, %v15445_v12  ;;  %v10641_v20 = vpop.f32.mrb[98].mxu1  ;;  %v7889_v39 = vmax.f32 %v7825_v3, 0.0  ;;  %v15458_v54 = vld [vmem:[#allocation125_spill] sm:$0xff] }
 0x5bb   : > { %v7892_v21 = vmax.f32 %v7828_v1, 0.0  ;;  %v7558_v22 = vadd.f32 %v15446_v16, %v7004_v0  ;;  %v7005_v4 = vadd.f32 %v10641_v20, %v15447_v58  ;;  %v6894_v43 = vpop.f32.mrb[99].mxu1  ;;  %v15459_v0 = vld [vmem:[#allocation29_spill] sm:$0xff] }
 0x5bc   : > { %v7890_v53 = vmax.f32 %v7826_v51, 0.0  ;;  %v7556_v48 = vadd.f32 %v15448_v38, %v7002_v8  ;;  %v7003_v45 = vadd.f32 %v6894_v43, %v15449_v34 }
 0x5bd   : > { %v7932_v11 = vpack.c.bf16 %v7892_v21, %v7891_v17  ;;  %v7760_v61 = vmul.f32 %v14073_v25, %v7558_v22  ;;  %v7559_v57 = vadd.f32 %v15450_v10, %v7005_v4  ;;  %v15460_v22 = vld [vmem:[#allocation166_spill] sm:$0xff] }
 0x5be   : > { %v7758_v30 = vmul.f32 %v14073_v25, %v7556_v48  ;;  %v7557_v33 = vadd.f32 %v15451_v63, %v7003_v45  ;;  %v7931_v15 = vpack.c.bf16 %v7890_v53, %v7889_v39  ;;  %v15461_v39 = vld [vmem:[#allocation128_spill] sm:$0xff] }
 0x5bf   : > { %v7831_v60 = vadd.f32 %v14085_v46, %v7760_v61  ;;  %v7761_v59 = vmul.f32 %v14073_v25, %v7559_v57 }
 0x5c0   : > { %v7829_v24 = vadd.f32 %v14085_v46, %v7758_v30  ;;  %v7759_v56 = vmul.f32 %v14073_v25, %v7557_v33  ;;  %v10644_v9 = vpop.f32.mrb[100].mxu1  ;;  %10794 = vmatprep.mubr.bf16.mxu1 %v7931_v15  ;;  %v15463_v33 = vld [vmem:[#allocation119_spill] sm:$0xff] }
 0x5c1   : > { %v7832_v52 = vadd.f32 %v14085_v46, %v7761_v59  ;;  %v7008_v44 = vadd.f32 %v10644_v9, %v15452_v62  ;;  %v6907_v2 = vpop.f32.mrb[101].mxu1  ;;  %10795 = vmatmul.mubr.bf16.gmra.mrb[156].mxu1 %v7932_v11  ;;  %v7895_v47 = vmax.f32 %v7831_v60, 0.0  ;;  %v15462_v11 = vld [vmem:[#allocation168_spill] sm:$0xff] }
 0x5c2   : > { %v7830_v32 = vadd.f32 %v14085_v46, %v7759_v56  ;;  %v7006_v13 = vadd.f32 %v6907_v2, %v15453_v27  ;;  %v10645_v6 = vpop.f32.mrb[102].mxu1  ;;  %v7893_v5 = vmax.f32 %v7829_v24, 0.0  ;;  %v15464_v9 = vld [vmem:[#allocation184_spill] sm:$0xff] }
 0x5c3   : > { %v7896_v26 = vmax.f32 %v7832_v52, 0.0  ;;  %v7562_v28 = vadd.f32 %v15454_v49, %v7008_v44  ;;  %v7009_v35 = vadd.f32 %v10645_v6, %v15455_v42  ;;  %v6910_v55 = vpop.f32.mrb[103].mxu1 }
 0x5c4   : > { %v7894_v40 = vmax.f32 %v7830_v32, 0.0  ;;  %v7560_v41 = vadd.f32 %v15456_v18, %v7006_v13  ;;  %v7007_v36 = vadd.f32 %v6910_v55, %v15457_v14  ;;  %v15465_v13 = vld [vmem:[#allocation76_spill] sm:$0xff] }
 0x5c5   : > { %v7934_v3 = vpack.c.bf16 %v7896_v26, %v7895_v47  ;;  %v7764_v23 = vmul.f32 %v14073_v25, %v7562_v28  ;;  %v7563_v1 = vadd.f32 %v15458_v54, %v7009_v35  ;;  %v15466_v26 = vld [vmem:[#allocation77_spill] sm:$0xff] }
 0x5c6   : > { %v7762_v50 = vmul.f32 %v14073_v25, %v7560_v41  ;;  %v7561_v31 = vadd.f32 %v15459_v0, %v7007_v36  ;;  %v7933_v51 = vpack.c.bf16 %v7894_v40, %v7893_v5  ;;  %v15467_v5 = vld [vmem:[#allocation131_spill] sm:$0xff]  ;;  %v15468_v36 = vld [vmem:[#allocation24_spill] sm:$0xff] }
 0x5c7   : > { %v7835_v12 = vadd.f32 %v14085_v46, %v7764_v23  ;;  %v7765_v8 = vmul.f32 %v14073_v25, %v7563_v1  ;;  %v15469_v23 = vld [vmem:[#allocation121_spill] sm:$0xff]  ;;  %v15470_v0 = vld [vmem:[#allocation127_spill] sm:$0xff] }
 0x5c8   : > { %v7833_v20 = vadd.f32 %v14085_v46, %v7762_v50  ;;  %v7763_v17 = vmul.f32 %v14073_v25, %v7561_v31  ;;  %v10648_v21 = vpop.f32.mrb[104].mxu1  ;;  %10798 = vmatprep.mubr.bf16.mxu1 %v7933_v51 }
 0x5c9   : > { %v7836_v16 = vadd.f32 %v14085_v46, %v7765_v8  ;;  %v7012_v58 = vadd.f32 %v10648_v21, %v15460_v22  ;;  %v6923_v4 = vpop.f32.mrb[105].mxu1  ;;  %10799 = vmatmul.mubr.bf16.gmra.mrb[160].mxu1 %v7934_v3  ;;  %v7899_v48 = vmax.f32 %v7835_v12, 0.0  ;;  %v15471_v12 = vld [vmem:[#allocation27_spill] sm:$0xff] }
 0x5ca   : > { %v7834_v43 = vadd.f32 %v14085_v46, %v7763_v17  ;;  %v7010_v53 = vadd.f32 %v6923_v4, %v15461_v39  ;;  %v10649_v38 = vpop.f32.mrb[106].mxu1  ;;  %v7897_v57 = vmax.f32 %v7833_v20, 0.0 }
 0x5cb   : > { %v7900_v34 = vmax.f32 %v7836_v16, 0.0  ;;  %v7566_v45 = vadd.f32 %v14105_v37, %v7012_v58  ;;  %v7013_v61 = vadd.f32 %v10649_v38, %v15462_v11  ;;  %v6926_v10 = vpop.f32.mrb[107].mxu1 }
 0x5cc   : > { %v7898_v30 = vmax.f32 %v7834_v43, 0.0  ;;  %v7564_v63 = vadd.f32 %v14109_v29, %v7010_v53  ;;  %v7011_v15 = vadd.f32 %v6926_v10, %v15463_v33 }
 0x5cd   : > { %v7936_v60 = vpack.c.bf16 %v7900_v34, %v7899_v48  ;;  %v7768_v59 = vmul.f32 %v14073_v25, %v7566_v45  ;;  %v7567_v24 = vadd.f32 %v14113_v7, %v7013_v61 }
 0x5ce   : > { %v7766_v56 = vmul.f32 %v14073_v25, %v7564_v63  ;;  %v7565_v52 = vadd.f32 %v15464_v9, %v7011_v15  ;;  %v7935_v62 = vpack.c.bf16 %v7898_v30, %v7897_v57 }
 0x5cf   : > { %v7839_v37 = vadd.f32 %v14085_v46, %v7768_v59  ;;  %v7769_v44 = vmul.f32 %v14073_v25, %v7567_v24 }
 0x5d0   : > { %v7837_v2 = vadd.f32 %v14085_v46, %v7766_v56  ;;  %v7767_v29 = vmul.f32 %v14073_v25, %v7565_v52  ;;  %v10652_v32 = vpop.f32.mrb[108].mxu1  ;;  %10802 = vmatprep.mubr.bf16.mxu1 %v7935_v62 }
 0x5d1   : > { %v7840_v27 = vadd.f32 %v14085_v46, %v7769_v44  ;;  %v7016_v6 = vadd.f32 %v10652_v32, %v15465_v13  ;;  %v6939_v7 = vpop.f32.mrb[109].mxu1  ;;  %10803 = vmatmul.mubr.bf16.gmra.mrb[164].mxu1 %v7936_v60  ;;  %v7903_v42 = vmax.f32 %v7839_v37, 0.0 }
 0x5d2   : > { %v7838_v47 = vadd.f32 %v14085_v46, %v7767_v29  ;;  %v7014_v49 = vadd.f32 %v6939_v7, %v15466_v26  ;;  %v10653_v28 = vpop.f32.mrb[110].mxu1  ;;  %v7901_v41 = vmax.f32 %v7837_v2, 0.0 }
 0x5d3   : > { %v7904_v35 = vmax.f32 %v7840_v27, 0.0  ;;  %v7570_v55 = vadd.f32 %v14129_v19, %v7016_v6  ;;  %v7017_v40 = vadd.f32 %v10653_v28, %v15467_v5  ;;  %v6942_v18 = vpop.f32.mrb[111].mxu1 }
 0x5d4   : > { %v7902_v14 = vmax.f32 %v7838_v47, 0.0  ;;  %v7568_v3 = vadd.f32 %v15468_v36, %v7014_v49  ;;  %v7015_v54 = vadd.f32 %v6942_v18, %v15469_v23 }
 0x5d5   : > { %v7938_v1 = vpack.c.bf16 %v7904_v35, %v7903_v42  ;;  %v7772_v50 = vmul.f32 %v14073_v25, %v7570_v55  ;;  %v7571_v31 = vadd.f32 %v15470_v0, %v7017_v40 }
 0x5d6   : > { %v7770_v51 = vmul.f32 %v14073_v25, %v7568_v3  ;;  %v7569_v8 = vadd.f32 %v15471_v12, %v7015_v54  ;;  %v7937_v20 = vpack.c.bf16 %v7902_v14, %v7901_v41 }
 0x5d7   : > { %v7843_v19 = vadd.f32 %v14085_v46, %v7772_v50  ;;  %v7773_v17 = vmul.f32 %v14073_v25, %v7571_v31 }
 0x5d8   : > { %v7841_v21 = vadd.f32 %v14085_v46, %v7770_v51  ;;  %v7771_v16 = vmul.f32 %v14073_v25, %v7569_v8  ;;  %10806 = vmatprep.mubr.bf16.mxu1 %v7937_v20  ;;  %v14362_v25 = vld [vmem:[%s14482_s7] ss:$0 sm:$0xff] }
 0x5d9   : > { %v7844_v22 = vadd.f32 %v14085_v46, %v7773_v17  ;;  %10807 = vmatmul.mubr.bf16.gmra.mrb[168].mxu1 %v7938_v1  ;;  %v7907_v4 = vmax.f32 %v7843_v19, 0.0 }
 0x5da   : > { %v7842_v58 = vadd.f32 %v14085_v46, %v7771_v16  ;;  %v7905_v39 = vmax.f32 %v7841_v21, 0.0 }
 0x5db   : > { %v7908_v43 = vmax.f32 %v7844_v22, 0.0 }
 0x5dc   : > { %v7906_v53 = vmax.f32 %v7842_v58, 0.0 }
 0x5dd   : > { %v7940_v38 = vpack.c.bf16 %v7908_v43, %v7907_v4 }
 0x5de   : > { %v7939_v48 = vpack.c.bf16 %v7906_v53, %v7905_v39 }
 0x5e0   : > { %10810 = vmatprep.mubr.bf16.mxu1 %v7939_v48 }
 0x5e1   : > { %10811 = vmatmul.mubr.bf16.gmra.mrb[172].mxu1 %v7940_v38 }
 0x63c   : > { %v10752_v34 = vpop.f32.mrb[112].mxu1 }
 0x63d   : > { %v8046_v45 = vpop.f32.mrb[113].mxu1  ;;  %v8055_v46 = vadd.f32 %v10752_v34, %v14362_v25 }
 0x63e   : > { %v10753_v11 = vpop.f32.mrb[114].mxu1  ;;  %v8047_v57 = vadd.f32 %v14362_v25, %v8046_v45 }
 0x63f   : > { %v8058_v61 = vadd.f32 %v10753_v11, %v14362_v25  ;;  %v8049_v10 = vpop.f32.mrb[115].mxu1 }
 0x640   : > { %v8050_v30 = vadd.f32 %v14362_v25, %v8049_v10 }
 0x641   : > { %v9329_v63 = vpack.c.bf16 %v8058_v61, %v8055_v46 }
 0x642   : > { %v9324_v33 = vpack.c.bf16 %v8050_v30, %v8047_v57 }
 0x643   : > { %9481 = vst [vmem:[%s11230_s27 + $0x8] sm:$0xff] %v9329_v63  }
 0x644   : > { %9325 = vst [vmem:[%s11230_s27] sm:$0xff] %v9324_v33   ;;  %v10756_v15 = vpop.f32.mrb[116].mxu1 }
 0x645   : > { %v8062_v60 = vpop.f32.mrb[117].mxu1  ;;  %v8071_v24 = vadd.f32 %v10756_v15, %v14362_v25 }
 0x646   : > { %v10757_v59 = vpop.f32.mrb[118].mxu1  ;;  %v8063_v52 = vadd.f32 %v14362_v25, %v8062_v60 }
 0x647   : > { %v8074_v56 = vadd.f32 %v10757_v59, %v14362_v25  ;;  %v8065_v9 = vpop.f32.mrb[119].mxu1 }
 0x648   : > { %v8066_v62 = vadd.f32 %v14362_v25, %v8065_v9 }
 0x649   : > { %v9339_v37 = vpack.c.bf16 %v8074_v56, %v8071_v24 }
 0x64a   : > { %v9334_v44 = vpack.c.bf16 %v8066_v62, %v8063_v52 }
 0x64b   : > { %9483 = vst [vmem:[%s11230_s27 + $0x18] sm:$0xff] %v9339_v37  }
 0x64c   : > { %9482 = vst [vmem:[%s11230_s27 + $0x10] sm:$0xff] %v9334_v44   ;;  %v10760_v2 = vpop.f32.mrb[120].mxu1 }
 0x64d   : > { %v8078_v29 = vpop.f32.mrb[121].mxu1  ;;  %v8087_v27 = vadd.f32 %v10760_v2, %v14362_v25 }
 0x64e   : > { %v10761_v32 = vpop.f32.mrb[122].mxu1  ;;  %v8079_v7 = vadd.f32 %v14362_v25, %v8078_v29 }
 0x64f   : > { %v8090_v13 = vadd.f32 %v10761_v32, %v14362_v25  ;;  %v8081_v6 = vpop.f32.mrb[123].mxu1 }
 0x650   : > { %v8082_v47 = vadd.f32 %v14362_v25, %v8081_v6 }
 0x651   : > { %v9349_v26 = vpack.c.bf16 %v8090_v13, %v8087_v27 }
 0x652   : > { %v9344_v49 = vpack.c.bf16 %v8082_v47, %v8079_v7 }
 0x653   : > { %9485 = vst [vmem:[%s11230_s27 + $0x28] sm:$0xff] %v9349_v26  }
 0x654   : > { %9484 = vst [vmem:[%s11230_s27 + $0x20] sm:$0xff] %v9344_v49   ;;  %v10764_v28 = vpop.f32.mrb[124].mxu1 }
 0x655   : > { %v8094_v42 = vpop.f32.mrb[125].mxu1  ;;  %v8103_v55 = vadd.f32 %v10764_v28, %v14362_v25 }
 0x656   : > { %v10765_v35 = vpop.f32.mrb[126].mxu1  ;;  %v8095_v18 = vadd.f32 %v14362_v25, %v8094_v42 }
 0x657   : > { %v8106_v5 = vadd.f32 %v10765_v35, %v14362_v25  ;;  %v8097_v40 = vpop.f32.mrb[127].mxu1 }
 0x658   : > { %v8098_v41 = vadd.f32 %v14362_v25, %v8097_v40 }
 0x659   : > { %v9359_v14 = vpack.c.bf16 %v8106_v5, %v8103_v55 }
 0x65a   : > { %v9354_v36 = vpack.c.bf16 %v8098_v41, %v8095_v18 }
 0x65b   : > { %9487 = vst [vmem:[%s11230_s27 + $0x38] sm:$0xff] %v9359_v14  }
 0x65c   : > { %9486 = vst [vmem:[%s11230_s27 + $0x30] sm:$0xff] %v9354_v36   ;;  %v10768_v3 = vpop.f32.mrb[128].mxu1 }
 0x65d   : > { %v8110_v23 = vpop.f32.mrb[129].mxu1  ;;  %v8119_v1 = vadd.f32 %v10768_v3, %v14362_v25 }
 0x65e   : > { %v10769_v54 = vpop.f32.mrb[130].mxu1  ;;  %v8111_v31 = vadd.f32 %v14362_v25, %v8110_v23 }
 0x65f   : > { %v8122_v50 = vadd.f32 %v10769_v54, %v14362_v25  ;;  %v8113_v0 = vpop.f32.mrb[131].mxu1 }
 0x660   : > { %v8114_v51 = vadd.f32 %v14362_v25, %v8113_v0 }
 0x661   : > { %v9369_v12 = vpack.c.bf16 %v8122_v50, %v8119_v1 }
 0x662   : > { %v9364_v8 = vpack.c.bf16 %v8114_v51, %v8111_v31 }
 0x663   : > { %9489 = vst [vmem:[%s11230_s27 + $0x48] sm:$0xff] %v9369_v12  }
 0x664   : > { %9488 = vst [vmem:[%s11230_s27 + $0x40] sm:$0xff] %v9364_v8   ;;  %v10772_v20 = vpop.f32.mrb[132].mxu1 }
 0x665   : > { %v8126_v19 = vpop.f32.mrb[133].mxu1  ;;  %v8135_v21 = vadd.f32 %v10772_v20, %v14362_v25 }
 0x666   : > { %v10773_v17 = vpop.f32.mrb[134].mxu1  ;;  %v8127_v58 = vadd.f32 %v14362_v25, %v8126_v19 }
 0x667   : > { %v8138_v16 = vadd.f32 %v10773_v17, %v14362_v25  ;;  %v8129_v22 = vpop.f32.mrb[135].mxu1 }
 0x668   : > { %v8130_v4 = vadd.f32 %v14362_v25, %v8129_v22 }
 0x669   : > { %v9379_v43 = vpack.c.bf16 %v8138_v16, %v8135_v21 }
 0x66a   : > { %v9374_v39 = vpack.c.bf16 %v8130_v4, %v8127_v58 }
 0x66b   : > { %9491 = vst [vmem:[%s11230_s27 + $0x58] sm:$0xff] %v9379_v43  }
 0x66c   : > { %9490 = vst [vmem:[%s11230_s27 + $0x50] sm:$0xff] %v9374_v39   ;;  %v10776_v53 = vpop.f32.mrb[136].mxu1 }
 0x66d   : > { %v8142_v38 = vpop.f32.mrb[137].mxu1  ;;  %v8151_v34 = vadd.f32 %v10776_v53, %v14362_v25 }
 0x66e   : > { %v10777_v48 = vpop.f32.mrb[138].mxu1  ;;  %v8143_v46 = vadd.f32 %v14362_v25, %v8142_v38 }
 0x66f   : > { %v8154_v45 = vadd.f32 %v10777_v48, %v14362_v25  ;;  %v8145_v11 = vpop.f32.mrb[139].mxu1 }
 0x670   : > { %v8146_v61 = vadd.f32 %v14362_v25, %v8145_v11 }
 0x671   : > { %v9389_v10 = vpack.c.bf16 %v8154_v45, %v8151_v34 }
 0x672   : > { %v9384_v57 = vpack.c.bf16 %v8146_v61, %v8143_v46 }
 0x673   : > { %9493 = vst [vmem:[%s11230_s27 + $0x68] sm:$0xff] %v9389_v10  }
 0x674   : > { %9492 = vst [vmem:[%s11230_s27 + $0x60] sm:$0xff] %v9384_v57   ;;  %v10780_v30 = vpop.f32.mrb[140].mxu1 }
 0x675   : > { %v8158_v63 = vpop.f32.mrb[141].mxu1  ;;  %v8167_v15 = vadd.f32 %v10780_v30, %v14362_v25 }
 0x676   : > { %v10781_v33 = vpop.f32.mrb[142].mxu1  ;;  %v8159_v24 = vadd.f32 %v14362_v25, %v8158_v63 }
 0x677   : > { %v8170_v60 = vadd.f32 %v10781_v33, %v14362_v25  ;;  %v8161_v59 = vpop.f32.mrb[143].mxu1 }
 0x678   : > { %v8162_v56 = vadd.f32 %v14362_v25, %v8161_v59 }
 0x679   : > { %v9399_v9 = vpack.c.bf16 %v8170_v60, %v8167_v15 }
 0x67a   : > { %v9394_v52 = vpack.c.bf16 %v8162_v56, %v8159_v24 }
 0x67b   : > { %9495 = vst [vmem:[%s11230_s27 + $0x78] sm:$0xff] %v9399_v9  }
 0x67c   : > { %9494 = vst [vmem:[%s11230_s27 + $0x70] sm:$0xff] %v9394_v52   ;;  %v10784_v62 = vpop.f32.mrb[144].mxu1 }
 0x67d   : > { %v8174_v37 = vpop.f32.mrb[145].mxu1  ;;  %v8183_v2 = vadd.f32 %v10784_v62, %v14362_v25 }
 0x67e   : > { %v10785_v44 = vpop.f32.mrb[146].mxu1  ;;  %v8175_v27 = vadd.f32 %v14362_v25, %v8174_v37 }
 0x67f   : > { %v8186_v29 = vadd.f32 %v10785_v44, %v14362_v25  ;;  %v8177_v32 = vpop.f32.mrb[147].mxu1 }
 0x680   : > { %v8178_v13 = vadd.f32 %v14362_v25, %v8177_v32 }
 0x681   : > { %v9409_v6 = vpack.c.bf16 %v8186_v29, %v8183_v2 }
 0x682   : > { %v9404_v7 = vpack.c.bf16 %v8178_v13, %v8175_v27 }
 0x683   : > { %9497 = vst [vmem:[%s11230_s27 + $0x88] sm:$0xff] %v9409_v6  }
 0x684   : > { %9496 = vst [vmem:[%s11230_s27 + $0x80] sm:$0xff] %v9404_v7   ;;  %v10788_v47 = vpop.f32.mrb[148].mxu1 }
 0x685   : > { %v8190_v26 = vpop.f32.mrb[149].mxu1  ;;  %v8199_v28 = vadd.f32 %v10788_v47, %v14362_v25 }
 0x686   : > { %v10789_v49 = vpop.f32.mrb[150].mxu1  ;;  %v8191_v55 = vadd.f32 %v14362_v25, %v8190_v26 }
 0x687   : > { %v8202_v42 = vadd.f32 %v10789_v49, %v14362_v25  ;;  %v8193_v35 = vpop.f32.mrb[151].mxu1 }
 0x688   : > { %v8194_v5 = vadd.f32 %v14362_v25, %v8193_v35 }
 0x689   : > { %v9419_v40 = vpack.c.bf16 %v8202_v42, %v8199_v28 }
 0x68a   : > { %v9414_v18 = vpack.c.bf16 %v8194_v5, %v8191_v55 }
 0x68b   : > { %9499 = vst [vmem:[%s11230_s27 + $0x98] sm:$0xff] %v9419_v40  }
 0x68c   : > { %9498 = vst [vmem:[%s11230_s27 + $0x90] sm:$0xff] %v9414_v18   ;;  %v10792_v41 = vpop.f32.mrb[152].mxu1 }
 0x68d   : > { %v8206_v14 = vpop.f32.mrb[153].mxu1  ;;  %v8215_v3 = vadd.f32 %v10792_v41, %v14362_v25 }
 0x68e   : > { %v10793_v36 = vpop.f32.mrb[154].mxu1  ;;  %v8207_v1 = vadd.f32 %v14362_v25, %v8206_v14 }
 0x68f   : > { %v8218_v23 = vadd.f32 %v10793_v36, %v14362_v25  ;;  %v8209_v54 = vpop.f32.mrb[155].mxu1 }
 0x690   : > { %v8210_v50 = vadd.f32 %v14362_v25, %v8209_v54 }
 0x691   : > { %v9429_v0 = vpack.c.bf16 %v8218_v23, %v8215_v3 }
 0x692   : > { %v9424_v31 = vpack.c.bf16 %v8210_v50, %v8207_v1 }
 0x693   : > { %9501 = vst [vmem:[%s11230_s27 + $0xa8] sm:$0xff] %v9429_v0  }
 0x694   : > { %9500 = vst [vmem:[%s11230_s27 + $0xa0] sm:$0xff] %v9424_v31   ;;  %v10796_v51 = vpop.f32.mrb[156].mxu1 }
 0x695   : > { %v8222_v12 = vpop.f32.mrb[157].mxu1  ;;  %v8231_v20 = vadd.f32 %v10796_v51, %v14362_v25 }
 0x696   : > { %v10797_v8 = vpop.f32.mrb[158].mxu1  ;;  %v8223_v21 = vadd.f32 %v14362_v25, %v8222_v12 }
 0x697   : > { %v8234_v19 = vadd.f32 %v10797_v8, %v14362_v25  ;;  %v8225_v17 = vpop.f32.mrb[159].mxu1 }
 0x698   : > { %v8226_v16 = vadd.f32 %v14362_v25, %v8225_v17 }
 0x699   : > { %v9439_v22 = vpack.c.bf16 %v8234_v19, %v8231_v20 }
 0x69a   : > { %v9434_v58 = vpack.c.bf16 %v8226_v16, %v8223_v21 }
 0x69b   : > { %9503 = vst [vmem:[%s11230_s27 + $0xb8] sm:$0xff] %v9439_v22  }
 0x69c   : > { %9502 = vst [vmem:[%s11230_s27 + $0xb0] sm:$0xff] %v9434_v58   ;;  %v10800_v4 = vpop.f32.mrb[160].mxu1 }
 0x69d   : > { %v8238_v43 = vpop.f32.mrb[161].mxu1  ;;  %v8247_v53 = vadd.f32 %v10800_v4, %v14362_v25 }
 0x69e   : > { %v10801_v39 = vpop.f32.mrb[162].mxu1  ;;  %v8239_v34 = vadd.f32 %v14362_v25, %v8238_v43 }
 0x69f   : > { %v8250_v38 = vadd.f32 %v10801_v39, %v14362_v25  ;;  %v8241_v48 = vpop.f32.mrb[163].mxu1 }
 0x6a0   : > { %v8242_v45 = vadd.f32 %v14362_v25, %v8241_v48 }
 0x6a1   : > { %v9449_v11 = vpack.c.bf16 %v8250_v38, %v8247_v53 }
 0x6a2   : > { %v9444_v46 = vpack.c.bf16 %v8242_v45, %v8239_v34 }
 0x6a3   : > { %9505 = vst [vmem:[%s11230_s27 + $0xc8] sm:$0xff] %v9449_v11  }
 0x6a4   : > { %9504 = vst [vmem:[%s11230_s27 + $0xc0] sm:$0xff] %v9444_v46   ;;  %v10804_v61 = vpop.f32.mrb[164].mxu1 }
 0x6a5   : > { %v8254_v10 = vpop.f32.mrb[165].mxu1  ;;  %v8263_v30 = vadd.f32 %v10804_v61, %v14362_v25 }
 0x6a6   : > { %v10805_v57 = vpop.f32.mrb[166].mxu1  ;;  %v8255_v15 = vadd.f32 %v14362_v25, %v8254_v10 }
 0x6a7   : > { %v8266_v63 = vadd.f32 %v10805_v57, %v14362_v25  ;;  %v8257_v33 = vpop.f32.mrb[167].mxu1 }
 0x6a8   : > { %v8258_v60 = vadd.f32 %v14362_v25, %v8257_v33 }
 0x6a9   : > { %v9459_v59 = vpack.c.bf16 %v8266_v63, %v8263_v30 }
 0x6aa   : > { %v9454_v24 = vpack.c.bf16 %v8258_v60, %v8255_v15 }
 0x6ab   : > { %9507 = vst [vmem:[%s11230_s27 + $0xd8] sm:$0xff] %v9459_v59  }
 0x6ac   : > { %9506 = vst [vmem:[%s11230_s27 + $0xd0] sm:$0xff] %v9454_v24   ;;  %v10808_v56 = vpop.f32.mrb[168].mxu1 }
 0x6ad   : > { %v8270_v9 = vpop.f32.mrb[169].mxu1  ;;  %v8279_v62 = vadd.f32 %v10808_v56, %v14362_v25 }
 0x6ae   : > { %v10809_v52 = vpop.f32.mrb[170].mxu1  ;;  %v8271_v2 = vadd.f32 %v14362_v25, %v8270_v9 }
 0x6af   : > { %v8282_v37 = vadd.f32 %v10809_v52, %v14362_v25  ;;  %v8273_v44 = vpop.f32.mrb[171].mxu1 }
 0x6b0   : > { %v8274_v29 = vadd.f32 %v14362_v25, %v8273_v44 }
 0x6b1   : > { %v9469_v32 = vpack.c.bf16 %v8282_v37, %v8279_v62 }
 0x6b2   : > { %v9464_v27 = vpack.c.bf16 %v8274_v29, %v8271_v2 }
 0x6b3   : > { %9509 = vst [vmem:[%s11230_s27 + $0xe8] sm:$0xff] %v9469_v32  }
 0x6b4   : > { %9508 = vst [vmem:[%s11230_s27 + $0xe0] sm:$0xff] %v9464_v27   ;;  %v10812_v13 = vpop.f32.mrb[172].mxu1 }
 0x6b5   : > { %v8286_v6 = vpop.f32.mrb[173].mxu1  ;;  %v8295_v47 = vadd.f32 %v10812_v13, %v14362_v25 }
 0x6b6   : > { %v10813_v7 = vpop.f32.mrb[174].mxu1  ;;  %v8287_v28 = vadd.f32 %v14362_v25, %v8286_v6 }
 0x6b7   : > { %v8298_v26 = vadd.f32 %v10813_v7, %v14362_v25  ;;  %v8289_v49 = vpop.f32.mrb[175].mxu1 }
 0x6b8   : > { %v8290_v42 = vadd.f32 %v14362_v25, %v8289_v49 }
 0x6b9   : > { %v9479_v35 = vpack.c.bf16 %v8298_v26, %v8295_v47 }
 0x6ba   : > { %v9474_v55 = vpack.c.bf16 %v8290_v42, %v8287_v28 }
 0x6bb   : > { %9511 = vst [vmem:[%s11230_s27 + $0xf8] sm:$0xff] %v9479_v35  }
 0x6bc   : > { %9510 = vst [vmem:[%s11230_s27 + $0xf0] sm:$0xff] %v9474_v55  }
 0x6bd PF: > { %s18_s9 = sadd.s32 1, %s11130_s9   ;;  %s15472_s27 = sld [smem:[#allocation8_spill]] }
 0x6be   : > { %p15_p7 = scmp.ge.s32.totalorder %s18_s9, 6   ;;  %s15473_s28 = sld [smem:[#allocation9_spill]] }
 0x6bf   : > { %s15474_s29 = sld [smem:[#allocation10_spill]]  ;;  %s15475_s30 = sld [smem:[#allocation11_spill]] }
 0x6c0   :  { %17 = sbr.rel (!%p15_p7) target bundleno = 3 (0x3), region = 196 }
 0x6c7   :  { %8651 = vsyncmov [#allocation3] }
 0x6ca   :  { %s8652_s17 = vpop.sfrf %8651 }
 0x6cb   :  { %p9255_p8 = scmp.ne.s32.totalorder %s8652_s17, 0 }
 0x6cd   :  { %8656 = shalt.err (%p9255_p8)  }
 0x6ce   :  { %8658 = vsyncmov [#allocation3 + $0x1] }
 0x6d1   :  { %s8659_s18 = vpop.sfrf %8658 }
 0x6d2   :  { %p9256_p9 = scmp.ne.s32.totalorder %s8659_s18, 0 }
 0x6d4   :  { %8663 = shalt.err (%p9256_p9)  }

</bundles_post_ra>
